<compile_context>
chip_gen: v7x
topology: tpu7x:2x2x1
jax: 0.10.0
libtpu: 0.0.40
codegen_flags: <defaults>
</compile_context>

<pallas_src>
import functools
import math

import jax
import jax.numpy as jnp
from jax.experimental import pallas as pl
from jax.experimental.pallas import tpu as pltpu


# -----------------------------------------------------------------------------
# elementwise helpers (ops with guaranteed Mosaic lowering, all f32)
# -----------------------------------------------------------------------------
def _sigmoid(x):
  return 1.0 / (1.0 + jnp.exp(-x))


def _gelu_tanh(x):
  # gelu(approximate="tanh") -- used inside the recurrentgemma-style LRU block.
  c = math.sqrt(2.0 / math.pi)
  return 0.5 * x * (1.0 + jnp.tanh(c * (x + 0.044715 * x * x * x)))


def _erf(x):
  # Abramowitz & Stegun 7.1.26, |err| < 1.5e-7 (fp32-roundoff level).
  a1, a2, a3, a4, a5 = (0.254829592, -0.284496736, 1.421413741,
                        -1.453152027, 1.061405429)
  p = 0.3275911
  ax = jnp.abs(x)
  t = 1.0 / (1.0 + p * ax)
  poly = t * (a1 + t * (a2 + t * (a3 + t * (a4 + t * a5))))
  y = 1.0 - poly * jnp.exp(-ax * ax)
  return jnp.where(x >= 0.0, y, -y)


def _gelu_exact(x):
  # torch.nn.GELU() (erf based), used by the torchvision ViT MLP block.
  return 0.5 * x * (1.0 + _erf(x * 0.7071067811865476))


def _full_spec(arr):
  nd = arr.ndim
  return pl.BlockSpec(arr.shape, lambda *args, nd=nd: (0,) * nd)


# -----------------------------------------------------------------------------
# fused TRecViTBlock kernel: SSM (RG-LRU residual block) + ViT EncoderBlock
# -----------------------------------------------------------------------------
def _trecvit_kernel(
    x_ref,
    # --- SSM params ---
    tns, wy, by, wx, bx, convw, convb, sp_a,
    igw, igb, agw, agb, wout, bout, cns,
    up_wg, up_bg, up_wl, up_bl, down_w, down_b,
    # --- ViT params ---
    ln1g, ln1b, wq, bq, wk, bk, wv, bv, wo, bo,
    ln2g, ln2b, w1, b1, w2, b2,
    # --- outputs ---
    y_ref, state_ref, *, num_heads):
  _, t_len, n_tok, c = x_ref.shape
  lw = wy.shape[1]
  rows = t_len * n_tok                       # row index r = t*N + n

  def mm(x_f32, w_ref):
    # bf16 MXU operands, f32 accumulation; weights were cast to bf16 in wrapper.
    return jnp.dot(x_f32.astype(jnp.bfloat16), w_ref[...],
                   preferred_element_type=jnp.float32)

  raw = x_ref[...].astype(jnp.float32).reshape(rows, c)

  # ================= SSM residual block =================
  # temporal pre-norm (RMSNorm, uses (scale + 1), eps=1e-6)
  var = jnp.mean(raw * raw, axis=-1, keepdims=True)
  xn = raw * jax.lax.rsqrt(var + 1e-6) * (tns[...] + 1.0)

  ybr = _gelu_tanh(mm(xn, wy) + by[...])          # gate branch   (rows, L)
  xb = mm(xn, wx) + bx[...]                       # x branch      (rows, L)
  xb3 = xb.reshape(t_len, n_tok, lw)

  # causal depthwise conv1d (temporal_width=4, zero left pad, cache=None):
  #   conv_t = sum_j cw[j] * x_{t-3+j}   i.e. cw[3]*x_t + cw[2]*x_{t-1} + ...
  cw = convw[...]
  xpad = jnp.concatenate(
      [jnp.zeros((3, n_tok, lw), jnp.float32), xb3], axis=0)
  conv3 = convb[...].reshape(1, 1, lw)
  for j in range(4):
    conv3 = conv3 + cw[j][None, None, :] * xpad[j:j + t_len]
  conv2 = conv3.reshape(rows, lw)

  # RG-LRU gates. NOTE: block-diagonal gate weights are densified to (L, L)
  # in the wrapper -- negligible at L=32, O(L^2/H) wasted FLOPs/DMA at large L.
  gate_x = _sigmoid(mm(conv2, igw) + igb[...])
  gate_a = _sigmoid(mm(conv2, agw) + agb[...])
  log_a = -8.0 * gate_a * sp_a[...]               # sp_a = softplus(a_param)
  a = jnp.exp(log_a)
  mult = jnp.sqrt(1.0 - jnp.exp(2.0 * log_a))
  gated = conv2 * gate_x
  nx = gated * mult

  a3 = a.reshape(t_len, n_tok, lw)
  nx3 = nx.reshape(t_len, n_tok, lw)
  g3 = gated.reshape(t_len, n_tok, lw)
  ybr3 = ybr.reshape(t_len, n_tok, lw)

  # linear scan h_t = a_t * h_{t-1} + nx_t, register-resident (T small/static).
  # t==0 is the segment start (cache=None): a=0, multiplier=1 -> h_0 = gated_0.
  h = g3[0]
  ys = [h * ybr3[0]]
  for ti in range(1, t_len):
    h = a3[ti] * h + nx3[ti]
    ys.append(h * ybr3[ti])
  rec = jnp.concatenate(ys, axis=0)               # (rows, L), t-major order

  # packed cache state, lane-dense (N, 4L)=(16,128): [x_{T-3}, x_{T-2}, x_{T-1}, h]
  state = jnp.concatenate(
      [xb3[t_len - 3], xb3[t_len - 2], xb3[t_len - 1], h], axis=-1)
  state_ref[...] = state.reshape(1, n_tok, 4 * lw)

  rec_out = mm(rec, wout) + bout[...]
  residual = rec_out + raw

  # channel pre-norm (RMSNorm) + gated MLP
  var2 = jnp.mean(residual * residual, axis=-1, keepdims=True)
  cn = residual * jax.lax.rsqrt(var2 + 1e-6) * (cns[...] + 1.0)
  gate_v = _gelu_tanh(mm(cn, up_wg) + up_bg[...])
  lin_v = mm(cn, up_wl) + up_bl[...]
  xs = mm(gate_v * lin_v, down_w) + down_b[...] + residual   # SSM output (rows, C)

  # ================= ViT encoder block =================
  # (b n) t c -> (b t) n c is free here: xs rows are already (t, n)-ordered,
  # so per-frame attention is just batching over the leading t axis.
  mu = jnp.mean(xs, axis=-1, keepdims=True)
  xc = xs - mu
  varl = jnp.mean(xc * xc, axis=-1, keepdims=True)
  xn1 = xc * jax.lax.rsqrt(varl + 1e-6) * ln1g[...] + ln1b[...]

  q = (mm(xn1, wq) + bq[...]).reshape(t_len, n_tok, c)
  k = (mm(xn1, wk) + bk[...]).reshape(t_len, n_tok, c)
  v = (mm(xn1, wv) + bv[...]).reshape(t_len, n_tok, c)

  hd = c // num_heads
  scale = 1.0 / math.sqrt(hd)
  wo_full = wo[...]                                # bf16 (C, C)
  attn_proj = jnp.zeros((rows, c), jnp.float32)
  # Heads are unrolled (H=4, static). Head outputs accumulate directly into the
  # output projection -> no lane-concatenate of heads. (A single 2-batch-dim
  # einsum over (t, h) would be ideal but risks Mosaic dot_general lowering at
  # head_dim=8, so we keep the safe per-head form.)
  for hh in range(num_heads):
    lo = hh * hd
    qh = (q[..., lo:lo + hd] * scale).astype(jnp.bfloat16)
    kh = k[..., lo:lo + hd].astype(jnp.bfloat16)
    vh = v[..., lo:lo + hd].astype(jnp.bfloat16)
    logits = jnp.einsum("tnd,tmd->tnm", qh, kh,
                        preferred_element_type=jnp.float32)
    m = jnp.max(logits, axis=-1, keepdims=True)
    p = jnp.exp(logits - m)
    p = p * pl.reciprocal(jnp.sum(p, axis=-1, keepdims=True), approx=True)
    out_h = jnp.einsum("tnm,tmd->tnd", p.astype(jnp.bfloat16), vh,
                       preferred_element_type=jnp.float32)
    attn_proj = attn_proj + jnp.dot(
        out_h.reshape(rows, hd).astype(jnp.bfloat16), wo_full[lo:lo + hd, :],
        preferred_element_type=jnp.float32)
  x1 = xs + attn_proj + bo[...]                    # residual 1 (dropout p=0)

  # LayerNorm 2 + MLP (Linear -> GELU(exact) -> Linear)
  mu2 = jnp.mean(x1, axis=-1, keepdims=True)
  yc = x1 - mu2
  var3 = jnp.mean(yc * yc, axis=-1, keepdims=True)
  yn = yc * jax.lax.rsqrt(var3 + 1e-6) * ln2g[...] + ln2b[...]
  hmid = _gelu_exact(mm(yn, w1) + b1[...])
  mlp2 = mm(hmid, w2) + b2[...]

  y_ref[...] = (x1 + mlp2).reshape(1, t_len, n_tok, c).astype(y_ref.dtype)


# -----------------------------------------------------------------------------
# wrapper
# -----------------------------------------------------------------------------
_SSM_ORDER = ("tns", "wy", "by", "wx", "bx", "convw", "convb", "sp_a",
              "igw", "igb", "agw", "agb", "wout", "bout", "cns",
              "up_wg", "up_bg", "up_wl", "up_bl", "down_w", "down_b")
_VIT_ORDER = ("ln1g", "ln1b", "wq", "bq", "wk", "bk", "wv", "bv", "wo", "bo",
              "ln2g", "ln2b", "w1", "b1", "w2", "b2")
# matmul (MXU) weights -> bf16; biases / norm scales / conv / sp_a stay f32.
_BF16_KEYS = frozenset({"wy", "wx", "igw", "agw", "wout", "up_wg", "up_wl",
                        "down_w", "wq", "wk", "wv", "wo", "w1", "w2"})


def trecvit_block_forward(x, params, num_heads):
  """x: (B, T, N, C) -> (y, (rg_lru_state, conv1d_state)).  cache=None path."""
  b, t, n, c = x.shape
  lw = params["ssm"]["wy"].shape[1]
  assert t >= 3, "conv1d cache extraction assumes T >= temporal_width - 1 = 3"

  plist = []
  for key in _SSM_ORDER:
    a = params["ssm"][key]
    plist.append(a.astype(jnp.bfloat16) if key in _BF16_KEYS else a)
  for key in _VIT_ORDER:
    a = params["vit"][key]
    plist.append(a.astype(jnp.bfloat16) if key in _BF16_KEYS else a)

  kernel = functools.partial(_trecvit_kernel, num_heads=num_heads)
  # NOTE: at production widths add pipeline_mode=pl.Buffered(1) to the
  # constant-index weight specs below so v7x (64 MiB VMEM) is not forced to
  # double-buffer resident weights.
  y, state = pl.pallas_call(
      kernel,
      grid=(b,),
      in_specs=([pl.BlockSpec((1, t, n, c), lambda i: (i, 0, 0, 0))] +
                [_full_spec(a) for a in plist]),
      out_specs=(pl.BlockSpec((1, t, n, c), lambda i: (i, 0, 0, 0)),
                 pl.BlockSpec((1, n, 4 * lw), lambda i: (i, 0, 0))),
      out_shape=(jax.ShapeDtypeStruct((b, t, n, c), x.dtype),
                 jax.ShapeDtypeStruct((b, n, 4 * lw), jnp.float32)),
      compiler_params=pltpu.CompilerParams(
          dimension_semantics=("parallel",),
          vmem_limit_bytes=32 * 1024 * 1024),
  )(x, *plist)

  # unpack the lane-dense state slab: [x_{T-3}, x_{T-2}, x_{T-1}, h] per token.
  state4 = state.reshape(b * n, 4, lw)
  conv1d_state = state4[:, :3, :]
  rg_lru_state = state4[:, 3, :]
  return y, (rg_lru_state, conv1d_state)


# -----------------------------------------------------------------------------
# deterministic synthetic parameters
# -----------------------------------------------------------------------------
def init_params(key, width, lru_width, num_heads):
  c, l, h = width, lru_width, num_heads
  e = 4 * width
  bw = l // h
  keys = iter(jax.random.split(key, 48))

  def w(shape, scale=0.05):
    return scale * jax.random.normal(next(keys), shape, jnp.float32)

  def block_diag(wb):
    # RG-LRU gate weights are block-diagonal per head; densified to (L, L) for
    # a single MXU matmul.  Fine at L=32; wasteful (H x FLOPs/DMA) at large L.
    full = jnp.zeros((h * bw, h * bw), jnp.float32)
    for i in range(h):
      full = full.at[i * bw:(i + 1) * bw, i * bw:(i + 1) * bw].set(wb[i])
    return full

  ig_w, ig_b = w((h, bw, bw)), w((h, bw))
  ag_w, ag_b = w((h, bw, bw)), w((h, bw))
  a_param = 0.5 + 0.5 * jax.random.uniform(next(keys), (l,), jnp.float32)

  ssm = dict(
      tns=w((1, c)),
      wy=w((c, l)), by=w((1, l)),
      wx=w((c, l)), bx=w((1, l)),
      convw=w((4, l)), convb=w((1, l)),
      sp_a=jax.nn.softplus(a_param).reshape(1, l),   # parameter setup (glue)
      igw=block_diag(ig_w), igb=ig_b.reshape(1, l),
      agw=block_diag(ag_w), agb=ag_b.reshape(1, l),
      wout=w((l, c)), bout=w((1, c)),
      cns=w((1, c)),
      up_wg=w((c, e)), up_bg=w((1, e)),
      up_wl=w((c, e)), up_bl=w((1, e)),
      down_w=w((e, c)), down_b=w((1, c)),
  )
  vit = dict(
      ln1g=1.0 + w((1, c)), ln1b=w((1, c)),
      wq=w((c, c)), bq=w((1, c)),
      wk=w((c, c)), bk=w((1, c)),
      wv=w((c, c)), bv=w((1, c)),
      wo=w((c, c)), bo=w((1, c)),
      ln2g=1.0 + w((1, c)), ln2b=w((1, c)),
      w1=w((c, e)), b1=w((1, e)),
      w2=w((e, c)), b2=w((1, c)),
  )
  return dict(ssm=ssm, vit=vit)


if __name__ == "__main__":
  B, T, N = 2, 8, 16          # batch, time, tokens(patches)
  WIDTH = 32                  # hidden dim
  NUM_HEADS = 4
  LRU_WIDTH = 32

  key = jax.random.PRNGKey(0)
  k_x, k_p = jax.random.split(key)
  x = jax.random.normal(k_x, (B, T, N, WIDTH), jnp.float32)
  params = init_params(k_p, WIDTH, LRU_WIDTH, NUM_HEADS)

  fwd = jax.jit(functools.partial(trecvit_block_forward, num_heads=NUM_HEADS))
  out, (rg_lru_state, conv1d_state) = fwd(x, params)
  jax.block_until_ready((out, rg_lru_state, conv1d_state))

  assert out.shape == (B, T, N, WIDTH)
  assert rg_lru_state.shape == (B * N, LRU_WIDTH)
  assert conv1d_state.shape == (B * N, 3, LRU_WIDTH)
  assert bool(jnp.all(jnp.isfinite(out)))
  assert bool(jnp.all(jnp.isfinite(rg_lru_state)))
  assert bool(jnp.all(jnp.isfinite(conv1d_state)))
  print("KERNEL_OK")
</pallas_src>

<mosaic_0001>
module attributes {stable_mosaic.version = 11 : i64} {
  func.func @_trecvit_kernel(%arg0: i32, %arg1: memref<1x8x16x32xf32, #tpu.memory_space<vmem>>, %arg2: memref<1x32xf32, #tpu.memory_space<vmem>>, %arg3: memref<32x32xbf16, #tpu.memory_space<vmem>>, %arg4: memref<1x32xf32, #tpu.memory_space<vmem>>, %arg5: memref<32x32xbf16, #tpu.memory_space<vmem>>, %arg6: memref<1x32xf32, #tpu.memory_space<vmem>>, %arg7: memref<4x32xf32, #tpu.memory_space<vmem>>, %arg8: memref<1x32xf32, #tpu.memory_space<vmem>>, %arg9: memref<1x32xf32, #tpu.memory_space<vmem>>, %arg10: memref<32x32xbf16, #tpu.memory_space<vmem>>, %arg11: memref<1x32xf32, #tpu.memory_space<vmem>>, %arg12: memref<32x32xbf16, #tpu.memory_space<vmem>>, %arg13: memref<1x32xf32, #tpu.memory_space<vmem>>, %arg14: memref<32x32xbf16, #tpu.memory_space<vmem>>, %arg15: memref<1x32xf32, #tpu.memory_space<vmem>>, %arg16: memref<1x32xf32, #tpu.memory_space<vmem>>, %arg17: memref<32x128xbf16, #tpu.memory_space<vmem>>, %arg18: memref<1x128xf32, #tpu.memory_space<vmem>>, %arg19: memref<32x128xbf16, #tpu.memory_space<vmem>>, %arg20: memref<1x128xf32, #tpu.memory_space<vmem>>, %arg21: memref<128x32xbf16, #tpu.memory_space<vmem>>, %arg22: memref<1x32xf32, #tpu.memory_space<vmem>>, %arg23: memref<1x32xf32, #tpu.memory_space<vmem>>, %arg24: memref<1x32xf32, #tpu.memory_space<vmem>>, %arg25: memref<32x32xbf16, #tpu.memory_space<vmem>>, %arg26: memref<1x32xf32, #tpu.memory_space<vmem>>, %arg27: memref<32x32xbf16, #tpu.memory_space<vmem>>, %arg28: memref<1x32xf32, #tpu.memory_space<vmem>>, %arg29: memref<32x32xbf16, #tpu.memory_space<vmem>>, %arg30: memref<1x32xf32, #tpu.memory_space<vmem>>, %arg31: memref<32x32xbf16, #tpu.memory_space<vmem>>, %arg32: memref<1x32xf32, #tpu.memory_space<vmem>>, %arg33: memref<1x32xf32, #tpu.memory_space<vmem>>, %arg34: memref<1x32xf32, #tpu.memory_space<vmem>>, %arg35: memref<32x128xbf16, #tpu.memory_space<vmem>>, %arg36: memref<1x128xf32, #tpu.memory_space<vmem>>, %arg37: memref<128x32xbf16, #tpu.memory_space<vmem>>, %arg38: memref<1x32xf32, #tpu.memory_space<vmem>>, %arg39: memref<1x8x16x32xf32, #tpu.memory_space<vmem>>, %arg40: memref<1x16x128xf32, #tpu.memory_space<vmem>>) attributes {dimension_semantics = [#tpu.dimension_semantics<parallel>], iteration_bounds = array<i64: 2>, scalar_prefetch = 0 : i64, scratch_operands = 0 : i64, tpu.core_type = #tpu.core_type<tc>, window_params = [{transform_indices = @transform_0, window_bounds = array<i64: 1, 8, 16, 32>}, {pipeline_mode = #tpu.pipeline_mode<synchronous>, transform_indices = @transform_1, window_bounds = array<i64: 1, 32>}, {pipeline_mode = #tpu.pipeline_mode<synchronous>, transform_indices = @transform_2, window_bounds = array<i64: 32, 32>}, {pipeline_mode = #tpu.pipeline_mode<synchronous>, transform_indices = @transform_3, window_bounds = array<i64: 1, 32>}, {pipeline_mode = #tpu.pipeline_mode<synchronous>, transform_indices = @transform_4, window_bounds = array<i64: 32, 32>}, {pipeline_mode = #tpu.pipeline_mode<synchronous>, transform_indices = @transform_5, window_bounds = array<i64: 1, 32>}, {pipeline_mode = #tpu.pipeline_mode<synchronous>, transform_indices = @transform_6, window_bounds = array<i64: 4, 32>}, {pipeline_mode = #tpu.pipeline_mode<synchronous>, transform_indices = @transform_7, window_bounds = array<i64: 1, 32>}, {pipeline_mode = #tpu.pipeline_mode<synchronous>, transform_indices = @transform_8, window_bounds = array<i64: 1, 32>}, {pipeline_mode = #tpu.pipeline_mode<synchronous>, transform_indices = @transform_9, window_bounds = array<i64: 32, 32>}, {pipeline_mode = #tpu.pipeline_mode<synchronous>, transform_indices = @transform_10, window_bounds = array<i64: 1, 32>}, {pipeline_mode = #tpu.pipeline_mode<synchronous>, transform_indices = @transform_11, window_bounds = array<i64: 32, 32>}, {pipeline_mode = #tpu.pipeline_mode<synchronous>, transform_indices = @transform_12, window_bounds = array<i64: 1, 32>}, {pipeline_mode = #tpu.pipeline_mode<synchronous>, transform_indices = @transform_13, window_bounds = array<i64: 32, 32>}, {pipeline_mode = #tpu.pipeline_mode<synchronous>, transform_indices = @transform_14, window_bounds = array<i64: 1, 32>}, {pipeline_mode = #tpu.pipeline_mode<synchronous>, transform_indices = @transform_15, window_bounds = array<i64: 1, 32>}, {pipeline_mode = #tpu.pipeline_mode<synchronous>, transform_indices = @transform_16, window_bounds = array<i64: 32, 128>}, {pipeline_mode = #tpu.pipeline_mode<synchronous>, transform_indices = @transform_17, window_bounds = array<i64: 1, 128>}, {pipeline_mode = #tpu.pipeline_mode<synchronous>, transform_indices = @transform_18, window_bounds = array<i64: 32, 128>}, {pipeline_mode = #tpu.pipeline_mode<synchronous>, transform_indices = @transform_19, window_bounds = array<i64: 1, 128>}, {pipeline_mode = #tpu.pipeline_mode<synchronous>, transform_indices = @transform_20, window_bounds = array<i64: 128, 32>}, {pipeline_mode = #tpu.pipeline_mode<synchronous>, transform_indices = @transform_21, window_bounds = array<i64: 1, 32>}, {pipeline_mode = #tpu.pipeline_mode<synchronous>, transform_indices = @transform_22, window_bounds = array<i64: 1, 32>}, {pipeline_mode = #tpu.pipeline_mode<synchronous>, transform_indices = @transform_23, window_bounds = array<i64: 1, 32>}, {pipeline_mode = #tpu.pipeline_mode<synchronous>, transform_indices = @transform_24, window_bounds = array<i64: 32, 32>}, {pipeline_mode = #tpu.pipeline_mode<synchronous>, transform_indices = @transform_25, window_bounds = array<i64: 1, 32>}, {pipeline_mode = #tpu.pipeline_mode<synchronous>, transform_indices = @transform_26, window_bounds = array<i64: 32, 32>}, {pipeline_mode = #tpu.pipeline_mode<synchronous>, transform_indices = @transform_27, window_bounds = array<i64: 1, 32>}, {pipeline_mode = #tpu.pipeline_mode<synchronous>, transform_indices = @transform_28, window_bounds = array<i64: 32, 32>}, {pipeline_mode = #tpu.pipeline_mode<synchronous>, transform_indices = @transform_29, window_bounds = array<i64: 1, 32>}, {pipeline_mode = #tpu.pipeline_mode<synchronous>, transform_indices = @transform_30, window_bounds = array<i64: 32, 32>}, {pipeline_mode = #tpu.pipeline_mode<synchronous>, transform_indices = @transform_31, window_bounds = array<i64: 1, 32>}, {pipeline_mode = #tpu.pipeline_mode<synchronous>, transform_indices = @transform_32, window_bounds = array<i64: 1, 32>}, {pipeline_mode = #tpu.pipeline_mode<synchronous>, transform_indices = @transform_33, window_bounds = array<i64: 1, 32>}, {pipeline_mode = #tpu.pipeline_mode<synchronous>, transform_indices = @transform_34, window_bounds = array<i64: 32, 128>}, {pipeline_mode = #tpu.pipeline_mode<synchronous>, transform_indices = @transform_35, window_bounds = array<i64: 1, 128>}, {pipeline_mode = #tpu.pipeline_mode<synchronous>, transform_indices = @transform_36, window_bounds = array<i64: 128, 32>}, {pipeline_mode = #tpu.pipeline_mode<synchronous>, transform_indices = @transform_37, window_bounds = array<i64: 1, 32>}, {transform_indices = @transform_38, window_bounds = array<i64: 1, 8, 16, 32>}, {transform_indices = @transform_39, window_bounds = array<i64: 1, 16, 128>}]} {
    %c0 = arith.constant 0 : index
    %c0_0 = arith.constant 0 : index
    %c0_1 = arith.constant 0 : index
    %c0_2 = arith.constant 0 : index
    %0 = vector.load %arg1[%c0, %c0_0, %c0_1, %c0_2] : memref<1x8x16x32xf32, #tpu.memory_space<vmem>>, vector<1x8x16x32xf32>
    %1 = vector.shape_cast %0 : vector<1x8x16x32xf32> to vector<128x32xf32>
    %2 = arith.mulf %1, %1 : vector<128x32xf32>
    %cst = arith.constant dense<0.000000e+00> : vector<128xf32>
    %3 = vector.multi_reduction <add>, %2, %cst [1] : vector<128x32xf32> to vector<128xf32>
    %4 = vector.shape_cast %3 : vector<128xf32> to vector<128x1xf32>
    %cst_3 = arith.constant 3.200000e+01 : f32
    %5 = vector.broadcast %cst_3 : f32 to vector<128x1xf32>
    %6 = arith.divf %4, %5 : vector<128x1xf32>
    %cst_4 = arith.constant 9.99999997E-7 : f32
    %7 = vector.broadcast %cst_4 : f32 to vector<128x1xf32>
    %8 = arith.addf %6, %7 : vector<128x1xf32>
    %9 = math.rsqrt %8 : vector<128x1xf32>
    %10 = vector.broadcast %9 : vector<128x1xf32> to vector<128x32xf32>
    %11 = arith.mulf %1, %10 : vector<128x32xf32>
    %c0_5 = arith.constant 0 : index
    %c0_6 = arith.constant 0 : index
    %12 = vector.load %arg2[%c0_5, %c0_6] : memref<1x32xf32, #tpu.memory_space<vmem>>, vector<1x32xf32>
    %cst_7 = arith.constant 1.000000e+00 : f32
    %13 = vector.broadcast %cst_7 : f32 to vector<1x32xf32>
    %14 = arith.addf %12, %13 : vector<1x32xf32>
    %15 = vector.broadcast %14 : vector<1x32xf32> to vector<128x32xf32>
    %16 = arith.mulf %11, %15 : vector<128x32xf32>
    %17 = arith.truncf %16 : vector<128x32xf32> to vector<128x32xbf16>
    %c0_8 = arith.constant 0 : index
    %c0_9 = arith.constant 0 : index
    %18 = vector.load %arg3[%c0_8, %c0_9] : memref<32x32xbf16, #tpu.memory_space<vmem>>, vector<32x32xbf16>
    %cst_10 = arith.constant dense<0.000000e+00> : vector<128x32xf32>
    %19 = tpu.matmul %17, %18, %cst_10 {dimension_numbers = #tpu.dot_dimension_numbers<[1], [0], [0], [1], [0, 0, 1, 1], [], []>} : vector<128x32xbf16>, vector<32x32xbf16>, vector<128x32xf32> -> vector<128x32xf32>
    %c0_11 = arith.constant 0 : index
    %c0_12 = arith.constant 0 : index
    %20 = vector.load %arg4[%c0_11, %c0_12] : memref<1x32xf32, #tpu.memory_space<vmem>>, vector<1x32xf32>
    %21 = vector.broadcast %20 : vector<1x32xf32> to vector<128x32xf32>
    %22 = arith.addf %19, %21 : vector<128x32xf32>
    %cst_13 = arith.constant 5.000000e-01 : f32
    %23 = vector.broadcast %cst_13 : f32 to vector<128x32xf32>
    %24 = arith.mulf %23, %22 : vector<128x32xf32>
    %cst_14 = arith.constant 4.471500e-02 : f32
    %25 = vector.broadcast %cst_14 : f32 to vector<128x32xf32>
    %26 = arith.mulf %25, %22 : vector<128x32xf32>
    %27 = arith.mulf %26, %22 : vector<128x32xf32>
    %28 = arith.mulf %27, %22 : vector<128x32xf32>
    %29 = arith.addf %22, %28 : vector<128x32xf32>
    %cst_15 = arith.constant 0.797884583 : f32
    %30 = vector.broadcast %cst_15 : f32 to vector<128x32xf32>
    %31 = arith.mulf %30, %29 : vector<128x32xf32>
    %32 = math.tanh %31 : vector<128x32xf32>
    %cst_16 = arith.constant 1.000000e+00 : f32
    %33 = vector.broadcast %cst_16 : f32 to vector<128x32xf32>
    %34 = arith.addf %33, %32 : vector<128x32xf32>
    %35 = arith.mulf %24, %34 : vector<128x32xf32>
    %36 = arith.truncf %16 : vector<128x32xf32> to vector<128x32xbf16>
    %c0_17 = arith.constant 0 : index
    %c0_18 = arith.constant 0 : index
    %37 = vector.load %arg5[%c0_17, %c0_18] : memref<32x32xbf16, #tpu.memory_space<vmem>>, vector<32x32xbf16>
    %cst_19 = arith.constant dense<0.000000e+00> : vector<128x32xf32>
    %38 = tpu.matmul %36, %37, %cst_19 {dimension_numbers = #tpu.dot_dimension_numbers<[1], [0], [0], [1], [0, 0, 1, 1], [], []>} : vector<128x32xbf16>, vector<32x32xbf16>, vector<128x32xf32> -> vector<128x32xf32>
    %c0_20 = arith.constant 0 : index
    %c0_21 = arith.constant 0 : index
    %39 = vector.load %arg6[%c0_20, %c0_21] : memref<1x32xf32, #tpu.memory_space<vmem>>, vector<1x32xf32>
    %40 = vector.broadcast %39 : vector<1x32xf32> to vector<128x32xf32>
    %41 = arith.addf %38, %40 : vector<128x32xf32>
    %42 = vector.shape_cast %41 : vector<128x32xf32> to vector<8x16x32xf32>
    %c0_22 = arith.constant 0 : index
    %c0_23 = arith.constant 0 : index
    %43 = vector.load %arg7[%c0_22, %c0_23] : memref<4x32xf32, #tpu.memory_space<vmem>>, vector<4x32xf32>
    %cst_24 = arith.constant 0.000000e+00 : f32
    %44 = vector.broadcast %cst_24 : f32 to vector<3x16x32xf32>
    %45 = tpu.concatenate %44, %42 in 0 : vector<3x16x32xf32>, vector<8x16x32xf32> -> vector<11x16x32xf32>
    %c0_25 = arith.constant 0 : index
    %c0_26 = arith.constant 0 : index
    %46 = vector.load %arg8[%c0_25, %c0_26] : memref<1x32xf32, #tpu.memory_space<vmem>>, vector<1x32xf32>
    %47 = vector.shape_cast %46 : vector<1x32xf32> to vector<1x1x32xf32>
    %48 = vector.extract_strided_slice %43 {offsets = [0, 0], sizes = [1, 32], strides = [1, 1]} : vector<4x32xf32> to vector<1x32xf32>
    %49 = vector.shape_cast %48 : vector<1x32xf32> to vector<32xf32>
    %50 = vector.shape_cast %49 : vector<32xf32> to vector<1x1x32xf32>
    %51 = vector.extract_strided_slice %45 {offsets = [0, 0, 0], sizes = [8, 16, 32], strides = [1, 1, 1]} : vector<11x16x32xf32> to vector<8x16x32xf32>
    %52 = vector.broadcast %50 : vector<1x1x32xf32> to vector<8x16x32xf32>
    %53 = arith.mulf %52, %51 : vector<8x16x32xf32>
    %54 = vector.broadcast %47 : vector<1x1x32xf32> to vector<8x16x32xf32>
    %55 = arith.addf %54, %53 : vector<8x16x32xf32>
    %56 = vector.extract_strided_slice %43 {offsets = [1, 0], sizes = [1, 32], strides = [1, 1]} : vector<4x32xf32> to vector<1x32xf32>
    %57 = vector.shape_cast %56 : vector<1x32xf32> to vector<32xf32>
    %58 = vector.shape_cast %57 : vector<32xf32> to vector<1x1x32xf32>
    %59 = vector.extract_strided_slice %45 {offsets = [1, 0, 0], sizes = [8, 16, 32], strides = [1, 1, 1]} : vector<11x16x32xf32> to vector<8x16x32xf32>
    %60 = vector.broadcast %58 : vector<1x1x32xf32> to vector<8x16x32xf32>
    %61 = arith.mulf %60, %59 : vector<8x16x32xf32>
    %62 = arith.addf %55, %61 : vector<8x16x32xf32>
    %63 = vector.extract_strided_slice %43 {offsets = [2, 0], sizes = [1, 32], strides = [1, 1]} : vector<4x32xf32> to vector<1x32xf32>
    %64 = vector.shape_cast %63 : vector<1x32xf32> to vector<32xf32>
    %65 = vector.shape_cast %64 : vector<32xf32> to vector<1x1x32xf32>
    %66 = vector.extract_strided_slice %45 {offsets = [2, 0, 0], sizes = [8, 16, 32], strides = [1, 1, 1]} : vector<11x16x32xf32> to vector<8x16x32xf32>
    %67 = vector.broadcast %65 : vector<1x1x32xf32> to vector<8x16x32xf32>
    %68 = arith.mulf %67, %66 : vector<8x16x32xf32>
    %69 = arith.addf %62, %68 : vector<8x16x32xf32>
    %70 = vector.extract_strided_slice %43 {offsets = [3, 0], sizes = [1, 32], strides = [1, 1]} : vector<4x32xf32> to vector<1x32xf32>
    %71 = vector.shape_cast %70 : vector<1x32xf32> to vector<32xf32>
    %72 = vector.shape_cast %71 : vector<32xf32> to vector<1x1x32xf32>
    %73 = vector.extract_strided_slice %45 {offsets = [3, 0, 0], sizes = [8, 16, 32], strides = [1, 1, 1]} : vector<11x16x32xf32> to vector<8x16x32xf32>
    %74 = vector.broadcast %72 : vector<1x1x32xf32> to vector<8x16x32xf32>
    %75 = arith.mulf %74, %73 : vector<8x16x32xf32>
    %76 = arith.addf %69, %75 : vector<8x16x32xf32>
    %77 = vector.shape_cast %76 : vector<8x16x32xf32> to vector<128x32xf32>
    %78 = arith.truncf %77 : vector<128x32xf32> to vector<128x32xbf16>
    %c0_27 = arith.constant 0 : index
    %c0_28 = arith.constant 0 : index
    %79 = vector.load %arg10[%c0_27, %c0_28] : memref<32x32xbf16, #tpu.memory_space<vmem>>, vector<32x32xbf16>
    %cst_29 = arith.constant dense<0.000000e+00> : vector<128x32xf32>
    %80 = tpu.matmul %78, %79, %cst_29 {dimension_numbers = #tpu.dot_dimension_numbers<[1], [0], [0], [1], [0, 0, 1, 1], [], []>} : vector<128x32xbf16>, vector<32x32xbf16>, vector<128x32xf32> -> vector<128x32xf32>
    %c0_30 = arith.constant 0 : index
    %c0_31 = arith.constant 0 : index
    %81 = vector.load %arg11[%c0_30, %c0_31] : memref<1x32xf32, #tpu.memory_space<vmem>>, vector<1x32xf32>
    %82 = vector.broadcast %81 : vector<1x32xf32> to vector<128x32xf32>
    %83 = arith.addf %80, %82 : vector<128x32xf32>
    %cst_32 = arith.constant 0.000000e+00 : f32
    %84 = vector.broadcast %cst_32 : f32 to vector<128x32xf32>
    %85 = arith.subf %84, %83 : vector<128x32xf32>
    %86 = math.exp %85 : vector<128x32xf32>
    %cst_33 = arith.constant 1.000000e+00 : f32
    %87 = vector.broadcast %cst_33 : f32 to vector<128x32xf32>
    %88 = arith.addf %87, %86 : vector<128x32xf32>
    %cst_34 = arith.constant 1.000000e+00 : f32
    %89 = vector.broadcast %cst_34 : f32 to vector<128x32xf32>
    %90 = arith.divf %89, %88 : vector<128x32xf32>
    %91 = arith.truncf %77 : vector<128x32xf32> to vector<128x32xbf16>
    %c0_35 = arith.constant 0 : index
    %c0_36 = arith.constant 0 : index
    %92 = vector.load %arg12[%c0_35, %c0_36] : memref<32x32xbf16, #tpu.memory_space<vmem>>, vector<32x32xbf16>
    %cst_37 = arith.constant dense<0.000000e+00> : vector<128x32xf32>
    %93 = tpu.matmul %91, %92, %cst_37 {dimension_numbers = #tpu.dot_dimension_numbers<[1], [0], [0], [1], [0, 0, 1, 1], [], []>} : vector<128x32xbf16>, vector<32x32xbf16>, vector<128x32xf32> -> vector<128x32xf32>
    %c0_38 = arith.constant 0 : index
    %c0_39 = arith.constant 0 : index
    %94 = vector.load %arg13[%c0_38, %c0_39] : memref<1x32xf32, #tpu.memory_space<vmem>>, vector<1x32xf32>
    %95 = vector.broadcast %94 : vector<1x32xf32> to vector<128x32xf32>
    %96 = arith.addf %93, %95 : vector<128x32xf32>
    %cst_40 = arith.constant 0.000000e+00 : f32
    %97 = vector.broadcast %cst_40 : f32 to vector<128x32xf32>
    %98 = arith.subf %97, %96 : vector<128x32xf32>
    %99 = math.exp %98 : vector<128x32xf32>
    %cst_41 = arith.constant 1.000000e+00 : f32
    %100 = vector.broadcast %cst_41 : f32 to vector<128x32xf32>
    %101 = arith.addf %100, %99 : vector<128x32xf32>
    %cst_42 = arith.constant 1.000000e+00 : f32
    %102 = vector.broadcast %cst_42 : f32 to vector<128x32xf32>
    %103 = arith.divf %102, %101 : vector<128x32xf32>
    %cst_43 = arith.constant -8.000000e+00 : f32
    %104 = vector.broadcast %cst_43 : f32 to vector<128x32xf32>
    %105 = arith.mulf %104, %103 : vector<128x32xf32>
    %c0_44 = arith.constant 0 : index
    %c0_45 = arith.constant 0 : index
    %106 = vector.load %arg9[%c0_44, %c0_45] : memref<1x32xf32, #tpu.memory_space<vmem>>, vector<1x32xf32>
    %107 = vector.broadcast %106 : vector<1x32xf32> to vector<128x32xf32>
    %108 = arith.mulf %105, %107 : vector<128x32xf32>
    %109 = math.exp %108 : vector<128x32xf32>
    %cst_46 = arith.constant 2.000000e+00 : f32
    %110 = vector.broadcast %cst_46 : f32 to vector<128x32xf32>
    %111 = arith.mulf %110, %108 : vector<128x32xf32>
    %112 = math.exp %111 : vector<128x32xf32>
    %cst_47 = arith.constant 1.000000e+00 : f32
    %113 = vector.broadcast %cst_47 : f32 to vector<128x32xf32>
    %114 = arith.subf %113, %112 : vector<128x32xf32>
    %115 = math.sqrt %114 : vector<128x32xf32>
    %116 = arith.mulf %77, %90 : vector<128x32xf32>
    %117 = arith.mulf %116, %115 : vector<128x32xf32>
    %118 = vector.shape_cast %109 : vector<128x32xf32> to vector<8x16x32xf32>
    %119 = vector.shape_cast %117 : vector<128x32xf32> to vector<8x16x32xf32>
    %120 = vector.shape_cast %116 : vector<128x32xf32> to vector<8x16x32xf32>
    %121 = vector.shape_cast %35 : vector<128x32xf32> to vector<8x16x32xf32>
    %122 = vector.extract_strided_slice %120 {offsets = [0, 0, 0], sizes = [1, 16, 32], strides = [1, 1, 1]} : vector<8x16x32xf32> to vector<1x16x32xf32>
    %123 = vector.shape_cast %122 : vector<1x16x32xf32> to vector<16x32xf32>
    %124 = vector.extract_strided_slice %121 {offsets = [0, 0, 0], sizes = [1, 16, 32], strides = [1, 1, 1]} : vector<8x16x32xf32> to vector<1x16x32xf32>
    %125 = vector.shape_cast %124 : vector<1x16x32xf32> to vector<16x32xf32>
    %126 = arith.mulf %123, %125 : vector<16x32xf32>
    %127 = vector.extract_strided_slice %118 {offsets = [1, 0, 0], sizes = [1, 16, 32], strides = [1, 1, 1]} : vector<8x16x32xf32> to vector<1x16x32xf32>
    %128 = vector.shape_cast %127 : vector<1x16x32xf32> to vector<16x32xf32>
    %129 = arith.mulf %128, %123 : vector<16x32xf32>
    %130 = vector.extract_strided_slice %119 {offsets = [1, 0, 0], sizes = [1, 16, 32], strides = [1, 1, 1]} : vector<8x16x32xf32> to vector<1x16x32xf32>
    %131 = vector.shape_cast %130 : vector<1x16x32xf32> to vector<16x32xf32>
    %132 = arith.addf %129, %131 : vector<16x32xf32>
    %133 = vector.extract_strided_slice %121 {offsets = [1, 0, 0], sizes = [1, 16, 32], strides = [1, 1, 1]} : vector<8x16x32xf32> to vector<1x16x32xf32>
    %134 = vector.shape_cast %133 : vector<1x16x32xf32> to vector<16x32xf32>
    %135 = arith.mulf %132, %134 : vector<16x32xf32>
    %136 = vector.extract_strided_slice %118 {offsets = [2, 0, 0], sizes = [1, 16, 32], strides = [1, 1, 1]} : vector<8x16x32xf32> to vector<1x16x32xf32>
    %137 = vector.shape_cast %136 : vector<1x16x32xf32> to vector<16x32xf32>
    %138 = arith.mulf %137, %132 : vector<16x32xf32>
    %139 = vector.extract_strided_slice %119 {offsets = [2, 0, 0], sizes = [1, 16, 32], strides = [1, 1, 1]} : vector<8x16x32xf32> to vector<1x16x32xf32>
    %140 = vector.shape_cast %139 : vector<1x16x32xf32> to vector<16x32xf32>
    %141 = arith.addf %138, %140 : vector<16x32xf32>
    %142 = vector.extract_strided_slice %121 {offsets = [2, 0, 0], sizes = [1, 16, 32], strides = [1, 1, 1]} : vector<8x16x32xf32> to vector<1x16x32xf32>
    %143 = vector.shape_cast %142 : vector<1x16x32xf32> to vector<16x32xf32>
    %144 = arith.mulf %141, %143 : vector<16x32xf32>
    %145 = vector.extract_strided_slice %118 {offsets = [3, 0, 0], sizes = [1, 16, 32], strides = [1, 1, 1]} : vector<8x16x32xf32> to vector<1x16x32xf32>
    %146 = vector.shape_cast %145 : vector<1x16x32xf32> to vector<16x32xf32>
    %147 = arith.mulf %146, %141 : vector<16x32xf32>
    %148 = vector.extract_strided_slice %119 {offsets = [3, 0, 0], sizes = [1, 16, 32], strides = [1, 1, 1]} : vector<8x16x32xf32> to vector<1x16x32xf32>
    %149 = vector.shape_cast %148 : vector<1x16x32xf32> to vector<16x32xf32>
    %150 = arith.addf %147, %149 : vector<16x32xf32>
    %151 = vector.extract_strided_slice %121 {offsets = [3, 0, 0], sizes = [1, 16, 32], strides = [1, 1, 1]} : vector<8x16x32xf32> to vector<1x16x32xf32>
    %152 = vector.shape_cast %151 : vector<1x16x32xf32> to vector<16x32xf32>
    %153 = arith.mulf %150, %152 : vector<16x32xf32>
    %154 = vector.extract_strided_slice %118 {offsets = [4, 0, 0], sizes = [1, 16, 32], strides = [1, 1, 1]} : vector<8x16x32xf32> to vector<1x16x32xf32>
    %155 = vector.shape_cast %154 : vector<1x16x32xf32> to vector<16x32xf32>
    %156 = arith.mulf %155, %150 : vector<16x32xf32>
    %157 = vector.extract_strided_slice %119 {offsets = [4, 0, 0], sizes = [1, 16, 32], strides = [1, 1, 1]} : vector<8x16x32xf32> to vector<1x16x32xf32>
    %158 = vector.shape_cast %157 : vector<1x16x32xf32> to vector<16x32xf32>
    %159 = arith.addf %156, %158 : vector<16x32xf32>
    %160 = vector.extract_strided_slice %121 {offsets = [4, 0, 0], sizes = [1, 16, 32], strides = [1, 1, 1]} : vector<8x16x32xf32> to vector<1x16x32xf32>
    %161 = vector.shape_cast %160 : vector<1x16x32xf32> to vector<16x32xf32>
    %162 = arith.mulf %159, %161 : vector<16x32xf32>
    %163 = vector.extract_strided_slice %118 {offsets = [5, 0, 0], sizes = [1, 16, 32], strides = [1, 1, 1]} : vector<8x16x32xf32> to vector<1x16x32xf32>
    %164 = vector.shape_cast %163 : vector<1x16x32xf32> to vector<16x32xf32>
    %165 = arith.mulf %164, %159 : vector<16x32xf32>
    %166 = vector.extract_strided_slice %119 {offsets = [5, 0, 0], sizes = [1, 16, 32], strides = [1, 1, 1]} : vector<8x16x32xf32> to vector<1x16x32xf32>
    %167 = vector.shape_cast %166 : vector<1x16x32xf32> to vector<16x32xf32>
    %168 = arith.addf %165, %167 : vector<16x32xf32>
    %169 = vector.extract_strided_slice %121 {offsets = [5, 0, 0], sizes = [1, 16, 32], strides = [1, 1, 1]} : vector<8x16x32xf32> to vector<1x16x32xf32>
    %170 = vector.shape_cast %169 : vector<1x16x32xf32> to vector<16x32xf32>
    %171 = arith.mulf %168, %170 : vector<16x32xf32>
    %172 = vector.extract_strided_slice %118 {offsets = [6, 0, 0], sizes = [1, 16, 32], strides = [1, 1, 1]} : vector<8x16x32xf32> to vector<1x16x32xf32>
    %173 = vector.shape_cast %172 : vector<1x16x32xf32> to vector<16x32xf32>
    %174 = arith.mulf %173, %168 : vector<16x32xf32>
    %175 = vector.extract_strided_slice %119 {offsets = [6, 0, 0], sizes = [1, 16, 32], strides = [1, 1, 1]} : vector<8x16x32xf32> to vector<1x16x32xf32>
    %176 = vector.shape_cast %175 : vector<1x16x32xf32> to vector<16x32xf32>
    %177 = arith.addf %174, %176 : vector<16x32xf32>
    %178 = vector.extract_strided_slice %121 {offsets = [6, 0, 0], sizes = [1, 16, 32], strides = [1, 1, 1]} : vector<8x16x32xf32> to vector<1x16x32xf32>
    %179 = vector.shape_cast %178 : vector<1x16x32xf32> to vector<16x32xf32>
    %180 = arith.mulf %177, %179 : vector<16x32xf32>
    %181 = vector.extract_strided_slice %118 {offsets = [7, 0, 0], sizes = [1, 16, 32], strides = [1, 1, 1]} : vector<8x16x32xf32> to vector<1x16x32xf32>
    %182 = vector.shape_cast %181 : vector<1x16x32xf32> to vector<16x32xf32>
    %183 = arith.mulf %182, %177 : vector<16x32xf32>
    %184 = vector.extract_strided_slice %119 {offsets = [7, 0, 0], sizes = [1, 16, 32], strides = [1, 1, 1]} : vector<8x16x32xf32> to vector<1x16x32xf32>
    %185 = vector.shape_cast %184 : vector<1x16x32xf32> to vector<16x32xf32>
    %186 = arith.addf %183, %185 : vector<16x32xf32>
    %187 = vector.extract_strided_slice %121 {offsets = [7, 0, 0], sizes = [1, 16, 32], strides = [1, 1, 1]} : vector<8x16x32xf32> to vector<1x16x32xf32>
    %188 = vector.shape_cast %187 : vector<1x16x32xf32> to vector<16x32xf32>
    %189 = arith.mulf %186, %188 : vector<16x32xf32>
    %190 = tpu.concatenate %126, %135, %144, %153, %162, %171, %180, %189 in 0 : vector<16x32xf32>, vector<16x32xf32>, vector<16x32xf32>, vector<16x32xf32>, vector<16x32xf32>, vector<16x32xf32>, vector<16x32xf32>, vector<16x32xf32> -> vector<128x32xf32>
    %191 = vector.extract_strided_slice %42 {offsets = [5, 0, 0], sizes = [1, 16, 32], strides = [1, 1, 1]} : vector<8x16x32xf32> to vector<1x16x32xf32>
    %192 = vector.shape_cast %191 : vector<1x16x32xf32> to vector<16x32xf32>
    %193 = vector.extract_strided_slice %42 {offsets = [6, 0, 0], sizes = [1, 16, 32], strides = [1, 1, 1]} : vector<8x16x32xf32> to vector<1x16x32xf32>
    %194 = vector.shape_cast %193 : vector<1x16x32xf32> to vector<16x32xf32>
    %195 = vector.extract_strided_slice %42 {offsets = [7, 0, 0], sizes = [1, 16, 32], strides = [1, 1, 1]} : vector<8x16x32xf32> to vector<1x16x32xf32>
    %196 = vector.shape_cast %195 : vector<1x16x32xf32> to vector<16x32xf32>
    %197 = tpu.concatenate %192, %194, %196, %186 in 1 : vector<16x32xf32>, vector<16x32xf32>, vector<16x32xf32>, vector<16x32xf32> -> vector<16x128xf32>
    %198 = vector.shape_cast %197 : vector<16x128xf32> to vector<1x16x128xf32>
    %c0_48 = arith.constant 0 : index
    %c0_49 = arith.constant 0 : index
    %c0_50 = arith.constant 0 : index
    %199 = vector.load %arg40[%c0_48, %c0_49, %c0_50] : memref<1x16x128xf32, #tpu.memory_space<vmem>>, vector<1x16x128xf32>
    tpu.vector_store %arg40[%c0_48, %c0_49, %c0_50], %198 {strides = array<i32>} : memref<1x16x128xf32, #tpu.memory_space<vmem>>, vector<1x16x128xf32>,
    %200 = arith.truncf %190 : vector<128x32xf32> to vector<128x32xbf16>
    %c0_51 = arith.constant 0 : index
    %c0_52 = arith.constant 0 : index
    %201 = vector.load %arg14[%c0_51, %c0_52] : memref<32x32xbf16, #tpu.memory_space<vmem>>, vector<32x32xbf16>
    %cst_53 = arith.constant dense<0.000000e+00> : vector<128x32xf32>
    %202 = tpu.matmul %200, %201, %cst_53 {dimension_numbers = #tpu.dot_dimension_numbers<[1], [0], [0], [1], [0, 0, 1, 1], [], []>} : vector<128x32xbf16>, vector<32x32xbf16>, vector<128x32xf32> -> vector<128x32xf32>
    %c0_54 = arith.constant 0 : index
    %c0_55 = arith.constant 0 : index
    %203 = vector.load %arg15[%c0_54, %c0_55] : memref<1x32xf32, #tpu.memory_space<vmem>>, vector<1x32xf32>
    %204 = vector.broadcast %203 : vector<1x32xf32> to vector<128x32xf32>
    %205 = arith.addf %202, %204 : vector<128x32xf32>
    %206 = arith.addf %205, %1 : vector<128x32xf32>
    %207 = arith.mulf %206, %206 : vector<128x32xf32>
    %cst_56 = arith.constant dense<0.000000e+00> : vector<128xf32>
    %208 = vector.multi_reduction <add>, %207, %cst_56 [1] : vector<128x32xf32> to vector<128xf32>
    %209 = vector.shape_cast %208 : vector<128xf32> to vector<128x1xf32>
    %cst_57 = arith.constant 3.200000e+01 : f32
    %210 = vector.broadcast %cst_57 : f32 to vector<128x1xf32>
    %211 = arith.divf %209, %210 : vector<128x1xf32>
    %cst_58 = arith.constant 9.99999997E-7 : f32
    %212 = vector.broadcast %cst_58 : f32 to vector<128x1xf32>
    %213 = arith.addf %211, %212 : vector<128x1xf32>
    %214 = math.rsqrt %213 : vector<128x1xf32>
    %215 = vector.broadcast %214 : vector<128x1xf32> to vector<128x32xf32>
    %216 = arith.mulf %206, %215 : vector<128x32xf32>
    %c0_59 = arith.constant 0 : index
    %c0_60 = arith.constant 0 : index
    %217 = vector.load %arg16[%c0_59, %c0_60] : memref<1x32xf32, #tpu.memory_space<vmem>>, vector<1x32xf32>
    %cst_61 = arith.constant 1.000000e+00 : f32
    %218 = vector.broadcast %cst_61 : f32 to vector<1x32xf32>
    %219 = arith.addf %217, %218 : vector<1x32xf32>
    %220 = vector.broadcast %219 : vector<1x32xf32> to vector<128x32xf32>
    %221 = arith.mulf %216, %220 : vector<128x32xf32>
    %222 = arith.truncf %221 : vector<128x32xf32> to vector<128x32xbf16>
    %c0_62 = arith.constant 0 : index
    %c0_63 = arith.constant 0 : index
    %223 = vector.load %arg17[%c0_62, %c0_63] : memref<32x128xbf16, #tpu.memory_space<vmem>>, vector<32x128xbf16>
    %cst_64 = arith.constant dense<0.000000e+00> : vector<128x128xf32>
    %224 = tpu.matmul %222, %223, %cst_64 {dimension_numbers = #tpu.dot_dimension_numbers<[1], [0], [0], [1], [0, 0, 1, 1], [], []>} : vector<128x32xbf16>, vector<32x128xbf16>, vector<128x128xf32> -> vector<128x128xf32>
    %c0_65 = arith.constant 0 : index
    %c0_66 = arith.constant 0 : index
    %225 = vector.load %arg18[%c0_65, %c0_66] : memref<1x128xf32, #tpu.memory_space<vmem>>, vector<1x128xf32>
    %226 = vector.broadcast %225 : vector<1x128xf32> to vector<128x128xf32>
    %227 = arith.addf %224, %226 : vector<128x128xf32>
    %cst_67 = arith.constant 5.000000e-01 : f32
    %228 = vector.broadcast %cst_67 : f32 to vector<128x128xf32>
    %229 = arith.mulf %228, %227 : vector<128x128xf32>
    %cst_68 = arith.constant 4.471500e-02 : f32
    %230 = vector.broadcast %cst_68 : f32 to vector<128x128xf32>
    %231 = arith.mulf %230, %227 : vector<128x128xf32>
    %232 = arith.mulf %231, %227 : vector<128x128xf32>
    %233 = arith.mulf %232, %227 : vector<128x128xf32>
    %234 = arith.addf %227, %233 : vector<128x128xf32>
    %cst_69 = arith.constant 0.797884583 : f32
    %235 = vector.broadcast %cst_69 : f32 to vector<128x128xf32>
    %236 = arith.mulf %235, %234 : vector<128x128xf32>
    %237 = math.tanh %236 : vector<128x128xf32>
    %cst_70 = arith.constant 1.000000e+00 : f32
    %238 = vector.broadcast %cst_70 : f32 to vector<128x128xf32>
    %239 = arith.addf %238, %237 : vector<128x128xf32>
    %240 = arith.mulf %229, %239 : vector<128x128xf32>
    %241 = arith.truncf %221 : vector<128x32xf32> to vector<128x32xbf16>
    %c0_71 = arith.constant 0 : index
    %c0_72 = arith.constant 0 : index
    %242 = vector.load %arg19[%c0_71, %c0_72] : memref<32x128xbf16, #tpu.memory_space<vmem>>, vector<32x128xbf16>
    %cst_73 = arith.constant dense<0.000000e+00> : vector<128x128xf32>
    %243 = tpu.matmul %241, %242, %cst_73 {dimension_numbers = #tpu.dot_dimension_numbers<[1], [0], [0], [1], [0, 0, 1, 1], [], []>} : vector<128x32xbf16>, vector<32x128xbf16>, vector<128x128xf32> -> vector<128x128xf32>
    %c0_74 = arith.constant 0 : index
    %c0_75 = arith.constant 0 : index
    %244 = vector.load %arg20[%c0_74, %c0_75] : memref<1x128xf32, #tpu.memory_space<vmem>>, vector<1x128xf32>
    %245 = vector.broadcast %244 : vector<1x128xf32> to vector<128x128xf32>
    %246 = arith.addf %243, %245 : vector<128x128xf32>
    %247 = arith.mulf %240, %246 : vector<128x128xf32>
    %248 = arith.truncf %247 : vector<128x128xf32> to vector<128x128xbf16>
    %c0_76 = arith.constant 0 : index
    %c0_77 = arith.constant 0 : index
    %249 = vector.load %arg21[%c0_76, %c0_77] : memref<128x32xbf16, #tpu.memory_space<vmem>>, vector<128x32xbf16>
    %cst_78 = arith.constant dense<0.000000e+00> : vector<128x32xf32>
    %250 = tpu.matmul %248, %249, %cst_78 {dimension_numbers = #tpu.dot_dimension_numbers<[1], [0], [0], [1], [0, 0, 1, 1], [], []>} : vector<128x128xbf16>, vector<128x32xbf16>, vector<128x32xf32> -> vector<128x32xf32>
    %c0_79 = arith.constant 0 : index
    %c0_80 = arith.constant 0 : index
    %251 = vector.load %arg22[%c0_79, %c0_80] : memref<1x32xf32, #tpu.memory_space<vmem>>, vector<1x32xf32>
    %252 = vector.broadcast %251 : vector<1x32xf32> to vector<128x32xf32>
    %253 = arith.addf %250, %252 : vector<128x32xf32>
    %254 = arith.addf %253, %206 : vector<128x32xf32>
    %cst_81 = arith.constant dense<0.000000e+00> : vector<128xf32>
    %255 = vector.multi_reduction <add>, %254, %cst_81 [1] : vector<128x32xf32> to vector<128xf32>
    %256 = vector.shape_cast %255 : vector<128xf32> to vector<128x1xf32>
    %cst_82 = arith.constant 3.200000e+01 : f32
    %257 = vector.broadcast %cst_82 : f32 to vector<128x1xf32>
    %258 = arith.divf %256, %257 : vector<128x1xf32>
    %259 = vector.broadcast %258 : vector<128x1xf32> to vector<128x32xf32>
    %260 = arith.subf %254, %259 : vector<128x32xf32>
    %261 = arith.mulf %260, %260 : vector<128x32xf32>
    %cst_83 = arith.constant dense<0.000000e+00> : vector<128xf32>
    %262 = vector.multi_reduction <add>, %261, %cst_83 [1] : vector<128x32xf32> to vector<128xf32>
    %263 = vector.shape_cast %262 : vector<128xf32> to vector<128x1xf32>
    %cst_84 = arith.constant 3.200000e+01 : f32
    %264 = vector.broadcast %cst_84 : f32 to vector<128x1xf32>
    %265 = arith.divf %263, %264 : vector<128x1xf32>
    %cst_85 = arith.constant 9.99999997E-7 : f32
    %266 = vector.broadcast %cst_85 : f32 to vector<128x1xf32>
    %267 = arith.addf %265, %266 : vector<128x1xf32>
    %268 = math.rsqrt %267 : vector<128x1xf32>
    %269 = vector.broadcast %268 : vector<128x1xf32> to vector<128x32xf32>
    %270 = arith.mulf %260, %269 : vector<128x32xf32>
    %c0_86 = arith.constant 0 : index
    %c0_87 = arith.constant 0 : index
    %271 = vector.load %arg23[%c0_86, %c0_87] : memref<1x32xf32, #tpu.memory_space<vmem>>, vector<1x32xf32>
    %272 = vector.broadcast %271 : vector<1x32xf32> to vector<128x32xf32>
    %273 = arith.mulf %270, %272 : vector<128x32xf32>
    %c0_88 = arith.constant 0 : index
    %c0_89 = arith.constant 0 : index
    %274 = vector.load %arg24[%c0_88, %c0_89] : memref<1x32xf32, #tpu.memory_space<vmem>>, vector<1x32xf32>
    %275 = vector.broadcast %274 : vector<1x32xf32> to vector<128x32xf32>
    %276 = arith.addf %273, %275 : vector<128x32xf32>
    %277 = arith.truncf %276 : vector<128x32xf32> to vector<128x32xbf16>
    %c0_90 = arith.constant 0 : index
    %c0_91 = arith.constant 0 : index
    %278 = vector.load %arg25[%c0_90, %c0_91] : memref<32x32xbf16, #tpu.memory_space<vmem>>, vector<32x32xbf16>
    %cst_92 = arith.constant dense<0.000000e+00> : vector<128x32xf32>
    %279 = tpu.matmul %277, %278, %cst_92 {dimension_numbers = #tpu.dot_dimension_numbers<[1], [0], [0], [1], [0, 0, 1, 1], [], []>} : vector<128x32xbf16>, vector<32x32xbf16>, vector<128x32xf32> -> vector<128x32xf32>
    %c0_93 = arith.constant 0 : index
    %c0_94 = arith.constant 0 : index
    %280 = vector.load %arg26[%c0_93, %c0_94] : memref<1x32xf32, #tpu.memory_space<vmem>>, vector<1x32xf32>
    %281 = vector.broadcast %280 : vector<1x32xf32> to vector<128x32xf32>
    %282 = arith.addf %279, %281 : vector<128x32xf32>
    %283 = vector.shape_cast %282 : vector<128x32xf32> to vector<8x16x32xf32>
    %284 = arith.truncf %276 : vector<128x32xf32> to vector<128x32xbf16>
    %c0_95 = arith.constant 0 : index
    %c0_96 = arith.constant 0 : index
    %285 = vector.load %arg27[%c0_95, %c0_96] : memref<32x32xbf16, #tpu.memory_space<vmem>>, vector<32x32xbf16>
    %cst_97 = arith.constant dense<0.000000e+00> : vector<128x32xf32>
    %286 = tpu.matmul %284, %285, %cst_97 {dimension_numbers = #tpu.dot_dimension_numbers<[1], [0], [0], [1], [0, 0, 1, 1], [], []>} : vector<128x32xbf16>, vector<32x32xbf16>, vector<128x32xf32> -> vector<128x32xf32>
    %c0_98 = arith.constant 0 : index
    %c0_99 = arith.constant 0 : index
    %287 = vector.load %arg28[%c0_98, %c0_99] : memref<1x32xf32, #tpu.memory_space<vmem>>, vector<1x32xf32>
    %288 = vector.broadcast %287 : vector<1x32xf32> to vector<128x32xf32>
    %289 = arith.addf %286, %288 : vector<128x32xf32>
    %290 = vector.shape_cast %289 : vector<128x32xf32> to vector<8x16x32xf32>
    %291 = arith.truncf %276 : vector<128x32xf32> to vector<128x32xbf16>
    %c0_100 = arith.constant 0 : index
    %c0_101 = arith.constant 0 : index
    %292 = vector.load %arg29[%c0_100, %c0_101] : memref<32x32xbf16, #tpu.memory_space<vmem>>, vector<32x32xbf16>
    %cst_102 = arith.constant dense<0.000000e+00> : vector<128x32xf32>
    %293 = tpu.matmul %291, %292, %cst_102 {dimension_numbers = #tpu.dot_dimension_numbers<[1], [0], [0], [1], [0, 0, 1, 1], [], []>} : vector<128x32xbf16>, vector<32x32xbf16>, vector<128x32xf32> -> vector<128x32xf32>
    %c0_103 = arith.constant 0 : index
    %c0_104 = arith.constant 0 : index
    %294 = vector.load %arg30[%c0_103, %c0_104] : memref<1x32xf32, #tpu.memory_space<vmem>>, vector<1x32xf32>
    %295 = vector.broadcast %294 : vector<1x32xf32> to vector<128x32xf32>
    %296 = arith.addf %293, %295 : vector<128x32xf32>
    %297 = vector.shape_cast %296 : vector<128x32xf32> to vector<8x16x32xf32>
    %c0_105 = arith.constant 0 : index
    %c0_106 = arith.constant 0 : index
    %298 = vector.load %arg31[%c0_105, %c0_106] : memref<32x32xbf16, #tpu.memory_space<vmem>>, vector<32x32xbf16>
    %cst_107 = arith.constant 0.000000e+00 : f32
    %299 = vector.broadcast %cst_107 : f32 to vector<128x32xf32>
    %300 = vector.extract_strided_slice %283 {offsets = [0, 0, 0], sizes = [8, 16, 8], strides = [1, 1, 1]} : vector<8x16x32xf32> to vector<8x16x8xf32>
    %cst_108 = arith.constant 0.353553385 : f32
    %301 = vector.broadcast %cst_108 : f32 to vector<8x16x8xf32>
    %302 = arith.mulf %300, %301 : vector<8x16x8xf32>
    %303 = arith.truncf %302 : vector<8x16x8xf32> to vector<8x16x8xbf16>
    %304 = vector.extract_strided_slice %290 {offsets = [0, 0, 0], sizes = [8, 16, 8], strides = [1, 1, 1]} : vector<8x16x32xf32> to vector<8x16x8xf32>
    %305 = arith.truncf %304 : vector<8x16x8xf32> to vector<8x16x8xbf16>
    %306 = vector.extract_strided_slice %297 {offsets = [0, 0, 0], sizes = [8, 16, 8], strides = [1, 1, 1]} : vector<8x16x32xf32> to vector<8x16x8xf32>
    %307 = arith.truncf %306 : vector<8x16x8xf32> to vector<8x16x8xbf16>
    "tpu.trace_start"() <{level = 10 : i32, message = "tnd,tmd->tnm"}> : () -> ()
    %cst_109 = arith.constant dense<0.000000e+00> : vector<8x16x16xf32>
    %308 = tpu.matmul %303, %305, %cst_109 {dimension_numbers = #tpu.dot_dimension_numbers<[2], [2], [1], [1], [0, 0, 0, 1, 1, 1], [0], [0]>} : vector<8x16x8xbf16>, vector<8x16x8xbf16>, vector<8x16x16xf32> -> vector<8x16x16xf32>
    "tpu.trace_stop"() : () -> ()
    %cst_110 = arith.constant dense<0xFF800000> : vector<8x16xf32>
    %309 = vector.multi_reduction <maximumf>, %308, %cst_110 [2] : vector<8x16x16xf32> to vector<8x16xf32>
    %310 = vector.shape_cast %309 : vector<8x16xf32> to vector<8x16x1xf32>
    %311 = vector.broadcast %310 : vector<8x16x1xf32> to vector<8x16x16xf32>
    %312 = arith.subf %308, %311 : vector<8x16x16xf32>
    %313 = math.exp %312 : vector<8x16x16xf32>
    %cst_111 = arith.constant dense<0.000000e+00> : vector<8x16xf32>
    %314 = vector.multi_reduction <add>, %313, %cst_111 [2] : vector<8x16x16xf32> to vector<8x16xf32>
    %315 = vector.shape_cast %314 : vector<8x16xf32> to vector<8x16x1xf32>
    %316 = tpu.reciprocal %315 {approx = true} : vector<8x16x1xf32> -> vector<8x16x1xf32>
    %317 = vector.broadcast %316 : vector<8x16x1xf32> to vector<8x16x16xf32>
    %318 = arith.mulf %313, %317 : vector<8x16x16xf32>
    %319 = arith.truncf %318 : vector<8x16x16xf32> to vector<8x16x16xbf16>
    "tpu.trace_start"() <{level = 10 : i32, message = "tnm,tmd->tnd"}> : () -> ()
    %cst_112 = arith.constant dense<0.000000e+00> : vector<8x16x8xf32>
    %320 = tpu.matmul %319, %307, %cst_112 {dimension_numbers = #tpu.dot_dimension_numbers<[2], [1], [1], [2], [0, 0, 0, 1, 1, 2], [0], [0]>} : vector<8x16x16xbf16>, vector<8x16x8xbf16>, vector<8x16x8xf32> -> vector<8x16x8xf32>
    "tpu.trace_stop"() : () -> ()
    %321 = vector.shape_cast %320 : vector<8x16x8xf32> to vector<128x8xf32>
    %322 = arith.truncf %321 : vector<128x8xf32> to vector<128x8xbf16>
    %323 = vector.extract_strided_slice %298 {offsets = [0, 0], sizes = [8, 32], strides = [1, 1]} : vector<32x32xbf16> to vector<8x32xbf16>
    %cst_113 = arith.constant dense<0.000000e+00> : vector<128x32xf32>
    %324 = tpu.matmul %322, %323, %cst_113 {dimension_numbers = #tpu.dot_dimension_numbers<[1], [0], [0], [1], [0, 0, 1, 1], [], []>} : vector<128x8xbf16>, vector<8x32xbf16>, vector<128x32xf32> -> vector<128x32xf32>
    %325 = arith.addf %299, %324 : vector<128x32xf32>
    %326 = vector.extract_strided_slice %283 {offsets = [0, 0, 8], sizes = [8, 16, 8], strides = [1, 1, 1]} : vector<8x16x32xf32> to vector<8x16x8xf32>
    %cst_114 = arith.constant 0.353553385 : f32
    %327 = vector.broadcast %cst_114 : f32 to vector<8x16x8xf32>
    %328 = arith.mulf %326, %327 : vector<8x16x8xf32>
    %329 = arith.truncf %328 : vector<8x16x8xf32> to vector<8x16x8xbf16>
    %330 = vector.extract_strided_slice %290 {offsets = [0, 0, 8], sizes = [8, 16, 8], strides = [1, 1, 1]} : vector<8x16x32xf32> to vector<8x16x8xf32>
    %331 = arith.truncf %330 : vector<8x16x8xf32> to vector<8x16x8xbf16>
    %332 = vector.extract_strided_slice %297 {offsets = [0, 0, 8], sizes = [8, 16, 8], strides = [1, 1, 1]} : vector<8x16x32xf32> to vector<8x16x8xf32>
    %333 = arith.truncf %332 : vector<8x16x8xf32> to vector<8x16x8xbf16>
    "tpu.trace_start"() <{level = 10 : i32, message = "tnd,tmd->tnm"}> : () -> ()
    %cst_115 = arith.constant dense<0.000000e+00> : vector<8x16x16xf32>
    %334 = tpu.matmul %329, %331, %cst_115 {dimension_numbers = #tpu.dot_dimension_numbers<[2], [2], [1], [1], [0, 0, 0, 1, 1, 1], [0], [0]>} : vector<8x16x8xbf16>, vector<8x16x8xbf16>, vector<8x16x16xf32> -> vector<8x16x16xf32>
    "tpu.trace_stop"() : () -> ()
    %cst_116 = arith.constant dense<0xFF800000> : vector<8x16xf32>
    %335 = vector.multi_reduction <maximumf>, %334, %cst_116 [2] : vector<8x16x16xf32> to vector<8x16xf32>
    %336 = vector.shape_cast %335 : vector<8x16xf32> to vector<8x16x1xf32>
    %337 = vector.broadcast %336 : vector<8x16x1xf32> to vector<8x16x16xf32>
    %338 = arith.subf %334, %337 : vector<8x16x16xf32>
    %339 = math.exp %338 : vector<8x16x16xf32>
    %cst_117 = arith.constant dense<0.000000e+00> : vector<8x16xf32>
    %340 = vector.multi_reduction <add>, %339, %cst_117 [2] : vector<8x16x16xf32> to vector<8x16xf32>
    %341 = vector.shape_cast %340 : vector<8x16xf32> to vector<8x16x1xf32>
    %342 = tpu.reciprocal %341 {approx = true} : vector<8x16x1xf32> -> vector<8x16x1xf32>
    %343 = vector.broadcast %342 : vector<8x16x1xf32> to vector<8x16x16xf32>
    %344 = arith.mulf %339, %343 : vector<8x16x16xf32>
    %345 = arith.truncf %344 : vector<8x16x16xf32> to vector<8x16x16xbf16>
    "tpu.trace_start"() <{level = 10 : i32, message = "tnm,tmd->tnd"}> : () -> ()
    %cst_118 = arith.constant dense<0.000000e+00> : vector<8x16x8xf32>
    %346 = tpu.matmul %345, %333, %cst_118 {dimension_numbers = #tpu.dot_dimension_numbers<[2], [1], [1], [2], [0, 0, 0, 1, 1, 2], [0], [0]>} : vector<8x16x16xbf16>, vector<8x16x8xbf16>, vector<8x16x8xf32> -> vector<8x16x8xf32>
    "tpu.trace_stop"() : () -> ()
    %347 = vector.shape_cast %346 : vector<8x16x8xf32> to vector<128x8xf32>
    %348 = arith.truncf %347 : vector<128x8xf32> to vector<128x8xbf16>
    %349 = vector.extract_strided_slice %298 {offsets = [8, 0], sizes = [8, 32], strides = [1, 1]} : vector<32x32xbf16> to vector<8x32xbf16>
    %cst_119 = arith.constant dense<0.000000e+00> : vector<128x32xf32>
    %350 = tpu.matmul %348, %349, %cst_119 {dimension_numbers = #tpu.dot_dimension_numbers<[1], [0], [0], [1], [0, 0, 1, 1], [], []>} : vector<128x8xbf16>, vector<8x32xbf16>, vector<128x32xf32> -> vector<128x32xf32>
    %351 = arith.addf %325, %350 : vector<128x32xf32>
    %352 = vector.extract_strided_slice %283 {offsets = [0, 0, 16], sizes = [8, 16, 8], strides = [1, 1, 1]} : vector<8x16x32xf32> to vector<8x16x8xf32>
    %cst_120 = arith.constant 0.353553385 : f32
    %353 = vector.broadcast %cst_120 : f32 to vector<8x16x8xf32>
    %354 = arith.mulf %352, %353 : vector<8x16x8xf32>
    %355 = arith.truncf %354 : vector<8x16x8xf32> to vector<8x16x8xbf16>
    %356 = vector.extract_strided_slice %290 {offsets = [0, 0, 16], sizes = [8, 16, 8], strides = [1, 1, 1]} : vector<8x16x32xf32> to vector<8x16x8xf32>
    %357 = arith.truncf %356 : vector<8x16x8xf32> to vector<8x16x8xbf16>
    %358 = vector.extract_strided_slice %297 {offsets = [0, 0, 16], sizes = [8, 16, 8], strides = [1, 1, 1]} : vector<8x16x32xf32> to vector<8x16x8xf32>
    %359 = arith.truncf %358 : vector<8x16x8xf32> to vector<8x16x8xbf16>
    "tpu.trace_start"() <{level = 10 : i32, message = "tnd,tmd->tnm"}> : () -> ()
    %cst_121 = arith.constant dense<0.000000e+00> : vector<8x16x16xf32>
    %360 = tpu.matmul %355, %357, %cst_121 {dimension_numbers = #tpu.dot_dimension_numbers<[2], [2], [1], [1], [0, 0, 0, 1, 1, 1], [0], [0]>} : vector<8x16x8xbf16>, vector<8x16x8xbf16>, vector<8x16x16xf32> -> vector<8x16x16xf32>
    "tpu.trace_stop"() : () -> ()
    %cst_122 = arith.constant dense<0xFF800000> : vector<8x16xf32>
    %361 = vector.multi_reduction <maximumf>, %360, %cst_122 [2] : vector<8x16x16xf32> to vector<8x16xf32>
    %362 = vector.shape_cast %361 : vector<8x16xf32> to vector<8x16x1xf32>
    %363 = vector.broadcast %362 : vector<8x16x1xf32> to vector<8x16x16xf32>
    %364 = arith.subf %360, %363 : vector<8x16x16xf32>
    %365 = math.exp %364 : vector<8x16x16xf32>
    %cst_123 = arith.constant dense<0.000000e+00> : vector<8x16xf32>
    %366 = vector.multi_reduction <add>, %365, %cst_123 [2] : vector<8x16x16xf32> to vector<8x16xf32>
    %367 = vector.shape_cast %366 : vector<8x16xf32> to vector<8x16x1xf32>
    %368 = tpu.reciprocal %367 {approx = true} : vector<8x16x1xf32> -> vector<8x16x1xf32>
    %369 = vector.broadcast %368 : vector<8x16x1xf32> to vector<8x16x16xf32>
    %370 = arith.mulf %365, %369 : vector<8x16x16xf32>
    %371 = arith.truncf %370 : vector<8x16x16xf32> to vector<8x16x16xbf16>
    "tpu.trace_start"() <{level = 10 : i32, message = "tnm,tmd->tnd"}> : () -> ()
    %cst_124 = arith.constant dense<0.000000e+00> : vector<8x16x8xf32>
    %372 = tpu.matmul %371, %359, %cst_124 {dimension_numbers = #tpu.dot_dimension_numbers<[2], [1], [1], [2], [0, 0, 0, 1, 1, 2], [0], [0]>} : vector<8x16x16xbf16>, vector<8x16x8xbf16>, vector<8x16x8xf32> -> vector<8x16x8xf32>
    "tpu.trace_stop"() : () -> ()
    %373 = vector.shape_cast %372 : vector<8x16x8xf32> to vector<128x8xf32>
    %374 = arith.truncf %373 : vector<128x8xf32> to vector<128x8xbf16>
    %375 = vector.extract_strided_slice %298 {offsets = [16, 0], sizes = [8, 32], strides = [1, 1]} : vector<32x32xbf16> to vector<8x32xbf16>
    %cst_125 = arith.constant dense<0.000000e+00> : vector<128x32xf32>
    %376 = tpu.matmul %374, %375, %cst_125 {dimension_numbers = #tpu.dot_dimension_numbers<[1], [0], [0], [1], [0, 0, 1, 1], [], []>} : vector<128x8xbf16>, vector<8x32xbf16>, vector<128x32xf32> -> vector<128x32xf32>
    %377 = arith.addf %351, %376 : vector<128x32xf32>
    %378 = vector.extract_strided_slice %283 {offsets = [0, 0, 24], sizes = [8, 16, 8], strides = [1, 1, 1]} : vector<8x16x32xf32> to vector<8x16x8xf32>
    %cst_126 = arith.constant 0.353553385 : f32
    %379 = vector.broadcast %cst_126 : f32 to vector<8x16x8xf32>
    %380 = arith.mulf %378, %379 : vector<8x16x8xf32>
    %381 = arith.truncf %380 : vector<8x16x8xf32> to vector<8x16x8xbf16>
    %382 = vector.extract_strided_slice %290 {offsets = [0, 0, 24], sizes = [8, 16, 8], strides = [1, 1, 1]} : vector<8x16x32xf32> to vector<8x16x8xf32>
    %383 = arith.truncf %382 : vector<8x16x8xf32> to vector<8x16x8xbf16>
    %384 = vector.extract_strided_slice %297 {offsets = [0, 0, 24], sizes = [8, 16, 8], strides = [1, 1, 1]} : vector<8x16x32xf32> to vector<8x16x8xf32>
    %385 = arith.truncf %384 : vector<8x16x8xf32> to vector<8x16x8xbf16>
    "tpu.trace_start"() <{level = 10 : i32, message = "tnd,tmd->tnm"}> : () -> ()
    %cst_127 = arith.constant dense<0.000000e+00> : vector<8x16x16xf32>
    %386 = tpu.matmul %381, %383, %cst_127 {dimension_numbers = #tpu.dot_dimension_numbers<[2], [2], [1], [1], [0, 0, 0, 1, 1, 1], [0], [0]>} : vector<8x16x8xbf16>, vector<8x16x8xbf16>, vector<8x16x16xf32> -> vector<8x16x16xf32>
    "tpu.trace_stop"() : () -> ()
    %cst_128 = arith.constant dense<0xFF800000> : vector<8x16xf32>
    %387 = vector.multi_reduction <maximumf>, %386, %cst_128 [2] : vector<8x16x16xf32> to vector<8x16xf32>
    %388 = vector.shape_cast %387 : vector<8x16xf32> to vector<8x16x1xf32>
    %389 = vector.broadcast %388 : vector<8x16x1xf32> to vector<8x16x16xf32>
    %390 = arith.subf %386, %389 : vector<8x16x16xf32>
    %391 = math.exp %390 : vector<8x16x16xf32>
    %cst_129 = arith.constant dense<0.000000e+00> : vector<8x16xf32>
    %392 = vector.multi_reduction <add>, %391, %cst_129 [2] : vector<8x16x16xf32> to vector<8x16xf32>
    %393 = vector.shape_cast %392 : vector<8x16xf32> to vector<8x16x1xf32>
    %394 = tpu.reciprocal %393 {approx = true} : vector<8x16x1xf32> -> vector<8x16x1xf32>
    %395 = vector.broadcast %394 : vector<8x16x1xf32> to vector<8x16x16xf32>
    %396 = arith.mulf %391, %395 : vector<8x16x16xf32>
    %397 = arith.truncf %396 : vector<8x16x16xf32> to vector<8x16x16xbf16>
    "tpu.trace_start"() <{level = 10 : i32, message = "tnm,tmd->tnd"}> : () -> ()
    %cst_130 = arith.constant dense<0.000000e+00> : vector<8x16x8xf32>
    %398 = tpu.matmul %397, %385, %cst_130 {dimension_numbers = #tpu.dot_dimension_numbers<[2], [1], [1], [2], [0, 0, 0, 1, 1, 2], [0], [0]>} : vector<8x16x16xbf16>, vector<8x16x8xbf16>, vector<8x16x8xf32> -> vector<8x16x8xf32>
    "tpu.trace_stop"() : () -> ()
    %399 = vector.shape_cast %398 : vector<8x16x8xf32> to vector<128x8xf32>
    %400 = arith.truncf %399 : vector<128x8xf32> to vector<128x8xbf16>
    %401 = vector.extract_strided_slice %298 {offsets = [24, 0], sizes = [8, 32], strides = [1, 1]} : vector<32x32xbf16> to vector<8x32xbf16>
    %cst_131 = arith.constant dense<0.000000e+00> : vector<128x32xf32>
    %402 = tpu.matmul %400, %401, %cst_131 {dimension_numbers = #tpu.dot_dimension_numbers<[1], [0], [0], [1], [0, 0, 1, 1], [], []>} : vector<128x8xbf16>, vector<8x32xbf16>, vector<128x32xf32> -> vector<128x32xf32>
    %403 = arith.addf %377, %402 : vector<128x32xf32>
    %404 = arith.addf %254, %403 : vector<128x32xf32>
    %c0_132 = arith.constant 0 : index
    %c0_133 = arith.constant 0 : index
    %405 = vector.load %arg32[%c0_132, %c0_133] : memref<1x32xf32, #tpu.memory_space<vmem>>, vector<1x32xf32>
    %406 = vector.broadcast %405 : vector<1x32xf32> to vector<128x32xf32>
    %407 = arith.addf %404, %406 : vector<128x32xf32>
    %cst_134 = arith.constant dense<0.000000e+00> : vector<128xf32>
    %408 = vector.multi_reduction <add>, %407, %cst_134 [1] : vector<128x32xf32> to vector<128xf32>
    %409 = vector.shape_cast %408 : vector<128xf32> to vector<128x1xf32>
    %cst_135 = arith.constant 3.200000e+01 : f32
    %410 = vector.broadcast %cst_135 : f32 to vector<128x1xf32>
    %411 = arith.divf %409, %410 : vector<128x1xf32>
    %412 = vector.broadcast %411 : vector<128x1xf32> to vector<128x32xf32>
    %413 = arith.subf %407, %412 : vector<128x32xf32>
    %414 = arith.mulf %413, %413 : vector<128x32xf32>
    %cst_136 = arith.constant dense<0.000000e+00> : vector<128xf32>
    %415 = vector.multi_reduction <add>, %414, %cst_136 [1] : vector<128x32xf32> to vector<128xf32>
    %416 = vector.shape_cast %415 : vector<128xf32> to vector<128x1xf32>
    %cst_137 = arith.constant 3.200000e+01 : f32
    %417 = vector.broadcast %cst_137 : f32 to vector<128x1xf32>
    %418 = arith.divf %416, %417 : vector<128x1xf32>
    %cst_138 = arith.constant 9.99999997E-7 : f32
    %419 = vector.broadcast %cst_138 : f32 to vector<128x1xf32>
    %420 = arith.addf %418, %419 : vector<128x1xf32>
    %421 = math.rsqrt %420 : vector<128x1xf32>
    %422 = vector.broadcast %421 : vector<128x1xf32> to vector<128x32xf32>
    %423 = arith.mulf %413, %422 : vector<128x32xf32>
    %c0_139 = arith.constant 0 : index
    %c0_140 = arith.constant 0 : index
    %424 = vector.load %arg33[%c0_139, %c0_140] : memref<1x32xf32, #tpu.memory_space<vmem>>, vector<1x32xf32>
    %425 = vector.broadcast %424 : vector<1x32xf32> to vector<128x32xf32>
    %426 = arith.mulf %423, %425 : vector<128x32xf32>
    %c0_141 = arith.constant 0 : index
    %c0_142 = arith.constant 0 : index
    %427 = vector.load %arg34[%c0_141, %c0_142] : memref<1x32xf32, #tpu.memory_space<vmem>>, vector<1x32xf32>
    %428 = vector.broadcast %427 : vector<1x32xf32> to vector<128x32xf32>
    %429 = arith.addf %426, %428 : vector<128x32xf32>
    %430 = arith.truncf %429 : vector<128x32xf32> to vector<128x32xbf16>
    %c0_143 = arith.constant 0 : index
    %c0_144 = arith.constant 0 : index
    %431 = vector.load %arg35[%c0_143, %c0_144] : memref<32x128xbf16, #tpu.memory_space<vmem>>, vector<32x128xbf16>
    %cst_145 = arith.constant dense<0.000000e+00> : vector<128x128xf32>
    %432 = tpu.matmul %430, %431, %cst_145 {dimension_numbers = #tpu.dot_dimension_numbers<[1], [0], [0], [1], [0, 0, 1, 1], [], []>} : vector<128x32xbf16>, vector<32x128xbf16>, vector<128x128xf32> -> vector<128x128xf32>
    %c0_146 = arith.constant 0 : index
    %c0_147 = arith.constant 0 : index
    %433 = vector.load %arg36[%c0_146, %c0_147] : memref<1x128xf32, #tpu.memory_space<vmem>>, vector<1x128xf32>
    %434 = vector.broadcast %433 : vector<1x128xf32> to vector<128x128xf32>
    %435 = arith.addf %432, %434 : vector<128x128xf32>
    %cst_148 = arith.constant 5.000000e-01 : f32
    %436 = vector.broadcast %cst_148 : f32 to vector<128x128xf32>
    %437 = arith.mulf %436, %435 : vector<128x128xf32>
    %cst_149 = arith.constant 0.707106769 : f32
    %438 = vector.broadcast %cst_149 : f32 to vector<128x128xf32>
    %439 = arith.mulf %435, %438 : vector<128x128xf32>
    %440 = math.absf %439 : vector<128x128xf32>
    %cst_150 = arith.constant 0.327591091 : f32
    %441 = vector.broadcast %cst_150 : f32 to vector<128x128xf32>
    %442 = arith.mulf %441, %440 : vector<128x128xf32>
    %cst_151 = arith.constant 1.000000e+00 : f32
    %443 = vector.broadcast %cst_151 : f32 to vector<128x128xf32>
    %444 = arith.addf %443, %442 : vector<128x128xf32>
    %cst_152 = arith.constant 1.000000e+00 : f32
    %445 = vector.broadcast %cst_152 : f32 to vector<128x128xf32>
    %446 = arith.divf %445, %444 : vector<128x128xf32>
    %cst_153 = arith.constant 1.06140542 : f32
    %447 = vector.broadcast %cst_153 : f32 to vector<128x128xf32>
    %448 = arith.mulf %446, %447 : vector<128x128xf32>
    %cst_154 = arith.constant -1.45315206 : f32
    %449 = vector.broadcast %cst_154 : f32 to vector<128x128xf32>
    %450 = arith.addf %449, %448 : vector<128x128xf32>
    %451 = arith.mulf %446, %450 : vector<128x128xf32>
    %cst_155 = arith.constant 1.42141378 : f32
    %452 = vector.broadcast %cst_155 : f32 to vector<128x128xf32>
    %453 = arith.addf %452, %451 : vector<128x128xf32>
    %454 = arith.mulf %446, %453 : vector<128x128xf32>
    %cst_156 = arith.constant -0.284496725 : f32
    %455 = vector.broadcast %cst_156 : f32 to vector<128x128xf32>
    %456 = arith.addf %455, %454 : vector<128x128xf32>
    %457 = arith.mulf %446, %456 : vector<128x128xf32>
    %cst_157 = arith.constant 0.254829586 : f32
    %458 = vector.broadcast %cst_157 : f32 to vector<128x128xf32>
    %459 = arith.addf %458, %457 : vector<128x128xf32>
    %460 = arith.mulf %446, %459 : vector<128x128xf32>
    %cst_158 = arith.constant 0.000000e+00 : f32
    %461 = vector.broadcast %cst_158 : f32 to vector<128x128xf32>
    %462 = arith.subf %461, %440 : vector<128x128xf32>
    %463 = arith.mulf %462, %440 : vector<128x128xf32>
    %464 = math.exp %463 : vector<128x128xf32>
    %465 = arith.mulf %460, %464 : vector<128x128xf32>
    %cst_159 = arith.constant 1.000000e+00 : f32
    %466 = vector.broadcast %cst_159 : f32 to vector<128x128xf32>
    %467 = arith.subf %466, %465 : vector<128x128xf32>
    %cst_160 = arith.constant 0.000000e+00 : f32
    %468 = vector.broadcast %cst_160 : f32 to vector<128x128xf32>
    %469 = arith.cmpf oge, %439, %468 : vector<128x128xf32>
    %cst_161 = arith.constant 0.000000e+00 : f32
    %470 = vector.broadcast %cst_161 : f32 to vector<128x128xf32>
    %471 = arith.subf %470, %467 : vector<128x128xf32>
    %472 = arith.select %469, %467, %471 : vector<128x128xi1>, vector<128x128xf32>
    %cst_162 = arith.constant 1.000000e+00 : f32
    %473 = vector.broadcast %cst_162 : f32 to vector<128x128xf32>
    %474 = arith.addf %473, %472 : vector<128x128xf32>
    %475 = arith.mulf %437, %474 : vector<128x128xf32>
    %476 = arith.truncf %475 : vector<128x128xf32> to vector<128x128xbf16>
    %c0_163 = arith.constant 0 : index
    %c0_164 = arith.constant 0 : index
    %477 = vector.load %arg37[%c0_163, %c0_164] : memref<128x32xbf16, #tpu.memory_space<vmem>>, vector<128x32xbf16>
    %cst_165 = arith.constant dense<0.000000e+00> : vector<128x32xf32>
    %478 = tpu.matmul %476, %477, %cst_165 {dimension_numbers = #tpu.dot_dimension_numbers<[1], [0], [0], [1], [0, 0, 1, 1], [], []>} : vector<128x128xbf16>, vector<128x32xbf16>, vector<128x32xf32> -> vector<128x32xf32>
    %c0_166 = arith.constant 0 : index
    %c0_167 = arith.constant 0 : index
    %479 = vector.load %arg38[%c0_166, %c0_167] : memref<1x32xf32, #tpu.memory_space<vmem>>, vector<1x32xf32>
    %480 = vector.broadcast %479 : vector<1x32xf32> to vector<128x32xf32>
    %481 = arith.addf %478, %480 : vector<128x32xf32>
    %482 = arith.addf %407, %481 : vector<128x32xf32>
    %483 = vector.shape_cast %482 : vector<128x32xf32> to vector<1x8x16x32xf32>
    %c0_168 = arith.constant 0 : index
    %c0_169 = arith.constant 0 : index
    %c0_170 = arith.constant 0 : index
    %c0_171 = arith.constant 0 : index
    %484 = vector.load %arg39[%c0_168, %c0_169, %c0_170, %c0_171] : memref<1x8x16x32xf32, #tpu.memory_space<vmem>>, vector<1x8x16x32xf32>
    tpu.vector_store %arg39[%c0_168, %c0_169, %c0_170, %c0_171], %483 {strides = array<i32>} : memref<1x8x16x32xf32, #tpu.memory_space<vmem>>, vector<1x8x16x32xf32>,
    return
  }
  func.func @transform_0(%arg0: i32) -> (i32, i32, i32, i32) {
    %c0_i32 = arith.constant 0 : i32
    %c0_i32_0 = arith.constant 0 : i32
    %c0_i32_1 = arith.constant 0 : i32
    %c0_i32_2 = arith.constant 0 : i32
    return %arg0, %c0_i32, %c0_i32_0, %c0_i32_1 : i32, i32, i32, i32
  }
  func.func @transform_1(%arg0: i32) -> (i32, i32) {
    %c0_i32 = arith.constant 0 : i32
    %c0_i32_0 = arith.constant 0 : i32
    %c0_i32_1 = arith.constant 0 : i32
    return %c0_i32, %c0_i32_0 : i32, i32
  }
  func.func @transform_2(%arg0: i32) -> (i32, i32) {
    %c0_i32 = arith.constant 0 : i32
    %c0_i32_0 = arith.constant 0 : i32
    %c0_i32_1 = arith.constant 0 : i32
    return %c0_i32, %c0_i32_0 : i32, i32
  }
  func.func @transform_3(%arg0: i32) -> (i32, i32) {
    %c0_i32 = arith.constant 0 : i32
    %c0_i32_0 = arith.constant 0 : i32
    %c0_i32_1 = arith.constant 0 : i32
    return %c0_i32, %c0_i32_0 : i32, i32
  }
  func.func @transform_4(%arg0: i32) -> (i32, i32) {
    %c0_i32 = arith.constant 0 : i32
    %c0_i32_0 = arith.constant 0 : i32
    %c0_i32_1 = arith.constant 0 : i32
    return %c0_i32, %c0_i32_0 : i32, i32
  }
  func.func @transform_5(%arg0: i32) -> (i32, i32) {
    %c0_i32 = arith.constant 0 : i32
    %c0_i32_0 = arith.constant 0 : i32
    %c0_i32_1 = arith.constant 0 : i32
    return %c0_i32, %c0_i32_0 : i32, i32
  }
  func.func @transform_6(%arg0: i32) -> (i32, i32) {
    %c0_i32 = arith.constant 0 : i32
    %c0_i32_0 = arith.constant 0 : i32
    %c0_i32_1 = arith.constant 0 : i32
    return %c0_i32, %c0_i32_0 : i32, i32
  }
  func.func @transform_7(%arg0: i32) -> (i32, i32) {
    %c0_i32 = arith.constant 0 : i32
    %c0_i32_0 = arith.constant 0 : i32
    %c0_i32_1 = arith.constant 0 : i32
    return %c0_i32, %c0_i32_0 : i32, i32
  }
  func.func @transform_8(%arg0: i32) -> (i32, i32) {
    %c0_i32 = arith.constant 0 : i32
    %c0_i32_0 = arith.constant 0 : i32
    %c0_i32_1 = arith.constant 0 : i32
    return %c0_i32, %c0_i32_0 : i32, i32
  }
  func.func @transform_9(%arg0: i32) -> (i32, i32) {
    %c0_i32 = arith.constant 0 : i32
    %c0_i32_0 = arith.constant 0 : i32
    %c0_i32_1 = arith.constant 0 : i32
    return %c0_i32, %c0_i32_0 : i32, i32
  }
  func.func @transform_10(%arg0: i32) -> (i32, i32) {
    %c0_i32 = arith.constant 0 : i32
    %c0_i32_0 = arith.constant 0 : i32
    %c0_i32_1 = arith.constant 0 : i32
    return %c0_i32, %c0_i32_0 : i32, i32
  }
  func.func @transform_11(%arg0: i32) -> (i32, i32) {
    %c0_i32 = arith.constant 0 : i32
    %c0_i32_0 = arith.constant 0 : i32
    %c0_i32_1 = arith.constant 0 : i32
    return %c0_i32, %c0_i32_0 : i32, i32
  }
  func.func @transform_12(%arg0: i32) -> (i32, i32) {
    %c0_i32 = arith.constant 0 : i32
    %c0_i32_0 = arith.constant 0 : i32
    %c0_i32_1 = arith.constant 0 : i32
    return %c0_i32, %c0_i32_0 : i32, i32
  }
  func.func @transform_13(%arg0: i32) -> (i32, i32) {
    %c0_i32 = arith.constant 0 : i32
    %c0_i32_0 = arith.constant 0 : i32
    %c0_i32_1 = arith.constant 0 : i32
    return %c0_i32, %c0_i32_0 : i32, i32
  }
  func.func @transform_14(%arg0: i32) -> (i32, i32) {
    %c0_i32 = arith.constant 0 : i32
    %c0_i32_0 = arith.constant 0 : i32
    %c0_i32_1 = arith.constant 0 : i32
    return %c0_i32, %c0_i32_0 : i32, i32
  }
  func.func @transform_15(%arg0: i32) -> (i32, i32) {
    %c0_i32 = arith.constant 0 : i32
    %c0_i32_0 = arith.constant 0 : i32
    %c0_i32_1 = arith.constant 0 : i32
    return %c0_i32, %c0_i32_0 : i32, i32
  }
  func.func @transform_16(%arg0: i32) -> (i32, i32) {
    %c0_i32 = arith.constant 0 : i32
    %c0_i32_0 = arith.constant 0 : i32
    %c0_i32_1 = arith.constant 0 : i32
    return %c0_i32, %c0_i32_0 : i32, i32
  }
  func.func @transform_17(%arg0: i32) -> (i32, i32) {
    %c0_i32 = arith.constant 0 : i32
    %c0_i32_0 = arith.constant 0 : i32
    %c0_i32_1 = arith.constant 0 : i32
    return %c0_i32, %c0_i32_0 : i32, i32
  }
  func.func @transform_18(%arg0: i32) -> (i32, i32) {
    %c0_i32 = arith.constant 0 : i32
    %c0_i32_0 = arith.constant 0 : i32
    %c0_i32_1 = arith.constant 0 : i32
    return %c0_i32, %c0_i32_0 : i32, i32
  }
  func.func @transform_19(%arg0: i32) -> (i32, i32) {
    %c0_i32 = arith.constant 0 : i32
    %c0_i32_0 = arith.constant 0 : i32
    %c0_i32_1 = arith.constant 0 : i32
    return %c0_i32, %c0_i32_0 : i32, i32
  }
  func.func @transform_20(%arg0: i32) -> (i32, i32) {
    %c0_i32 = arith.constant 0 : i32
    %c0_i32_0 = arith.constant 0 : i32
    %c0_i32_1 = arith.constant 0 : i32
    return %c0_i32, %c0_i32_0 : i32, i32
  }
  func.func @transform_21(%arg0: i32) -> (i32, i32) {
    %c0_i32 = arith.constant 0 : i32
    %c0_i32_0 = arith.constant 0 : i32
    %c0_i32_1 = arith.constant 0 : i32
    return %c0_i32, %c0_i32_0 : i32, i32
  }
  func.func @transform_22(%arg0: i32) -> (i32, i32) {
    %c0_i32 = arith.constant 0 : i32
    %c0_i32_0 = arith.constant 0 : i32
    %c0_i32_1 = arith.constant 0 : i32
    return %c0_i32, %c0_i32_0 : i32, i32
  }
  func.func @transform_23(%arg0: i32) -> (i32, i32) {
    %c0_i32 = arith.constant 0 : i32
    %c0_i32_0 = arith.constant 0 : i32
    %c0_i32_1 = arith.constant 0 : i32
    return %c0_i32, %c0_i32_0 : i32, i32
  }
  func.func @transform_24(%arg0: i32) -> (i32, i32) {
    %c0_i32 = arith.constant 0 : i32
    %c0_i32_0 = arith.constant 0 : i32
    %c0_i32_1 = arith.constant 0 : i32
    return %c0_i32, %c0_i32_0 : i32, i32
  }
  func.func @transform_25(%arg0: i32) -> (i32, i32) {
    %c0_i32 = arith.constant 0 : i32
    %c0_i32_0 = arith.constant 0 : i32
    %c0_i32_1 = arith.constant 0 : i32
    return %c0_i32, %c0_i32_0 : i32, i32
  }
  func.func @transform_26(%arg0: i32) -> (i32, i32) {
    %c0_i32 = arith.constant 0 : i32
    %c0_i32_0 = arith.constant 0 : i32
    %c0_i32_1 = arith.constant 0 : i32
    return %c0_i32, %c0_i32_0 : i32, i32
  }
  func.func @transform_27(%arg0: i32) -> (i32, i32) {
    %c0_i32 = arith.constant 0 : i32
    %c0_i32_0 = arith.constant 0 : i32
    %c0_i32_1 = arith.constant 0 : i32
    return %c0_i32, %c0_i32_0 : i32, i32
  }
  func.func @transform_28(%arg0: i32) -> (i32, i32) {
    %c0_i32 = arith.constant 0 : i32
    %c0_i32_0 = arith.constant 0 : i32
    %c0_i32_1 = arith.constant 0 : i32
    return %c0_i32, %c0_i32_0 : i32, i32
  }
  func.func @transform_29(%arg0: i32) -> (i32, i32) {
    %c0_i32 = arith.constant 0 : i32
    %c0_i32_0 = arith.constant 0 : i32
    %c0_i32_1 = arith.constant 0 : i32
    return %c0_i32, %c0_i32_0 : i32, i32
  }
  func.func @transform_30(%arg0: i32) -> (i32, i32) {
    %c0_i32 = arith.constant 0 : i32
    %c0_i32_0 = arith.constant 0 : i32
    %c0_i32_1 = arith.constant 0 : i32
    return %c0_i32, %c0_i32_0 : i32, i32
  }
  func.func @transform_31(%arg0: i32) -> (i32, i32) {
    %c0_i32 = arith.constant 0 : i32
    %c0_i32_0 = arith.constant 0 : i32
    %c0_i32_1 = arith.constant 0 : i32
    return %c0_i32, %c0_i32_0 : i32, i32
  }
  func.func @transform_32(%arg0: i32) -> (i32, i32) {
    %c0_i32 = arith.constant 0 : i32
    %c0_i32_0 = arith.constant 0 : i32
    %c0_i32_1 = arith.constant 0 : i32
    return %c0_i32, %c0_i32_0 : i32, i32
  }
  func.func @transform_33(%arg0: i32) -> (i32, i32) {
    %c0_i32 = arith.constant 0 : i32
    %c0_i32_0 = arith.constant 0 : i32
    %c0_i32_1 = arith.constant 0 : i32
    return %c0_i32, %c0_i32_0 : i32, i32
  }
  func.func @transform_34(%arg0: i32) -> (i32, i32) {
    %c0_i32 = arith.constant 0 : i32
    %c0_i32_0 = arith.constant 0 : i32
    %c0_i32_1 = arith.constant 0 : i32
    return %c0_i32, %c0_i32_0 : i32, i32
  }
  func.func @transform_35(%arg0: i32) -> (i32, i32) {
    %c0_i32 = arith.constant 0 : i32
    %c0_i32_0 = arith.constant 0 : i32
    %c0_i32_1 = arith.constant 0 : i32
    return %c0_i32, %c0_i32_0 : i32, i32
  }
  func.func @transform_36(%arg0: i32) -> (i32, i32) {
    %c0_i32 = arith.constant 0 : i32
    %c0_i32_0 = arith.constant 0 : i32
    %c0_i32_1 = arith.constant 0 : i32
    return %c0_i32, %c0_i32_0 : i32, i32
  }
  func.func @transform_37(%arg0: i32) -> (i32, i32) {
    %c0_i32 = arith.constant 0 : i32
    %c0_i32_0 = arith.constant 0 : i32
    %c0_i32_1 = arith.constant 0 : i32
    return %c0_i32, %c0_i32_0 : i32, i32
  }
  func.func @transform_38(%arg0: i32) -> (i32, i32, i32, i32) {
    %c0_i32 = arith.constant 0 : i32
    %c0_i32_0 = arith.constant 0 : i32
    %c0_i32_1 = arith.constant 0 : i32
    %c0_i32_2 = arith.constant 0 : i32
    return %arg0, %c0_i32, %c0_i32_0, %c0_i32_1 : i32, i32, i32, i32
  }
  func.func @transform_39(%arg0: i32) -> (i32, i32, i32) {
    %c0_i32 = arith.constant 0 : i32
    %c0_i32_0 = arith.constant 0 : i32
    %c0_i32_1 = arith.constant 0 : i32
    return %arg0, %c0_i32, %c0_i32_0 : i32, i32, i32
  }
}

</mosaic_0001>

<bundles_post_ra>
// kernel: trecvit_block_forward.1
= control target key start
LH: loop header
LB: loop body
LE: loop exit
PB: predicated region body
PF: predicated region fallthrough
CT: control target
= control target key end

     0   :  { %s12243_s6 = smov 1   ;;  %s12244_s10 = smov 2   ;;  %s16155_s0 = inlined_call_operand.smem [shape: u32[40], index: -1, kind: input, shape index: {}] }
   0x1   :  { %s12301_s5 = sld [smem:[%s16155_s0]]   ;;  %s12245_s14 = smov 3  }
   0x2   :  { %s12306_s9 = sld [smem:[%s16155_s0 + %s12243_s6]]   ;;  %s12246_s18 = smov 4  }
   0x3   :  { %s12311_s13 = sld [smem:[%s16155_s0 + %s12244_s10]]   ;;  %s12247_s22 = smov 5  }
   0x4   :  { %s12316_s17 = sld [smem:[%s16155_s0 + %s12245_s14]]   ;;  %s12248_s26 = smov 6  }
   0x5   :  { %s12321_s21 = sld [smem:[%s16155_s0 + %s12246_s18]]   ;;  %s12249_s30 = smov 7  }
   0x6   :  { %s12326_s25 = sld [smem:[%s16155_s0 + %s12247_s22]]   ;;  %s12250_s4 = smov 8  }
   0x7   :  { %16244 = sst [smem:[#allocation5_spill]] %s12301_s5  ;;  %s12251_s10 = smov 9  }
   0x8   :  { %s12331_s29 = sld [smem:[%s16155_s0 + %s12248_s26]]   ;;  %s12252_s15 = smov 10  }
   0x9   :  { %s12336_s3 = sld [smem:[%s16155_s0 + %s12249_s30]]   ;;  %s12253_s20 = smov 11  }
   0xa   :  { %s12341_s8 = sld [smem:[%s16155_s0 + %s12250_s4]]   ;;  %s12254_s26 = smov 12  }
   0xb   :  { %s12346_s14 = sld [smem:[%s16155_s0 + %s12251_s10]]   ;;  %s12255_s1 = smov 13  }
   0xc   :  { %s12351_s19 = sld [smem:[%s16155_s0 + %s12252_s15]]   ;;  %s12256_s7 = smov 14  }
   0xd   :  { %s12356_s24 = sld [smem:[%s16155_s0 + %s12253_s20]]   ;;  %s12257_s15 = smov 15  }
   0xe   :  { %s12361_s30 = sld [smem:[%s16155_s0 + %s12254_s26]]   ;;  %s12258_s22 = smov 16  }
   0xf   :  { %16245 = sst [smem:[#allocation6_spill]] %s12336_s3  ;;  %s12259_s28 = smov 17  }
  0x10   :  { %16246 = sst [smem:[#allocation7_spill]] %s12341_s8 }
  0x11   :  { %s12366_s6 = sld [smem:[%s16155_s0 + %s12255_s1]]  }
  0x12   :  { %s12371_s12 = sld [smem:[%s16155_s0 + %s12256_s7]]   ;;  %s12260_s7 = smov 18  }
  0x13   :  { %s12376_s20 = sld [smem:[%s16155_s0 + %s12257_s15]]   ;;  %s12261_s15 = smov 19  }
  0x14   :  { %s12381_s27 = sld [smem:[%s16155_s0 + %s12258_s22]]   ;;  %s12262_s22 = smov 20  }
  0x15   :  { %s12386_s4 = sld [smem:[%s16155_s0 + %s12259_s28]]   ;;  %s12263_s28 = smov 21  }
  0x17   :  { %16247 = sst [smem:[#allocation8_spill]] %s12366_s6 }
  0x18   :  { %16248 = sst [smem:[#allocation9_spill]] %s12371_s12 }
  0x19   :  { %16249 = sst [smem:[#allocation10_spill]] %s12376_s20 }
  0x1a   :  { %16250 = sst [smem:[#allocation11_spill]] %s12381_s27 }
  0x1b   :  { %16251 = sst [smem:[#allocation12_spill]] %s12386_s4 }
  0x1c   :  { %s12391_s12 = sld [smem:[%s16155_s0 + %s12260_s7]]   ;;  %s12264_s7 = smov 22  }
  0x1d   :  { %s12396_s20 = sld [smem:[%s16155_s0 + %s12261_s15]]   ;;  %s12265_s15 = smov 23  }
  0x1e   :  { %s12401_s27 = sld [smem:[%s16155_s0 + %s12262_s22]]   ;;  %s12266_s22 = smov 24  }
  0x1f   :  { %s12406_s4 = sld [smem:[%s16155_s0 + %s12263_s28]]   ;;  %s12267_s28 = smov 25  }
  0x22   :  { %16252 = sst [smem:[#allocation13_spill]] %s12391_s12 }
  0x23   :  { %16253 = sst [smem:[#allocation14_spill]] %s12396_s20 }
  0x24   :  { %16254 = sst [smem:[#allocation15_spill]] %s12401_s27 }
  0x25   :  { %16255 = sst [smem:[#allocation16_spill]] %s12406_s4 }
  0x26   :  { %s12411_s12 = sld [smem:[%s16155_s0 + %s12264_s7]]   ;;  %s12268_s7 = smov 26  }
  0x27   :  { %s12416_s20 = sld [smem:[%s16155_s0 + %s12265_s15]]   ;;  %s12269_s15 = smov 27  }
  0x28   :  { %s12421_s27 = sld [smem:[%s16155_s0 + %s12266_s22]]   ;;  %s12270_s22 = smov 28  }
  0x29   :  { %s12426_s4 = sld [smem:[%s16155_s0 + %s12267_s28]]   ;;  %s12271_s28 = smov 29  }
  0x2c   :  { %16256 = sst [smem:[#allocation17_spill]] %s12411_s12 }
  0x2d   :  { %16257 = sst [smem:[#allocation18_spill]] %s12416_s20 }
  0x2e   :  { %16258 = sst [smem:[#allocation19_spill]] %s12421_s27 }
  0x2f   :  { %16259 = sst [smem:[#allocation20_spill]] %s12426_s4 }
  0x30   :  { %s12431_s12 = sld [smem:[%s16155_s0 + %s12268_s7]]   ;;  %s12272_s7 = smov 30  }
  0x31   :  { %s12436_s20 = sld [smem:[%s16155_s0 + %s12269_s15]]   ;;  %s12273_s15 = smov 31  }
  0x32   :  { %s12441_s27 = sld [smem:[%s16155_s0 + %s12270_s22]]   ;;  %s12274_s22 = smov 32  }
  0x33   :  { %s12446_s4 = sld [smem:[%s16155_s0 + %s12271_s28]]   ;;  %s12275_s28 = smov 33  }
  0x36   :  { %16260 = sst [smem:[#allocation21_spill]] %s12431_s12 }
  0x37   :  { %16261 = sst [smem:[#allocation22_spill]] %s12436_s20 }
  0x38   :  { %16262 = sst [smem:[#allocation23_spill]] %s12441_s27 }
  0x39   :  { %16263 = sst [smem:[#allocation24_spill]] %s12446_s4 }
  0x3a   :  { %s12451_s12 = sld [smem:[%s16155_s0 + %s12272_s7]]   ;;  %s12276_s7 = smov 34  }
  0x3b   :  { %s12456_s20 = sld [smem:[%s16155_s0 + %s12273_s15]]   ;;  %s12277_s15 = smov 35  }
  0x3c   :  { %s12461_s27 = sld [smem:[%s16155_s0 + %s12274_s22]]   ;;  %s12278_s22 = smov 36  }
  0x3d   :  { %s12466_s4 = sld [smem:[%s16155_s0 + %s12275_s28]]   ;;  %s12279_s28 = smov 37  }
  0x40   :  { %16264 = sst [smem:[#allocation25_spill]] %s12451_s12 }
  0x41   :  { %16265 = sst [smem:[#allocation26_spill]] %s12456_s20 }
  0x42   :  { %16266 = sst [smem:[#allocation27_spill]] %s12461_s27 }
  0x43   :  { %16267 = sst [smem:[#allocation28_spill]] %s12466_s4 }
  0x44   :  { %s12471_s12 = sld [smem:[%s16155_s0 + %s12276_s7]]   ;;  %s12280_s7 = smov 38  }
  0x45   :  { %s12476_s20 = sld [smem:[%s16155_s0 + %s12277_s15]]   ;;  %s12281_s15 = smov 39  }
  0x46   :  { %s12481_s27 = sld [smem:[%s16155_s0 + %s12278_s22]]  }
  0x47   :  { %s12486_s4 = sld [smem:[%s16155_s0 + %s12279_s28]]  }
  0x4a   :  { %16268 = sst [smem:[#allocation29_spill]] %s12471_s12 }
  0x4b   :  { %16269 = sst [smem:[#allocation30_spill]] %s12476_s20 }
  0x4c   :  { %s12491_s12 = sld [smem:[%s16155_s0 + %s12280_s7]]  }
  0x4d   :  { %16270 = sst [smem:[#allocation31_spill]] %s12486_s4 }
  0x4e   :  { %s12496_s20 = sld [smem:[%s16155_s0 + %s12281_s15]]  }
  0x4f   :  { %85 = vsyncpa [#allocation3], 0 }
  0x50   :  { %87 = vsyncpa [#allocation3 + $0x1], 0  ;;  %s12498_s22 = smov 0   ;;  %s12500_s23 = smov 0  }
  0x51   :  { %s12502_s26 = smov 0   ;;  %s12504_s28 = smov 0  }
  0x52 LB: > { %s16271_s6 = sld [smem:[#allocation8_spill]]  ;;  %s12519_s0 = sadd.s32 4294967295, %s12241_s28   ;;  %s12229_s22 = sphi %s12498_s22, %s16454_s22   ;;  %s12241_s28 = sphi %s12504_s28, %s16457_s28   ;;  %s12237_s26 = sphi %s12502_s26, %s16456_s26   ;;  %s12233_s23 = sphi %s12500_s23, %s16455_s23  }
  0x53   : > { %s9960_s1 = sadd.s32 4294967294, %s12241_s28   ;;  %s12523_s2 = sadd.s32 1, %s12241_s28  }
  0x54   : > { %s903_s7 = sadd.s32 1, %s12237_s26  ;;  %s900_s10 = ssub.s32 %s12241_s28, %s12523_s2 }
  0x55   : > { %p913_p0 = scmp.ne.s32.totalorder %s12237_s26, %s12233_s23  ;;  %p901_p1 = scmp.eq.s32.totalorder %s900_s10, 0 }
  0x56   : > { %p914_p2 = scmp.eq.s32.totalorder %s12519_s0, 1  ;;  %p919_p3 = scmp.ne.s32.totalorder %s12233_s23, %s12229_s22 }
  0x57   : > { %p920_p4 = scmp.eq.s32.totalorder %s9960_s1, 1  ;;  %p9963_p7 = scmp.ge.s32.totalorder %s12241_s28, 1 }
  0x58   : > { %s12534_s11 = scalar_select %p901_p1, %s12237_s26, %s903_s7  }
  0x59   : > { %p12536_p5 = por %p914_p2, %p913_p0  ;;  %p12540_p6 = por %p920_p4, %p919_p3 }
  0x5a   : > { %p1083_p8 = scmp.lt.s32.totalorder %s12241_s28, 3 }
  0x5c   : > { %p1084_p9 = pnand %p9963_p7, %p1083_p8 }
  0x5e   : > { %1087 = sbr.rel (%p1084_p9) target bundleno = 6335 (0x18bf), region = 172 }
  0x65   : > { %s16274_s5 = sld [smem:[#allocation5_spill]]  ;;  %p1184_p10 = scmp.lt.s32.totalorder %s12519_s0, 1  ;;  %vm1227_vm0 = vcmask 261120   ;;  %v11409_v48 = vld [vmem:[%s12311_s13] sm:$0xff]   ;;  %v11410_v49 = vld [vmem:[%s12311_s13 + $0x8] sm:$0xff]   ;;  %v1344_v61 = vlaneseq }
  0x66   : > { %11265 = vmatprep.subr.bf16.mxu1 %v11409_v48  ;;  %10525 = vmatprep.subr.bf16.mxu0 %v11409_v48  ;;  %v12653_v50 = vld [vmem:[%s12321_s21] sm:$0xff]   ;;  %s16279_s3 = sld [smem:[#allocation6_spill]]  ;;  %s16302_s8 = sld [smem:[#allocation7_spill]] }
  0x67   : > { %s12548_s18 = scalar_select %p1184_p10, %s12519_s0, 1  ;;  %11267 = vmatpush3.bf16.msra.mxu1 %v11409_v48  ;;  %10526 = vmatpush3.bf16.msra.mxu0 %v11409_v48 }
  0x68   : > { %11266 = vmatprep.subr.bf16.mxu1 %v11410_v49  ;;  %10527 = vmatprep.subr.bf16.mxu0 %v11410_v49  ;;  %s16331_s10 = sld [smem:[#allocation9_spill]]  ;;  %s16450_s4 = sld [smem:[#allocation31_spill]] }
  0x69   : > { %s10216_s1 = sshll.u32 %s12548_s18, 7 }
  0x6b   : > { %s12552_s7 = scalar_lea.vmem %s16274_s5, %s10216_s1  ;;  %11268 = vmatpush3.bf16.msra.mxu1 %v11410_v49  ;;  %10528 = vmatpush3.bf16.msra.mxu0 %v11410_v49  ;;  %s16333_s1 = sld [smem:[#allocation11_spill]] }
  0x6c   : > { %v12555_v0 = vld [vmem:[%s12552_s7 + $0x50] sm:$0xff]  ;;  %v12558_v1 = vld [vmem:[%s12552_s7 + $0x40] sm:$0xff]  ;;  %v12561_v2 = vld [vmem:[%s12552_s7 + $0x58] sm:$0xff]  ;;  %10545 = vmatprep.subr.bf16.mxu1 %v12653_v50  ;;  %s16359_s5 = sld [smem:[#allocation23_spill]] }
  0x6d   : > { %v1221_v3 = vmul.f32 %v12555_v0, %v12555_v0  ;;  %v1219_v4 = vmul.f32 %v12558_v1, %v12558_v1  ;;  %v1222_v5 = vmul.f32 %v12561_v2, %v12561_v2  ;;  %v12570_v6 = vld [vmem:[%s12552_s7 + $0x48] sm:$0xff]  ;;  %v12576_v8 = vld [vmem:[%s12552_s7 + $0x60] sm:$0xff]  ;;  %v12581_v10 = vld [vmem:[%s12552_s7 + $0x78] sm:$0xff] }
  0x6e   : > { %v12573_v7 = vld [vmem:[%s12552_s7 + $0x68] sm:$0xff]  ;;  %v1220_v9 = vmul.f32 %v12570_v6, %v12570_v6  ;;  %v12584_v11 = vld [vmem:[%s12552_s7 + $0x70] sm:$0xff]  ;;  %v1223_v16 = vmul.f32 %v12576_v8, %v12576_v8  ;;  %v12596_v17 = vld [vmem:[%s12552_s7] sm:$0xff]  ;;  %v1226_v21 = vmul.f32 %v12581_v10, %v12581_v10 }
  0x6f   : > { %v12587_v12 = vld [vmem:[%s12552_s7 + $0x8] sm:$0xff]  ;;  %v1258_v13 = vsel %vm1227_vm0, %v1221_v3, 0.0  ;;  %v1252_v14 = vsel %vm1227_vm0, %v1219_v4, 0.0  ;;  %v1224_v15 = vmul.f32 %v12573_v7, %v12573_v7  ;;  %v12599_v18 = vld [vmem:[%s12552_s7 + $0x18] sm:$0xff]  ;;  %v12602_v19 = vld [vmem:[%s12552_s7 + $0x10] sm:$0xff]  ;;  %v1261_v20 = vsel %vm1227_vm0, %v1222_v5, 0.0 }
  0x70   : > { %1259 = vadd.xlane.f32.xlu1 %v1258_v13  ;;  %1253 = vadd.xlane.f32.xlu0 %v1252_v14  ;;  %v1225_v22 = vmul.f32 %v12584_v11, %v12584_v11  ;;  %v12610_v23 = vld [vmem:[%s12552_s7 + $0x28] sm:$0xff]  ;;  %v12613_v24 = vld [vmem:[%s12552_s7 + $0x20] sm:$0xff]  ;;  %v1255_v25 = vsel %vm1227_vm0, %v1220_v9, 0.0  ;;  %v1212_v26 = vmul.f32 %v12587_v12, %v12587_v12  ;;  %v1211_v27 = vmul.f32 %v12596_v17, %v12596_v17  ;;  %v12639_v42 = vld [vmem:[%s12552_s7 + $0x38] sm:$0xff] }
  0x71   : > { %v1214_v28 = vmul.f32 %v12599_v18, %v12599_v18  ;;  %v1213_v29 = vmul.f32 %v12602_v19, %v12602_v19  ;;  %v1216_v30 = vmul.f32 %v12610_v23, %v12610_v23  ;;  %v1215_v31 = vmul.f32 %v12613_v24, %v12613_v24  ;;  %v12642_v43 = vld [vmem:[%s12552_s7 + $0x30] sm:$0xff] }
  0x72   : > { %v1267_v32 = vsel %vm1227_vm0, %v1224_v15, 0.0  ;;  %v1264_v33 = vsel %vm1227_vm0, %v1223_v16, 0.0  ;;  %v1273_v34 = vsel %vm1227_vm0, %v1226_v21, 0.0  ;;  %v1270_v35 = vsel %vm1227_vm0, %v1225_v22, 0.0  ;;  %v1341_v16 = vld [vmem:[%s12306_s9] sm:$0x1] }
  0x73   : > { %v1231_v36 = vsel %vm1227_vm0, %v1212_v26, 0.0  ;;  %v1228_v37 = vsel %vm1227_vm0, %v1211_v27, 0.0  ;;  %v1237_v38 = vsel %vm1227_vm0, %v1214_v28, 0.0  ;;  %v1234_v39 = vsel %vm1227_vm0, %v1213_v29, 0.0 }
  0x74   : > { %1262 = vadd.xlane.f32.xlu1 %v1261_v20  ;;  %1256 = vadd.xlane.f32.xlu0 %v1255_v25  ;;  %v1243_v40 = vsel %vm1227_vm0, %v1216_v30, 0.0  ;;  %v1240_v41 = vsel %vm1227_vm0, %v1215_v31, 0.0  ;;  %v1218_v44 = vmul.f32 %v12639_v42, %v12639_v42  ;;  %v1217_v45 = vmul.f32 %v12642_v43, %v12642_v43 }
  0x75   : > { %v12656_v13 = vshrl.u32 %v1344_v61, 7  ;;  %v1342_v26 = vadd.f32 1.0, %v1341_v16 }
  0x76   : > { %v1249_v46 = vsel %vm1227_vm0, %v1218_v44, 0.0  ;;  %v1246_v47 = vsel %vm1227_vm0, %v1217_v45, 0.0 }
  0x77   : > { %v12660_v27 = vsub.s32 0, %v12656_v13 }
  0x78   : > { %1268 = vadd.xlane.f32.xlu1 %v1267_v32  ;;  %1265 = vadd.xlane.f32.xlu0 %v1264_v33 }
  0x79   : > { %16275 = vst [vmem:[#allocation32_spill] sm:$0xff] %v12660_v27 }
  0x7c   : > { %1274 = vadd.xlane.f32.xlu1 %v1273_v34  ;;  %1271 = vadd.xlane.f32.xlu0 %v1270_v35 }
  0x80   : > { %1232 = vadd.xlane.f32.xlu1 %v1231_v36  ;;  %1229 = vadd.xlane.f32.xlu0 %v1228_v37  ;;  %v12663_v36 = vrot.slane %v1342_v26, %v12660_v27 }
  0x84   : > { %1238 = vadd.xlane.f32.xlu1 %v1237_v38  ;;  %1235 = vadd.xlane.f32.xlu0 %v1234_v39 }
  0x88   : > { %1244 = vadd.xlane.f32.xlu1 %v1243_v40  ;;  %1241 = vadd.xlane.f32.xlu0 %v1240_v41 }
  0x8c   : > { %1250 = vadd.xlane.f32.xlu1 %v1249_v46  ;;  %1247 = vadd.xlane.f32.xlu0 %v1246_v47 }
  0xfd   : > { %v1260_v51 = vpop.xlane.xlu1 %1259  ;;  %v1254_v52 = vpop.xlane.xlu0 %1253 }
  0xfe   : > { %v1287_v53 = vmul.f32 0.03125, %v1260_v51  ;;  %v1285_v54 = vmul.f32 0.03125, %v1254_v52 }
 0x100   : > { %v1303_v55 = vadd.f32 1e-06, %v1287_v53  ;;  %v1301_v56 = vadd.f32 1e-06, %v1285_v54 }
 0x101   : > { %v1263_v57 = vpop.xlane.xlu1 %1262  ;;  %v1257_v58 = vpop.xlane.xlu0 %1256 }
 0x102   : > { %11447 = vrsqrt.f32 %v1303_v55  ;;  %v1288_v59 = vmul.f32 0.03125, %v1263_v57  ;;  %v1286_v60 = vmul.f32 0.03125, %v1257_v58 }
 0x103   : > { %11449 = vrsqrt.f32 %v1301_v56 }
 0x104   : > { %v1304_v62 = vadd.f32 1e-06, %v1288_v59  ;;  %v1302_v63 = vadd.f32 1e-06, %v1286_v60 }
 0x105   : > { %v1269_v3 = vpop.xlane.xlu1 %1268  ;;  %v1266_v4 = vpop.xlane.xlu0 %1265 }
 0x106   : > { %11451 = vrsqrt.f32 %v1304_v62  ;;  %v1290_v5 = vmul.f32 0.03125, %v1269_v3  ;;  %v1289_v9 = vmul.f32 0.03125, %v1266_v4  ;;  %v11412_v4 = vld [vmem:[%s12321_s21 + $0x8] sm:$0xff]  }
 0x107   : > { %11453 = vrsqrt.f32 %v1302_v63 }
 0x108   : > { %v1306_v14 = vadd.f32 1e-06, %v1290_v5  ;;  %v1305_v15 = vadd.f32 1e-06, %v1289_v9 }
 0x109   : > { %v1275_v20 = vpop.xlane.xlu1 %1274  ;;  %v1272_v21 = vpop.xlane.xlu0 %1271 }
 0x10a   : > { %11455 = vrsqrt.f32 %v1306_v14  ;;  %v1292_v22 = vmul.f32 0.03125, %v1275_v20  ;;  %v1291_v25 = vmul.f32 0.03125, %v1272_v21 }
 0x10b   : > { %11457 = vrsqrt.f32 %v1305_v15 }
 0x10c   : > { %v11448_v28 = vpop.eup %11447  ;;  %v1308_v29 = vadd.f32 1e-06, %v1292_v22  ;;  %v1307_v30 = vadd.f32 1e-06, %v1291_v25 }
 0x10d   : > { %v11450_v31 = vpop.eup %11449  ;;  %v1233_v32 = vpop.xlane.xlu1 %1232  ;;  %v1335_v37 = vmul.f32 %v11448_v28, %v12555_v0 }
 0x10e   : > { %v1230_v33 = vpop.xlane.xlu0 %1229  ;;  %11459 = vrsqrt.f32 %v1308_v29  ;;  %v1278_v34 = vmul.f32 0.03125, %v1233_v32  ;;  %v1333_v41 = vmul.f32 %v11450_v31, %v12558_v1 }
 0x10f   : > { %v1277_v35 = vmul.f32 0.03125, %v1230_v33  ;;  %11461 = vrsqrt.f32 %v1307_v30  ;;  %v1359_v52 = vmul.f32 %v12663_v36, %v1335_v37 }
 0x110   : > { %v11452_v38 = vpop.eup %11451  ;;  %v1294_v39 = vadd.f32 1e-06, %v1278_v34  ;;  %v1357_v1 = vmul.f32 %v12663_v36, %v1333_v41 }
 0x111   : > { %v1293_v40 = vadd.f32 1e-06, %v1277_v35  ;;  %v11454_v44 = vpop.eup %11453  ;;  %v1239_v45 = vpop.xlane.xlu1 %1238  ;;  %v1336_v47 = vmul.f32 %v11452_v38, %v12561_v2 }
 0x112   : > { %v1236_v46 = vpop.xlane.xlu0 %1235  ;;  %11463 = vrsqrt.f32 %v1294_v39  ;;  %v1280_v48 = vmul.f32 0.03125, %v1239_v45  ;;  %v1334_v51 = vmul.f32 %v11454_v44, %v12570_v6 }
 0x113   : > { %v1279_v49 = vmul.f32 0.03125, %v1236_v46  ;;  %11465 = vrsqrt.f32 %v1293_v40  ;;  %v1360_v0 = vmul.f32 %v12663_v36, %v1336_v47 }
 0x114   : > { %v11456_v53 = vpop.eup %11455  ;;  %v1296_v54 = vadd.f32 1e-06, %v1280_v48  ;;  %v1358_v56 = vmul.f32 %v12663_v36, %v1334_v51 }
 0x115   : > { %v1295_v55 = vadd.f32 1e-06, %v1279_v49  ;;  %v11458_v57 = vpop.eup %11457  ;;  %v1245_v2 = vpop.xlane.xlu1 %1244  ;;  %v12673_v59 = vpack.c.bf16 %v1360_v0, %v1359_v52  ;;  %v1338_v6 = vmul.f32 %v11456_v53, %v12573_v7 }
 0x116   : > { %v1242_v58 = vpop.xlane.xlu0 %1241  ;;  %11467 = vrsqrt.f32 %v1296_v54  ;;  %v1282_v60 = vmul.f32 0.03125, %v1245_v2  ;;  %v12676_v62 = vpack.c.bf16 %v1358_v56, %v1357_v1  ;;  %v1337_v63 = vmul.f32 %v11458_v57, %v12576_v8  ;;  %v12728_v1 = vld [vmem:[%s12316_s17] ss:$0 sm:$0xff] }
 0x117   : > { %v1281_v61 = vmul.f32 0.03125, %v1242_v58  ;;  %11469 = vrsqrt.f32 %v1295_v55  ;;  %v1362_v3 = vmul.f32 %v12663_v36, %v1338_v6  ;;  %v11416_v55 = vld [vmem:[%s12356_s24 + $0x8] sm:$0xff]  }
 0x118   : > { %v11460_v5 = vpop.eup %11459  ;;  %v1298_v9 = vadd.f32 1e-06, %v1282_v60  ;;  %10537 = vmatprep.mubr.msk.bf16.mxu1 %vm1227_vm0, %v12676_v62  ;;  %v1361_v20 = vmul.f32 %v12663_v36, %v1337_v63 }
 0x119   : > { %v1297_v14 = vadd.f32 1e-06, %v1281_v61  ;;  %v11462_v15 = vpop.eup %11461  ;;  %10538 = vmatmul.mubr.msk.bf16.vlgmr.msra.gmra.mrb[0].mxu1 %vm1227_vm0, %v12673_v59  ;;  %v1251_v7 = vpop.xlane.xlu1 %1250  ;;  %v1340_v21 = vmul.f32 %v11460_v5, %v12581_v10 }
 0x11a   : > { %v1248_v16 = vpop.xlane.xlu0 %1247  ;;  %11471 = vrsqrt.f32 %v1298_v9  ;;  %v1284_v8 = vmul.f32 0.03125, %v1251_v7  ;;  %v1339_v25 = vmul.f32 %v11462_v15, %v12584_v11  ;;  %10546 = vmatpush3.bf16.msra.mxu1 %v12653_v50  ;;  %v1371_v26 = vpack.c.bf16 %v1362_v3, %v1361_v20  ;;  %v1781_v15 = vld [vmem:[%s12331_s29] sm:$0xf] }
 0x11b   : > { %v1283_v22 = vmul.f32 0.03125, %v1248_v16  ;;  %11473 = vrsqrt.f32 %v1297_v14  ;;  %v1364_v28 = vmul.f32 %v12663_v36, %v1340_v21  ;;  %10547 = vmatprep.subr.bf16.mxu1 %v11412_v4  ;;  %v12756_v16 = vrot.slane %v1781_v15, %v12660_v27 }
 0x11c   : > { %v11464_v29 = vpop.eup %11463  ;;  %v1300_v30 = vadd.f32 1e-06, %v1284_v8  ;;  %v1363_v32 = vmul.f32 %v12663_v36, %v1339_v25  ;;  %10541 = vmatprep.mubr.msk.bf16.mxu1 %vm1227_vm0, %v1371_v26  ;;  %v1817_v20 = vsub.s32 1, %v12656_v13 }
 0x11d   : > { %v1299_v31 = vadd.f32 1e-06, %v1283_v22  ;;  %v11466_v33 = vpop.eup %11465  ;;  %v1326_v10 = vmul.f32 %v11464_v29, %v12587_v12  ;;  %v1787_v29 = vmul.f32 0.0, %v12756_v16 }
 0x11e   : > { %11475 = vrsqrt.f32 %v1300_v30  ;;  %v1372_v34 = vpack.c.bf16 %v1364_v28, %v1363_v32  ;;  %v1325_v11 = vmul.f32 %v11466_v33, %v12596_v17  ;;  %10548 = vmatpush3.bf16.msra.mxu1 %v11412_v4  ;;  %v12765_v28 = vrot.slane %v1781_v15, %v1817_v20  ;;  %v12771_v32 = vld [vmem:[%s16279_s3] ss:$0 sm:$0xff]  ;;  %s16358_s3 = sld [smem:[#allocation21_spill]] }
 0x11f   : > { %11477 = vrsqrt.f32 %v1299_v31  ;;  %v1350_v50 = vmul.f32 %v12663_v36, %v1326_v10  ;;  %v12774_v10 = vld [vmem:[%s12326_s25] ss:$0 sm:$0xff] }
 0x120   : > { %v11468_v35 = vpop.eup %11467  ;;  %v1349_v37 = vmul.f32 %v12663_v36, %v1325_v11  ;;  %v1881_v11 = vsub.s32 3, %v12656_v13 }
 0x121   : > { %v11470_v38 = vpop.eup %11469  ;;  %10542 = vmatmul.mubr.msk.bf16.gmra.mrb[4].mxu1 %vm1227_vm0, %v1372_v34  ;;  %v1328_v39 = vmul.f32 %v11468_v35, %v12599_v18  ;;  %v1819_v35 = vmul.f32 0.0, %v12765_v28 }
 0x122   : > { %v1365_v40 = vpack.c.bf16 %v1350_v50, %v1349_v37  ;;  %v1327_v41 = vmul.f32 %v11470_v38, %v12602_v19  ;;  %v12779_v50 = vadd.f32 %v12771_v32, %v1787_v29 }
 0x123   : > { %v1352_v12 = vmul.f32 %v12663_v36, %v1328_v39 }
 0x124   : > { %v11472_v44 = vpop.eup %11471  ;;  %10529 = vmatprep.mubr.msk.bf16.mxu0 %vm1227_vm0, %v1365_v40  ;;  %10549 = vmatprep.mubr.msk.bf16.mxu1 %vm1227_vm0, %v1365_v40  ;;  %v1351_v17 = vmul.f32 %v12663_v36, %v1327_v41  ;;  %v12792_v41 = vrot.slane %v1781_v15, %v1881_v11 }
 0x125   : > { %v11474_v45 = vpop.eup %11473  ;;  %v1330_v46 = vmul.f32 %v11472_v44, %v12610_v23 }
 0x126   : > { %v1366_v47 = vpack.c.bf16 %v1352_v12, %v1351_v17  ;;  %v1329_v48 = vmul.f32 %v11474_v45, %v12613_v24  ;;  %v1832_v45 = vadd.f32 %v1819_v35, %v12779_v50 }
 0x127   : > { %v1354_v18 = vmul.f32 %v12663_v36, %v1330_v46 }
 0x128   : > { %v11476_v49 = vpop.eup %11475  ;;  %10530 = vmatmul.mubr.msk.bf16.vlgmr.msra.gmra.mrb[0].mxu0 %vm1227_vm0, %v1366_v47  ;;  %v1353_v19 = vmul.f32 %v12663_v36, %v1329_v48 }
 0x129   : > { %v11478_v51 = vpop.eup %11477  ;;  %10550 = vmatmul.mubr.msk.bf16.vlgmr.msra.gmra.mrb[8].mxu1 %vm1227_vm0, %v1366_v47  ;;  %v1332_v52 = vmul.f32 %v11476_v49, %v12639_v42  ;;  %v11413_v42 = vld [vmem:[%s12346_s14] sm:$0xff]  }
 0x12a   : > { %v1367_v0 = vpack.c.bf16 %v1354_v18, %v1353_v19  ;;  %v1331_v23 = vmul.f32 %v11478_v51, %v12642_v43  ;;  %v11414_v43 = vld [vmem:[%s12356_s24] sm:$0xff]   ;;  %10565 = vmatprep.subr.bf16.mxu0 %v11413_v42 }
 0x12b   : > { %v1356_v53 = vmul.f32 %v12663_v36, %v1332_v52  ;;  %10585 = vmatprep.subr.bf16.mxu1 %v11414_v43  ;;  %10566 = vmatpush3.bf16.msra.mxu0 %v11413_v42 }
 0x12c   : > { %10553 = vmatprep.mubr.msk.bf16.mxu1 %vm1227_vm0, %v1367_v0  ;;  %v1355_v24 = vmul.f32 %v12663_v36, %v1331_v23  ;;  %10533 = vmatprep.mubr.msk.bf16.mxu0 %vm1227_vm0, %v1367_v0  ;;  %v11415_v36 = vld [vmem:[%s12346_s14 + $0x8] sm:$0xff]  }
 0x12d   : > { %10586 = vmatpush3.bf16.msra.mxu1 %v11414_v43  ;;  %10567 = vmatprep.subr.bf16.mxu0 %v11415_v36 }
 0x12e   : > { %v1368_v54 = vpack.c.bf16 %v1356_v53, %v1355_v24  ;;  %10587 = vmatprep.subr.bf16.mxu1 %v11416_v55 }
 0x12f   : > { %10568 = vmatpush3.bf16.msra.mxu0 %v11415_v36 }
 0x130   : > { %10534 = vmatmul.mubr.msk.bf16.gmra.mrb[4].mxu0 %vm1227_vm0, %v1368_v54 }
 0x131   : > { %10554 = vmatmul.mubr.msk.bf16.gmra.mrb[12].mxu1 %vm1227_vm0, %v1368_v54 }
 0x132   : > { %10557 = vmatprep.mubr.msk.bf16.mxu1 %vm1227_vm0, %v12676_v62  ;;  %10588 = vmatpush3.bf16.msra.mxu1 %v11416_v55 }
 0x139   : > { %10558 = vmatmul.mubr.msk.bf16.gmra.mrb[16].mxu1 %vm1227_vm0, %v12673_v59 }
 0x13a   : > { %10561 = vmatprep.mubr.msk.bf16.mxu1 %vm1227_vm0, %v1371_v26 }
 0x141   : > { %10562 = vmatmul.mubr.msk.bf16.gmra.mrb[20].mxu1 %vm1227_vm0, %v1372_v34  ;;  %v1847_v34 = vsub.s32 2, %v12656_v13 }
 0x143   : > { %v12790_v40 = vrot.slane %v1781_v15, %v1847_v34 }
 0x145   : > { %v1849_v54 = vmul.f32 0.0, %v12790_v40 }
 0x147   : > { %v1864_v20 = vadd.f32 %v1849_v54, %v1832_v45 }
 0x1ec   : > { %v10539_v56 = vpop.f32.mrb[0].mxu1 }
 0x1ed   : > { %v12731_v57 = vadd.f32 %v10539_v56, %v12728_v1  ;;  %v1486_v2 = vpop.f32.mrb[1].mxu1 }
 0x1ee   : > { %v12734_v58 = vadd.f32 %v12728_v1, %v1486_v2  ;;  %v10540_v59 = vpop.f32.mrb[2].mxu1 }
 0x1ef   : > { %v12737_v6 = vadd.f32 %v10540_v59, %v12728_v1  ;;  %v1489_v60 = vpop.f32.mrb[3].mxu1 }
 0x1f0   : > { %v12740_v61 = vadd.f32 %v12728_v1, %v1489_v60 }
 0x1f2   : > { %16276 = vst [vmem:[#allocation33_spill] sm:$0xff] %v12740_v61 }
 0x1f4   : > { %v10543_v62 = vpop.f32.mrb[4].mxu1 }
 0x1f5   : > { %v12743_v63 = vadd.f32 %v10543_v62, %v12728_v1  ;;  %v1502_v3 = vpop.f32.mrb[5].mxu1 }
 0x1f6   : > { %v12746_v4 = vadd.f32 %v12728_v1, %v1502_v3  ;;  %v10544_v5 = vpop.f32.mrb[6].mxu1 }
 0x1f7   : > { %16277 = vst [vmem:[#allocation34_spill] sm:$0xff] %v12743_v63  ;;  %v12749_v9 = vadd.f32 %v10544_v5, %v12728_v1  ;;  %v1505_v14 = vpop.f32.mrb[7].mxu1 }
 0x1f8   : > { %16278 = vst [vmem:[#allocation35_spill] sm:$0xff] %v12746_v4  ;;  %v12753_v7 = vadd.f32 %v12728_v1, %v1505_v14 }
 0x1f9   : > { %16280 = vst [vmem:[#allocation36_spill] sm:$0xff] %v12749_v9 }
 0x1fa   : > { %16281 = vst [vmem:[#allocation37_spill] sm:$0xff] %v12753_v7 }
 0x1fb   : > { %v12759_v21 = vpop.f32.mrb[0].mxu0 }
 0x1fc   : > { %v12761_v8 = vpop.f32.mrb[1].mxu0  ;;  %v10551_v22 = vpop.f32.mrb[8].mxu1 }
 0x1fd   : > { %v12763_v25 = vpop.f32.mrb[2].mxu0  ;;  %v1718_v26 = vpop.f32.mrb[9].mxu1  ;;  %v12788_v39 = vadd.f32 %v10551_v22, %v12774_v10 }
 0x1fe   : > { %v12768_v30 = vpop.f32.mrb[3].mxu0  ;;  %v10552_v31 = vpop.f32.mrb[10].mxu1  ;;  %v12783_v37 = vadd.f32 %v12774_v10, %v1718_v26 }
 0x1ff   : > { %v1721_v33 = vpop.f32.mrb[11].mxu1  ;;  %v1885_v49 = vmul.f32 %v12792_v41, %v12788_v39  ;;  %v12813_v23 = vadd.f32 %v10552_v31, %v12774_v10  ;;  %v1790_v53 = vmul.f32 %v12756_v16, %v12788_v39  ;;  %v1822_v62 = vmul.f32 %v12765_v28, %v12788_v39 }
 0x200   : > { %v1850_v46 = vmul.f32 %v12790_v40, %v12783_v37  ;;  %v1722_v51 = vadd.f32 %v12774_v10, %v1721_v33  ;;  %v1788_v52 = vmul.f32 %v12756_v16, %v12783_v37  ;;  %v1883_v22 = vmul.f32 %v12792_v41, %v12783_v37 }
 0x201   : > { %v1886_v2 = vmul.f32 %v12792_v41, %v12813_v23  ;;  %v1807_v5 = vadd.f32 %v12771_v32, %v1790_v53  ;;  %v1791_v33 = vmul.f32 %v12756_v16, %v12813_v23 }
 0x202   : > { %v1865_v19 = vadd.f32 %v1850_v46, %v1832_v45  ;;  %v1851_v24 = vmul.f32 %v12790_v40, %v1722_v51  ;;  %v1805_v43 = vadd.f32 %v12771_v32, %v1788_v52  ;;  %v1789_v36 = vmul.f32 %v12756_v16, %v1722_v51 }
 0x203   : > { %v12785_v38 = vpop.f32.mrb[4].mxu0  ;;  %v1884_v34 = vmul.f32 %v12792_v41, %v1722_v51  ;;  %v12859_v54 = vadd.f32 %v1883_v22, %v1864_v20 }
 0x204   : > { %v10555_v12 = vpop.f32.mrb[12].mxu1  ;;  %v12794_v44 = vpop.f32.mrb[5].mxu0  ;;  %v12810_v0 = vadd.f32 %v1885_v49, %v1865_v19  ;;  %v1866_v59 = vadd.f32 %v1851_v24, %v1832_v45  ;;  %v1806_v26 = vadd.f32 %v12771_v32, %v1789_v36  ;;  %v1835_v29 = vadd.f32 %v1822_v62, %v1805_v43 }
 0x205   : > { %v1734_v13 = vpop.f32.mrb[13].mxu1  ;;  %v12796_v17 = vpop.f32.mrb[6].mxu0  ;;  %v1743_v11 = vadd.f32 %v10555_v12, %v12774_v10  ;;  %v1808_v24 = vadd.f32 %v12771_v32, %v1791_v33  ;;  %v12861_v43 = vadd.f32 %v1884_v34, %v1864_v20  ;;  %v1820_v34 = vmul.f32 %v12765_v28, %v12783_v37 }
 0x206   : > { %v12801_v47 = vpop.f32.mrb[14].mxu1  ;;  %v12803_v48 = vpop.f32.mrb[7].mxu0  ;;  %v12824_v55 = vadd.f32 %v12774_v10, %v1734_v13  ;;  %v12833_v14 = vadd.f32 %v1886_v2, %v1866_v59  ;;  %v1823_v13 = vmul.f32 %v12765_v28, %v12813_v23 }
 0x207   : > { %v1737_v18 = vpop.f32.mrb[15].mxu1  ;;  %v1826_v12 = vmul.f32 %v12765_v28, %v1743_v11  ;;  %v1794_v20 = vmul.f32 %v12756_v16, %v1743_v11 }
 0x208   : > { %16282 = vst [vmem:[#allocation38_spill] sm:$0xff] %v12833_v14  ;;  %v1824_v15 = vmul.f32 %v12765_v28, %v12824_v55  ;;  %v1854_v31 = vmul.f32 %v12790_v40, %v12824_v55  ;;  %v1792_v45 = vmul.f32 %v12756_v16, %v12824_v55  ;;  %v1738_v19 = vadd.f32 %v12774_v10, %v1737_v18 }
 0x209   : > { %v1836_v52 = vadd.f32 %v1823_v13, %v1806_v26  ;;  %v1916_v2 = vpack.c.bf16 %v12833_v14, %v12810_v0  ;;  %v1821_v13 = vmul.f32 %v12765_v28, %v1722_v51  ;;  %v1852_v51 = vmul.f32 %v12790_v40, %v12788_v39 }
 0x20a   : > { %v12846_v35 = vadd.f32 %v1824_v15, %v1807_v5  ;;  %v1869_v46 = vadd.f32 %v1854_v31, %v1835_v29  ;;  %v1809_v59 = vadd.f32 %v12771_v32, %v1792_v45  ;;  %v1825_v18 = vmul.f32 %v12765_v28, %v1738_v19 }
 0x20b   : > { %v1855_v62 = vmul.f32 %v12790_v40, %v1738_v19  ;;  %v1915_v15 = vpack.c.bf16 %v12861_v43, %v12859_v54  ;;  %v1793_v29 = vmul.f32 %v12756_v16, %v1738_v19  ;;  %v1746_v45 = vadd.f32 %v12801_v47, %v12774_v10 }
 0x20c   : > { %v12819_v42 = vpop.f32.mrb[16].mxu1  ;;  %v12872_v26 = vadd.f32 %v1825_v18, %v1808_v24  ;;  %v1839_v33 = vadd.f32 %v1826_v12, %v1809_v59  ;;  %v1889_v12 = vmul.f32 %v12792_v41, %v1743_v11 }
 0x20d   : > { %v1750_v56 = vpop.f32.mrb[17].mxu1  ;;  %v1870_v22 = vadd.f32 %v1855_v62, %v1836_v52  ;;  %10569 = vmatprep.mubr.msk.bf16.mxu0 %vm1227_vm0, %v1915_v15  ;;  %10589 = vmatprep.mubr.msk.bf16.mxu1 %vm1227_vm0, %v1915_v15  ;;  %v1811_v52 = vadd.f32 %v12771_v32, %v1794_v20  ;;  %v1810_v24 = vadd.f32 %v12771_v32, %v1793_v29 }
 0x20e   : > { %v12828_v60 = vpop.f32.mrb[18].mxu1  ;;  %10570 = vmatmul.mubr.msk.bf16.vlgmr.msra.gmra.mrb[8].mxu0 %vm1227_vm0, %v1916_v2  ;;  %10590 = vmatmul.mubr.msk.bf16.vlgmr.msra.gmra.mrb[24].mxu1 %vm1227_vm0, %v1916_v2  ;;  %v1751_v31 = vadd.f32 %v12774_v10, %v1750_v56  ;;  %v1833_v2 = vadd.f32 %v1820_v34, %v12779_v50  ;;  %v1834_v56 = vadd.f32 %v1821_v13, %v12779_v50 }
 0x20f   : > { %v1753_v3 = vpop.f32.mrb[19].mxu1  ;;  %v1795_v37 = vmul.f32 %v12756_v16, %v1746_v45  ;;  %v1827_v47 = vmul.f32 %v12765_v28, %v1746_v45  ;;  %v1853_v20 = vmul.f32 %v12790_v40, %v12813_v23  ;;  %v1856_v29 = vmul.f32 %v12790_v40, %v1743_v11 }
 0x210   : > { %v1828_v18 = vmul.f32 %v12765_v28, %v1751_v31  ;;  %v1858_v62 = vmul.f32 %v12790_v40, %v1751_v31  ;;  %v1887_v34 = vmul.f32 %v12792_v41, %v12824_v55  ;;  %v1888_v50 = vmul.f32 %v12792_v41, %v1738_v19 }
 0x211   : > { %v1857_v13 = vmul.f32 %v12790_v40, %v1746_v45  ;;  %v12906_v27 = vadd.f32 %v12819_v42, %v12774_v10  ;;  %v1754_v39 = vadd.f32 %v12774_v10, %v1753_v3  ;;  %v1868_v23 = vadd.f32 %v1853_v20, %v1834_v56 }
 0x212   : > { %v1841_v59 = vadd.f32 %v1828_v18, %v1811_v52  ;;  %v1873_v15 = vadd.f32 %v1858_v62, %v1839_v33  ;;  %v1840_v52 = vadd.f32 %v1827_v47, %v1810_v24  ;;  %v1812_v33 = vadd.f32 %v12771_v32, %v1795_v37 }
 0x213   : > { %16283 = vst [vmem:[#allocation39_spill] sm:$0xff] %v12906_v27  ;;  %v1867_v18 = vadd.f32 %v1852_v51, %v1833_v2  ;;  %v12910_v62 = vadd.f32 %v1889_v12, %v1869_v46  ;;  %v1796_v11 = vmul.f32 %v12756_v16, %v1751_v31  ;;  %v12915_v55 = vadd.f32 %v12828_v60, %v12774_v10 }
 0x214   : > { %v12852_v49 = vpop.f32.mrb[20].mxu1  ;;  %v1829_v19 = vmul.f32 %v12765_v28, %v1754_v39  ;;  %v1859_v42 = vmul.f32 %v12790_v40, %v1754_v39  ;;  %v1890_v14 = vmul.f32 %v12792_v41, %v1746_v45  ;;  %v1797_v3 = vmul.f32 %v12756_v16, %v1754_v39 }
 0x215   : > { %v12855_v53 = vpop.f32.mrb[21].mxu1  ;;  %16284 = vst [vmem:[#allocation40_spill] sm:$0xff] %v12910_v62  ;;  %16285 = vst [vmem:[#allocation41_spill] sm:$0xff] %v12915_v55  ;;  %v12921_v24 = vadd.f32 %v1887_v34, %v1867_v18  ;;  %v12923_v2 = vadd.f32 %v1888_v50, %v1868_v23  ;;  %v1830_v46 = vmul.f32 %v12765_v28, %v12906_v27 }
 0x216   : > { %v12863_v36 = vpop.f32.mrb[22].mxu1  ;;  %v1860_v56 = vmul.f32 %v12790_v40, %v12906_v27  ;;  %v1842_v60 = vadd.f32 %v1829_v19, %v1812_v33  ;;  %v1874_v12 = vadd.f32 %v1859_v42, %v1840_v52  ;;  %v1893_v37 = vmul.f32 %v12792_v41, %v12906_v27 }
 0x217   : > { %v1769_v5 = vpop.f32.mrb[23].mxu1  ;;  %16286 = vst [vmem:[#allocation42_spill] sm:$0xff] %v12923_v2  ;;  %v1917_v45 = vpack.c.bf16 %v12923_v2, %v12921_v24  ;;  %v12933_v51 = vadd.f32 %v1890_v14, %v1870_v22  ;;  %v12937_v16 = vadd.f32 %v12774_v10, %v12855_v53  ;;  %v1813_v47 = vadd.f32 %v12771_v32, %v1796_v11 }
 0x218   : > { %v1891_v20 = vmul.f32 %v12792_v41, %v1751_v31  ;;  %v1831_v34 = vmul.f32 %v12765_v28, %v12915_v55  ;;  %v12944_v50 = vadd.f32 %v12774_v10, %v1769_v5  ;;  %v1861_v52 = vmul.f32 %v12790_v40, %v12915_v55 }
 0x219   : > { %16287 = vst [vmem:[#allocation43_spill] sm:$0xff] %v12933_v51  ;;  %16288 = vst [vmem:[#allocation44_spill] sm:$0xff] %v12937_v16  ;;  %v1814_v14 = vadd.f32 %v12771_v32, %v1797_v3  ;;  %10573 = vmatprep.mubr.msk.bf16.mxu0 %vm1227_vm0, %v1917_v45  ;;  %10593 = vmatprep.mubr.msk.bf16.mxu1 %vm1227_vm0, %v1917_v45  ;;  %v1918_v53 = vpack.c.bf16 %v12933_v51, %v12910_v62 }
 0x21a   : > { %16289 = vst [vmem:[#allocation45_spill] sm:$0xff] %v12944_v50  ;;  %v1894_v22 = vmul.f32 %v12792_v41, %v12915_v55  ;;  %v1892_v28 = vmul.f32 %v12792_v41, %v1754_v39  ;;  %v1875_v31 = vadd.f32 %v1860_v56, %v1841_v59  ;;  %v1895_v5 = vmul.f32 %v12792_v41, %v12937_v16 }
 0x21b   : > { %10574 = vmatmul.mubr.msk.bf16.gmra.mrb[12].mxu0 %vm1227_vm0, %v1918_v53  ;;  %10594 = vmatmul.mubr.msk.bf16.gmra.mrb[28].mxu1 %vm1227_vm0, %v1918_v53  ;;  %v1863_v32 = vmul.f32 %v12790_v40, %v12944_v50  ;;  %v1876_v33 = vadd.f32 %v1861_v52, %v1842_v60  ;;  %v1896_v18 = vmul.f32 %v12792_v41, %v12944_v50  ;;  %v1542_v52 = vmul.f32 0.044715, %v12740_v61 }
 0x21c   : > { %v1862_v23 = vmul.f32 %v12790_v40, %v12937_v16  ;;  %v12968_v59 = vadd.f32 %v12863_v36, %v12774_v10  ;;  %v1871_v39 = vadd.f32 %v1856_v29, %v12846_v35  ;;  %v1872_v11 = vadd.f32 %v1857_v13, %v12872_v26 }
 0x21d   : > { %v1844_v19 = vadd.f32 %v1831_v34, %v1814_v14  ;;  %v12972_v42 = vadd.f32 %v1896_v18, %v1876_v33  ;;  %v12974_v3 = vadd.f32 %v1893_v37, %v1873_v15  ;;  %v12976_v56 = vadd.f32 %v1894_v22, %v1874_v12 }
 0x21e   : > { %16290 = vst [vmem:[#allocation46_spill] sm:$0xff] %v12968_v59  ;;  %v12978_v60 = vadd.f32 %v1895_v5, %v1875_v31  ;;  %v12980_v45 = vadd.f32 %v1891_v20, %v1871_v39  ;;  %v12982_v40 = vadd.f32 %v1892_v28, %v1872_v11  ;;  %v12986_v36 = vadd.f32 %v12852_v49, %v12774_v10 }
 0x21f   : > { %16291 = vst [vmem:[#allocation47_spill] sm:$0xff] %v12972_v42  ;;  %16292 = vst [vmem:[#allocation48_spill] sm:$0xff] %v12974_v3  ;;  %v1843_v35 = vadd.f32 %v1830_v46, %v1813_v47  ;;  %v1878_v29 = vadd.f32 %v1863_v32, %v1844_v19  ;;  %v1920_v26 = vpack.c.bf16 %v12976_v56, %v12974_v3  ;;  %v1541_v20 = vmul.f32 0.044715, %v12734_v58 }
 0x220   : > { %16293 = vst [vmem:[#allocation49_spill] sm:$0xff] %v12976_v56  ;;  %16294 = vst [vmem:[#allocation50_spill] sm:$0xff] %v12978_v60  ;;  %v1919_v15 = vpack.c.bf16 %v12982_v40, %v12980_v45  ;;  %v1921_v13 = vpack.c.bf16 %v12972_v42, %v12978_v60  ;;  %v1898_v37 = vmul.f32 %v12792_v41, %v12968_v59  ;;  %v1544_v34 = vmul.f32 0.044715, %v12737_v6 }
 0x221   : > { %16295 = vst [vmem:[#allocation51_spill] sm:$0xff] %v12980_v45  ;;  %16296 = vst [vmem:[#allocation52_spill] sm:$0xff] %v12982_v40  ;;  %v1877_v12 = vadd.f32 %v1862_v23, %v1843_v35  ;;  %v1897_v10 = vmul.f32 %v12792_v41, %v12986_v36  ;;  %v1543_v41 = vmul.f32 0.044715, %v12731_v57  ;;  %v1557_v53 = vmul.f32 %v1541_v20, %v12734_v58 }
 0x222   : > { %16297 = vst [vmem:[#allocation53_spill] sm:$0xff] %v12986_v36  ;;  %10577 = vmatprep.mubr.msk.bf16.mxu0 %vm1227_vm0, %v1919_v15  ;;  %10597 = vmatprep.mubr.msk.bf16.mxu1 %vm1227_vm0, %v1919_v15  ;;  %v13000_v49 = vadd.f32 %v1898_v37, %v1878_v29  ;;  %v1560_v22 = vmul.f32 %v1544_v34, %v12737_v6  ;;  %v13179_v3 = vmul.f32 0.044715, %v12749_v9 }
 0x223   : > { %10578 = vmatmul.mubr.msk.bf16.gmra.mrb[16].mxu0 %vm1227_vm0, %v1920_v26  ;;  %10598 = vmatmul.mubr.msk.bf16.gmra.mrb[32].mxu1 %vm1227_vm0, %v1920_v26  ;;  %v13006_v46 = vadd.f32 %v1897_v10, %v1877_v12  ;;  %v1559_v14 = vmul.f32 %v1543_v41, %v12731_v57  ;;  %v1558_v28 = vmul.f32 %v1542_v52, %v12740_v61  ;;  %v11417_v41 = vld [vmem:[%s16271_s6] sm:$0xff]  }
 0x224   : > { %16298 = vst [vmem:[#allocation54_spill] sm:$0xff] %v13000_v49  ;;  %10581 = vmatprep.mubr.msk.bf16.mxu0 %vm1227_vm0, %v1921_v13  ;;  %10601 = vmatprep.mubr.msk.bf16.mxu1 %vm1227_vm0, %v1921_v13  ;;  %v13022_v31 = vadd.f32 %v12759_v21, %v12728_v1  ;;  %v13027_v32 = vadd.f32 %v12728_v1, %v12761_v8  ;;  %16304 = vst [vmem:[#allocation59_spill] sm:$0xff] %v13179_v3 }
 0x225   : > { %16299 = vst [vmem:[#allocation55_spill] sm:$0xff] %v13006_v46  ;;  %v1922_v47 = vpack.c.bf16 %v13000_v49, %v13006_v46  ;;  %v1575_v5 = vmul.f32 %v1559_v14, %v12731_v57  ;;  %v1573_v33 = vmul.f32 %v1557_v53, %v12734_v58  ;;  %v1576_v18 = vmul.f32 %v1560_v22, %v12737_v6 }
 0x226   : > { %v1574_v23 = vmul.f32 %v1558_v28, %v12740_v61  ;;  %v1535_v39 = vmul.f32 0.044715, %v13022_v31  ;;  %v1533_v21 = vmul.f32 0.044715, %v13027_v32  ;;  %v13037_v19 = vadd.f32 %v12763_v25, %v12728_v1  ;;  %10605 = vmatprep.subr.bf16.mxu0 %v11417_v41 }
 0x227   : > { %v1591_v11 = vadd.f32 %v1575_v5, %v12731_v57  ;;  %v1589_v8 = vadd.f32 %v1573_v33, %v12734_v58  ;;  %v13042_v35 = vadd.f32 %v12728_v1, %v12768_v30  ;;  %v1592_v29 = vadd.f32 %v1576_v18, %v12737_v6  ;;  %10606 = vmatpush3.bf16.msra.mxu0 %v11417_v41  ;;  %v13074_v33 = vld [vmem:[%s12351_s19] ss:$0 sm:$0xff] }
 0x228   : > { %v1590_v26 = vadd.f32 %v1574_v23, %v12740_v61  ;;  %v1551_v15 = vmul.f32 %v1535_v39, %v13022_v31  ;;  %v13049_v13 = vadd.f32 %v12785_v38, %v12728_v1  ;;  %v1549_v25 = vmul.f32 %v1533_v21, %v13027_v32  ;;  %v13077_v18 = vld [vmem:[%s12361_s30] ss:$0 sm:$0xff] }
 0x229   : > { %v1607_v12 = vmul.f32 0.7978846, %v1591_v11  ;;  %v1536_v37 = vmul.f32 0.044715, %v13037_v19  ;;  %v13055_v10 = vadd.f32 %v12728_v1, %v12794_v44  ;;  %v1605_v30 = vmul.f32 0.7978846, %v1589_v8 }
 0x22a   : > { %v1608_v20 = vmul.f32 0.7978846, %v1592_v29  ;;  %v1606_v34 = vmul.f32 0.7978846, %v1590_v26  ;;  %v1567_v38 = vmul.f32 %v1551_v15, %v13022_v31  ;;  %v1539_v52 = vmul.f32 0.044715, %v13049_v13 }
 0x22b   : > { %10582 = vmatmul.mubr.msk.bf16.gmra.mrb[20].mxu0 %vm1227_vm0, %v1922_v47  ;;  %10602 = vmatmul.mubr.msk.bf16.gmra.mrb[36].mxu1 %vm1227_vm0, %v1922_v47  ;;  %v1534_v47 = vmul.f32 0.044715, %v13042_v35  ;;  %v13063_v14 = vadd.f32 %v12796_v17, %v12728_v1  ;;  %v1565_v44 = vmul.f32 %v1549_v25, %v13027_v32  ;;  %v1552_v53 = vmul.f32 %v1536_v37, %v13037_v19  ;;  %v11418_v17 = vld [vmem:[%s16271_s6 + $0x8] sm:$0xff]  }
 0x22c   : > { %v1537_v22 = vmul.f32 0.044715, %v13055_v10  ;;  %11479 = vtanh.f32 %v1607_v12  ;;  %v13071_v5 = vadd.f32 %v12728_v1, %v12803_v48  ;;  %v1583_v23 = vadd.f32 %v1567_v38, %v13022_v31  ;;  %10607 = vmatprep.subr.bf16.mxu0 %v11418_v17 }
 0x22d   : > { %v1550_v28 = vmul.f32 %v1534_v47, %v13042_v35  ;;  %11481 = vtanh.f32 %v1605_v30  ;;  %v1555_v39 = vmul.f32 %v1539_v52, %v13049_v13  ;;  %v1540_v11 = vmul.f32 0.044715, %v13063_v14  ;;  %10608 = vmatpush3.bf16.msra.mxu0 %v11418_v17 }
 0x22e   : > { %11483 = vtanh.f32 %v1608_v20  ;;  %v1581_v1 = vadd.f32 %v1565_v44, %v13027_v32  ;;  %v1568_v48 = vmul.f32 %v1552_v53, %v13037_v19  ;;  %v1553_v37 = vmul.f32 %v1537_v22, %v13055_v10 }
 0x22f   : > { %11485 = vtanh.f32 %v1606_v34  ;;  %v1566_v25 = vmul.f32 %v1550_v28, %v13042_v35  ;;  %v1538_v30 = vmul.f32 0.044715, %v13071_v5  ;;  %v1571_v17 = vmul.f32 %v1555_v39, %v13049_v13 }
 0x230   : > { %v1556_v28 = vmul.f32 %v1540_v11, %v13063_v14 }
 0x2e1   : > { %v10571_v21 = vpop.f32.mrb[8].mxu0  ;;  %v10591_v8 = vpop.f32.mrb[24].mxu1 }
 0x2e2   : > { %v2013_v29 = vadd.f32 %v10571_v21, %v13074_v33  ;;  %v2227_v26 = vadd.f32 %v10591_v8, %v13077_v18  ;;  %v2004_v15 = vpop.f32.mrb[9].mxu0  ;;  %v2220_v12 = vpop.f32.mrb[25].mxu1 }
 0x2e3   : > { %v2005_v47 = vadd.f32 %v13074_v33, %v2004_v15  ;;  %v10572_v41 = vpop.f32.mrb[10].mxu0  ;;  %v10592_v20 = vpop.f32.mrb[26].mxu1 }
 0x2e4   : > { %v2069_v34 = vsub.f32 0.0, %v2013_v29  ;;  %v2281_v38 = vsub.f32 0.0, %v2227_v26  ;;  %v2016_v52 = vadd.f32 %v10572_v41, %v13074_v33  ;;  %v2230_v44 = vadd.f32 %v10592_v20, %v13077_v18  ;;  %v2007_v53 = vpop.f32.mrb[11].mxu0  ;;  %v2222_v21 = vpop.f32.mrb[27].mxu1 }
 0x2e5   : > { %v2067_v8 = vsub.f32 0.0, %v2005_v47  ;;  %v2008_v22 = vadd.f32 %v13074_v33, %v2007_v53  ;;  %v1569_v29 = vmul.f32 %v1553_v37, %v13055_v10  ;;  %v1554_v26 = vmul.f32 %v1538_v30, %v13071_v5  ;;  %v13098_v20 = vpop.eup %11479 }
 0x2e6   : > { %v2087_v12 = vmul.f32 1.442695, %v2069_v34  ;;  %v2295_v27 = vmul.f32 1.442695, %v2281_v38  ;;  %v2070_v15 = vsub.f32 0.0, %v2016_v52  ;;  %v2282_v55 = vsub.f32 0.0, %v2230_v44  ;;  %v13101_v47 = vpop.eup %11481 }
 0x2e7   : > { %v2083_v41 = vmul.f32 1.442695, %v2067_v8  ;;  %v2068_v59 = vsub.f32 0.0, %v2008_v22  ;;  %v1584_v21 = vadd.f32 %v1568_v48, %v13037_v19  ;;  %v1582_v34 = vadd.f32 %v1566_v25, %v13042_v35  ;;  %v13105_v37 = vpop.eup %11483 }
 0x2e8   : > { %11487 = vpow2.f32 %v2087_v12  ;;  %v2089_v39 = vmul.f32 1.442695, %v2070_v15  ;;  %v2297_v11 = vmul.f32 1.442695, %v2282_v55  ;;  %v1572_v38 = vmul.f32 %v1556_v28, %v13063_v14  ;;  %16300 = vst [vmem:[#allocation56_spill] sm:$0xff] %v13105_v37  ;;  %v13108_v53 = vpop.eup %11485 }
 0x2e9   : > { %11489 = vpow2.f32 %v2295_v27  ;;  %v2085_v52 = vmul.f32 1.442695, %v2068_v59  ;;  %v1599_v30 = vmul.f32 0.7978846, %v1583_v23  ;;  %v1587_v44 = vadd.f32 %v1571_v17, %v13049_v13 }
 0x2ea   : > { %11491 = vpow2.f32 %v2083_v41  ;;  %v1597_v48 = vmul.f32 0.7978846, %v1581_v1  ;;  %v1585_v8 = vadd.f32 %v1569_v29, %v13055_v10  ;;  %v1570_v55 = vmul.f32 %v1554_v26, %v13071_v5 }
 0x2eb   : > { %11493 = vpow2.f32 %v2089_v39  ;;  %v1600_v22 = vmul.f32 0.7978846, %v1584_v21  ;;  %v1598_v25 = vmul.f32 0.7978846, %v1582_v34  ;;  %v1588_v27 = vadd.f32 %v1572_v38, %v13063_v14 }
 0x2ec   : > { %11495 = vpow2.f32 %v2297_v11  ;;  %v1603_v59 = vmul.f32 0.7978846, %v1587_v44  ;;  %v1601_v23 = vmul.f32 0.7978846, %v1585_v8  ;;  %v1586_v17 = vadd.f32 %v1570_v55, %v13071_v5 }
 0x2ed   : > { %11497 = vpow2.f32 %v2085_v52  ;;  %v1604_v1 = vmul.f32 0.7978846, %v1588_v27  ;;  %v1545_v12 = vmul.f32 0.044715, %v12746_v4  ;;  %v13116_v26 = vmul.f32 0.5, %v12731_v57 }
 0x2ee   : > { %11499 = vtanh.f32 %v1599_v30  ;;  %v10575_v15 = vpop.f32.mrb[12].mxu0  ;;  %v10595_v29 = vpop.f32.mrb[28].mxu1  ;;  %v1602_v21 = vmul.f32 0.7978846, %v1586_v17  ;;  %v13126_v17 = vmul.f32 0.5, %v12737_v6 }
 0x2ef   : > { %11501 = vtanh.f32 %v1597_v48  ;;  %v2029_v39 = vadd.f32 %v10575_v15, %v13074_v33  ;;  %v2243_v11 = vadd.f32 %v10595_v29, %v13077_v18  ;;  %v2020_v34 = vpop.f32.mrb[13].mxu0  ;;  %v2234_v38 = vpop.f32.mrb[29].mxu1 }
 0x2f0   : > { %11503 = vtanh.f32 %v1600_v22  ;;  %v2021_v48 = vadd.f32 %v13074_v33, %v2020_v34  ;;  %v2235_v8 = vadd.f32 %v13077_v18, %v2234_v38  ;;  %v10576_v55 = vpop.f32.mrb[14].mxu0  ;;  %v10596_v22 = vpop.f32.mrb[30].mxu1  ;;  %16301 = vst [vmem:[#allocation57_spill] sm:$0xff] %v13126_v17 }
 0x2f1   : > { %11505 = vtanh.f32 %v1598_v25  ;;  %v2285_v25 = vsub.f32 0.0, %v2243_v11  ;;  %v2023_v27 = vpop.f32.mrb[15].mxu0  ;;  %v2073_v11 = vsub.f32 0.0, %v2029_v39 }
 0x2f2   : > { %v11488_v28 = vpop.eup %11487  ;;  %11507 = vtanh.f32 %v1603_v59  ;;  %v2237_v59 = vpop.f32.mrb[31].mxu1  ;;  %v2071_v6 = vsub.f32 0.0, %v2021_v48 }
 0x2f3   : > { %v11490_v41 = vpop.eup %11489  ;;  %11509 = vtanh.f32 %v1601_v23  ;;  %v2117_v30 = vadd.f32 1.0, %v11488_v28  ;;  %v13123_v23 = vmul.f32 0.5, %v12734_v58  ;;  %v13129_v28 = vmul.f32 0.044715, %v12743_v63 }
 0x2f4   : > { %v11492_v52 = vpop.eup %11491  ;;  %v2323_v44 = vadd.f32 1.0, %v11490_v41  ;;  %11511 = vtanh.f32 %v1604_v1  ;;  %v2283_v41 = vsub.f32 0.0, %v2235_v8  ;;  %v1561_v58 = vmul.f32 %v1545_v12, %v12746_v4 }
 0x2f5   : > { %v11494_v57 = vpop.eup %11493  ;;  %v2115_v29 = vadd.f32 1.0, %v11492_v52  ;;  %v2303_v16 = vmul.f32 1.442695, %v2285_v25  ;;  %v2246_v52 = vadd.f32 %v10596_v22, %v13077_v18  ;;  %v2095_v48 = vmul.f32 1.442695, %v2073_v11 }
 0x2f6   : > { %v11496_v15 = vpop.eup %11495  ;;  %11513 = vrcp.f32 %v2323_v44  ;;  %v2118_v38 = vadd.f32 1.0, %v11494_v57  ;;  %v2032_v44 = vadd.f32 %v10576_v55, %v13074_v33  ;;  %v2299_v39 = vmul.f32 1.442695, %v2283_v41  ;;  %v10579_v12 = vpop.f32.mrb[16].mxu0 }
 0x2f7   : > { %v11498_v34 = vpop.eup %11497  ;;  %11515 = vtanh.f32 %v1602_v21  ;;  %v2324_v1 = vadd.f32 1.0, %v11496_v15  ;;  %v1546_v21 = vmul.f32 0.044715, %v12753_v7  ;;  %v2238_v57 = vadd.f32 %v13077_v18, %v2237_v59  ;;  %v2036_v55 = vpop.f32.mrb[17].mxu0 }
 0x2f8   : > { %v13131_v36 = vpop.eup %11499  ;;  %11517 = vrcp.f32 %v2117_v30  ;;  %v2116_v42 = vadd.f32 1.0, %v11498_v34  ;;  %v10599_v30 = vpop.f32.mrb[32].mxu1  ;;  %v2286_v15 = vsub.f32 0.0, %v2246_v52  ;;  %v2024_v34 = vadd.f32 %v13074_v33, %v2023_v27 }
 0x2f9   : > { %v13134_v50 = vpop.eup %11501  ;;  %11519 = vrcp.f32 %v2324_v1  ;;  %v2250_v1 = vpop.f32.mrb[33].mxu1  ;;  %v2284_v49 = vsub.f32 0.0, %v2238_v57  ;;  %v2259_v41 = vadd.f32 %v10599_v30, %v13077_v18  ;;  %v2074_v11 = vsub.f32 0.0, %v2032_v44 }
 0x2fa   : > { %v13138_v8 = vpop.eup %11503  ;;  %11521 = vrcp.f32 %v2115_v29  ;;  %v2045_v29 = vadd.f32 %v10579_v12, %v13074_v33  ;;  %v10580_v59 = vpop.f32.mrb[18].mxu0  ;;  %v2305_v27 = vmul.f32 1.442695, %v2286_v15  ;;  %v1577_v52 = vmul.f32 %v1561_v58, %v12746_v4  ;;  %v13165_v58 = vld [vmem:[%s16302_s8] ss:$0 sm:$0xff] }
 0x2fb   : > { %v13142_v25 = vpop.eup %11505  ;;  %11523 = vrcp.f32 %v2118_v38  ;;  %v13149_v60 = vpop.f32.mrb[34].mxu1  ;;  %v2091_v38 = vmul.f32 1.442695, %v2071_v6  ;;  %v2301_v17 = vmul.f32 1.442695, %v2284_v49  ;;  %v2072_v30 = vsub.f32 0.0, %v2024_v34 }
 0x2fc   : > { %v13145_v22 = vpop.eup %11507  ;;  %11525 = vpow2.f32 %v2303_v16  ;;  %v2289_v16 = vsub.f32 0.0, %v2259_v41  ;;  %v2039_v57 = vpop.f32.mrb[19].mxu0  ;;  %v2037_v61 = vadd.f32 %v13074_v33, %v2036_v55  ;;  %v2251_v40 = vadd.f32 %v13077_v18, %v2250_v1 }
 0x2fd   : > { %v13151_v46 = vpop.eup %11509  ;;  %11527 = vrcp.f32 %v2116_v42  ;;  %v13154_v37 = vpop.f32.mrb[35].mxu1  ;;  %v13161_v42 = vadd.f32 %v10580_v59, %v13074_v33  ;;  %v1562_v44 = vmul.f32 %v1546_v21, %v12753_v7  ;;  %v2077_v49 = vsub.f32 0.0, %v2045_v29 }
 0x2fe   : > { %11529 = vpow2.f32 %v2299_v39  ;;  %v13156_v12 = vpop.eup %11511  ;;  %v2311_v39 = vmul.f32 1.442695, %v2289_v16  ;;  %v2097_v34 = vmul.f32 1.442695, %v2074_v11  ;;  %v2287_v56 = vsub.f32 0.0, %v2251_v40  ;;  %v10603_v29 = vpop.f32.mrb[36].mxu1 }
 0x2ff   : > { %11531 = vpow2.f32 %v2305_v27  ;;  %v13173_v1 = vmul.f32 %v13129_v28, %v12743_v63  ;;  %v2075_v59 = vsub.f32 0.0, %v2037_v61  ;;  %v13176_v21 = vadd.f32 %v13074_v33, %v2039_v57  ;;  %v10583_v27 = vpop.f32.mrb[20].mxu0 }
 0x300   : > { %v11514_v6 = vpop.eup %11513  ;;  %11533 = vpow2.f32 %v2095_v48  ;;  %v2093_v40 = vmul.f32 1.442695, %v2072_v30  ;;  %v2052_v11 = vpop.f32.mrb[21].mxu0  ;;  %v2103_v61 = vmul.f32 1.442695, %v2077_v49  ;;  %v13189_v45 = vadd.f32 %v1577_v52, %v12746_v4 }
 0x301   : > { %v13167_v15 = vpop.eup %11515  ;;  %v2365_v41 = vmul.f32 -8.0, %v11514_v6  ;;  %16303 = vst [vmem:[#allocation58_spill] sm:$0xff] %v13173_v1  ;;  %11535 = vpow2.f32 %v2301_v17  ;;  %v13182_v6 = vpop.f32.mrb[37].mxu1  ;;  %v2307_v57 = vmul.f32 1.442695, %v2287_v56  ;;  %v13192_v3 = vmul.f32 %v1562_v44, %v12753_v7 }
 0x302   : > { %v13169_v55 = vpop.eup %11517  ;;  %11537 = vpow2.f32 %v2091_v38  ;;  %v10584_v1 = vpop.f32.mrb[22].mxu0  ;;  %16305 = vst [vmem:[#allocation60_spill] sm:$0xff] %v13189_v45  ;;  %v2099_v56 = vmul.f32 1.442695, %v2075_v59  ;;  %v1517_v52 = vmul.f32 0.5, %v13027_v32  ;;  %v1520_v7 = vmul.f32 0.5, %v13037_v19 }
 0x303   : > { %v11520_v16 = vpop.eup %11519  ;;  %v2386_v48 = vmul.f32 %v13165_v58, %v2365_v41  ;;  %11539 = vpow2.f32 %v2311_v39  ;;  %16306 = vst [vmem:[#allocation61_spill] sm:$0xff] %v13192_v3  ;;  %v10604_v30 = vpop.f32.mrb[38].mxu1  ;;  %v1518_v59 = vmul.f32 0.5, %v13042_v35 }
 0x304   : > { %v13184_v28 = vpop.eup %11521  ;;  %v2366_v17 = vmul.f32 -8.0, %v11520_v16  ;;  %11541 = vpow2.f32 %v2097_v34  ;;  %v13194_v41 = vpop.f32.mrb[23].mxu0  ;;  %v1519_v16 = vmul.f32 0.5, %v13022_v31  ;;  %v1631_v34 = vadd.f32 1.0, %v13131_v36 }
 0x305   : > { %v13186_v63 = vpop.eup %11523  ;;  %v2428_v38 = vmul.f32 2.0, %v2386_v48  ;;  %11543 = vpow2.f32 %v2307_v57  ;;  %v2269_v39 = vpop.f32.mrb[39].mxu1  ;;  %v1632_v31 = vadd.f32 1.0, %v13138_v8  ;;  %v13209_v36 = vmul.f32 0.5, %v13049_v13 }
 0x306   : > { %v11526_v9 = vpop.eup %11525  ;;  %v2387_v49 = vmul.f32 %v13165_v58, %v2366_v17  ;;  %11545 = vpow2.f32 %v2093_v40  ;;  %v2400_v17 = vmul.f32 1.442695, %v2386_v48  ;;  %v13212_v40 = vadd.f32 %v10603_v29, %v13077_v18 }
 0x307   : > { %v13198_v51 = vpop.eup %11527  ;;  %v2442_v4 = vmul.f32 1.442695, %v2428_v38  ;;  %v2327_v44 = vadd.f32 1.0, %v11526_v9  ;;  %11547 = vpow2.f32 %v2103_v61  ;;  %v13206_v9 = vadd.f32 %v10583_v27, %v13074_v33 }
 0x308   : > { %v11530_v3 = vpop.eup %11529  ;;  %v2429_v45 = vmul.f32 2.0, %v2387_v49  ;;  %v2402_v19 = vmul.f32 1.442695, %v2387_v49  ;;  %v13214_v35 = vmul.f32 %v1631_v34, %v1519_v16  ;;  %v13220_v27 = vmul.f32 0.5, %v13055_v10 }
 0x309   : > { %11549 = vpow2.f32 %v2442_v4  ;;  %v11532_v57 = vpop.eup %11531  ;;  %v2325_v2 = vadd.f32 1.0, %v11530_v3  ;;  %v13217_v3 = vadd.f32 %v13074_v33, %v2052_v11  ;;  %v1629_v13 = vadd.f32 1.0, %v13134_v50 }
 0x30a   : > { %v2444_v62 = vmul.f32 1.442695, %v2429_v45  ;;  %11551 = vpow2.f32 %v2099_v56  ;;  %v11534_v32 = vpop.eup %11533  ;;  %v2328_v4 = vadd.f32 1.0, %v11532_v57  ;;  %v1630_v48 = vadd.f32 1.0, %v13142_v25 }
 0x30b   : > { %11553 = vrcp.f32 %v2327_v44  ;;  %v11536_v8 = vpop.eup %11535  ;;  %v13224_v29 = vmul.f32 %v1632_v31, %v1520_v7  ;;  %v13229_v11 = vmul.f32 0.5, %v13063_v14  ;;  %v2121_v10 = vadd.f32 1.0, %v11534_v32 }
 0x30c   : > { %11555 = vpow2.f32 %v2444_v62  ;;  %v11538_v45 = vpop.eup %11537  ;;  %v2326_v38 = vadd.f32 1.0, %v11536_v8  ;;  %v2262_v62 = vadd.f32 %v13149_v60, %v13077_v18  ;;  %v13233_v49 = vadd.f32 %v13077_v18, %v13182_v6 }
 0x30d   : > { %11557 = vpow2.f32 %v2400_v17  ;;  %v11540_v61 = vpop.eup %11539  ;;  %v13236_v25 = vmul.f32 0.5, %v13071_v5  ;;  %v2119_v56 = vadd.f32 1.0, %v11538_v45  ;;  %v13242_v14 = vadd.f32 %v10604_v30, %v13077_v18 }
 0x30e   : > { %11559 = vrcp.f32 %v2325_v2  ;;  %v11542_v16 = vpop.eup %11541  ;;  %v2331_v7 = vadd.f32 1.0, %v11540_v61  ;;  %v13239_v2 = vadd.f32 %v10584_v1, %v13074_v33  ;;  %v1645_v44 = vmul.f32 %v1629_v13, %v1517_v52 }
 0x30f   : > { %11561 = vpow2.f32 %v2402_v19  ;;  %v11544_v50 = vpop.eup %11543  ;;  %v1646_v34 = vmul.f32 %v1630_v48, %v1518_v59  ;;  %v2290_v6 = vsub.f32 0.0, %v2262_v62  ;;  %v13246_v17 = vadd.f32 %v13074_v33, %v13194_v41 }
 0x310   : > { %11563 = vrcp.f32 %v2328_v4  ;;  %v11546_v60 = vpop.eup %11545  ;;  %v13249_v5 = vadd.f32 %v13077_v18, %v2269_v39  ;;  %v2329_v1 = vadd.f32 1.0, %v11544_v50  ;;  %v2078_v32 = vsub.f32 0.0, %v13161_v42 }
 0x311   : > { %v11548_v31 = vpop.eup %11547  ;;  %11565 = vrcp.f32 %v2326_v38  ;;  %v2254_v30 = vadd.f32 %v13077_v18, %v13154_v37  ;;  %v2122_v19 = vadd.f32 1.0, %v11542_v16  ;;  %v2582_v33 = vmul.f32 %v13184_v28, %v12859_v54  ;;  %v16307_v38 = vld [vmem:[#allocation38_spill] sm:$0xff] }
 0x312   : > { %11567 = vrcp.f32 %v2121_v10  ;;  %v13260_v39 = vmul.f32 %v13169_v55, %v12810_v0  ;;  %v13263_v8 = vadd.f32 1.0, %v13151_v46  ;;  %v13266_v42 = vadd.f32 1.0, %v13145_v22 }
 0x313   : > { %v11550_v57 = vpop.eup %11549  ;;  %11569 = vrcp.f32 %v2331_v7  ;;  %v2313_v4 = vmul.f32 1.442695, %v2290_v6  ;;  %v2076_v45 = vsub.f32 0.0, %v13176_v21  ;;  %v2105_v0 = vmul.f32 1.442695, %v2078_v32 }
 0x314   : > { %v11552_v52 = vpop.eup %11551  ;;  %v13254_v59 = vsub.f32 1.0, %v11550_v57  ;;  %11571 = vrcp.f32 %v2119_v56  ;;  %v2583_v55 = vmul.f32 %v13198_v51, %v12861_v43  ;;  %v2120_v13 = vadd.f32 1.0, %v11546_v60 }
 0x315   : > { %v11554_v41 = vpop.eup %11553  ;;  %v2288_v22 = vsub.f32 0.0, %v2254_v30  ;;  %v2612_v48 = vmul.f32 %v2582_v33, %v1645_v44  ;;  %v13276_v62 = vmul.f32 %v13186_v63, %v16307_v38  ;;  %v2125_v16 = vadd.f32 1.0, %v11548_v31 }
 0x316   : > { %v11556_v18 = vpop.eup %11555  ;;  %11573 = vrsqrt.f32 %v13254_v59  ;;  %v2369_v37 = vmul.f32 -8.0, %v11554_v41  ;;  %v2123_v7 = vadd.f32 1.0, %v11552_v52  ;;  %v2101_v43 = vmul.f32 1.442695, %v2076_v45 }
 0x317   : > { %v11558_v54 = vpop.eup %11557  ;;  %v13270_v28 = vsub.f32 1.0, %v11556_v18  ;;  %11575 = vrcp.f32 %v2329_v1  ;;  %v2613_v56 = vmul.f32 %v2583_v55, %v1646_v34  ;;  %v2309_v6 = vmul.f32 1.442695, %v2288_v22 }
 0x318   : > { %v11560_v46 = vpop.eup %11559  ;;  %11577 = vrcp.f32 %v2122_v19  ;;  %v2390_v50 = vmul.f32 %v13165_v58, %v2369_v37  ;;  %v13281_v63 = vmul.f32 %v11558_v54, %v2582_v33  ;;  %v2293_v41 = vsub.f32 0.0, %v13212_v40 }
 0x319   : > { %v11562_v61 = vpop.eup %11561  ;;  %11579 = vrsqrt.f32 %v13270_v28  ;;  %v2367_v21 = vmul.f32 -8.0, %v11560_v46  ;;  %v2690_v34 = vpack.c.bf16 %v2613_v56, %v2612_v48  ;;  %vm2486_vm1 = vcmp.eq.f32.partialorder %v13254_v59, inf }
 0x31a   : > { %v11564_v10 = vpop.eup %11563  ;;  %11581 = vpow2.f32 %v2313_v4  ;;  %v13283_v57 = vmul.f32 %v11562_v61, %v2583_v55  ;;  %v2408_v37 = vmul.f32 1.442695, %v2390_v50  ;;  %v2432_v33 = vmul.f32 2.0, %v2390_v50 }
 0x31b   : > { %v2388_v51 = vmul.f32 %v13165_v58, %v2367_v21  ;;  %v2370_v60 = vmul.f32 -8.0, %v11564_v10  ;;  %11583 = vpow2.f32 %v2105_v0  ;;  %v11566_v44 = vpop.eup %11565  ;;  %vm2488_vm2 = vcmp.eq.f32.partialorder %v13254_v59, 0.0  ;;  %10609 = vmatprep.mubr.msk.bf16.mxu0 %vm1227_vm0, %v2690_v34 }
 0x31c   : > { %11585 = vrcp.f32 %v2120_v13  ;;  %v13285_v1 = vpop.eup %11567  ;;  %v2368_v30 = vmul.f32 -8.0, %v11566_v44  ;;  %v2489_v22 = vand.u32 2147483648, %v13254_v59  ;;  %vm2493_vm3 = vcmp.eq.f32.partialorder %v13270_v28, inf }
 0x31d   : > { %v2430_v31 = vmul.f32 2.0, %v2388_v51  ;;  %v2391_v32 = vmul.f32 %v13165_v58, %v2370_v60  ;;  %11587 = vrcp.f32 %v2125_v16  ;;  %v11570_v52 = vpop.eup %11569  ;;  %v2404_v19 = vmul.f32 1.442695, %v2388_v51 }
 0x31e   : > { %11589 = vrcp.f32 %v2123_v7  ;;  %v13289_v18 = vpop.eup %11571  ;;  %v2389_v54 = vmul.f32 %v13165_v58, %v2368_v30  ;;  %v2373_v0 = vmul.f32 -8.0, %v11570_v52  ;;  %v2450_v16 = vmul.f32 1.442695, %v2432_v33 }
 0x31f   : > { %v2433_v45 = vmul.f32 2.0, %v2391_v32  ;;  %11591 = vpow2.f32 %v2309_v6  ;;  %v2446_v46 = vmul.f32 1.442695, %v2430_v31  ;;  %v2410_v44 = vmul.f32 1.442695, %v2391_v32 }
 0x320   : > { %v11574_v4 = vpop.eup %11573  ;;  %11593 = vpow2.f32 %v2101_v43  ;;  %v2406_v61 = vmul.f32 1.442695, %v2389_v54  ;;  %v2431_v38 = vmul.f32 2.0, %v2389_v54  ;;  %v2394_v60 = vmul.f32 %v13165_v58, %v2373_v0 }
 0x321   : > { %v11576_v55 = vpop.eup %11575  ;;  %v2485_v13 = vmul.f32 %v11574_v4, %v13254_v59  ;;  %11595 = vpow2.f32 %v2404_v19  ;;  %v2452_v43 = vmul.f32 1.442695, %v2433_v45  ;;  %vm2495_vm4 = vcmp.eq.f32.partialorder %v13270_v28, 0.0 }
 0x322   : > { %v13297_v48 = vpop.eup %11577  ;;  %11597 = vpow2.f32 %v2408_v37  ;;  %v2371_v10 = vmul.f32 -8.0, %v11576_v55  ;;  %v2448_v51 = vmul.f32 1.442695, %v2431_v38  ;;  %v2496_v33 = vand.u32 2147483648, %v13270_v28 }
 0x323   : > { %v11580_v21 = vpop.eup %11579  ;;  %v2487_v50 = vsel %vm2486_vm1, %v13254_v59, %v2485_v13  ;;  %11599 = vpow2.f32 %v2406_v61  ;;  %v2436_v59 = vmul.f32 2.0, %v2394_v60  ;;  %v2291_v55 = vsub.f32 0.0, %v13233_v49 }
 0x324   : > { %v11582_v7 = vpop.eup %11581  ;;  %11601 = vpow2.f32 %v2446_v46  ;;  %v2392_v6 = vmul.f32 %v13165_v58, %v2371_v10  ;;  %v2490_v31 = vsel %vm2488_vm2, %v2489_v22, %v2487_v50  ;;  %v2492_v19 = vmul.f32 %v11580_v21, %v13270_v28 }
 0x325   : > { %v11584_v56 = vpop.eup %11583  ;;  %11603 = vpow2.f32 %v2448_v51  ;;  %v2332_v52 = vadd.f32 1.0, %v11582_v7  ;;  %v2598_v32 = vmul.f32 %v13260_v39, %v2490_v31  ;;  %v2416_v22 = vmul.f32 1.442695, %v2394_v60 }
 0x326   : > { %v13307_v30 = vpop.eup %11585  ;;  %11605 = vpow2.f32 %v2450_v16  ;;  %v2434_v37 = vmul.f32 2.0, %v2392_v6  ;;  %v2126_v45 = vadd.f32 1.0, %v11584_v56  ;;  %v2494_v54 = vsel %vm2493_vm3, %v13270_v28, %v2492_v19 }
 0x327   : > { %v13311_v34 = vpop.eup %11587  ;;  %11607 = vpow2.f32 %v2452_v43  ;;  %v2497_v46 = vsel %vm2495_vm4, %v2496_v33, %v2494_v54  ;;  %v2616_v39 = vadd.f32 %v13281_v63, %v2598_v32  ;;  %v2319_v16 = vmul.f32 1.442695, %v2293_v41 }
 0x328   : > { %v13315_v4 = vpop.eup %11589  ;;  %11609 = vpow2.f32 %v2410_v44  ;;  %v2454_v0 = vmul.f32 1.442695, %v2434_v37  ;;  %v2599_v61 = vmul.f32 %v13276_v62, %v2497_v46  ;;  %v2294_v28 = vsub.f32 0.0, %v13242_v14 }
 0x329   : > { %v11592_v13 = vpop.eup %11591  ;;  %11611 = vrcp.f32 %v2332_v52  ;;  %v2458_v50 = vmul.f32 1.442695, %v2436_v59  ;;  %v2618_v7 = vmul.f32 %v2616_v39, %v13214_v35  ;;  %v2315_v62 = vmul.f32 1.442695, %v2291_v55 }
 0x32a   : > { %v11594_v38 = vpop.eup %11593  ;;  %11613 = vpow2.f32 %v2454_v0  ;;  %v2330_v21 = vadd.f32 1.0, %v11592_v13  ;;  %v2617_v49 = vadd.f32 %v13283_v57, %v2599_v61  ;;  %v2292_v63 = vsub.f32 0.0, %v13249_v5 }
 0x32b   : > { %v11596_v10 = vpop.eup %11595  ;;  %11615 = vrcp.f32 %v2126_v45  ;;  %v2412_v40 = vmul.f32 1.442695, %v2392_v6  ;;  %v1636_v41 = vadd.f32 1.0, %v13156_v12  ;;  %v2321_v57 = vmul.f32 1.442695, %v2294_v28 }
 0x32c   : > { %v13328_v43 = vpop.eup %11597  ;;  %11617 = vrcp.f32 %v2330_v21  ;;  %v13331_v51 = vmul.f32 %v11596_v10, %v2616_v39  ;;  %v2619_v14 = vmul.f32 %v2617_v49, %v13224_v29  ;;  %v1634_v35 = vadd.f32 1.0, %v13167_v15 }
 0x32d   : > { %v11600_v60 = vpop.eup %11599  ;;  %11619 = vpow2.f32 %v2416_v22  ;;  %v2124_v52 = vadd.f32 1.0, %v11594_v38  ;;  %v13340_v19 = vmul.f32 %v13263_v8, %v13220_v27  ;;  %v2317_v29 = vmul.f32 1.442695, %v2292_v63 }
 0x32e   : > { %v11602_v56 = vpop.eup %11601  ;;  %11621 = vpow2.f32 %v2319_v16  ;;  %v13336_v44 = vmul.f32 %v11600_v60, %v2617_v49  ;;  %v2691_v5 = vpack.c.bf16 %v2619_v14, %v2618_v7  ;;  %v1637_v12 = vadd.f32 1.0, %v13101_v47  ;;  %v16308_v49 = vld [vmem:[#allocation42_spill] sm:$0xff] }
 0x32f   : > { %v11604_v31 = vpop.eup %11603  ;;  %11623 = vpow2.f32 %v2458_v50  ;;  %v13344_v37 = vadd.f32 1.0, %v13108_v53  ;;  %v13346_v15 = vsub.f32 1.0, %v11602_v56  ;;  %v13351_v32 = vmul.f32 %v13266_v42, %v13209_v36 }
 0x330   : > { %v11606_v6 = vpop.eup %11605  ;;  %11625 = vpow2.f32 %v2315_v62  ;;  %10610 = vmatmul.mubr.msk.bf16.vlgmr.msra.gmra.mrb[24].mxu0 %vm1227_vm0, %v2691_v5  ;;  %v13354_v27 = vmul.f32 %v1636_v41, %v13229_v11  ;;  %v13358_v59 = vsub.f32 1.0, %v11604_v31  ;;  %v2081_v47 = vsub.f32 0.0, %v13206_v9  ;;  %v16309_v62 = vld [vmem:[#allocation40_spill] sm:$0xff]  ;;  %v16310_v41 = vld [vmem:[#allocation43_spill] sm:$0xff] }
 0x331   : > { %v11608_v33 = vpop.eup %11607  ;;  %11627 = vpow2.f32 %v2412_v40  ;;  %v1639_v53 = vadd.f32 1.0, %v13098_v20  ;;  %v13362_v54 = vsub.f32 1.0, %v11606_v6  ;;  %v2079_v0 = vsub.f32 0.0, %v13217_v3 }
 0x332   : > { %v13356_v8 = vpop.eup %11609  ;;  %11629 = vpow2.f32 %v2321_v57  ;;  %v2082_v36 = vsub.f32 0.0, %v13239_v2  ;;  %v13366_v11 = vsub.f32 1.0, %v11608_v33  ;;  %v2080_v46 = vsub.f32 0.0, %v13246_v17 }
 0x333   : > { %v11612_v45 = vpop.eup %11611  ;;  %11631 = vrcp.f32 %v2124_v52  ;;  %v13374_v20 = vmul.f32 %v1634_v35, %v13236_v25  ;;  %v13378_v3 = vmul.f32 %v1637_v12, %v13123_v23  ;;  %v2111_v61 = vmul.f32 1.442695, %v2081_v47 }
 0x334   : > { %v11614_v42 = vpop.eup %11613  ;;  %v2374_v55 = vmul.f32 -8.0, %v11612_v45  ;;  %11633 = vpow2.f32 %v2317_v29  ;;  %v13385_v17 = vmul.f32 %v1639_v53, %v13116_v26  ;;  %v2107_v25 = vmul.f32 1.442695, %v2079_v0 }
 0x335   : > { %v13369_v13 = vpop.eup %11615  ;;  %v13371_v9 = vsub.f32 1.0, %v11614_v42  ;;  %11635 = vrsqrt.f32 %v13346_v15  ;;  %v2113_v21 = vmul.f32 1.442695, %v2082_v36  ;;  %v13391_v28 = vmul.f32 1.442695, %v2080_v46 }
 0x336   : > { %v11618_v2 = vpop.eup %11617  ;;  %v13381_v22 = vmul.f32 %v13165_v58, %v2374_v55  ;;  %11637 = vrsqrt.f32 %v13358_v59  ;;  %v2586_v10 = vmul.f32 %v13289_v18, %v12921_v24  ;;  %v2587_v7 = vmul.f32 %v13307_v30, %v16308_v49  ;;  %v16311_v30 = vld [vmem:[#allocation51_spill] sm:$0xff] }
 0x337   : > { %v13387_v39 = vpop.eup %11619  ;;  %v2372_v38 = vmul.f32 -8.0, %v11618_v2  ;;  %11639 = vrsqrt.f32 %v13362_v54  ;;  %v13401_v63 = vmul.f32 %v13285_v1, %v16309_v62  ;;  %v13406_v24 = vmul.f32 %v13297_v48, %v16310_v41 }
 0x338   : > { %v11622_v16 = vpop.eup %11621  ;;  %v2437_v23 = vmul.f32 2.0, %v13381_v22  ;;  %11641 = vrsqrt.f32 %v13366_v11  ;;  %vm2514_vm5 = vcmp.eq.f32.partialorder %v13362_v54, inf  ;;  %v13413_v1 = vmul.f32 %v13315_v4, %v16311_v30 }
 0x339   : > { %v11624_v50 = vpop.eup %11623  ;;  %v2393_v26 = vmul.f32 %v13165_v58, %v2372_v38  ;;  %11643 = vrsqrt.f32 %v13371_v9  ;;  %v2335_v14 = vadd.f32 1.0, %v11622_v16  ;;  %vm2500_vm6 = vcmp.eq.f32.partialorder %v13346_v15, inf }
 0x33a   : > { %v11626_v60 = vpop.eup %11625  ;;  %v2460_v40 = vmul.f32 1.442695, %v2437_v23  ;;  %11645 = vpow2.f32 %v2111_v61  ;;  %vm2516_vm7 = vcmp.eq.f32.partialorder %v13362_v54, 0.0  ;;  %v2517_v35 = vand.u32 2147483648, %v13362_v54 }
 0x33b   : > { %v13408_v18 = vpop.eup %11627  ;;  %v2435_v56 = vmul.f32 2.0, %v2393_v26  ;;  %11647 = vpow2.f32 %v2107_v25  ;;  %v2333_v52 = vadd.f32 1.0, %v11626_v60  ;;  %vm2502_vm8 = vcmp.eq.f32.partialorder %v13346_v15, 0.0 }
 0x33c   : > { %v11630_v57 = vpop.eup %11629  ;;  %11649 = vpow2.f32 %v2460_v40  ;;  %v2503_v4 = vand.u32 2147483648, %v13346_v15  ;;  %vm2521_vm9 = vcmp.eq.f32.partialorder %v13366_v11, inf  ;;  %vm2523_vm10 = vcmp.eq.f32.partialorder %v13366_v11, 0.0 }
 0x33d   : > { %v13418_v48 = vpop.eup %11631  ;;  %v2456_v31 = vmul.f32 1.442695, %v2435_v56  ;;  %11651 = vpow2.f32 %v2113_v21  ;;  %v13424_v29 = vsub.f32 1.0, %v11624_v50  ;;  %v2336_v12 = vadd.f32 1.0, %v11630_v57 }
 0x33e   : > { %v11634_v5 = vpop.eup %11633  ;;  %11653 = vrcp.f32 %v2335_v14  ;;  %v2524_v33 = vand.u32 2147483648, %v13366_v11  ;;  %v2414_v53 = vmul.f32 1.442695, %v2393_v26  ;;  %vm2507_vm11 = vcmp.eq.f32.partialorder %v13358_v59, inf }
 0x33f   : > { %v11636_v6 = vpop.eup %11635  ;;  %11655 = vpow2.f32 %v2456_v31  ;;  %vm2509_vm12 = vcmp.eq.f32.partialorder %v13358_v59, 0.0  ;;  %v2334_v36 = vadd.f32 1.0, %v11634_v5  ;;  %v2510_v55 = vand.u32 2147483648, %v13358_v59 }
 0x340   : > { %v11638_v47 = vpop.eup %11637  ;;  %v2499_v45 = vmul.f32 %v11636_v6, %v13346_v15  ;;  %11657 = vrcp.f32 %v2333_v52  ;;  %vm2528_vm13 = vcmp.eq.f32.partialorder %v13371_v9, inf  ;;  %v2531_v38 = vand.u32 2147483648, %v13371_v9 }
 0x341   : > { %v11640_v0 = vpop.eup %11639  ;;  %v2506_v42 = vmul.f32 %v11638_v47, %v13358_v59  ;;  %11659 = vrcp.f32 %v2336_v12  ;;  %vm2530_vm14 = vcmp.eq.f32.partialorder %v13371_v9, 0.0  ;;  %vm2542_vm15 = vcmp.eq.f32.partialorder %v13424_v29, inf }
 0x342   : > { %v11642_v46 = vpop.eup %11641  ;;  %v2501_v2 = vsel %vm2500_vm6, %v13346_v15, %v2499_v45  ;;  %v2513_v61 = vmul.f32 %v11640_v0, %v13362_v54  ;;  %11661 = vpow2.f32 %v2414_v53  ;;  %vm2544_vm1 = vcmp.eq.f32.partialorder %v13424_v29, 0.0 }
 0x343   : > { %v11644_v25 = vpop.eup %11643  ;;  %v2504_v21 = vsel %vm2502_vm8, %v2503_v4, %v2501_v2  ;;  %v2508_v16 = vsel %vm2507_vm11, %v13358_v59, %v2506_v42  ;;  %v2520_v23 = vmul.f32 %v11642_v46, %v13366_v11  ;;  %11663 = vrcp.f32 %v2334_v36  ;;  %v16313_v42 = vld [vmem:[#allocation49_spill] sm:$0xff] }
 0x344   : > { %v13442_v50 = vpop.eup %11645  ;;  %v2511_v26 = vsel %vm2509_vm12, %v2510_v55, %v2508_v16  ;;  %v2600_v49 = vmul.f32 %v2586_v10, %v2504_v21  ;;  %v2515_v62 = vsel %vm2514_vm5, %v13362_v54, %v2513_v61  ;;  %v2527_v30 = vmul.f32 %v11644_v25, %v13371_v9 }
 0x345   : > { %v13449_v60 = vpop.eup %11647  ;;  %v2601_v15 = vmul.f32 %v2587_v7, %v2511_v26  ;;  %v2518_v40 = vsel %vm2516_vm7, %v2517_v35, %v2515_v62  ;;  %v2522_v14 = vsel %vm2521_vm9, %v13366_v11, %v2520_v23  ;;  %11665 = vrsqrt.f32 %v13424_v29 }
 0x346   : > { %v11650_v41 = vpop.eup %11649  ;;  %v2622_v59 = vadd.f32 %v13331_v51, %v2600_v49  ;;  %v2525_v10 = vsel %vm2523_vm10, %v2524_v33, %v2522_v14  ;;  %v2602_v56 = vmul.f32 %v13401_v63, %v2518_v40  ;;  %v2529_v63 = vsel %vm2528_vm13, %v13371_v9, %v2527_v30 }
 0x347   : > { %v13461_v57 = vpop.eup %11651  ;;  %v13463_v7 = vsub.f32 1.0, %v11650_v41  ;;  %v2623_v54 = vadd.f32 %v13336_v44, %v2601_v15  ;;  %v2603_v35 = vmul.f32 %v13406_v24, %v2525_v10  ;;  %v2532_v24 = vsel %vm2530_vm14, %v2531_v38, %v2529_v63  ;;  %v16314_v15 = vld [vmem:[#allocation52_spill] sm:$0xff] }
 0x348   : > { %v11654_v31 = vpop.eup %11653  ;;  %v2624_v51 = vmul.f32 %v2622_v59, %v13340_v19  ;;  %v2626_v11 = vmul.f32 %v13328_v43, %v2622_v59  ;;  %v2604_v19 = vmul.f32 %v13413_v1, %v2532_v24  ;;  %v2418_v33 = vmul.f32 1.442695, %v13381_v22 }
 0x349   : > { %v11656_v52 = vpop.eup %11655  ;;  %v2377_v5 = vmul.f32 -8.0, %v11654_v31  ;;  %v2625_v4 = vmul.f32 %v2623_v54, %v13374_v20  ;;  %v2627_v44 = vmul.f32 %v13356_v8, %v2623_v54  ;;  %11667 = vrsqrt.f32 %v13463_v7  ;;  %v16312_v8 = vld [vmem:[#allocation48_spill] sm:$0xff] }
 0x34a   : > { %v13476_v6 = vsub.f32 1.0, %v11656_v52  ;;  %v2628_v12 = vadd.f32 %v2626_v11, %v2602_v56  ;;  %v11658_v43 = vpop.eup %11657  ;;  %v2592_v0 = vmul.f32 %v13311_v34, %v16312_v8  ;;  %v2593_v55 = vmul.f32 %v13369_v13, %v16313_v42 }
 0x34b   : > { %v13482_v47 = vmul.f32 %v13165_v58, %v2377_v5  ;;  %v2692_v9 = vpack.c.bf16 %v2625_v4, %v2624_v51  ;;  %v2629_v53 = vadd.f32 %v2627_v44, %v2603_v35  ;;  %v2375_v45 = vmul.f32 -8.0, %v11658_v43  ;;  %v11660_v36 = vpop.eup %11659  ;;  %v16316_v43 = vld [vmem:[#allocation58_spill] sm:$0xff] }
 0x34c   : > { %v2630_v20 = vmul.f32 %v2628_v12, %v13351_v32  ;;  %11669 = vrsqrt.f32 %v13476_v6  ;;  %v11662_v46 = vpop.eup %11661  ;;  %v2378_v2 = vmul.f32 -8.0, %v11660_v36  ;;  %v2632_v61 = vmul.f32 %v13408_v18, %v2628_v12 }
 0x34d   : > { %v2440_v1 = vmul.f32 2.0, %v13482_v47  ;;  %11671 = vpow2.f32 %v13391_v28  ;;  %10613 = vmatprep.mubr.msk.bf16.mxu0 %vm1227_vm0, %v2692_v9  ;;  %v2631_v22 = vmul.f32 %v2629_v53, %v13354_v27  ;;  %v2396_v32 = vmul.f32 %v13165_v58, %v2375_v45  ;;  %v11664_v34 = vpop.eup %11663  ;;  %v16317_v9 = vld [vmem:[#allocation36_spill] sm:$0xff] }
 0x34e   : > { %11673 = vpow2.f32 %v2418_v33  ;;  %v13497_v28 = vmul.f32 %v11662_v46, %v2629_v53  ;;  %v13500_v27 = vmul.f32 %v13165_v58, %v2378_v2  ;;  %v2376_v13 = vmul.f32 -8.0, %v11664_v34  ;;  %v16318_v53 = vld [vmem:[#allocation59_spill] sm:$0xff]  ;;  %v16321_v2 = vld [vmem:[#allocation37_spill] sm:$0xff] }
 0x34f   : > { %v2466_v38 = vmul.f32 1.442695, %v2440_v1  ;;  %v2693_v25 = vpack.c.bf16 %v2631_v22, %v2630_v20  ;;  %v2420_v21 = vmul.f32 1.442695, %v2396_v32  ;;  %v2438_v16 = vmul.f32 2.0, %v2396_v32  ;;  %v11666_v23 = vpop.eup %11665  ;;  %v16320_v1 = vld [vmem:[#allocation33_spill] sm:$0xff] }
 0x350   : > { %v2634_v26 = vadd.f32 %v2632_v61, %v2604_v19  ;;  %v2545_v18 = vand.u32 2147483648, %v13424_v29  ;;  %v2441_v62 = vmul.f32 2.0, %v13500_v27  ;;  %v2591_v40 = vmul.f32 %v13418_v48, %v16314_v15  ;;  %v16315_v19 = vld [vmem:[#allocation34_spill] sm:$0xff]  ;;  %v16322_v61 = vld [vmem:[#allocation61_spill] sm:$0xff] }
 0x351   : > { %11675 = vpow2.f32 %v2466_v38  ;;  %10614 = vmatmul.mubr.msk.bf16.gmra.mrb[28].mxu0 %vm1227_vm0, %v2693_v25  ;;  %v2462_v49 = vmul.f32 1.442695, %v2438_v16  ;;  %v2397_v14 = vmul.f32 %v13165_v58, %v2376_v13  ;;  %v2541_v59 = vmul.f32 %v11666_v23, %v13424_v29 }
 0x352   : > { %11677 = vpow2.f32 %v2420_v21  ;;  %v13510_v41 = vmul.f32 %v2634_v26, %v13378_v3  ;;  %v2638_v10 = vmul.f32 %v13387_v39, %v2634_v26  ;;  %v2129_v30 = vadd.f32 1.0, %v13442_v50  ;;  %v16323_v21 = vld [vmem:[#allocation56_spill] sm:$0xff] }
 0x353   : > { %v11668_v56 = vpop.eup %11667  ;;  %11679 = vpow2.f32 %v2462_v49  ;;  %v2468_v54 = vmul.f32 1.442695, %v2441_v62  ;;  %vm2549_vm2 = vcmp.eq.f32.partialorder %v13463_v7, inf  ;;  %v2422_v35 = vmul.f32 1.442695, %v2397_v14 }
 0x354   : > { %v2439_v31 = vmul.f32 2.0, %v2397_v14  ;;  %vm2535_vm3 = vcmp.eq.f32.partialorder %v13476_v6, inf  ;;  %v2543_v58 = vsel %vm2542_vm15, %v13424_v29, %v2541_v59  ;;  %vm2537_vm4 = vcmp.eq.f32.partialorder %v13476_v6, 0.0 }
 0x355   : > { %11681 = vpow2.f32 %v2468_v54  ;;  %v2546_v39 = vsel %vm2544_vm1, %v2545_v18, %v2543_v58  ;;  %v2548_v48 = vmul.f32 %v11668_v56, %v13463_v7  ;;  %v2552_v63 = vand.u32 2147483648, %v13463_v7 }
 0x356   : > { %v11670_v3 = vpop.eup %11669  ;;  %v2464_v51 = vmul.f32 1.442695, %v2439_v31  ;;  %v2606_v52 = vmul.f32 %v2592_v0, %v2546_v39  ;;  %11683 = vpow2.f32 %v2422_v35  ;;  %v2538_v5 = vand.u32 2147483648, %v13476_v6 }
 0x357   : > { %v11672_v50 = vpop.eup %11671  ;;  %v2534_v11 = vmul.f32 %v11670_v3, %v13476_v6  ;;  %v2550_v4 = vsel %vm2549_vm2, %v13463_v7, %v2548_v48  ;;  %vm2551_vm5 = vcmp.eq.f32.partialorder %v13463_v7, 0.0  ;;  %v1579_v33 = vmul.f32 %v16316_v43, %v16315_v19  ;;  %v16319_v7 = vld [vmem:[#allocation60_spill] sm:$0xff] }
 0x358   : > { %v11674_v29 = vpop.eup %11673  ;;  %11685 = vpow2.f32 %v2464_v51  ;;  %v2553_v24 = vsel %vm2551_vm5, %v2552_v63, %v2550_v4  ;;  %v2640_v12 = vadd.f32 %v2638_v10, %v2606_v52  ;;  %v1564_v45 = vmul.f32 %v16318_v53, %v16317_v9 }
 0x359   : > { %v2536_v44 = vsel %vm2535_vm3, %v13476_v6, %v2534_v11  ;;  %v2607_v8 = vmul.f32 %v2593_v55, %v2553_v24  ;;  %v1609_v36 = vmul.f32 0.7978846, %v16319_v7  ;;  %v1526_v22 = vmul.f32 0.5, %v16320_v1 }
 0x35a   : > { %v2539_v20 = vsel %vm2537_vm4, %v2538_v5, %v2536_v44  ;;  %v2642_v46 = vmul.f32 %v2640_v12, %v13385_v17  ;;  %v1594_v34 = vadd.f32 %v16322_v61, %v16321_v2  ;;  %v2127_v25 = vadd.f32 1.0, %v13449_v60  ;;  %v16325_v44 = vld [vmem:[#allocation55_spill] sm:$0xff] }
 0x35b   : > { %v11676_v0 = vpop.eup %11675  ;;  %v2605_v42 = vmul.f32 %v2591_v40, %v2539_v20  ;;  %v1640_v16 = vadd.f32 1.0, %v16323_v21  ;;  %11687 = vrcp.f32 %v2129_v30  ;;  %v1654_v6 = vmul.f32 %v13344_v37, %v1526_v22  ;;  %v16328_v21 = vld [vmem:[#allocation54_spill] sm:$0xff] }
 0x35c   : > { %v11678_v32 = vpop.eup %11677  ;;  %v2482_v38 = vsub.f32 1.0, %v11676_v0  ;;  %v1595_v26 = vadd.f32 %v1579_v33, %v16315_v19  ;;  %v1580_v17 = vmul.f32 %v1564_v45, %v16317_v9  ;;  %v2130_v18 = vadd.f32 1.0, %v13461_v57 }
 0x35d   : > { %v2635_v55 = vadd.f32 %v13497_v28, %v2605_v42  ;;  %v13549_v13 = vmul.f32 %v11678_v32, %v2640_v12  ;;  %v11680_v23 = vpop.eup %11679  ;;  %v1610_v40 = vmul.f32 0.7978846, %v1594_v34  ;;  %v2128_v37 = vadd.f32 1.0, %v11672_v50  ;;  %v16324_v28 = vld [vmem:[#allocation57_spill] sm:$0xff]  ;;  %v16327_v42 = vld [vmem:[#allocation35_spill] sm:$0xff] }
 0x35e   : > { %11689 = vrsqrt.f32 %v2482_v38  ;;  %v13554_v49 = vsub.f32 1.0, %v11680_v23  ;;  %v1656_v14 = vmul.f32 %v1640_v16, %v16324_v28  ;;  %v1596_v30 = vadd.f32 %v1580_v17, %v16317_v9 }
 0x35f   : > { %v2637_v60 = vmul.f32 %v2635_v55, %v1654_v6  ;;  %v2639_v62 = vmul.f32 %v11674_v29, %v2635_v55  ;;  %11691 = vtanh.f32 %v1609_v36  ;;  %v11682_v15 = vpop.eup %11681  ;;  %v1611_v58 = vmul.f32 0.7978846, %v1595_v26 }
 0x360   : > { %11693 = vrcp.f32 %v2127_v25  ;;  %v13557_v59 = vsub.f32 1.0, %v11682_v15  ;;  %v11684_v57 = vpop.eup %11683  ;;  %v1612_v48 = vmul.f32 0.7978846, %v1596_v30  ;;  %v2426_v5 = vmul.f32 1.442695, %v13500_v27 }
 0x361   : > { %v2694_v10 = vpack.c.bf16 %v2637_v60, %v13510_v41  ;;  %v2641_v56 = vadd.f32 %v2639_v62, %v2607_v8  ;;  %11695 = vrsqrt.f32 %v13554_v49  ;;  %v2424_v41 = vmul.f32 1.442695, %v13482_v47  ;;  %v16326_v8 = vld [vmem:[#allocation50_spill] sm:$0xff] }
 0x362   : > { %11697 = vrcp.f32 %v2130_v18  ;;  %v11686_v54 = vpop.eup %11685  ;;  %vm2570_vm6 = vcmp.eq.f32.partialorder %v2482_v38, inf  ;;  %v2573_v4 = vand.u32 2147483648, %v2482_v38  ;;  %vm2572_vm7 = vcmp.eq.f32.partialorder %v2482_v38, 0.0 }
 0x363   : > { %10617 = vmatprep.mubr.msk.bf16.mxu0 %vm1227_vm0, %v2694_v10  ;;  %v2643_v35 = vmul.f32 %v2641_v56, %v1656_v14  ;;  %v13563_v31 = vmul.f32 %v11684_v57, %v2641_v56  ;;  %11699 = vrsqrt.f32 %v13557_v59  ;;  %v13566_v3 = vsub.f32 1.0, %v11686_v54 }
 0x364   : > { %11701 = vtanh.f32 %v1610_v40  ;;  %vm2556_vm8 = vcmp.eq.f32.partialorder %v13554_v49, inf  ;;  %v2559_v20 = vand.u32 2147483648, %v13554_v49  ;;  %vm2558_vm9 = vcmp.eq.f32.partialorder %v13554_v49, 0.0  ;;  %v16329_v40 = vld [vmem:[#allocation47_spill] sm:$0xff] }
 0x365   : > { %11703 = vrcp.f32 %v2128_v37  ;;  %v2695_v39 = vpack.c.bf16 %v2643_v35, %v2642_v46  ;;  %v11688_v50 = vpop.eup %11687  ;;  %v1529_v46 = vmul.f32 0.5, %v16327_v42  ;;  %vm2577_vm10 = vcmp.eq.f32.partialorder %v13557_v59, inf }
 0x366   : > { %11705 = vrsqrt.f32 %v13566_v3  ;;  %v2596_v24 = vmul.f32 %v11688_v50, %v16325_v44  ;;  %v2580_v61 = vand.u32 2147483648, %v13557_v59  ;;  %vm2579_vm11 = vcmp.eq.f32.partialorder %v13557_v59, 0.0 }
 0x367   : > { %10618 = vmatmul.mubr.msk.bf16.gmra.mrb[32].mxu0 %vm1227_vm0, %v2695_v39  ;;  %11707 = vtanh.f32 %v1611_v58  ;;  %vm2563_vm12 = vcmp.eq.f32.partialorder %v13566_v3, inf  ;;  %v2566_v17 = vand.u32 2147483648, %v13566_v3  ;;  %vm2565_vm13 = vcmp.eq.f32.partialorder %v13566_v3, 0.0 }
 0x368   : > { %v11690_v51 = vpop.eup %11689  ;;  %11709 = vpow2.f32 %v2424_v41  ;;  %v1530_v56 = vmul.f32 0.5, %v16321_v2  ;;  %vm12283_vm14 = vmmov 0   ;;  %vm4324_vm15 = vcmask 64512  }
 0x369   : > { %v11692_v11 = vpop.eup %11691  ;;  %v2569_v63 = vmul.f32 %v11690_v51, %v2482_v38  ;;  %11711 = vtanh.f32 %v1612_v48  ;;  %v1532_v48 = vmul.f32 0.5, %v16317_v9  ;;  %vm4701_vm1 = vcmask 130048  }
 0x36a   : > { %v11694_v52 = vpop.eup %11693  ;;  %v1641_v43 = vadd.f32 1.0, %v11692_v11  ;;  %11713 = vpow2.f32 %v2426_v5  ;;  %vm6270_vm2 = vcmask 1043456   ;;  %vm2682_vm3 = vcmask 523264  }
 0x36b   : > { %v11696_v47 = vpop.eup %11695  ;;  %v2571_v29 = vsel %vm2570_vm6, %v2482_v38, %v2569_v63  ;;  %v2594_v27 = vmul.f32 %v11694_v52, %v16326_v8  ;;  %v12165_v8 = vld [vmem:[%s12552_s7 + $0x18] sm:$0xff]  ;;  %vm2685_vm4 = vcmask 785408  }
 0x36c   : > { %v11698_v12 = vpop.eup %11697  ;;  %v2555_v33 = vmul.f32 %v11696_v47, %v13554_v49  ;;  %v2574_v53 = vsel %vm2572_vm7, %v2573_v4, %v2571_v29  ;;  %v1657_v6 = vmul.f32 %v1641_v43, %v1529_v46  ;;  %v12163_v43 = vld [vmem:[%s12552_s7 + $0x10] sm:$0xff] }
 0x36d   : > { %v11700_v45 = vpop.eup %11699  ;;  %v2610_v0 = vmul.f32 %v2596_v24, %v2574_v53  ;;  %v2597_v16 = vmul.f32 %v11698_v12, %v16328_v21  ;;  %v12164_v53 = vld [vmem:[%s12552_s7] sm:$0xff] }
 0x36e   : > { %v11702_v7 = vpop.eup %11701  ;;  %v2557_v36 = vsel %vm2556_vm8, %v13554_v49, %v2555_v33  ;;  %v2576_v1 = vmul.f32 %v11700_v45, %v13557_v59 }
 0x36f   : > { %v11704_v22 = vpop.eup %11703  ;;  %v2560_v32 = vsel %vm2558_vm9, %v2559_v20, %v2557_v36  ;;  %v1642_v62 = vadd.f32 1.0, %v11702_v7 }
 0x370   : > { %v11706_v34 = vpop.eup %11705  ;;  %v2608_v38 = vmul.f32 %v2594_v27, %v2560_v32  ;;  %v2578_v25 = vsel %vm2577_vm10, %v13557_v59, %v2576_v1  ;;  %v2595_v37 = vmul.f32 %v11704_v22, %v16329_v40  ;;  %v12170_v40 = vld [vmem:[%s12552_s7 + $0x28] sm:$0xff] }
 0x371   : > { %v2562_v55 = vmul.f32 %v11706_v34, %v13566_v3  ;;  %v2581_v23 = vsel %vm2579_vm11, %v2580_v61, %v2578_v25  ;;  %v11708_v26 = vpop.eup %11707  ;;  %v1658_v54 = vmul.f32 %v1642_v62, %v1530_v56  ;;  %v12169_v62 = vld [vmem:[%s12552_s7 + $0x38] sm:$0xff] }
 0x372   : > { %v2646_v18 = vadd.f32 %v13549_v13, %v2608_v38  ;;  %v2611_v49 = vmul.f32 %v2597_v16, %v2581_v23  ;;  %v11710_v60 = vpop.eup %11709  ;;  %v1643_v35 = vadd.f32 1.0, %v11708_v26  ;;  %v12167_v26 = vld [vmem:[%s12552_s7 + $0x30] sm:$0xff] }
 0x373   : > { %v2564_v15 = vsel %vm2563_vm12, %v13566_v3, %v2562_v55  ;;  %v11712_v28 = vpop.eup %11711  ;;  %v1531_v3 = vmul.f32 0.5, %v16315_v19  ;;  %v13606_v19 = vld [vmem:[%s16331_s10] ss:$0 sm:$0xff]  ;;  %s16334_s10 = sld [smem:[#allocation13_spill]] }
 0x374   : > { %v2567_v14 = vsel %vm2565_vm13, %v2566_v17, %v2564_v15  ;;  %v2648_v59 = vmul.f32 %v2646_v18, %v1657_v6  ;;  %v2650_v10 = vmul.f32 %v11710_v60, %v2646_v18  ;;  %v1644_v58 = vadd.f32 1.0, %v11712_v28  ;;  %v11714_v41 = vpop.eup %11713  ;;  %v12168_v18 = vld [vmem:[%s12552_s7 + $0x20] sm:$0xff] }
 0x375   : > { %v2609_v57 = vmul.f32 %v2595_v37, %v2567_v14  ;;  %v1659_v11 = vmul.f32 %v1643_v35, %v1531_v3 }
 0x376   : > { %v13594_v30 = vadd.f32 %v2650_v10, %v2610_v0  ;;  %v1660_v2 = vmul.f32 %v1644_v58, %v1532_v48  ;;  %v12166_v0 = vld [vmem:[%s12552_s7 + $0x8] sm:$0xff] }
 0x377   : > { %v2647_v13 = vadd.f32 %v13563_v31, %v2609_v57 }
 0x378   : > { %16330 = vst [vmem:[#allocation38_spill] sm:$0xff] %v13594_v30  ;;  %v2654_v31 = vmul.f32 %v13594_v30, %v1659_v11 }
 0x379   : > { %v2649_v39 = vmul.f32 %v2647_v13, %v1658_v54  ;;  %v2651_v50 = vmul.f32 %v11714_v41, %v2647_v13 }
 0x37b   : > { %v2696_v51 = vpack.c.bf16 %v2649_v39, %v2648_v59  ;;  %v13599_v63 = vadd.f32 %v2651_v50, %v2611_v49 }
 0x37d   : > { %16332 = vst [vmem:[#allocation42_spill] sm:$0xff] %v13599_v63  ;;  %10621 = vmatprep.mubr.msk.bf16.mxu0 %vm1227_vm0, %v2696_v51  ;;  %v2655_v52 = vmul.f32 %v13599_v63, %v1660_v2  ;;  %v12171_v51 = vld [vmem:[%s12552_s7 + $0x50] sm:$0xff]  ;;  %v12172_v2 = vld [vmem:[%s12552_s7 + $0x40] sm:$0xff] }
 0x37f   : > { %v2697_v5 = vpack.c.bf16 %v2655_v52, %v2654_v31 }
 0x381   : > { %10622 = vmatmul.mubr.msk.bf16.gmra.mrb[36].mxu0 %vm1227_vm0, %v2697_v5  ;;  %v12173_v5 = vld [vmem:[%s12552_s7 + $0x58] sm:$0xff] }
 0x403   : > { %v10611_v9 = vpop.f32.mrb[24].mxu0 }
 0x404   : > { %v2788_v4 = vadd.f32 %v10611_v9, %v13606_v19  ;;  %v2779_v47 = vpop.f32.mrb[25].mxu0 }
 0x405   : > { %v2780_v29 = vadd.f32 %v13606_v19, %v2779_v47  ;;  %v10612_v44 = vpop.f32.mrb[26].mxu0 }
 0x406   : > { %v2791_v24 = vadd.f32 %v10612_v44, %v13606_v19  ;;  %v2782_v12 = vpop.f32.mrb[27].mxu0  ;;  %v13612_v33 = vadd.f32 %v12163_v43, %v2788_v4  ;;  %v12174_v4 = vld [vmem:[%s12552_s7 + $0x48] sm:$0xff] }
 0x407   : > { %v13615_v45 = vadd.f32 %v12164_v53, %v2780_v29  ;;  %v2783_v20 = vadd.f32 %v13606_v19, %v2782_v12 }
 0x408   : > { %v13619_v27 = vadd.f32 %v12165_v8, %v2791_v24  ;;  %v2860_v42 = vmul.f32 %v13612_v33, %v13612_v33  ;;  %v11420_v8 = vld [vmem:[%s16334_s10] sm:$0xff]  }
 0x409   : > { %v13622_v7 = vadd.f32 %v12166_v0, %v2783_v20  ;;  %v2858_v36 = vmul.f32 %v13615_v45, %v13615_v45  ;;  %v11419_v20 = vld [vmem:[%s16333_s1] sm:$0xff]   ;;  %10645 = vmatprep.subr.bf16.mxu0 %v11420_v8 }
 0x40a   : > { %v2861_v32 = vmul.f32 %v13619_v27, %v13619_v27  ;;  %v2880_v61 = vsel %vm1227_vm0, %v2860_v42, 0.0  ;;  %10625 = vmatprep.subr.bf16.mxu1 %v11419_v20  ;;  %10646 = vmatpush3.bf16.msra.mxu0 %v11420_v8 }
 0x40b   : > { %v2874_v1 = vsel %vm1227_vm0, %v2858_v36, 0.0  ;;  %v2859_v22 = vmul.f32 %v13622_v7, %v13622_v7  ;;  %10626 = vmatpush3.bf16.msra.mxu1 %v11419_v20 }
 0x40c   : > { %2875 = vadd.xlane.f32.xlu0 %v2874_v1  ;;  %v2883_v34 = vsel %vm1227_vm0, %v2861_v32, 0.0 }
 0x40d   : > { %v2877_v46 = vsel %vm1227_vm0, %v2859_v22, 0.0 }
 0x40e   : > { %2878 = vadd.xlane.f32.xlu1 %v2877_v46 }
 0x410   : > { %2881 = vadd.xlane.f32.xlu0 %v2880_v61 }
 0x412   : > { %2884 = vadd.xlane.f32.xlu1 %v2883_v34 }
 0x424   : > { %v10615_v38 = vpop.f32.mrb[28].mxu0 }
 0x425   : > { %v2804_v25 = vadd.f32 %v10615_v38, %v13606_v19  ;;  %v2795_v21 = vpop.f32.mrb[29].mxu0  ;;  %v11421_v38 = vld [vmem:[%s16333_s1 + $0x8] sm:$0xff]   ;;  %s16338_s1 = sld [smem:[#allocation12_spill]] }
 0x426   : > { %v2796_v16 = vadd.f32 %v13606_v19, %v2795_v21  ;;  %v10616_v6 = vpop.f32.mrb[30].mxu0  ;;  %v12175_v21 = vld [vmem:[%s12552_s7 + $0x70] sm:$0xff]  ;;  %10627 = vmatprep.subr.bf16.mxu1 %v11421_v38 }
 0x427   : > { %v2807_v55 = vadd.f32 %v10616_v6, %v13606_v19  ;;  %v2798_v23 = vpop.f32.mrb[31].mxu0  ;;  %v13640_v17 = vadd.f32 %v12167_v26, %v2804_v25  ;;  %v11422_v25 = vld [vmem:[%s16334_s10 + $0x8] sm:$0xff]   ;;  %v12176_v6 = vld [vmem:[%s12552_s7 + $0x60] sm:$0xff]  ;;  %v12177_v26 = vld [vmem:[%s12552_s7 + $0x78] sm:$0xff]  ;;  %10628 = vmatpush3.bf16.msra.mxu1 %v11421_v38 }
 0x428   : > { %v13643_v49 = vadd.f32 %v12168_v18, %v2796_v16  ;;  %v2799_v60 = vadd.f32 %v13606_v19, %v2798_v23  ;;  %10647 = vmatprep.subr.bf16.mxu0 %v11422_v25 }
 0x429   : > { %v13647_v15 = vadd.f32 %v12169_v62, %v2807_v55  ;;  %v2864_v10 = vmul.f32 %v13640_v17, %v13640_v17  ;;  %10648 = vmatpush3.bf16.msra.mxu0 %v11422_v25 }
 0x42a   : > { %v13650_v37 = vadd.f32 %v12170_v40, %v2799_v60  ;;  %v2862_v28 = vmul.f32 %v13643_v49, %v13643_v49  ;;  %v12178_v60 = vld [vmem:[%s12552_s7 + $0x68] sm:$0xff]  ;;  %s16335_s7 = sld [smem:[#allocation10_spill]] }
 0x42b   : > { %v2865_v57 = vmul.f32 %v13647_v15, %v13647_v15  ;;  %v2892_v54 = vsel %vm1227_vm0, %v2864_v10, 0.0 }
 0x42c   : > { %v2886_v14 = vsel %vm1227_vm0, %v2862_v28, 0.0  ;;  %v2863_v59 = vmul.f32 %v13650_v37, %v13650_v37 }
 0x42d   : > { %2887 = vadd.xlane.f32.xlu0 %v2886_v14  ;;  %v2895_v13 = vsel %vm1227_vm0, %v2865_v57, 0.0 }
 0x42e   : > { %v2889_v56 = vsel %vm1227_vm0, %v2863_v59, 0.0 }
 0x42f   : > { %2890 = vadd.xlane.f32.xlu1 %v2889_v56 }
 0x431   : > { %2893 = vadd.xlane.f32.xlu0 %v2892_v54 }
 0x433   : > { %2896 = vadd.xlane.f32.xlu1 %v2895_v13 }
 0x43a   : > { %v10619_v35 = vpop.f32.mrb[32].mxu0 }
 0x43b   : > { %v2820_v58 = vadd.f32 %v10619_v35, %v13606_v19  ;;  %v2811_v41 = vpop.f32.mrb[33].mxu0 }
 0x43c   : > { %v2812_v39 = vadd.f32 %v13606_v19, %v2811_v41  ;;  %v10620_v3 = vpop.f32.mrb[34].mxu0 }
 0x43d   : > { %v2823_v48 = vadd.f32 %v10620_v3, %v13606_v19  ;;  %v2814_v50 = vpop.f32.mrb[35].mxu0  ;;  %v13668_v11 = vadd.f32 %v12171_v51, %v2820_v58 }
 0x43e   : > { %v13671_v31 = vadd.f32 %v12172_v2, %v2812_v39  ;;  %v2815_v52 = vadd.f32 %v13606_v19, %v2814_v50 }
 0x43f   : > { %v13675_v9 = vadd.f32 %v12173_v5, %v2823_v48  ;;  %v2868_v12 = vmul.f32 %v13668_v11, %v13668_v11 }
 0x440   : > { %v13678_v47 = vadd.f32 %v12174_v4, %v2815_v52  ;;  %v2866_v29 = vmul.f32 %v13671_v31, %v13671_v31  ;;  %v2986_v52 = vld [vmem:[%s16335_s7] sm:$0x1]  ;;  %s16337_s7 = sld [smem:[#allocation15_spill]] }
 0x441   : > { %v2869_v53 = vmul.f32 %v13675_v9, %v13675_v9  ;;  %v2904_v0 = vsel %vm1227_vm0, %v2868_v12, 0.0  ;;  %v2987_v4 = vadd.f32 1.0, %v2986_v52 }
 0x442   : > { %v2898_v44 = vsel %vm1227_vm0, %v2866_v29, 0.0  ;;  %v2867_v24 = vmul.f32 %v13678_v47, %v13678_v47 }
 0x443   : > { %2899 = vadd.xlane.f32.xlu0 %v2898_v44  ;;  %v2907_v36 = vsel %vm1227_vm0, %v2869_v53, 0.0  ;;  %v16336_v44 = vld [vmem:[#allocation32_spill] sm:$0xff] }
 0x444   : > { %v2901_v43 = vsel %vm1227_vm0, %v2867_v24, 0.0  ;;  %v13726_v24 = vrot.slane %v2987_v4, %v16336_v44 }
 0x445   : > { %2902 = vadd.xlane.f32.xlu1 %v2901_v43 }
 0x447   : > { %2905 = vadd.xlane.f32.xlu0 %v2904_v0 }
 0x449   : > { %2908 = vadd.xlane.f32.xlu1 %v2907_v36 }
 0x454   : > { %v10623_v1 = vpop.f32.mrb[36].mxu0 }
 0x455   : > { %v2836_v22 = vadd.f32 %v10623_v1, %v13606_v19  ;;  %v2827_v42 = vpop.f32.mrb[37].mxu0 }
 0x456   : > { %v2828_v46 = vadd.f32 %v13606_v19, %v2827_v42  ;;  %v10624_v32 = vpop.f32.mrb[38].mxu0 }
 0x457   : > { %v2839_v61 = vadd.f32 %v10624_v32, %v13606_v19  ;;  %v2830_v34 = vpop.f32.mrb[39].mxu0  ;;  %v13700_v16 = vadd.f32 %v12175_v21, %v2836_v22 }
 0x458   : > { %v13703_v55 = vadd.f32 %v12176_v6, %v2828_v46  ;;  %v2831_v23 = vadd.f32 %v13606_v19, %v2830_v34 }
 0x459   : > { %v13707_v18 = vadd.f32 %v12177_v26, %v2839_v61  ;;  %v2872_v19 = vmul.f32 %v13700_v16, %v13700_v16 }
 0x45a   : > { %v13710_v62 = vadd.f32 %v12178_v60, %v2831_v23  ;;  %v2870_v40 = vmul.f32 %v13703_v55, %v13703_v55 }
 0x45b   : > { %v2873_v10 = vmul.f32 %v13707_v18, %v13707_v18  ;;  %v2916_v56 = vsel %vm1227_vm0, %v2872_v19, 0.0 }
 0x45c   : > { %v2910_v28 = vsel %vm1227_vm0, %v2870_v40, 0.0  ;;  %v2871_v14 = vmul.f32 %v13710_v62, %v13710_v62 }
 0x45d   : > { %2911 = vadd.xlane.f32.xlu0 %v2910_v28  ;;  %v2919_v57 = vsel %vm1227_vm0, %v2873_v10, 0.0 }
 0x45e   : > { %v2913_v59 = vsel %vm1227_vm0, %v2871_v14, 0.0 }
 0x45f   : > { %2914 = vadd.xlane.f32.xlu1 %v2913_v59 }
 0x461   : > { %2917 = vadd.xlane.f32.xlu0 %v2916_v56 }
 0x463   : > { %2920 = vadd.xlane.f32.xlu1 %v2919_v57 }
 0x499   : > { %v2876_v54 = vpop.xlane.xlu0 %2875 }
 0x49a   : > { %v2922_v13 = vmul.f32 0.03125, %v2876_v54 }
 0x49b   : > { %v2879_v35 = vpop.xlane.xlu1 %2878 }
 0x49c   : > { %v2938_v58 = vadd.f32 1e-06, %v2922_v13  ;;  %v2923_v41 = vmul.f32 0.03125, %v2879_v35 }
 0x49d   : > { %v2882_v39 = vpop.xlane.xlu0 %2881 }
 0x49e   : > { %11715 = vrsqrt.f32 %v2938_v58  ;;  %v2939_v3 = vadd.f32 1e-06, %v2923_v41  ;;  %v2924_v48 = vmul.f32 0.03125, %v2882_v39 }
 0x49f   : > { %v2885_v50 = vpop.xlane.xlu1 %2884 }
 0x4a0   : > { %11717 = vrsqrt.f32 %v2939_v3  ;;  %v2940_v51 = vadd.f32 1e-06, %v2924_v48  ;;  %v2925_v2 = vmul.f32 0.03125, %v2885_v50 }
 0x4a2   : > { %11719 = vrsqrt.f32 %v2940_v51  ;;  %v2941_v5 = vadd.f32 1e-06, %v2925_v2 }
 0x4a4   : > { %11721 = vrsqrt.f32 %v2941_v5 }
 0x4a8   : > { %v11716_v29 = vpop.eup %11715 }
 0x4a9   : > { %v2970_v12 = vmul.f32 %v11716_v29, %v13615_v45 }
 0x4aa   : > { %v11718_v43 = vpop.eup %11717 }
 0x4ab   : > { %v2971_v53 = vmul.f32 %v11718_v43, %v13622_v7  ;;  %v2994_v0 = vmul.f32 %v13726_v24, %v2970_v12 }
 0x4ac   : > { %v11720_v20 = vpop.eup %11719 }
 0x4ad   : > { %v2972_v8 = vmul.f32 %v11720_v20, %v13612_v33  ;;  %v2995_v36 = vmul.f32 %v13726_v24, %v2971_v53 }
 0x4ae   : > { %v11722_v1 = vpop.eup %11721 }
 0x4af   : > { %v2973_v22 = vmul.f32 %v11722_v1, %v13619_v27  ;;  %v3010_v42 = vpack.c.bf16 %v2995_v36, %v2994_v0  ;;  %v2996_v46 = vmul.f32 %v13726_v24, %v2972_v8 }
 0x4b1   : > { %v2997_v32 = vmul.f32 %v13726_v24, %v2973_v22  ;;  %10629 = vmatprep.mubr.msk.bf16.mxu1 %vm1227_vm0, %v3010_v42  ;;  %10649 = vmatprep.mubr.msk.bf16.mxu0 %vm1227_vm0, %v3010_v42 }
 0x4b3   : > { %v3011_v61 = vpack.c.bf16 %v2997_v32, %v2996_v46 }
 0x4b5   : > { %10630 = vmatmul.mubr.msk.bf16.vlgmr.msra.gmra.mrb[40].mxu1 %vm1227_vm0, %v3011_v61  ;;  %10650 = vmatmul.mubr.msk.bf16.vlgmr.msra.gmra.mrb[40].mxu0 %vm1227_vm0, %v3011_v61 }
 0x4ba   : > { %v2888_v34 = vpop.xlane.xlu0 %2887 }
 0x4bb   : > { %v2926_v38 = vmul.f32 0.03125, %v2888_v34 }
 0x4bc   : > { %v2891_v25 = vpop.xlane.xlu1 %2890 }
 0x4bd   : > { %v2942_v21 = vadd.f32 1e-06, %v2926_v38  ;;  %v2927_v6 = vmul.f32 0.03125, %v2891_v25 }
 0x4be   : > { %v2894_v23 = vpop.xlane.xlu0 %2893 }
 0x4bf   : > { %11723 = vrsqrt.f32 %v2942_v21  ;;  %v2943_v26 = vadd.f32 1e-06, %v2927_v6  ;;  %v2928_v60 = vmul.f32 0.03125, %v2894_v23 }
 0x4c0   : > { %v2897_v40 = vpop.xlane.xlu1 %2896 }
 0x4c1   : > { %11725 = vrsqrt.f32 %v2943_v26  ;;  %v2944_v28 = vadd.f32 1e-06, %v2928_v60  ;;  %v2929_v14 = vmul.f32 0.03125, %v2897_v40 }
 0x4c3   : > { %11727 = vrsqrt.f32 %v2944_v28  ;;  %v2945_v19 = vadd.f32 1e-06, %v2929_v14 }
 0x4c5   : > { %11729 = vrsqrt.f32 %v2945_v19 }
 0x4c9   : > { %v11724_v59 = vpop.eup %11723 }
 0x4ca   : > { %v2974_v10 = vmul.f32 %v11724_v59, %v13643_v49 }
 0x4cb   : > { %v11726_v56 = vpop.eup %11725 }
 0x4cc   : > { %v2975_v57 = vmul.f32 %v11726_v56, %v13650_v37  ;;  %v2998_v13 = vmul.f32 %v13726_v24, %v2974_v10 }
 0x4cd   : > { %v11728_v54 = vpop.eup %11727 }
 0x4ce   : > { %v2999_v35 = vmul.f32 %v13726_v24, %v2975_v57  ;;  %v2976_v58 = vmul.f32 %v11728_v54, %v13640_v17 }
 0x4cf   : > { %v11730_v41 = vpop.eup %11729 }
 0x4d0   : > { %v2900_v39 = vpop.xlane.xlu0 %2899  ;;  %v3012_v3 = vpack.c.bf16 %v2999_v35, %v2998_v13  ;;  %v2977_v48 = vmul.f32 %v11730_v41, %v13647_v15  ;;  %v3000_v2 = vmul.f32 %v13726_v24, %v2976_v58 }
 0x4d1   : > { %v2930_v50 = vmul.f32 0.03125, %v2900_v39 }
 0x4d2   : > { %v2903_v51 = vpop.xlane.xlu1 %2902  ;;  %10633 = vmatprep.mubr.msk.bf16.mxu1 %vm1227_vm0, %v3012_v3  ;;  %10653 = vmatprep.mubr.msk.bf16.mxu0 %vm1227_vm0, %v3012_v3  ;;  %v3001_v52 = vmul.f32 %v13726_v24, %v2977_v48 }
 0x4d3   : > { %v2946_v5 = vadd.f32 1e-06, %v2930_v50  ;;  %v2931_v4 = vmul.f32 0.03125, %v2903_v51 }
 0x4d4   : > { %v2906_v29 = vpop.xlane.xlu0 %2905  ;;  %v3013_v44 = vpack.c.bf16 %v3001_v52, %v3000_v2 }
 0x4d5   : > { %11731 = vrsqrt.f32 %v2946_v5  ;;  %v2947_v12 = vadd.f32 1e-06, %v2931_v4  ;;  %v2932_v43 = vmul.f32 0.03125, %v2906_v29 }
 0x4d6   : > { %v2909_v53 = vpop.xlane.xlu1 %2908  ;;  %10634 = vmatmul.mubr.msk.bf16.gmra.mrb[44].mxu1 %vm1227_vm0, %v3013_v44  ;;  %10654 = vmatmul.mubr.msk.bf16.gmra.mrb[44].mxu0 %vm1227_vm0, %v3013_v44 }
 0x4d7   : > { %11733 = vrsqrt.f32 %v2947_v12  ;;  %v2948_v20 = vadd.f32 1e-06, %v2932_v43  ;;  %v2933_v8 = vmul.f32 0.03125, %v2909_v53  ;;  %v11423_v43 = vld [vmem:[%s16337_s7] sm:$0xff]   ;;  %v11424_v53 = vld [vmem:[%s16337_s7 + $0x8] sm:$0xff]  }
 0x4d8   : > { %10665 = vmatprep.subr.bf16.mxu1 %v11423_v43 }
 0x4d9   : > { %11735 = vrsqrt.f32 %v2948_v20  ;;  %v2949_v0 = vadd.f32 1e-06, %v2933_v8  ;;  %10666 = vmatpush3.bf16.msra.mxu1 %v11423_v43  ;;  %v11425_v20 = vld [vmem:[%s16337_s7 + $0x10] sm:$0xff]   ;;  %v11426_v8 = vld [vmem:[%s16337_s7 + $0x18] sm:$0xff]  }
 0x4da   : > { %10667 = vmatprep.subr.bf16.mxu1 %v11424_v53 }
 0x4db   : > { %11737 = vrsqrt.f32 %v2949_v0  ;;  %v11428_v0 = vld [vmem:[%s16337_s7 + $0x28] sm:$0xff]  }
 0x4dd   : > { %10668 = vmatpush3.bf16.msra.mxu1 %v11424_v53 }
 0x4de   : > { %10669 = vmatprep.subr.bf16.mxu1 %v11425_v20 }
 0x4df   : > { %v11732_v36 = vpop.eup %11731 }
 0x4e0   : > { %v2978_v1 = vmul.f32 %v11732_v36, %v13671_v31  ;;  %v11429_v36 = vld [vmem:[%s16337_s7 + $0x30] sm:$0xff]  }
 0x4e1   : > { %v11734_v22 = vpop.eup %11733  ;;  %10670 = vmatpush3.bf16.msra.mxu1 %v11425_v20 }
 0x4e2   : > { %v2979_v42 = vmul.f32 %v11734_v22, %v13678_v47  ;;  %v3002_v32 = vmul.f32 %v13726_v24, %v2978_v1  ;;  %10671 = vmatprep.subr.bf16.mxu1 %v11426_v8  ;;  %v11430_v1 = vld [vmem:[%s16337_s7 + $0x38] sm:$0xff]   ;;  %v13785_v22 = vld [vmem:[%s16338_s1] ss:$0 sm:$0xff]  ;;  %s16339_s1 = sld [smem:[#allocation14_spill]] }
 0x4e3   : > { %v11736_v46 = vpop.eup %11735 }
 0x4e4   : > { %v3003_v61 = vmul.f32 %v13726_v24, %v2979_v42  ;;  %v2980_v34 = vmul.f32 %v11736_v46, %v13668_v11 }
 0x4e5   : > { %v11738_v38 = vpop.eup %11737  ;;  %10672 = vmatpush3.bf16.msra.mxu1 %v11426_v8 }
 0x4e6   : > { %v3014_v25 = vpack.c.bf16 %v3003_v61, %v3002_v32  ;;  %v2981_v21 = vmul.f32 %v11738_v38, %v13675_v9  ;;  %v3004_v6 = vmul.f32 %v13726_v24, %v2980_v34 }
 0x4e8   : > { %10637 = vmatprep.mubr.msk.bf16.mxu1 %vm1227_vm0, %v3014_v25  ;;  %10657 = vmatprep.mubr.msk.bf16.mxu0 %vm1227_vm0, %v3014_v25  ;;  %v3005_v23 = vmul.f32 %v13726_v24, %v2981_v21 }
 0x4ea   : > { %v2912_v26 = vpop.xlane.xlu0 %2911  ;;  %v3015_v60 = vpack.c.bf16 %v3005_v23, %v3004_v6 }
 0x4eb   : > { %v2934_v40 = vmul.f32 0.03125, %v2912_v26 }
 0x4ec   : > { %v2915_v28 = vpop.xlane.xlu1 %2914  ;;  %10638 = vmatmul.mubr.msk.bf16.gmra.mrb[48].mxu1 %vm1227_vm0, %v3015_v60  ;;  %10658 = vmatmul.mubr.msk.bf16.gmra.mrb[48].mxu0 %vm1227_vm0, %v3015_v60 }
 0x4ed   : > { %v2950_v14 = vadd.f32 1e-06, %v2934_v40  ;;  %v2935_v19 = vmul.f32 0.03125, %v2915_v28 }
 0x4ee   : > { %v2918_v59 = vpop.xlane.xlu0 %2917 }
 0x4ef   : > { %11739 = vrsqrt.f32 %v2950_v14  ;;  %v2951_v10 = vadd.f32 1e-06, %v2935_v19  ;;  %v2936_v56 = vmul.f32 0.03125, %v2918_v59 }
 0x4f0   : > { %v2921_v57 = vpop.xlane.xlu1 %2920 }
 0x4f1   : > { %11741 = vrsqrt.f32 %v2951_v10  ;;  %v2952_v54 = vadd.f32 1e-06, %v2936_v56  ;;  %v2937_v13 = vmul.f32 0.03125, %v2921_v57 }
 0x4f3   : > { %11743 = vrsqrt.f32 %v2952_v54  ;;  %v2953_v35 = vadd.f32 1e-06, %v2937_v13 }
 0x4f5   : > { %11745 = vrsqrt.f32 %v2953_v35 }
 0x4f9   : > { %v11740_v58 = vpop.eup %11739 }
 0x4fa   : > { %v2982_v41 = vmul.f32 %v11740_v58, %v13703_v55 }
 0x4fb   : > { %v11742_v39 = vpop.eup %11741 }
 0x4fc   : > { %v2983_v3 = vmul.f32 %v11742_v39, %v13710_v62  ;;  %v3006_v50 = vmul.f32 %v13726_v24, %v2982_v41 }
 0x4fd   : > { %v11744_v48 = vpop.eup %11743 }
 0x4fe   : > { %v3007_v51 = vmul.f32 %v13726_v24, %v2983_v3  ;;  %v2984_v2 = vmul.f32 %v11744_v48, %v13700_v16 }
 0x4ff   : > { %v11746_v52 = vpop.eup %11745 }
 0x500   : > { %v3016_v5 = vpack.c.bf16 %v3007_v51, %v3006_v50  ;;  %v2985_v4 = vmul.f32 %v11746_v52, %v13707_v18  ;;  %v3008_v29 = vmul.f32 %v13726_v24, %v2984_v2 }
 0x502   : > { %10641 = vmatprep.mubr.msk.bf16.mxu1 %vm1227_vm0, %v3016_v5  ;;  %10661 = vmatprep.mubr.msk.bf16.mxu0 %vm1227_vm0, %v3016_v5  ;;  %v3009_v44 = vmul.f32 %v13726_v24, %v2985_v4  ;;  %v11427_v24 = vld [vmem:[%s16337_s7 + $0x20] sm:$0xff]  }
 0x503   : > { %10673 = vmatprep.subr.bf16.mxu1 %v11427_v24  ;;  %v13792_v4 = vld [vmem:[%s16339_s1] ss:$0 sm:$0xff]  ;;  %s16340_s1 = sld [smem:[#allocation16_spill]] }
 0x504   : > { %v3017_v12 = vpack.c.bf16 %v3009_v44, %v3008_v29  ;;  %10674 = vmatpush3.bf16.msra.mxu1 %v11427_v24 }
 0x505   : > { %10675 = vmatprep.subr.bf16.mxu1 %v11428_v0 }
 0x506   : > { %10642 = vmatmul.mubr.msk.bf16.gmra.mrb[52].mxu1 %vm1227_vm0, %v3017_v12  ;;  %10662 = vmatmul.mubr.msk.bf16.gmra.mrb[52].mxu0 %vm1227_vm0, %v3017_v12 }
 0x508   : > { %10676 = vmatpush3.bf16.msra.mxu1 %v11428_v0 }
 0x509   : > { %10677 = vmatprep.subr.bf16.mxu1 %v11429_v36 }
 0x50c   : > { %10678 = vmatpush3.bf16.msra.mxu1 %v11429_v36 }
 0x50d   : > { %10679 = vmatprep.subr.bf16.mxu1 %v11430_v1 }
 0x510   : > { %10680 = vmatpush3.bf16.msra.mxu1 %v11430_v1 }
 0x588   : > { %v10631_v42 = vpop.f32.mrb[40].mxu1  ;;  %v10651_v46 = vpop.f32.mrb[40].mxu0 }
 0x589   : > { %v3108_v32 = vadd.f32 %v10631_v42, %v13785_v22  ;;  %v3099_v61 = vpop.f32.mrb[41].mxu1  ;;  %v3363_v34 = vpop.f32.mrb[41].mxu0  ;;  %v3372_v0 = vadd.f32 %v10651_v46, %v13792_v4 }
 0x58a   : > { %v3100_v38 = vadd.f32 %v13785_v22, %v3099_v61  ;;  %v10632_v25 = vpop.f32.mrb[42].mxu1  ;;  %v10652_v21 = vpop.f32.mrb[42].mxu0  ;;  %v3364_v61 = vadd.f32 %v13792_v4, %v3363_v34 }
 0x58b   : > { %v3180_v6 = vmul.f32 0.044715, %v3108_v32  ;;  %v3111_v23 = vadd.f32 %v10632_v25, %v13785_v22  ;;  %v3102_v26 = vpop.f32.mrb[43].mxu1  ;;  %v3366_v60 = vpop.f32.mrb[43].mxu0  ;;  %v3164_v44 = vmul.f32 0.5, %v3108_v32 }
 0x58c   : > { %v3178_v40 = vmul.f32 0.044715, %v3100_v38  ;;  %v3103_v28 = vadd.f32 %v13785_v22, %v3102_v26  ;;  %v3162_v53 = vmul.f32 0.5, %v3100_v38 }
 0x58d   : > { %v3196_v14 = vmul.f32 %v3180_v6, %v3108_v32  ;;  %v3181_v19 = vmul.f32 0.044715, %v3111_v23  ;;  %v3165_v36 = vmul.f32 0.5, %v3111_v23 }
 0x58e   : > { %v3194_v59 = vmul.f32 %v3178_v40, %v3100_v38  ;;  %v3179_v10 = vmul.f32 0.044715, %v3103_v28  ;;  %v3163_v25 = vmul.f32 0.5, %v3103_v28 }
 0x58f   : > { %v3212_v56 = vmul.f32 %v3196_v14, %v3108_v32  ;;  %v3197_v57 = vmul.f32 %v3181_v19, %v3111_v23  ;;  %v3375_v14 = vadd.f32 %v10652_v21, %v13792_v4 }
 0x590   : > { %v3210_v54 = vmul.f32 %v3194_v59, %v3100_v38  ;;  %v3195_v13 = vmul.f32 %v3179_v10, %v3103_v28 }
 0x591   : > { %v3228_v35 = vadd.f32 %v3212_v56, %v3108_v32  ;;  %v3213_v58 = vmul.f32 %v3197_v57, %v3111_v23 }
 0x592   : > { %v3226_v41 = vadd.f32 %v3210_v54, %v3100_v38  ;;  %v3211_v39 = vmul.f32 %v3195_v13, %v3103_v28  ;;  %v3367_v38 = vadd.f32 %v13792_v4, %v3366_v60 }
 0x593   : > { %v3244_v3 = vmul.f32 0.7978846, %v3228_v35  ;;  %v3229_v48 = vadd.f32 %v3213_v58, %v3111_v23 }
 0x594   : > { %v3242_v50 = vmul.f32 0.7978846, %v3226_v41  ;;  %v3227_v51 = vadd.f32 %v3211_v39, %v3103_v28 }
 0x595   : > { %11747 = vtanh.f32 %v3244_v3  ;;  %v3245_v2 = vmul.f32 0.7978846, %v3229_v48 }
 0x596   : > { %11749 = vtanh.f32 %v3242_v50  ;;  %v3243_v52 = vmul.f32 0.7978846, %v3227_v51 }
 0x597   : > { %11751 = vtanh.f32 %v3245_v2 }
 0x598   : > { %11753 = vtanh.f32 %v3243_v52 }
 0x59f   : > { %v11748_v5 = vpop.eup %11747 }
 0x5a0   : > { %v11750_v29 = vpop.eup %11749  ;;  %v3276_v12 = vadd.f32 1.0, %v11748_v5 }
 0x5a1   : > { %v11752_v43 = vpop.eup %11751  ;;  %v3274_v20 = vadd.f32 1.0, %v11750_v29 }
 0x5a2   : > { %v11754_v8 = vpop.eup %11753  ;;  %v3292_v24 = vmul.f32 %v3276_v12, %v3164_v44  ;;  %v3277_v1 = vadd.f32 1.0, %v11752_v43 }
 0x5a3   : > { %v3290_v42 = vmul.f32 %v3274_v20, %v3162_v53  ;;  %v3275_v6 = vadd.f32 1.0, %v11754_v8 }
 0x5a4   : > { %v3428_v26 = vmul.f32 %v3372_v0, %v3292_v24  ;;  %v3293_v40 = vmul.f32 %v3277_v1, %v3165_v36 }
 0x5a5   : > { %v3426_v32 = vmul.f32 %v3364_v61, %v3290_v42  ;;  %v3291_v19 = vmul.f32 %v3275_v6, %v3163_v25 }
 0x5a6   : > { %v3429_v59 = vmul.f32 %v3375_v14, %v3293_v40 }
 0x5a7   : > { %v3427_v10 = vmul.f32 %v3367_v38, %v3291_v19 }
 0x5a8   : > { %v3443_v56 = vpack.c.bf16 %v3429_v59, %v3428_v26 }
 0x5a9   : > { %v10635_v57 = vpop.f32.mrb[44].mxu1  ;;  %v10655_v46 = vpop.f32.mrb[44].mxu0  ;;  %v3442_v34 = vpack.c.bf16 %v3427_v10, %v3426_v32 }
 0x5aa   : > { %v3124_v23 = vadd.f32 %v10635_v57, %v13785_v22  ;;  %v3115_v54 = vpop.f32.mrb[45].mxu1  ;;  %v3379_v13 = vpop.f32.mrb[45].mxu0  ;;  %v3388_v14 = vadd.f32 %v10655_v46, %v13792_v4 }
 0x5ab   : > { %v3116_v28 = vadd.f32 %v13785_v22, %v3115_v54  ;;  %v10636_v35 = vpop.f32.mrb[46].mxu1  ;;  %v10656_v58 = vpop.f32.mrb[46].mxu0  ;;  %10681 = vmatprep.mubr.bf16.mxu1 %v3442_v34  ;;  %v3380_v32 = vadd.f32 %v13792_v4, %v3379_v13 }
 0x5ac   : > { %v3184_v41 = vmul.f32 0.044715, %v3124_v23  ;;  %v3127_v21 = vadd.f32 %v10636_v35, %v13785_v22  ;;  %v3118_v39 = vpop.f32.mrb[47].mxu1  ;;  %v3382_v3 = vpop.f32.mrb[47].mxu0  ;;  %10682 = vmatmul.mubr.bf16.vlgmr.msra.gmra.mrb[56].mxu1 %v3443_v56  ;;  %v3168_v40 = vmul.f32 0.5, %v3124_v23  ;;  %v3391_v54 = vadd.f32 %v10656_v58, %v13792_v4 }
 0x5ad   : > { %v3182_v60 = vmul.f32 0.044715, %v3116_v28  ;;  %v3119_v48 = vadd.f32 %v13785_v22, %v3118_v39  ;;  %v3166_v57 = vmul.f32 0.5, %v3116_v28 }
 0x5ae   : > { %v3200_v50 = vmul.f32 %v3184_v41, %v3124_v23  ;;  %v3185_v51 = vmul.f32 0.044715, %v3127_v21  ;;  %v3169_v46 = vmul.f32 0.5, %v3127_v21 }
 0x5af   : > { %v3198_v2 = vmul.f32 %v3182_v60, %v3116_v28  ;;  %v3183_v52 = vmul.f32 0.044715, %v3119_v48 }
 0x5b0   : > { %v3216_v5 = vmul.f32 %v3200_v50, %v3124_v23  ;;  %v3201_v29 = vmul.f32 %v3185_v51, %v3127_v21 }
 0x5b1   : > { %v3214_v44 = vmul.f32 %v3198_v2, %v3116_v28  ;;  %v3199_v12 = vmul.f32 %v3183_v52, %v3119_v48 }
 0x5b2   : > { %v3232_v43 = vadd.f32 %v3216_v5, %v3124_v23  ;;  %v3217_v53 = vmul.f32 %v3201_v29, %v3127_v21 }
 0x5b3   : > { %v3230_v20 = vadd.f32 %v3214_v44, %v3116_v28  ;;  %v3215_v8 = vmul.f32 %v3199_v12, %v3119_v48  ;;  %v3167_v28 = vmul.f32 0.5, %v3119_v48 }
 0x5b4   : > { %v3248_v24 = vmul.f32 0.7978846, %v3232_v43  ;;  %v3233_v0 = vadd.f32 %v3217_v53, %v3127_v21 }
 0x5b5   : > { %v3246_v36 = vmul.f32 0.7978846, %v3230_v20  ;;  %v3231_v1 = vadd.f32 %v3215_v8, %v3119_v48  ;;  %v3383_v8 = vadd.f32 %v13792_v4, %v3382_v3 }
 0x5b6   : > { %11755 = vtanh.f32 %v3248_v24  ;;  %v3249_v42 = vmul.f32 0.7978846, %v3233_v0 }
 0x5b7   : > { %11757 = vtanh.f32 %v3246_v36  ;;  %v3247_v61 = vmul.f32 0.7978846, %v3231_v1 }
 0x5b8   : > { %11759 = vtanh.f32 %v3249_v42 }
 0x5b9   : > { %11761 = vtanh.f32 %v3247_v61 }
 0x5bf   : > { %v10639_v25 = vpop.f32.mrb[48].mxu1  ;;  %v13802_v6 = vpop.f32.mrb[48].mxu0 }
 0x5c0   : > { %v11756_v26 = vpop.eup %11755  ;;  %v3140_v19 = vadd.f32 %v10639_v25, %v13785_v22  ;;  %v3131_v38 = vpop.f32.mrb[49].mxu1 }
 0x5c1   : > { %v13807_v59 = vpop.f32.mrb[49].mxu0  ;;  %v11758_v10 = vpop.eup %11757  ;;  %v3280_v56 = vadd.f32 1.0, %v11756_v26  ;;  %v3132_v34 = vadd.f32 %v13785_v22, %v3131_v38 }
 0x5c2   : > { %v10640_v35 = vpop.f32.mrb[50].mxu1  ;;  %v13811_v41 = vpop.f32.mrb[50].mxu0  ;;  %v3278_v39 = vadd.f32 1.0, %v11758_v10  ;;  %v3188_v60 = vmul.f32 0.044715, %v3140_v19 }
 0x5c3   : > { %v11760_v23 = vpop.eup %11759  ;;  %v3143_v13 = vadd.f32 %v10640_v35, %v13785_v22  ;;  %v3134_v50 = vpop.f32.mrb[51].mxu1  ;;  %v3296_v52 = vmul.f32 %v3280_v56, %v3168_v40  ;;  %v3186_v29 = vmul.f32 0.044715, %v3132_v34 }
 0x5c4   : > { %v13814_v51 = vpop.f32.mrb[51].mxu0  ;;  %v11762_v2 = vpop.eup %11761  ;;  %v3281_v5 = vadd.f32 1.0, %v11760_v23  ;;  %v3294_v58 = vmul.f32 %v3278_v39, %v3166_v57  ;;  %v3204_v12 = vmul.f32 %v3188_v60, %v3140_v19  ;;  %v3135_v25 = vadd.f32 %v13785_v22, %v3134_v50 }
 0x5c5   : > { %v3279_v44 = vadd.f32 1.0, %v11762_v2  ;;  %v3189_v43 = vmul.f32 0.044715, %v3143_v13  ;;  %v3432_v53 = vmul.f32 %v3388_v14, %v3296_v52  ;;  %v3202_v21 = vmul.f32 %v3186_v29, %v3132_v34 }
 0x5c6   : > { %v3297_v20 = vmul.f32 %v3281_v5, %v3169_v46  ;;  %v3430_v24 = vmul.f32 %v3380_v32, %v3294_v58  ;;  %v3220_v36 = vmul.f32 %v3204_v12, %v3140_v19  ;;  %v3187_v10 = vmul.f32 0.044715, %v3135_v25 }
 0x5c7   : > { %v3295_v0 = vmul.f32 %v3279_v44, %v3167_v28  ;;  %v3205_v1 = vmul.f32 %v3189_v43, %v3143_v13  ;;  %v3218_v61 = vmul.f32 %v3202_v21, %v3132_v34  ;;  %v3172_v2 = vmul.f32 0.5, %v3140_v19 }
 0x5c8   : > { %v3433_v42 = vmul.f32 %v3391_v54, %v3297_v20  ;;  %v3236_v48 = vadd.f32 %v3220_v36, %v3140_v19  ;;  %v3203_v3 = vmul.f32 %v3187_v10, %v3135_v25  ;;  %v3170_v28 = vmul.f32 0.5, %v3132_v34 }
 0x5c9   : > { %v3431_v26 = vmul.f32 %v3383_v8, %v3295_v0  ;;  %v3221_v40 = vmul.f32 %v3205_v1, %v3143_v13  ;;  %v3234_v38 = vadd.f32 %v3218_v61, %v3132_v34  ;;  %v3404_v44 = vadd.f32 %v13802_v6, %v13792_v4 }
 0x5ca   : > { %v3445_v56 = vpack.c.bf16 %v3433_v42, %v3432_v53  ;;  %v3252_v57 = vmul.f32 0.7978846, %v3236_v48  ;;  %v3219_v39 = vmul.f32 %v3203_v3, %v3135_v25  ;;  %v3173_v12 = vmul.f32 0.5, %v3143_v13 }
 0x5cb   : > { %v3237_v14 = vadd.f32 %v3221_v40, %v3143_v13  ;;  %v3444_v35 = vpack.c.bf16 %v3431_v26, %v3430_v24  ;;  %v3250_v23 = vmul.f32 0.7978846, %v3234_v38  ;;  %v3396_v21 = vadd.f32 %v13792_v4, %v13807_v59 }
 0x5cc   : > { %11763 = vtanh.f32 %v3252_v57  ;;  %v3235_v54 = vadd.f32 %v3219_v39, %v3135_v25  ;;  %v3407_v34 = vadd.f32 %v13811_v41, %v13792_v4  ;;  %v3171_v57 = vmul.f32 0.5, %v3135_v25 }
 0x5cd   : > { %v3253_v32 = vmul.f32 0.7978846, %v3237_v14  ;;  %10685 = vmatprep.mubr.bf16.mxu1 %v3444_v35  ;;  %11765 = vtanh.f32 %v3250_v23 }
 0x5ce   : > { %10686 = vmatmul.mubr.bf16.gmra.mrb[60].mxu1 %v3445_v56  ;;  %v3251_v46 = vmul.f32 0.7978846, %v3235_v54  ;;  %v3399_v54 = vadd.f32 %v13792_v4, %v13814_v51 }
 0x5cf   : > { %11767 = vtanh.f32 %v3253_v32 }
 0x5d0   : > { %11769 = vtanh.f32 %v3251_v46 }
 0x5d6   : > { %v11764_v60 = vpop.eup %11763 }
 0x5d7   : > { %v11766_v50 = vpop.eup %11765  ;;  %v3284_v52 = vadd.f32 1.0, %v11764_v60 }
 0x5d8   : > { %v3282_v29 = vadd.f32 1.0, %v11766_v50 }
 0x5d9   : > { %v11768_v5 = vpop.eup %11767  ;;  %v3300_v58 = vmul.f32 %v3284_v52, %v3172_v2  ;;  %v10643_v53 = vpop.f32.mrb[52].mxu1 }
 0x5da   : > { %v3285_v43 = vadd.f32 1.0, %v11768_v5  ;;  %v10663_v20 = vpop.f32.mrb[52].mxu0  ;;  %v3298_v8 = vmul.f32 %v3282_v29, %v3170_v28  ;;  %v3156_v24 = vadd.f32 %v10643_v53, %v13785_v22  ;;  %v3147_v0 = vpop.f32.mrb[53].mxu1 }
 0x5db   : > { %v3411_v19 = vpop.f32.mrb[53].mxu0  ;;  %v3436_v36 = vmul.f32 %v3404_v44, %v3300_v58  ;;  %v3148_v42 = vadd.f32 %v13785_v22, %v3147_v0  ;;  %v10644_v6 = vpop.f32.mrb[54].mxu1 }
 0x5dc   : > { %v3301_v1 = vmul.f32 %v3285_v43, %v3173_v12  ;;  %v10664_v13 = vpop.f32.mrb[54].mxu0  ;;  %v3434_v61 = vmul.f32 %v3396_v21, %v3298_v8  ;;  %v3192_v26 = vmul.f32 0.044715, %v3156_v24  ;;  %v3159_v48 = vadd.f32 %v10644_v6, %v13785_v22  ;;  %v3150_v40 = vpop.f32.mrb[55].mxu1 }
 0x5dd   : > { %v3414_v38 = vpop.f32.mrb[55].mxu0  ;;  %v11770_v59 = vpop.eup %11769  ;;  %v3190_v56 = vmul.f32 0.044715, %v3148_v42  ;;  %v3151_v41 = vadd.f32 %v13785_v22, %v3150_v40  ;;  %v3174_v6 = vmul.f32 0.5, %v3148_v42 }
 0x5de   : > { %v3437_v10 = vmul.f32 %v3407_v34, %v3301_v1  ;;  %v3283_v14 = vadd.f32 1.0, %v11770_v59  ;;  %v3208_v35 = vmul.f32 %v3192_v26, %v3156_v24  ;;  %v3193_v23 = vmul.f32 0.044715, %v3159_v48 }
 0x5df   : > { %v3206_v3 = vmul.f32 %v3190_v56, %v3148_v42  ;;  %v3191_v2 = vmul.f32 0.044715, %v3151_v41  ;;  %v3177_v59 = vmul.f32 0.5, %v3159_v48 }
 0x5e0   : > { %v3447_v32 = vpack.c.bf16 %v3437_v10, %v3436_v36  ;;  %v3299_v39 = vmul.f32 %v3283_v14, %v3171_v57  ;;  %v3224_v46 = vmul.f32 %v3208_v35, %v3156_v24  ;;  %v3209_v60 = vmul.f32 %v3193_v23, %v3159_v48 }
 0x5e1   : > { %v3222_v50 = vmul.f32 %v3206_v3, %v3148_v42  ;;  %v3207_v25 = vmul.f32 %v3191_v2, %v3151_v41  ;;  %v3176_v36 = vmul.f32 0.5, %v3156_v24  ;;  %v3412_v57 = vadd.f32 %v13792_v4, %v3411_v19 }
 0x5e2   : > { %v3435_v52 = vmul.f32 %v3399_v54, %v3299_v39  ;;  %v3240_v5 = vadd.f32 %v3224_v46, %v3156_v24  ;;  %v3225_v28 = vmul.f32 %v3209_v60, %v3159_v48  ;;  %v3423_v3 = vadd.f32 %v10664_v13, %v13792_v4 }
 0x5e3   : > { %v3238_v29 = vadd.f32 %v3222_v50, %v3148_v42  ;;  %v3223_v53 = vmul.f32 %v3207_v25, %v3151_v41  ;;  %v3175_v24 = vmul.f32 0.5, %v3151_v41  ;;  %v3415_v46 = vadd.f32 %v13792_v4, %v3414_v38  ;;  %v13835_v50 = vld [vmem:[%s16340_s1] ss:$0 sm:$0xff]  ;;  %s16357_s1 = sld [smem:[#allocation19_spill]] }
 0x5e4   : > { %v3256_v58 = vmul.f32 0.7978846, %v3240_v5  ;;  %v3241_v44 = vadd.f32 %v3225_v28, %v3159_v48  ;;  %v3446_v12 = vpack.c.bf16 %v3435_v52, %v3434_v61  ;;  %v3420_v61 = vadd.f32 %v10663_v20, %v13792_v4 }
 0x5e5   : > { %v3254_v43 = vmul.f32 0.7978846, %v3238_v29  ;;  %v3239_v8 = vadd.f32 %v3223_v53, %v3151_v41 }
 0x5e6   : > { %11771 = vtanh.f32 %v3256_v58  ;;  %v3257_v22 = vmul.f32 0.7978846, %v3241_v44  ;;  %10689 = vmatprep.mubr.bf16.mxu1 %v3446_v12 }
 0x5e7   : > { %11773 = vtanh.f32 %v3254_v43  ;;  %10690 = vmatmul.mubr.bf16.gmra.mrb[64].mxu1 %v3447_v32  ;;  %v3255_v51 = vmul.f32 0.7978846, %v3239_v8 }
 0x5e8   : > { %11775 = vtanh.f32 %v3257_v22 }
 0x5e9   : > { %11777 = vtanh.f32 %v3255_v51 }
 0x5f0   : > { %v11772_v21 = vpop.eup %11771 }
 0x5f1   : > { %v11774_v0 = vpop.eup %11773  ;;  %v3288_v1 = vadd.f32 1.0, %v11772_v21 }
 0x5f2   : > { %v11776_v34 = vpop.eup %11775  ;;  %v3286_v26 = vadd.f32 1.0, %v11774_v0 }
 0x5f3   : > { %v3304_v40 = vmul.f32 %v3288_v1, %v3176_v36  ;;  %v3289_v10 = vadd.f32 1.0, %v11776_v34  ;;  %v11778_v14 = vpop.eup %11777 }
 0x5f4   : > { %v3302_v56 = vmul.f32 %v3286_v26, %v3174_v6  ;;  %v3287_v39 = vadd.f32 1.0, %v11778_v14 }
 0x5f5   : > { %v3440_v35 = vmul.f32 %v3420_v61, %v3304_v40  ;;  %v3305_v23 = vmul.f32 %v3289_v10, %v3177_v59 }
 0x5f6   : > { %v3438_v32 = vmul.f32 %v3412_v57, %v3302_v56  ;;  %v3303_v42 = vmul.f32 %v3287_v39, %v3175_v24 }
 0x5f7   : > { %v3441_v54 = vmul.f32 %v3423_v3, %v3305_v23 }
 0x5f8   : > { %v3439_v20 = vmul.f32 %v3415_v46, %v3303_v42 }
 0x5f9   : > { %v3449_v60 = vpack.c.bf16 %v3441_v54, %v3440_v35 }
 0x5fa   : > { %v3448_v48 = vpack.c.bf16 %v3439_v20, %v3438_v32 }
 0x5fc   : > { %10693 = vmatprep.mubr.bf16.mxu1 %v3448_v48 }
 0x5fd   : > { %10694 = vmatmul.mubr.bf16.gmra.mrb[68].mxu1 %v3449_v60 }
 0x67f   : > { %v10683_v19 = vpop.f32.mrb[56].mxu1 }
 0x680   : > { %v3555_v2 = vpop.f32.mrb[57].mxu1  ;;  %v3564_v52 = vadd.f32 %v10683_v19, %v13835_v50 }
 0x681   : > { %v3556_v13 = vadd.f32 %v13835_v50, %v3555_v2  ;;  %v10684_v5 = vpop.f32.mrb[58].mxu1 }
 0x682   : > { %v3558_v41 = vpop.f32.mrb[59].mxu1  ;;  %v3567_v4 = vadd.f32 %v10684_v5, %v13835_v50  ;;  %v13845_v29 = vadd.f32 %v3564_v52, %v13612_v33 }
 0x683   : > { %v13840_v28 = vadd.f32 %v3556_v13, %v13615_v45  ;;  %v3559_v38 = vadd.f32 %v13835_v50, %v3558_v41 }
 0x684   : > { %16342 = vst [vmem:[#allocation43_spill] sm:$0xff] %v13845_v29  ;;  %v13853_v44 = vadd.f32 %v3567_v4, %v13619_v27  ;;  %v3640_v12 = vsel %vm1227_vm0, %v13845_v29, 0.0 }
 0x685   : > { %16341 = vst [vmem:[#allocation40_spill] sm:$0xff] %v13840_v28  ;;  %v13848_v25 = vadd.f32 %v3559_v38, %v13622_v7  ;;  %v3634_v58 = vsel %vm1227_vm0, %v13840_v28, 0.0 }
 0x686   : > { %3635 = vadd.xlane.f32.xlu0 %v3634_v58  ;;  %16344 = vst [vmem:[#allocation48_spill] sm:$0xff] %v13853_v44  ;;  %v3643_v33 = vsel %vm1227_vm0, %v13853_v44, 0.0 }
 0x687   : > { %16343 = vst [vmem:[#allocation51_spill] sm:$0xff] %v13848_v25  ;;  %v3637_v45 = vsel %vm1227_vm0, %v13848_v25, 0.0 }
 0x688   : > { %3638 = vadd.xlane.f32.xlu1 %v3637_v45 }
 0x68a   : > { %3641 = vadd.xlane.f32.xlu0 %v3640_v12 }
 0x68c   : > { %3644 = vadd.xlane.f32.xlu1 %v3643_v33 }
 0x6a1   : > { %v10687_v7 = vpop.f32.mrb[60].mxu1 }
 0x6a2   : > { %v3571_v43 = vpop.f32.mrb[61].mxu1  ;;  %v3580_v53 = vadd.f32 %v10687_v7, %v13835_v50 }
 0x6a3   : > { %v3572_v22 = vadd.f32 %v13835_v50, %v3571_v43  ;;  %v10688_v27 = vpop.f32.mrb[62].mxu1 }
 0x6a4   : > { %v3574_v8 = vpop.f32.mrb[63].mxu1  ;;  %v3583_v21 = vadd.f32 %v10688_v27, %v13835_v50  ;;  %v13869_v36 = vadd.f32 %v3580_v53, %v13640_v17 }
 0x6a5   : > { %v13864_v51 = vadd.f32 %v3572_v22, %v13643_v49  ;;  %v3575_v0 = vadd.f32 %v13835_v50, %v3574_v8 }
 0x6a6   : > { %16346 = vst [vmem:[#allocation52_spill] sm:$0xff] %v13869_v36  ;;  %v13877_v6 = vadd.f32 %v3583_v21, %v13647_v15  ;;  %v3652_v26 = vsel %vm1227_vm0, %v13869_v36, 0.0 }
 0x6a7   : > { %16345 = vst [vmem:[#allocation49_spill] sm:$0xff] %v13864_v51  ;;  %v13872_v1 = vadd.f32 %v3575_v0, %v13650_v37  ;;  %v3646_v34 = vsel %vm1227_vm0, %v13864_v51, 0.0 }
 0x6a8   : > { %3647 = vadd.xlane.f32.xlu0 %v3646_v34  ;;  %16348 = vst [vmem:[#allocation58_spill] sm:$0xff] %v13877_v6  ;;  %v3655_v17 = vsel %vm1227_vm0, %v13877_v6, 0.0 }
 0x6a9   : > { %16347 = vst [vmem:[#allocation34_spill] sm:$0xff] %v13872_v1  ;;  %v3649_v49 = vsel %vm1227_vm0, %v13872_v1, 0.0 }
 0x6aa   : > { %3650 = vadd.xlane.f32.xlu1 %v3649_v49 }
 0x6ac   : > { %3653 = vadd.xlane.f32.xlu0 %v3652_v26 }
 0x6ae   : > { %3656 = vadd.xlane.f32.xlu1 %v3655_v17 }
 0x6ba   : > { %v10691_v37 = vpop.f32.mrb[64].mxu1 }
 0x6bb   : > { %v3587_v40 = vpop.f32.mrb[65].mxu1  ;;  %v3596_v61 = vadd.f32 %v10691_v37, %v13835_v50 }
 0x6bc   : > { %v3588_v59 = vadd.f32 %v13835_v50, %v3587_v40  ;;  %v10692_v15 = vpop.f32.mrb[66].mxu1 }
 0x6bd   : > { %v3590_v10 = vpop.f32.mrb[67].mxu1  ;;  %v3599_v57 = vadd.f32 %v10692_v15, %v13835_v50  ;;  %v13893_v35 = vadd.f32 %v3596_v61, %v13668_v11 }
 0x6be   : > { %v13888_v56 = vadd.f32 %v3588_v59, %v13671_v31  ;;  %v3591_v14 = vadd.f32 %v13835_v50, %v3590_v10 }
 0x6bf   : > { %16350 = vst [vmem:[#allocation59_spill] sm:$0xff] %v13893_v35  ;;  %v13901_v32 = vadd.f32 %v3599_v57, %v13675_v9  ;;  %v3664_v24 = vsel %vm1227_vm0, %v13893_v35, 0.0 }
 0x6c0   : > { %16349 = vst [vmem:[#allocation36_spill] sm:$0xff] %v13888_v56  ;;  %v13896_v23 = vadd.f32 %v3591_v14, %v13678_v47  ;;  %v3658_v3 = vsel %vm1227_vm0, %v13888_v56, 0.0 }
 0x6c1   : > { %3659 = vadd.xlane.f32.xlu0 %v3658_v3  ;;  %16352 = vst [vmem:[#allocation33_spill] sm:$0xff] %v13901_v32  ;;  %v3667_v11 = vsel %vm1227_vm0, %v13901_v32, 0.0 }
 0x6c2   : > { %16351 = vst [vmem:[#allocation60_spill] sm:$0xff] %v13896_v23  ;;  %v3661_v31 = vsel %vm1227_vm0, %v13896_v23, 0.0 }
 0x6c3   : > { %3662 = vadd.xlane.f32.xlu1 %v3661_v31 }
 0x6c5   : > { %3665 = vadd.xlane.f32.xlu0 %v3664_v24 }
 0x6c7   : > { %3668 = vadd.xlane.f32.xlu1 %v3667_v11 }
 0x6d0   : > { %v10695_v47 = vpop.f32.mrb[68].mxu1 }
 0x6d1   : > { %v3603_v39 = vpop.f32.mrb[69].mxu1  ;;  %v3612_v54 = vadd.f32 %v10695_v47, %v13835_v50 }
 0x6d2   : > { %v3604_v42 = vadd.f32 %v13835_v50, %v3603_v39  ;;  %v10696_v9 = vpop.f32.mrb[70].mxu1 }
 0x6d3   : > { %v3606_v46 = vpop.f32.mrb[71].mxu1  ;;  %v3615_v20 = vadd.f32 %v10696_v9, %v13835_v50  ;;  %v13917_v19 = vadd.f32 %v3612_v54, %v13700_v16 }
 0x6d4   : > { %v13912_v60 = vadd.f32 %v3604_v42, %v13703_v55  ;;  %v3607_v48 = vadd.f32 %v13835_v50, %v3606_v46 }
 0x6d5   : > { %16354 = vst [vmem:[#allocation61_spill] sm:$0xff] %v13917_v19  ;;  %v13925_v13 = vadd.f32 %v3615_v20, %v13707_v18  ;;  %v3676_v50 = vsel %vm1227_vm0, %v13917_v19, 0.0 }
 0x6d6   : > { %16353 = vst [vmem:[#allocation37_spill] sm:$0xff] %v13912_v60  ;;  %v13920_v2 = vadd.f32 %v3607_v48, %v13710_v62  ;;  %v3670_v52 = vsel %vm1227_vm0, %v13912_v60, 0.0 }
 0x6d7   : > { %3671 = vadd.xlane.f32.xlu0 %v3670_v52  ;;  %16356 = vst [vmem:[#allocation57_spill] sm:$0xff] %v13925_v13  ;;  %v3679_v16 = vsel %vm1227_vm0, %v13925_v13, 0.0 }
 0x6d8   : > { %16355 = vst [vmem:[#allocation56_spill] sm:$0xff] %v13920_v2  ;;  %v3673_v55 = vsel %vm1227_vm0, %v13920_v2, 0.0 }
 0x6d9   : > { %3674 = vadd.xlane.f32.xlu1 %v3673_v55 }
 0x6db   : > { %3677 = vadd.xlane.f32.xlu0 %v3676_v50 }
 0x6dd   : > { %3680 = vadd.xlane.f32.xlu1 %v3679_v16 }
 0x713   : > { %v3636_v62 = vpop.xlane.xlu0 %3635 }
 0x714   : > { %v3682_v5 = vmul.f32 0.03125, %v3636_v62 }
 0x715   : > { %v3639_v41 = vpop.xlane.xlu1 %3638 }
 0x716   : > { %v13934_v4 = vsub.f32 %v13840_v28, %v3682_v5  ;;  %v3683_v18 = vmul.f32 0.03125, %v3639_v41 }
 0x717   : > { %v3642_v38 = vpop.xlane.xlu0 %3641 }
 0x718   : > { %v13937_v58 = vsub.f32 %v13848_v25, %v3683_v18  ;;  %v3684_v45 = vmul.f32 0.03125, %v3642_v38  ;;  %v3714_v12 = vmul.f32 %v13934_v4, %v13934_v4 }
 0x719   : > { %v3645_v33 = vpop.xlane.xlu1 %3644 }
 0x71a   : > { %v13942_v7 = vsub.f32 %v13845_v29, %v3684_v45  ;;  %v3685_v43 = vmul.f32 0.03125, %v3645_v33  ;;  %v3730_v53 = vsel %vm1227_vm0, %v3714_v12, 0.0  ;;  %v3715_v22 = vmul.f32 %v13937_v58, %v13937_v58 }
 0x71b   : > { %3731 = vadd.xlane.f32.xlu0 %v3730_v53 }
 0x71c   : > { %v13948_v27 = vsub.f32 %v13853_v44, %v3685_v43  ;;  %v3733_v8 = vsel %vm1227_vm0, %v3715_v22, 0.0  ;;  %v3716_v21 = vmul.f32 %v13942_v7, %v13942_v7 }
 0x71d   : > { %3734 = vadd.xlane.f32.xlu1 %v3733_v8 }
 0x71e   : > { %v3736_v0 = vsel %vm1227_vm0, %v3716_v21, 0.0  ;;  %v3717_v34 = vmul.f32 %v13948_v27, %v13948_v27 }
 0x71f   : > { %3737 = vadd.xlane.f32.xlu0 %v3736_v0 }
 0x720   : > { %v3739_v49 = vsel %vm1227_vm0, %v3717_v34, 0.0 }
 0x721   : > { %3740 = vadd.xlane.f32.xlu1 %v3739_v49 }
 0x735   : > { %v3648_v26 = vpop.xlane.xlu0 %3647 }
 0x736   : > { %v3686_v17 = vmul.f32 0.03125, %v3648_v26 }
 0x737   : > { %v3651_v37 = vpop.xlane.xlu1 %3650 }
 0x738   : > { %v13958_v40 = vsub.f32 %v13864_v51, %v3686_v17  ;;  %v3687_v61 = vmul.f32 0.03125, %v3651_v37  ;;  %v11431_v17 = vld [vmem:[%s16357_s1] sm:$0xff]  }
 0x739   : > { %v3654_v59 = vpop.xlane.xlu0 %3653  ;;  %v11432_v37 = vld [vmem:[%s16358_s3] sm:$0xff]   ;;  %10697 = vmatprep.subr.bf16.mxu0 %v11431_v17 }
 0x73a   : > { %v13961_v15 = vsub.f32 %v13872_v1, %v3687_v61  ;;  %v3688_v10 = vmul.f32 0.03125, %v3654_v59  ;;  %v3718_v57 = vmul.f32 %v13958_v40, %v13958_v40  ;;  %10717 = vmatprep.subr.bf16.mxu1 %v11432_v37  ;;  %10698 = vmatpush3.bf16.msra.mxu0 %v11431_v17 }
 0x73b   : > { %v3657_v14 = vpop.xlane.xlu1 %3656  ;;  %10718 = vmatpush3.bf16.msra.mxu1 %v11432_v37 }
 0x73c   : > { %v13966_v3 = vsub.f32 %v13869_v36, %v3688_v10  ;;  %v3689_v31 = vmul.f32 0.03125, %v3657_v14  ;;  %v3742_v24 = vsel %vm1227_vm0, %v3718_v57, 0.0  ;;  %v3719_v11 = vmul.f32 %v13961_v15, %v13961_v15 }
 0x73d   : > { %3743 = vadd.xlane.f32.xlu0 %v3742_v24 }
 0x73e   : > { %v13972_v47 = vsub.f32 %v13877_v6, %v3689_v31  ;;  %v3745_v39 = vsel %vm1227_vm0, %v3719_v11, 0.0  ;;  %v3720_v54 = vmul.f32 %v13966_v3, %v13966_v3  ;;  %v11433_v11 = vld [vmem:[%s16357_s1 + $0x8] sm:$0xff]   ;;  %s16360_s1 = sld [smem:[#allocation17_spill]] }
 0x73f   : > { %3746 = vadd.xlane.f32.xlu1 %v3745_v39  ;;  %v11434_v39 = vld [vmem:[%s16358_s3 + $0x8] sm:$0xff]   ;;  %10699 = vmatprep.subr.bf16.mxu0 %v11433_v11  ;;  %s16361_s3 = sld [smem:[#allocation18_spill]] }
 0x740   : > { %v3748_v42 = vsel %vm1227_vm0, %v3720_v54, 0.0  ;;  %v3721_v9 = vmul.f32 %v13972_v47, %v13972_v47  ;;  %10719 = vmatprep.subr.bf16.mxu1 %v11434_v39  ;;  %10700 = vmatpush3.bf16.msra.mxu0 %v11433_v11 }
 0x741   : > { %3749 = vadd.xlane.f32.xlu0 %v3748_v42  ;;  %10720 = vmatpush3.bf16.msra.mxu1 %v11434_v39 }
 0x742   : > { %v3751_v46 = vsel %vm1227_vm0, %v3721_v9, 0.0 }
 0x743   : > { %3752 = vadd.xlane.f32.xlu1 %v3751_v46 }
 0x744   : > { %v14035_v37 = vld [vmem:[%s16360_s1] ss:$0 sm:$0xff]  ;;  %s16363_s1 = sld [smem:[#allocation22_spill]] }
 0x745   : > { %v14041_v11 = vld [vmem:[%s16361_s3] ss:$0 sm:$0xff]  ;;  %s16362_s3 = sld [smem:[#allocation20_spill]] }
 0x74e   : > { %v3660_v20 = vpop.xlane.xlu0 %3659 }
 0x74f   : > { %v3690_v48 = vmul.f32 0.03125, %v3660_v20 }
 0x750   : > { %v3663_v52 = vpop.xlane.xlu1 %3662 }
 0x751   : > { %v13982_v55 = vsub.f32 %v13888_v56, %v3690_v48  ;;  %v3691_v50 = vmul.f32 0.03125, %v3663_v52 }
 0x752   : > { %v3666_v16 = vpop.xlane.xlu0 %3665 }
 0x753   : > { %v13985_v62 = vsub.f32 %v13896_v23, %v3691_v50  ;;  %v3692_v5 = vmul.f32 0.03125, %v3666_v16  ;;  %v3722_v41 = vmul.f32 %v13982_v55, %v13982_v55 }
 0x754   : > { %v3669_v18 = vpop.xlane.xlu1 %3668 }
 0x755   : > { %v13990_v38 = vsub.f32 %v13893_v35, %v3692_v5  ;;  %v3693_v45 = vmul.f32 0.03125, %v3669_v18  ;;  %v3754_v12 = vsel %vm1227_vm0, %v3722_v41, 0.0  ;;  %v3723_v33 = vmul.f32 %v13985_v62, %v13985_v62  ;;  %v11435_v41 = vld [vmem:[%s16359_s5] sm:$0xff]  }
 0x756   : > { %3755 = vadd.xlane.f32.xlu0 %v3754_v12  ;;  %10737 = vmatprep.subr.bf16.mxu0 %v11435_v41 }
 0x757   : > { %v13996_v43 = vsub.f32 %v13901_v32, %v3693_v45  ;;  %v3757_v53 = vsel %vm1227_vm0, %v3723_v33, 0.0  ;;  %v3724_v22 = vmul.f32 %v13990_v38, %v13990_v38 }
 0x758   : > { %3758 = vadd.xlane.f32.xlu1 %v3757_v53 }
 0x759   : > { %v3760_v8 = vsel %vm1227_vm0, %v3724_v22, 0.0  ;;  %v3725_v21 = vmul.f32 %v13996_v43, %v13996_v43 }
 0x75a   : > { %3761 = vadd.xlane.f32.xlu0 %v3760_v8 }
 0x75b   : > { %v3763_v0 = vsel %vm1227_vm0, %v3725_v21, 0.0 }
 0x75c   : > { %3764 = vadd.xlane.f32.xlu1 %v3763_v0 }
 0x764   : > { %v3672_v34 = vpop.xlane.xlu0 %3671 }
 0x765   : > { %v3694_v49 = vmul.f32 0.03125, %v3672_v34 }
 0x766   : > { %v3675_v26 = vpop.xlane.xlu1 %3674 }
 0x767   : > { %v14008_v61 = vsub.f32 %v13912_v60, %v3694_v49  ;;  %v3695_v59 = vmul.f32 0.03125, %v3675_v26 }
 0x768   : > { %v3678_v10 = vpop.xlane.xlu0 %3677 }
 0x769   : > { %v14011_v57 = vsub.f32 %v13920_v2, %v3695_v59  ;;  %v3696_v14 = vmul.f32 0.03125, %v3678_v10  ;;  %v3726_v31 = vmul.f32 %v14008_v61, %v14008_v61 }
 0x76a   : > { %v3681_v24 = vpop.xlane.xlu1 %3680 }
 0x76b   : > { %v14018_v54 = vsub.f32 %v13917_v19, %v3696_v14  ;;  %v3697_v42 = vmul.f32 0.03125, %v3681_v24  ;;  %v3766_v9 = vsel %vm1227_vm0, %v3726_v31, 0.0  ;;  %v3727_v46 = vmul.f32 %v14011_v57, %v14011_v57 }
 0x76c   : > { %3767 = vadd.xlane.f32.xlu0 %v3766_v9 }
 0x76d   : > { %v14024_v20 = vsub.f32 %v13925_v13, %v3697_v42  ;;  %v3769_v48 = vsel %vm1227_vm0, %v3727_v46, 0.0  ;;  %v3728_v52 = vmul.f32 %v14018_v54, %v14018_v54 }
 0x76e   : > { %3770 = vadd.xlane.f32.xlu1 %v3769_v48 }
 0x76f   : > { %v3772_v50 = vsel %vm1227_vm0, %v3728_v52, 0.0  ;;  %v3729_v16 = vmul.f32 %v14024_v20, %v14024_v20 }
 0x770   : > { %3773 = vadd.xlane.f32.xlu0 %v3772_v50 }
 0x771   : > { %v3775_v5 = vsel %vm1227_vm0, %v3729_v16, 0.0 }
 0x772   : > { %3776 = vadd.xlane.f32.xlu1 %v3775_v5 }
 0x7a8   : > { %v3732_v18 = vpop.xlane.xlu0 %3731 }
 0x7a9   : > { %v3778_v45 = vmul.f32 0.03125, %v3732_v18 }
 0x7aa   : > { %v3735_v12 = vpop.xlane.xlu1 %3734 }
 0x7ab   : > { %v3794_v33 = vadd.f32 1e-06, %v3778_v45  ;;  %v3779_v53 = vmul.f32 0.03125, %v3735_v12 }
 0x7ac   : > { %v3738_v22 = vpop.xlane.xlu0 %3737 }
 0x7ad   : > { %11779 = vrsqrt.f32 %v3794_v33  ;;  %v3795_v8 = vadd.f32 1e-06, %v3779_v53  ;;  %v3780_v21 = vmul.f32 0.03125, %v3738_v22 }
 0x7ae   : > { %v3741_v0 = vpop.xlane.xlu1 %3740 }
 0x7af   : > { %11781 = vrsqrt.f32 %v3795_v8  ;;  %v3796_v34 = vadd.f32 1e-06, %v3780_v21  ;;  %v3781_v49 = vmul.f32 0.03125, %v3741_v0 }
 0x7b1   : > { %11783 = vrsqrt.f32 %v3796_v34  ;;  %v3797_v26 = vadd.f32 1e-06, %v3781_v49 }
 0x7b3   : > { %11785 = vrsqrt.f32 %v3797_v26 }
 0x7b7   : > { %v11780_v17 = vpop.eup %11779 }
 0x7b8   : > { %v3826_v59 = vmul.f32 %v11780_v17, %v13934_v4 }
 0x7b9   : > { %v11782_v10 = vpop.eup %11781 }
 0x7ba   : > { %v3827_v14 = vmul.f32 %v11782_v10, %v13937_v58  ;;  %v3849_v31 = vmul.f32 %v14035_v37, %v3826_v59 }
 0x7bb   : > { %v11784_v24 = vpop.eup %11783 }
 0x7bc   : > { %v3828_v39 = vmul.f32 %v11784_v24, %v13942_v7  ;;  %v3850_v42 = vmul.f32 %v14035_v37, %v3827_v14  ;;  %v3872_v4 = vadd.f32 %v14041_v11, %v3849_v31 }
 0x7bd   : > { %v11786_v9 = vpop.eup %11785 }
 0x7be   : > { %v3851_v46 = vmul.f32 %v14035_v37, %v3828_v39  ;;  %v3829_v48 = vmul.f32 %v11786_v9, %v13948_v27  ;;  %v3873_v52 = vadd.f32 %v14041_v11, %v3850_v42  ;;  %v11436_v27 = vld [vmem:[%s16359_s5 + $0x8] sm:$0xff]   ;;  %s12286_s5 = smov 104  }
 0x7c0   : > { %v3852_v58 = vmul.f32 %v14035_v37, %v3829_v48  ;;  %v14050_v50 = vpack.c.bf16 %v3873_v52, %v3872_v4  ;;  %v3874_v16 = vadd.f32 %v14041_v11, %v3851_v46 }
 0x7c2   : > { %v3875_v5 = vadd.f32 %v14041_v11, %v3852_v58  ;;  %10701 = vmatprep.mubr.msk.bf16.mxu0 %vm1227_vm0, %v14050_v50  ;;  %10721 = vmatprep.mubr.msk.bf16.mxu1 %vm1227_vm0, %v14050_v50 }
 0x7c4   : > { %v14058_v7 = vpack.c.bf16 %v3875_v5, %v3874_v16 }
 0x7c6   : > { %10702 = vmatmul.mubr.msk.bf16.vlgmr.msra.gmra.mrb[56].mxu0 %vm1227_vm0, %v14058_v7  ;;  %10722 = vmatmul.mubr.msk.bf16.vlgmr.msra.gmra.mrb[72].mxu1 %vm1227_vm0, %v14058_v7 }
 0x7c7   : > { %10738 = vmatpush3.bf16.msra.mxu0 %v11435_v41 }
 0x7c8   : > { %10739 = vmatprep.subr.bf16.mxu0 %v11436_v27 }
 0x7ca   : > { %v3744_v18 = vpop.xlane.xlu0 %3743 }
 0x7cb   : > { %v3782_v45 = vmul.f32 0.03125, %v3744_v18  ;;  %10740 = vmatpush3.bf16.msra.mxu0 %v11436_v27 }
 0x7cc   : > { %v3747_v12 = vpop.xlane.xlu1 %3746 }
 0x7cd   : > { %v3798_v33 = vadd.f32 1e-06, %v3782_v45  ;;  %v3783_v53 = vmul.f32 0.03125, %v3747_v12 }
 0x7ce   : > { %v3750_v22 = vpop.xlane.xlu0 %3749 }
 0x7cf   : > { %11787 = vrsqrt.f32 %v3798_v33  ;;  %v3799_v8 = vadd.f32 1e-06, %v3783_v53  ;;  %v3784_v21 = vmul.f32 0.03125, %v3750_v22 }
 0x7d0   : > { %v3753_v0 = vpop.xlane.xlu1 %3752 }
 0x7d1   : > { %11789 = vrsqrt.f32 %v3799_v8  ;;  %v3800_v34 = vadd.f32 1e-06, %v3784_v21  ;;  %v3785_v49 = vmul.f32 0.03125, %v3753_v0 }
 0x7d3   : > { %11791 = vrsqrt.f32 %v3800_v34  ;;  %v3801_v26 = vadd.f32 1e-06, %v3785_v49 }
 0x7d5   : > { %11793 = vrsqrt.f32 %v3801_v26 }
 0x7d9   : > { %v11788_v17 = vpop.eup %11787 }
 0x7da   : > { %v3830_v41 = vmul.f32 %v11788_v17, %v13958_v40 }
 0x7db   : > { %v11790_v59 = vpop.eup %11789 }
 0x7dc   : > { %v3831_v10 = vmul.f32 %v11790_v59, %v13961_v15  ;;  %v3853_v14 = vmul.f32 %v14035_v37, %v3830_v41 }
 0x7dd   : > { %v11792_v31 = vpop.eup %11791 }
 0x7de   : > { %v3854_v24 = vmul.f32 %v14035_v37, %v3831_v10  ;;  %v3832_v39 = vmul.f32 %v11792_v31, %v13966_v3  ;;  %v3876_v9 = vadd.f32 %v14041_v11, %v3853_v14 }
 0x7df   : > { %v11794_v42 = vpop.eup %11793 }
 0x7e0   : > { %v3877_v46 = vadd.f32 %v14041_v11, %v3854_v24  ;;  %v3833_v48 = vmul.f32 %v11794_v42, %v13972_v47  ;;  %v3855_v4 = vmul.f32 %v14035_v37, %v3832_v39 }
 0x7e2   : > { %v14074_v40 = vpack.c.bf16 %v3877_v46, %v3876_v9  ;;  %v3856_v15 = vmul.f32 %v14035_v37, %v3833_v48  ;;  %v3878_v3 = vadd.f32 %v14041_v11, %v3855_v4 }
 0x7e3   : > { %v3756_v52 = vpop.xlane.xlu0 %3755 }
 0x7e4   : > { %10705 = vmatprep.mubr.msk.bf16.mxu0 %vm1227_vm0, %v14074_v40  ;;  %10725 = vmatprep.mubr.msk.bf16.mxu1 %vm1227_vm0, %v14074_v40  ;;  %v3879_v58 = vadd.f32 %v14041_v11, %v3856_v15  ;;  %v3786_v16 = vmul.f32 0.03125, %v3756_v52 }
 0x7e5   : > { %v3759_v5 = vpop.xlane.xlu1 %3758 }
 0x7e6   : > { %v14083_v47 = vpack.c.bf16 %v3879_v58, %v3878_v3  ;;  %v3802_v27 = vadd.f32 1e-06, %v3786_v16  ;;  %v3787_v18 = vmul.f32 0.03125, %v3759_v5 }
 0x7e7   : > { %v3762_v45 = vpop.xlane.xlu0 %3761 }
 0x7e8   : > { %10706 = vmatmul.mubr.msk.bf16.gmra.mrb[60].mxu0 %vm1227_vm0, %v14083_v47  ;;  %10726 = vmatmul.mubr.msk.bf16.gmra.mrb[76].mxu1 %vm1227_vm0, %v14083_v47  ;;  %11795 = vrsqrt.f32 %v3802_v27  ;;  %v3803_v12 = vadd.f32 1e-06, %v3787_v18  ;;  %v3788_v33 = vmul.f32 0.03125, %v3762_v45 }
 0x7e9   : > { %v3765_v53 = vpop.xlane.xlu1 %3764 }
 0x7ea   : > { %11797 = vrsqrt.f32 %v3803_v12  ;;  %v3804_v22 = vadd.f32 1e-06, %v3788_v33  ;;  %v3789_v8 = vmul.f32 0.03125, %v3765_v53 }
 0x7ec   : > { %11799 = vrsqrt.f32 %v3804_v22  ;;  %v3805_v21 = vadd.f32 1e-06, %v3789_v8 }
 0x7ee   : > { %11801 = vrsqrt.f32 %v3805_v21 }
 0x7f2   : > { %v11796_v0 = vpop.eup %11795 }
 0x7f3   : > { %v3834_v34 = vmul.f32 %v11796_v0, %v13982_v55 }
 0x7f4   : > { %v11798_v49 = vpop.eup %11797 }
 0x7f5   : > { %v3835_v26 = vmul.f32 %v11798_v49, %v13985_v62  ;;  %v3857_v17 = vmul.f32 %v14035_v37, %v3834_v34 }
 0x7f6   : > { %v11800_v41 = vpop.eup %11799 }
 0x7f7   : > { %v3858_v59 = vmul.f32 %v14035_v37, %v3835_v26  ;;  %v3836_v10 = vmul.f32 %v11800_v41, %v13990_v38  ;;  %v3880_v31 = vadd.f32 %v14041_v11, %v3857_v17 }
 0x7f8   : > { %v11802_v14 = vpop.eup %11801 }
 0x7f9   : > { %v3881_v24 = vadd.f32 %v14041_v11, %v3858_v59  ;;  %v3837_v39 = vmul.f32 %v11802_v14, %v13996_v43  ;;  %v3859_v42 = vmul.f32 %v14035_v37, %v3836_v10  ;;  %v3768_v55 = vpop.xlane.xlu0 %3767 }
 0x7fa   : > { %v3790_v46 = vmul.f32 0.03125, %v3768_v55 }
 0x7fb   : > { %v3892_v9 = vpack.c.bf16 %v3881_v24, %v3880_v31  ;;  %v3860_v62 = vmul.f32 %v14035_v37, %v3837_v39  ;;  %v3771_v48 = vpop.xlane.xlu1 %3770  ;;  %v3882_v38 = vadd.f32 %v14041_v11, %v3859_v42 }
 0x7fc   : > { %v3806_v15 = vadd.f32 1e-06, %v3790_v46  ;;  %v3791_v52 = vmul.f32 0.03125, %v3771_v48 }
 0x7fd   : > { %10709 = vmatprep.mubr.msk.bf16.mxu0 %vm1227_vm0, %v3892_v9  ;;  %10729 = vmatprep.mubr.msk.bf16.mxu1 %vm1227_vm0, %v3892_v9  ;;  %v3883_v4 = vadd.f32 %v14041_v11, %v3860_v62  ;;  %v3774_v3 = vpop.xlane.xlu0 %3773 }
 0x7fe   : > { %11803 = vrsqrt.f32 %v3806_v15  ;;  %v3807_v58 = vadd.f32 1e-06, %v3791_v52  ;;  %v3792_v16 = vmul.f32 0.03125, %v3774_v3 }
 0x7ff   : > { %v3893_v43 = vpack.c.bf16 %v3883_v4, %v3882_v38  ;;  %v3777_v5 = vpop.xlane.xlu1 %3776 }
 0x800   : > { %11805 = vrsqrt.f32 %v3807_v58  ;;  %v3808_v27 = vadd.f32 1e-06, %v3792_v16  ;;  %v3793_v18 = vmul.f32 0.03125, %v3777_v5 }
 0x801   : > { %10710 = vmatmul.mubr.msk.bf16.gmra.mrb[64].mxu0 %vm1227_vm0, %v3893_v43  ;;  %10730 = vmatmul.mubr.msk.bf16.gmra.mrb[80].mxu1 %vm1227_vm0, %v3893_v43 }
 0x802   : > { %11807 = vrsqrt.f32 %v3808_v27  ;;  %v3809_v45 = vadd.f32 1e-06, %v3793_v18 }
 0x804   : > { %11809 = vrsqrt.f32 %v3809_v45 }
 0x808   : > { %v11804_v12 = vpop.eup %11803 }
 0x809   : > { %v3838_v33 = vmul.f32 %v11804_v12, %v14008_v61 }
 0x80a   : > { %v11806_v53 = vpop.eup %11805 }
 0x80b   : > { %v3839_v22 = vmul.f32 %v11806_v53, %v14011_v57  ;;  %v3861_v8 = vmul.f32 %v14035_v37, %v3838_v33 }
 0x80c   : > { %v11808_v21 = vpop.eup %11807 }
 0x80d   : > { %v3862_v0 = vmul.f32 %v14035_v37, %v3839_v22  ;;  %v3840_v34 = vmul.f32 %v11808_v21, %v14018_v54  ;;  %v3884_v26 = vadd.f32 %v14041_v11, %v3861_v8 }
 0x80e   : > { %v11810_v49 = vpop.eup %11809 }
 0x80f   : > { %v3885_v17 = vadd.f32 %v14041_v11, %v3862_v0  ;;  %v3841_v41 = vmul.f32 %v11810_v49, %v14024_v20  ;;  %v3863_v59 = vmul.f32 %v14035_v37, %v3840_v34  ;;  %v16194_v20 = vmov 0.0  }
 0x810   : > { %10757 = vmatprep.subr.bf16.mxu1 %v16194_v20  ;;  %10781 = vmatprep.subr.bf16.mxu0 %v16194_v20 }
 0x811   : > { %v3894_v61 = vpack.c.bf16 %v3885_v17, %v3884_v26  ;;  %v3864_v10 = vmul.f32 %v14035_v37, %v3841_v41  ;;  %v3886_v57 = vadd.f32 %v14041_v11, %v3863_v59  ;;  %v14140_v37 = vld [vmem:[%s16362_s3] ss:$0 sm:$0xff]  ;;  %s16373_s3 = sld [smem:[#allocation24_spill]] }
 0x813   : > { %10713 = vmatprep.mubr.msk.bf16.mxu0 %vm1227_vm0, %v3894_v61  ;;  %10733 = vmatprep.mubr.msk.bf16.mxu1 %vm1227_vm0, %v3894_v61  ;;  %v3887_v54 = vadd.f32 %v14041_v11, %v3864_v10 }
 0x815   : > { %v3895_v14 = vpack.c.bf16 %v3887_v54, %v3886_v57 }
 0x817   : > { %10714 = vmatmul.mubr.msk.bf16.gmra.mrb[68].mxu0 %vm1227_vm0, %v3895_v14  ;;  %10734 = vmatmul.mubr.msk.bf16.gmra.mrb[84].mxu1 %vm1227_vm0, %v3895_v14 }
 0x818   : > { %10741 = vmatprep.mubr.msk.bf16.mxu0 %vm1227_vm0, %v14050_v50  ;;  %10759 = vmatprep.mubr.msk.bf16.mxu1 %vm12283_vm14, %v16194_v20 }
 0x81f   : > { %10742 = vmatmul.mubr.msk.bf16.vlgmr.msra.gmra.mrb[72].mxu0 %vm1227_vm0, %v14058_v7  ;;  %v14143_v7 = vld [vmem:[%s16363_s1] ss:$0 sm:$0xff]  ;;  %s12284_s1 = smov 120  }
 0x820   : > { %10745 = vmatprep.mubr.msk.bf16.mxu0 %vm1227_vm0, %v14074_v40 }
 0x827   : > { %10746 = vmatmul.mubr.msk.bf16.gmra.mrb[76].mxu0 %vm1227_vm0, %v14083_v47 }
 0x828   : > { %10749 = vmatprep.mubr.msk.bf16.mxu0 %vm1227_vm0, %v3892_v9 }
 0x82f   : > { %10750 = vmatmul.mubr.msk.bf16.gmra.mrb[80].mxu0 %vm1227_vm0, %v3893_v43 }
 0x830   : > { %10753 = vmatprep.mubr.msk.bf16.mxu0 %vm1227_vm0, %v3894_v61 }
 0x837   : > { %10754 = vmatmul.mubr.msk.bf16.gmra.mrb[84].mxu0 %vm1227_vm0, %v3895_v14 }
 0x838   : > { %10783 = vmatprep.mubr.msk.bf16.mxu0 %vm12283_vm14, %v16194_v20 }
 0x899   : > { %v10703_v11 = vpop.f32.mrb[56].mxu0  ;;  %v10723_v50 = vpop.f32.mrb[72].mxu1 }
 0x89a   : > { %v3986_v40 = vadd.f32 %v10703_v11, %v14140_v37  ;;  %v3977_v47 = vpop.f32.mrb[57].mxu0  ;;  %v4097_v31 = vpop.f32.mrb[73].mxu1  ;;  %v4106_v55 = vadd.f32 %v10723_v50, %v14143_v7 }
 0x89b   : > { %v3978_v24 = vadd.f32 %v14140_v37, %v3977_v47  ;;  %v10704_v39 = vpop.f32.mrb[58].mxu0  ;;  %v10724_v42 = vpop.f32.mrb[74].mxu1  ;;  %v4098_v38 = vadd.f32 %v14143_v7, %v4097_v31 }
 0x89c   : > { %v3989_v9 = vadd.f32 %v10704_v39, %v14140_v37  ;;  %v4109_v62 = vadd.f32 %v10724_v42, %v14143_v7  ;;  %v3980_v46 = vpop.f32.mrb[59].mxu0  ;;  %v4100_v48 = vpop.f32.mrb[75].mxu1  ;;  %v4286_v52 = vmul.f32 0.35355338, %v3986_v40 }
 0x89d   : > { %v3981_v4 = vadd.f32 %v14140_v37, %v3980_v46  ;;  %v4101_v15 = vadd.f32 %v14143_v7, %v4100_v48  ;;  %v4284_v58 = vmul.f32 0.35355338, %v3978_v24 }
 0x89e   : > { %v4287_v3 = vmul.f32 0.35355338, %v3989_v9  ;;  %v14153_v43 = vpack.c.bf16 %v4109_v62, %v4106_v55 }
 0x89f   : > { %v4285_v16 = vmul.f32 0.35355338, %v3981_v4  ;;  %v14155_v5 = vpack.c.bf16 %v4101_v15, %v4098_v38 }
 0x8a0   : > { %16364 = vst [vmem:[#allocation55_spill] sm:$0xff] %v14153_v43  ;;  %v14157_v27 = vpack.c.bf16 %v4287_v3, %v4286_v52  ;;  %v4376_v12 = vsel %vm4324_vm15, %v14153_v43, 0 }
 0x8a1   : > { %16365 = vst [vmem:[#allocation50_spill] sm:$0xff] %v14155_v5  ;;  %v14159_v18 = vpack.c.bf16 %v4285_v16, %v4284_v58  ;;  %v4329_v45 = vsel %vm4324_vm15, %v14155_v5, 0 }
 0x8a2   : > { %16366 = vst [vmem:[#allocation35_spill] sm:$0xff] %v14157_v27  ;;  %10758 = vmatpush3.bf16.xpose.msra.mxu1 %v4329_v45 }
 0x8a3   : > { %16367 = vst [vmem:[#allocation54_spill] sm:$0xff] %v14159_v18  ;;  %10763 = vmatprep.subr.bf16.mxu1 %v16194_v20 }
 0x8a9   : > { %10760 = vmatmul.mubr.msk.bf16.vlgmr.msra.gmra.mrb[88].mxu1 %vm4324_vm15, %v14159_v18 }
 0x8aa   : > { %10764 = vmatpush3.bf16.xpose.msra.mxu1 %v4376_v12  ;;  %10765 = vmatprep.mubr.msk.bf16.mxu1 %vm12283_vm14, %v16194_v20 }
 0x8ab   : > { %10769 = vmatprep.subr.bf16.mxu1 %v16194_v20 }
 0x8b1   : > { %10766 = vmatmul.mubr.msk.bf16.vlgmr.msra.gmra.mrb[92].mxu1 %vm4324_vm15, %v14157_v27 }
 0x8b2   : > { %10771 = vmatprep.mubr.msk.bf16.mxu1 %vm12283_vm14, %v16194_v20 }
 0x8bb   : > { %v10707_v33 = vpop.f32.mrb[60].mxu0  ;;  %v10727_v53 = vpop.f32.mrb[76].mxu1 }
 0x8bc   : > { %v4002_v22 = vadd.f32 %v10707_v33, %v14140_v37  ;;  %v3993_v8 = vpop.f32.mrb[61].mxu0  ;;  %v4113_v21 = vpop.f32.mrb[77].mxu1  ;;  %v4122_v26 = vadd.f32 %v10727_v53, %v14143_v7 }
 0x8bd   : > { %v3994_v0 = vadd.f32 %v14140_v37, %v3993_v8  ;;  %v10708_v34 = vpop.f32.mrb[62].mxu0  ;;  %v10728_v49 = vpop.f32.mrb[78].mxu1  ;;  %v4114_v10 = vadd.f32 %v14143_v7, %v4113_v21 }
 0x8be   : > { %v4005_v17 = vadd.f32 %v10708_v34, %v14140_v37  ;;  %v4125_v41 = vadd.f32 %v10728_v49, %v14143_v7  ;;  %v3996_v59 = vpop.f32.mrb[63].mxu0  ;;  %v4116_v61 = vpop.f32.mrb[79].mxu1  ;;  %v4290_v14 = vmul.f32 0.35355338, %v4002_v22 }
 0x8bf   : > { %v3997_v57 = vadd.f32 %v14140_v37, %v3996_v59  ;;  %v4117_v54 = vadd.f32 %v14143_v7, %v4116_v61  ;;  %v4288_v40 = vmul.f32 0.35355338, %v3994_v0 }
 0x8c0   : > { %v4291_v11 = vmul.f32 0.35355338, %v4005_v17  ;;  %v14183_v50 = vpack.c.bf16 %v4125_v41, %v4122_v26 }
 0x8c1   : > { %v4289_v47 = vmul.f32 0.35355338, %v3997_v57  ;;  %v14185_v31 = vpack.c.bf16 %v4117_v54, %v4114_v10 }
 0x8c2   : > { %16368 = vst [vmem:[#allocation47_spill] sm:$0xff] %v14183_v50  ;;  %v14187_v24 = vpack.c.bf16 %v4291_v11, %v4290_v14  ;;  %v4470_v55 = vsel %vm4324_vm15, %v14183_v50, 0 }
 0x8c3   : > { %16369 = vst [vmem:[#allocation32_spill] sm:$0xff] %v14185_v31  ;;  %v14189_v39 = vpack.c.bf16 %v4289_v47, %v4288_v40  ;;  %v4423_v42 = vsel %vm4324_vm15, %v14185_v31, 0 }
 0x8c4   : > { %16370 = vst [vmem:[#allocation62_spill] sm:$0xff] %v14187_v24  ;;  %10770 = vmatpush3.bf16.xpose.msra.mxu1 %v4423_v42 }
 0x8c5   : > { %16371 = vst [vmem:[#allocation63_spill] sm:$0xff] %v14189_v39  ;;  %10775 = vmatprep.subr.bf16.mxu1 %v16194_v20 }
 0x8cb   : > { %10772 = vmatmul.mubr.msk.bf16.vlgmr.msra.gmra.mrb[96].mxu1 %vm4324_vm15, %v14189_v39 }
 0x8cc   : > { %10776 = vmatpush3.bf16.xpose.msra.mxu1 %v4470_v55  ;;  %10777 = vmatprep.mubr.msk.bf16.mxu1 %vm12283_vm14, %v16194_v20 }
 0x8cd   : > { %10787 = vmatprep.subr.bf16.mxu1 %v16194_v20 }
 0x8d3   : > { %10778 = vmatmul.mubr.msk.bf16.vlgmr.msra.gmra.mrb[100].mxu1 %vm4324_vm15, %v14187_v24 }
 0x8d4   : > { %10789 = vmatprep.mubr.msk.bf16.mxu1 %vm12283_vm14, %v16194_v20  ;;  %v10711_v9 = vpop.f32.mrb[64].mxu0  ;;  %v10731_v62 = vpop.f32.mrb[80].mxu1 }
 0x8d5   : > { %v4018_v46 = vadd.f32 %v10711_v9, %v14140_v37  ;;  %v4009_v48 = vpop.f32.mrb[65].mxu0  ;;  %v4129_v38 = vpop.f32.mrb[81].mxu1  ;;  %v4138_v3 = vadd.f32 %v10731_v62, %v14143_v7 }
 0x8d6   : > { %v4010_v4 = vadd.f32 %v14140_v37, %v4009_v48  ;;  %v10712_v15 = vpop.f32.mrb[66].mxu0  ;;  %v10732_v52 = vpop.f32.mrb[82].mxu1  ;;  %v4130_v33 = vadd.f32 %v14143_v7, %v4129_v38 }
 0x8d7   : > { %v4021_v58 = vadd.f32 %v10712_v15, %v14140_v37  ;;  %v4141_v16 = vadd.f32 %v10732_v52, %v14143_v7  ;;  %v4012_v45 = vpop.f32.mrb[67].mxu0  ;;  %v4132_v12 = vpop.f32.mrb[83].mxu1  ;;  %v4294_v8 = vmul.f32 0.35355338, %v4018_v46 }
 0x8d8   : > { %v4013_v53 = vadd.f32 %v14140_v37, %v4012_v45  ;;  %v4133_v22 = vadd.f32 %v14143_v7, %v4132_v12  ;;  %v4292_v34 = vmul.f32 0.35355338, %v4010_v4 }
 0x8d9   : > { %v4295_v21 = vmul.f32 0.35355338, %v4021_v58  ;;  %v14213_v0 = vpack.c.bf16 %v4141_v16, %v4138_v3 }
 0x8da   : > { %v4293_v49 = vmul.f32 0.35355338, %v4013_v53  ;;  %v14215_v26 = vpack.c.bf16 %v4133_v22, %v4130_v33 }
 0x8db   : > { %v14217_v17 = vpack.c.bf16 %v4295_v21, %v4294_v8  ;;  %v4564_v41 = vsel %vm4324_vm15, %v14213_v0, 0  ;;  %v10081_v21 = vld [vmem:[%s16373_s3] ss:$0 sm:$0xff]  ;;  %s12285_s3 = smov 112  }
 0x8dc   : > { %16372 = vst [vmem:[#allocation64_spill] sm:$0xff] %v14215_v26  ;;  %v14221_v59 = vpack.c.bf16 %v4293_v49, %v4292_v34  ;;  %v4517_v61 = vsel %vm4324_vm15, %v14215_v26, 0  ;;  %10788 = vmatpush3.bf16.xpose.msra.mxu1 %v4564_v41 }
 0x8dd   : > { %10782 = vmatpush3.bf16.xpose.msra.mxu0 %v4517_v61  ;;  %10799 = vmatprep.subr.bf16.mxu1 %v16194_v20 }
 0x8de   : > { %10793 = vmatprep.subr.bf16.mxu0 %v16194_v20 }
 0x8e3   : > { %10790 = vmatmul.mubr.msk.bf16.vlgmr.msra.gmra.mrb[104].mxu1 %vm4324_vm15, %v14217_v17 }
 0x8e4   : > { %10784 = vmatmul.mubr.msk.bf16.vlgmr.msra.gmra.mrb[88].mxu0 %vm4324_vm15, %v14221_v59  ;;  %10801 = vmatprep.mubr.msk.bf16.mxu1 %vm12283_vm14, %v16194_v20 }
 0x8e5   : > { %10795 = vmatprep.mubr.msk.bf16.mxu0 %vm12283_vm14, %v16194_v20 }
 0x8ea   : > { %v10715_v10 = vpop.f32.mrb[68].mxu0  ;;  %v10735_v57 = vpop.f32.mrb[84].mxu1 }
 0x8eb   : > { %v4034_v54 = vadd.f32 %v10715_v10, %v14140_v37  ;;  %v4025_v14 = vpop.f32.mrb[69].mxu0  ;;  %v4145_v11 = vpop.f32.mrb[85].mxu1  ;;  %v4154_v55 = vadd.f32 %v10735_v57, %v14143_v7 }
 0x8ec   : > { %v4026_v40 = vadd.f32 %v14140_v37, %v4025_v14  ;;  %v10716_v47 = vpop.f32.mrb[70].mxu0  ;;  %v10736_v42 = vpop.f32.mrb[86].mxu1  ;;  %v4146_v38 = vadd.f32 %v14143_v7, %v4145_v11 }
 0x8ed   : > { %v4037_v9 = vadd.f32 %v10716_v47, %v14140_v37  ;;  %v4157_v62 = vadd.f32 %v10736_v42, %v14143_v7  ;;  %v4028_v46 = vpop.f32.mrb[71].mxu0  ;;  %v4148_v48 = vpop.f32.mrb[87].mxu1  ;;  %v4298_v52 = vmul.f32 0.35355338, %v4034_v54 }
 0x8ee   : > { %v4029_v4 = vadd.f32 %v14140_v37, %v4028_v46  ;;  %v4149_v15 = vadd.f32 %v14143_v7, %v4148_v48  ;;  %v4296_v16 = vmul.f32 0.35355338, %v4026_v40 }
 0x8ef   : > { %v4299_v3 = vmul.f32 0.35355338, %v4037_v9  ;;  %v14243_v58 = vpack.c.bf16 %v4157_v62, %v4154_v55 }
 0x8f0   : > { %v4297_v45 = vmul.f32 0.35355338, %v4029_v4  ;;  %v14245_v12 = vpack.c.bf16 %v4149_v15, %v4146_v38 }
 0x8f1   : > { %16374 = vst [vmem:[#allocation65_spill] sm:$0xff] %v14243_v58  ;;  %v14247_v33 = vpack.c.bf16 %v4299_v3, %v4298_v52  ;;  %v4658_v53 = vsel %vm4324_vm15, %v14243_v58, 0 }
 0x8f2   : > { %v14251_v22 = vpack.c.bf16 %v4297_v45, %v4296_v16  ;;  %v10743_v8 = vpop.f32.mrb[72].mxu0  ;;  %v4611_v37 = vsel %vm4324_vm15, %v14245_v12, 0  ;;  %10800 = vmatpush3.bf16.xpose.msra.mxu1 %v4658_v53 }
 0x8f3   : > { %16375 = vst [vmem:[#allocation66_spill] sm:$0xff] %v14247_v33  ;;  %v4217_v7 = vpop.f32.mrb[73].mxu0  ;;  %10794 = vmatpush3.bf16.xpose.msra.mxu0 %v4611_v37  ;;  %10811 = vmatprep.subr.bf16.mxu1 %v16194_v20  ;;  %v4226_v49 = vadd.f32 %v10743_v8, %v10081_v21 }
 0x8f4   : > { %16376 = vst [vmem:[#allocation67_spill] sm:$0xff] %v14251_v22  ;;  %v10744_v34 = vpop.f32.mrb[74].mxu0  ;;  %10805 = vmatprep.subr.bf16.mxu0 %v16194_v20  ;;  %v4218_v10 = vadd.f32 %v10081_v21, %v4217_v7 }
 0x8f5   : > { %v4229_v41 = vadd.f32 %v10744_v34, %v10081_v21  ;;  %v4220_v61 = vpop.f32.mrb[75].mxu0 }
 0x8f6   : > { %v4221_v57 = vadd.f32 %v10081_v21, %v4220_v61 }
 0x8f7   : > { %v14258_v54 = vpack.c.bf16 %v4229_v41, %v4226_v49 }
 0x8f8   : > { %v14260_v14 = vpack.c.bf16 %v4221_v57, %v4218_v10 }
 0x8f9   : > { %10802 = vmatmul.mubr.msk.bf16.vlgmr.msra.gmra.mrb[108].mxu1 %vm4324_vm15, %v14247_v33 }
 0x8fa   : > { %v10747_v11 = vpop.f32.mrb[76].mxu0  ;;  %10796 = vmatmul.mubr.msk.bf16.vlgmr.msra.gmra.mrb[92].mxu0 %vm4324_vm15, %v14251_v22  ;;  %10812 = vmatpush3.bf16.msra.mxu1 %v14258_v54 }
 0x8fb   : > { %v4242_v40 = vadd.f32 %v10747_v11, %v10081_v21  ;;  %v4233_v47 = vpop.f32.mrb[77].mxu0  ;;  %10806 = vmatpush3.bf16.msra.mxu0 %v14260_v14  ;;  %10813 = vmatprep.mubr.msk.bf16.mxu1 %vm12283_vm14, %v16194_v20 }
 0x8fc   : > { %v4234_v42 = vadd.f32 %v10081_v21, %v4233_v47  ;;  %v10748_v55 = vpop.f32.mrb[78].mxu0  ;;  %10823 = vmatprep.subr.bf16.mxu1 %v16194_v20  ;;  %10807 = vmatprep.mubr.msk.bf16.mxu0 %vm12283_vm14, %v16194_v20 }
 0x8fd   : > { %v4245_v9 = vadd.f32 %v10748_v55, %v10081_v21  ;;  %v4236_v62 = vpop.f32.mrb[79].mxu0  ;;  %10817 = vmatprep.subr.bf16.mxu0 %v16194_v20 }
 0x8fe   : > { %v4237_v46 = vadd.f32 %v10081_v21, %v4236_v62 }
 0x8ff   : > { %v14274_v48 = vpack.c.bf16 %v4245_v9, %v4242_v40 }
 0x900   : > { %v14276_v38 = vpack.c.bf16 %v4237_v46, %v4234_v42 }
 0x902   : > { %v10751_v4 = vpop.f32.mrb[80].mxu0 }
 0x903   : > { %v4258_v15 = vadd.f32 %v10751_v4, %v10081_v21  ;;  %v4249_v52 = vpop.f32.mrb[81].mxu0 }
 0x904   : > { %v4250_v3 = vadd.f32 %v10081_v21, %v4249_v52  ;;  %v10752_v16 = vpop.f32.mrb[82].mxu0 }
 0x905   : > { %v4261_v45 = vadd.f32 %v10752_v16, %v10081_v21  ;;  %v4252_v53 = vpop.f32.mrb[83].mxu0 }
 0x906   : > { %v4253_v8 = vadd.f32 %v10081_v21, %v4252_v53 }
 0x907   : > { %v14278_v37 = vpack.c.bf16 %v4261_v45, %v4258_v15 }
 0x908   : > { %v14280_v7 = vpack.c.bf16 %v4253_v8, %v4250_v3 }
 0x90a   : > { %v10755_v34 = vpop.f32.mrb[84].mxu0 }
 0x90b   : > { %v4274_v49 = vadd.f32 %v10755_v34, %v10081_v21  ;;  %v4265_v41 = vpop.f32.mrb[85].mxu0 }
 0x90c   : > { %v4266_v61 = vadd.f32 %v10081_v21, %v4265_v41  ;;  %v10756_v10 = vpop.f32.mrb[86].mxu0 }
 0x90d   : > { %v4277_v57 = vadd.f32 %v10756_v10, %v10081_v21  ;;  %v4268_v11 = vpop.f32.mrb[87].mxu0 }
 0x90e   : > { %v4269_v40 = vadd.f32 %v10081_v21, %v4268_v11 }
 0x90f   : > { %v14282_v47 = vpack.c.bf16 %v4277_v57, %v4274_v49 }
 0x910   : > { %v14284_v42 = vpack.c.bf16 %v4269_v40, %v4266_v61 }
 0x97c   : > { %v14286_v55 = vpop.f32.mrb[88].mxu1 }
 0x97d   : > { %v10761_v9 = vpop.f32.mrb[89].mxu1 }
 0x97e   : > { %v14288_v62 = vpop.f32.mrb[90].mxu1 }
 0x97f   : > { %v10762_v46 = vpop.f32.mrb[91].mxu1 }
 0x984   : > { %v4412_v4 = vpop.f32.mrb[92].mxu1 }
 0x985   : > { %v10767_v15 = vpop.f32.mrb[93].mxu1  ;;  %v4708_v52 = vsel %vm4701_vm1, %v4412_v4, -inf }
 0x986   : > { %4709 = vmax.xlane.f32.xlu0 %v4708_v52  ;;  %v4415_v3 = vpop.f32.mrb[94].mxu1 }
 0x987   : > { %v10768_v16 = vpop.f32.mrb[95].mxu1  ;;  %v4711_v21 = vsel %vm4701_vm1, %v4415_v3, -inf }
 0x988   : > { %4712 = vmax.xlane.f32.xlu1 %v4711_v21 }
 0x99e   : > { %v14292_v45 = vpop.f32.mrb[96].mxu1 }
 0x99f   : > { %v10773_v53 = vpop.f32.mrb[97].mxu1 }
 0x9a0   : > { %v14294_v8 = vpop.f32.mrb[98].mxu1 }
 0x9a1   : > { %v10774_v34 = vpop.f32.mrb[99].mxu1 }
 0x9a6   : > { %v4506_v49 = vpop.f32.mrb[100].mxu1 }
 0x9a7   : > { %v10779_v41 = vpop.f32.mrb[101].mxu1  ;;  %v4720_v61 = vsel %vm4701_vm1, %v4506_v49, -inf }
 0x9a8   : > { %4721 = vmax.xlane.f32.xlu0 %v4720_v61  ;;  %v4509_v10 = vpop.f32.mrb[102].mxu1 }
 0x9a9   : > { %v10780_v57 = vpop.f32.mrb[103].mxu1  ;;  %v4723_v11 = vsel %vm4701_vm1, %v4509_v10, -inf }
 0x9aa   : > { %4724 = vmax.xlane.f32.xlu1 %v4723_v11 }
 0x9b6   : > { %v4600_v40 = vpop.f32.mrb[104].mxu1 }
 0x9b7   : > { %v14298_v9 = vpop.f32.mrb[88].mxu0  ;;  %v10791_v46 = vpop.f32.mrb[105].mxu1  ;;  %v4732_v15 = vsel %vm4701_vm1, %v4600_v40, -inf }
 0x9b8   : > { %v10785_v52 = vpop.f32.mrb[89].mxu0  ;;  %4733 = vmax.xlane.f32.xlu0 %v4732_v15  ;;  %v4603_v16 = vpop.f32.mrb[106].mxu1 }
 0x9b9   : > { %v14301_v21 = vpop.f32.mrb[90].mxu0  ;;  %v10792_v53 = vpop.f32.mrb[107].mxu1  ;;  %v4735_v34 = vsel %vm4701_vm1, %v4603_v16, -inf }
 0x9ba   : > { %v10786_v41 = vpop.f32.mrb[91].mxu0  ;;  %4736 = vmax.xlane.f32.xlu1 %v4735_v34 }
 0x9cc   : > { %v4694_v61 = vpop.f32.mrb[108].mxu1 }
 0x9cd   : > { %v14304_v57 = vpop.f32.mrb[92].mxu0  ;;  %v10803_v11 = vpop.f32.mrb[109].mxu1  ;;  %v4744_v20 = vsel %vm4701_vm1, %v4694_v61, -inf }
 0x9ce   : > { %v10797_v63 = vpop.f32.mrb[93].mxu0  ;;  %4745 = vmax.xlane.f32.xlu0 %v4744_v20  ;;  %v4697_v46 = vpop.f32.mrb[110].mxu1 }
 0x9cf   : > { %v14307_v30 = vpop.f32.mrb[94].mxu0  ;;  %v10804_v15 = vpop.f32.mrb[111].mxu1  ;;  %v4747_v52 = vsel %vm4701_vm1, %v4697_v46, -inf }
 0x9d0   : > { %v10798_v2 = vpop.f32.mrb[95].mxu0  ;;  %4748 = vmax.xlane.f32.xlu1 %v4747_v52 }
 0x9e4   : > { %5303 = vrot.lane.b32.xlu0 %v14153_v43, %s12284_s1 }
 0xa13   : > { %v4710_v53 = vpop.xlane.xlu0 %4709 }
 0xa14   : > { %v4752_v34 = vsub.f32 %v4412_v4, %v4710_v53 }
 0xa15   : > { %v4713_v41 = vpop.xlane.xlu1 %4712 }
 0xa16   : > { %v4770_v11 = vmul.f32 1.442695, %v4752_v34  ;;  %v4753_v13 = vsub.f32 %v4415_v3, %v4713_v41 }
 0xa18   : > { %11811 = vpow2.f32 %v4770_v11  ;;  %v4772_v63 = vmul.f32 1.442695, %v4753_v13 }
 0xa1a   : > { %11813 = vpow2.f32 %v4772_v63 }
 0xa22   : > { %v14312_v20 = vpop.eup %11811 }
 0xa23   : > { %v4804_v15 = vsel %vm4701_vm1, %v14312_v20, 0.0 }
 0xa24   : > { %v14316_v60 = vpop.eup %11813  ;;  %4805 = vadd.xlane.f32.xlu0 %v4804_v15 }
 0xa25   : > { %v4807_v2 = vsel %vm4701_vm1, %v14316_v60, 0.0 }
 0xa26   : > { %4808 = vadd.xlane.f32.xlu1 %v4807_v2 }
 0xa35   : > { %v4722_v52 = vpop.xlane.xlu0 %4721 }
 0xa36   : > { %v4756_v4 = vsub.f32 %v4506_v49, %v4722_v52 }
 0xa37   : > { %v4725_v53 = vpop.xlane.xlu1 %4724 }
 0xa38   : > { %v4778_v34 = vmul.f32 1.442695, %v4756_v4  ;;  %v4757_v3 = vsub.f32 %v4509_v10, %v4725_v53 }
 0xa3a   : > { %11815 = vpow2.f32 %v4778_v34  ;;  %v4780_v13 = vmul.f32 1.442695, %v4757_v3 }
 0xa3c   : > { %11817 = vpow2.f32 %v4780_v13 }
 0xa44   : > { %v14320_v41 = vpop.eup %11815 }
 0xa45   : > { %v4816_v11 = vsel %vm4701_vm1, %v14320_v41, 0.0  ;;  %v4734_v15 = vpop.xlane.xlu0 %4733 }
 0xa46   : > { %v14324_v63 = vpop.eup %11817  ;;  %4817 = vadd.xlane.f32.xlu0 %v4816_v11  ;;  %v4760_v19 = vsub.f32 %v4600_v40, %v4734_v15 }
 0xa47   : > { %v4819_v2 = vsel %vm4701_vm1, %v14324_v63, 0.0  ;;  %v4737_v49 = vpop.xlane.xlu1 %4736 }
 0xa48   : > { %4820 = vadd.xlane.f32.xlu1 %v4819_v2  ;;  %v4786_v52 = vmul.f32 1.442695, %v4760_v19  ;;  %v4761_v10 = vsub.f32 %v4603_v16, %v4737_v49 }
 0xa4a   : > { %11819 = vpow2.f32 %v4786_v52  ;;  %v4788_v4 = vmul.f32 1.442695, %v4761_v10 }
 0xa4c   : > { %11821 = vpow2.f32 %v4788_v4 }
 0xa54   : > { %v14328_v53 = vpop.eup %11819 }
 0xa55   : > { %v4828_v34 = vsel %vm4701_vm1, %v14328_v53, 0.0 }
 0xa56   : > { %v14332_v3 = vpop.eup %11821  ;;  %4829 = vadd.xlane.f32.xlu0 %v4828_v34 }
 0xa57   : > { %v4831_v40 = vsel %vm4701_vm1, %v14332_v3, 0.0 }
 0xa58   : > { %4832 = vadd.xlane.f32.xlu1 %v4831_v40 }
 0xa5b   : > { %v4746_v13 = vpop.xlane.xlu0 %4745 }
 0xa5c   : > { %v4764_v11 = vsub.f32 %v4694_v61, %v4746_v13 }
 0xa5d   : > { %v4749_v2 = vpop.xlane.xlu1 %4748 }
 0xa5e   : > { %v4794_v15 = vmul.f32 1.442695, %v4764_v11  ;;  %v4765_v49 = vsub.f32 %v4697_v46, %v4749_v2  ;;  %v4705_v46 = vsel %vm4701_vm1, %v14288_v62, -inf }
 0xa5f   : > { %v14358_v4 = vpop.permute.xlu0 %5303 }
 0xa60   : > { %11823 = vpow2.f32 %v4794_v15  ;;  %v4796_v52 = vmul.f32 1.442695, %v4765_v49  ;;  %v16377_v49 = vmov 0.0  }
 0xa62   : > { %11825 = vpow2.f32 %v4796_v52  ;;  %v4702_v52 = vsel %vm4701_vm1, %v14286_v55, -inf }
 0xa69   : > { %5300 = vrot.lane.b32.xlu1 %v14157_v27, %s12284_s1 }
 0xa6a   : > { %v14338_v19 = vpop.eup %11823 }
 0xa6b   : > { %v4840_v16 = vsel %vm4701_vm1, %v14338_v19, 0.0 }
 0xa6c   : > { %4841 = vadd.xlane.f32.xlu0 %v4840_v16  ;;  %v14346_v61 = vpop.eup %11825 }
 0xa6d   : > { %v4843_v10 = vsel %vm4701_vm1, %v14346_v61, 0.0 }
 0xa82   : > { %5515 = vrot.lane.b32.xlu0 %v14213_v0, %s12284_s1 }
 0xa86   : > { %5621 = vrot.lane.b32.xlu0 %v14243_v58, %s12284_s1 }
 0xa8d   : > { %4844 = vadd.xlane.f32.xlu1 %v4843_v10  ;;  %v4714_v10 = vsel %vm4701_vm1, %v14292_v45, -inf }
 0xa9e   : > { %5409 = vrot.lane.b32.xlu1 %v14183_v50, %s12284_s1 }
 0xaa2   : > { %5406 = vrot.lane.b32.xlu1 %v14187_v24, %s12284_s1 }
 0xaa5   : > { %4706 = vmax.xlane.f32.xlu0 %v4705_v46 }
 0xaa6   : > { %5512 = vrot.lane.b32.xlu1 %v14217_v17, %s12284_s1 }
 0xab1   : > { %v4806_v34 = vpop.xlane.xlu0 %4805 }
 0xab2   : > { %11827 = vrcp.f32 %v4806_v34  ;;  %v4726_v34 = vsel %vm4701_vm1, %v14298_v9, -inf }
 0xab3   : > { %v4809_v40 = vpop.xlane.xlu1 %4808 }
 0xab4   : > { %11829 = vrcp.f32 %v4809_v40  ;;  %v4729_v40 = vsel %vm4701_vm1, %v14301_v21, -inf }
 0xabb   : > { %5618 = vrot.lane.b32.xlu0 %v14247_v33, %s12284_s1 }
 0xabc   : > { %v11828_v13 = vpop.eup %11827 }
 0xabd   : > { %v4864_v15 = vmul.f32 %v11828_v13, %v14312_v20  ;;  %v4741_v13 = vsel %vm4701_vm1, %v14307_v30, -inf }
 0xabe   : > { %v11830_v11 = vpop.eup %11829 }
 0xabf   : > { %v4865_v16 = vmul.f32 %v11830_v11, %v14316_v60  ;;  %v4717_v60 = vsel %vm4701_vm1, %v14294_v8, -inf }
 0xac1   : > { %v4879_v2 = vpack.c.bf16 %v4865_v16, %v4864_v15  ;;  %v4738_v15 = vsel %vm4701_vm1, %v14304_v57, -inf }
 0xac3   : > { %10814 = vmatmul.mubr.msk.bf16.vlgmr.msra.gmra.mrb[112].mxu1 %vm4701_vm1, %v4879_v2 }
 0xac4   : > { %10824 = vmatpush3.bf16.msra.mxu1 %v14274_v48  ;;  %10825 = vmatprep.mubr.msk.bf16.mxu1 %vm12283_vm14, %v16377_v49 }
 0xac5   : > { %10835 = vmatprep.subr.bf16.mxu1 %v16377_v49 }
 0xaca   : > { %4703 = vmax.xlane.f32.xlu1 %v4702_v52 }
 0xace   : > { %4715 = vmax.xlane.f32.xlu1 %v4714_v10 }
 0xad2   : > { %4718 = vmax.xlane.f32.xlu1 %v4717_v60 }
 0xad3   : > { %v4818_v20 = vpop.xlane.xlu0 %4817 }
 0xad4   : > { %11831 = vrcp.f32 %v4818_v20 }
 0xad5   : > { %v4821_v46 = vpop.xlane.xlu1 %4820 }
 0xad6   : > { %11833 = vrcp.f32 %v4821_v46  ;;  %4727 = vmax.xlane.f32.xlu1 %v4726_v34 }
 0xada   : > { %4730 = vmax.xlane.f32.xlu1 %v4729_v40  ;;  %4742 = vmax.xlane.f32.xlu0 %v4741_v13 }
 0xade   : > { %v11832_v11 = vpop.eup %11831  ;;  %4739 = vmax.xlane.f32.xlu1 %v4738_v15 }
 0xadf   : > { %v4868_v2 = vmul.f32 %v11832_v11, %v14320_v41 }
 0xae0   : > { %v11834_v16 = vpop.eup %11833 }
 0xae1   : > { %v4869_v52 = vmul.f32 %v11834_v16, %v14324_v63 }
 0xae3   : > { %v4881_v10 = vpack.c.bf16 %v4869_v52, %v4868_v2  ;;  %v4830_v60 = vpop.xlane.xlu0 %4829 }
 0xae4   : > { %11835 = vrcp.f32 %v4830_v60 }
 0xae5   : > { %10826 = vmatmul.mubr.msk.bf16.vlgmr.msra.gmra.mrb[116].mxu1 %vm4701_vm1, %v4881_v10  ;;  %v4833_v20 = vpop.xlane.xlu1 %4832  ;;  %v5309_v10 = vsel %vm4324_vm15, %v14358_v4, 0 }
 0xae6   : > { %10836 = vmatpush3.bf16.msra.mxu1 %v14278_v37  ;;  %10837 = vmatprep.mubr.msk.bf16.mxu1 %vm12283_vm14, %v16377_v49  ;;  %11837 = vrcp.f32 %v4833_v20 }
 0xae7   : > { %10847 = vmatprep.subr.bf16.mxu1 %v16377_v49 }
 0xaee   : > { %v11836_v46 = vpop.eup %11835 }
 0xaef   : > { %v4872_v41 = vmul.f32 %v11836_v46, %v14328_v53  ;;  %v5301_v53 = vpop.permute.xlu1 %5300 }
 0xaf0   : > { %v11838_v34 = vpop.eup %11837  ;;  %5250 = vrot.lane.b32.xlu0 %v14155_v5, %s12284_s1 }
 0xaf1   : > { %v4873_v63 = vmul.f32 %v11838_v34, %v14332_v3 }
 0xaf3   : > { %v4883_v40 = vpack.c.bf16 %v4873_v63, %v4872_v41 }
 0xaf4   : > { %5353 = vrot.lane.b32.xlu0 %v14189_v39, %s12284_s1 }
 0xaf5   : > { %10838 = vmatmul.mubr.msk.bf16.vlgmr.msra.gmra.mrb[120].mxu1 %vm4701_vm1, %v4883_v40 }
 0xaf6   : > { %10848 = vmatpush3.bf16.msra.mxu1 %v14282_v47  ;;  %10849 = vmatprep.mubr.msk.bf16.mxu1 %vm12283_vm14, %v16377_v49 }
 0xaf7   : > { %10859 = vmatprep.subr.bf16.mxu1 %v16377_v49 }
 0xaf8   : > { %5459 = vrot.lane.b32.xlu0 %v14221_v59, %s12284_s1 }
 0xaf9   : > { %v4842_v3 = vpop.xlane.xlu0 %4841 }
 0xafa   : > { %11839 = vrcp.f32 %v4842_v3 }
 0xafc   : > { %5565 = vrot.lane.b32.xlu0 %v14251_v22, %s12284_s1 }
 0xb00   : > { %5903 = vrot.lane.b32.xlu0 %v14258_v54, %s12284_s1 }
 0xb04   : > { %6191 = vrot.lane.b32.xlu0 %v14282_v47, %s12284_s1  ;;  %v11840_v11 = vpop.eup %11839 }
 0xb05   : > { %v4876_v16 = vmul.f32 %v11840_v11, %v14338_v19  ;;  %v5516_v19 = vpop.permute.xlu0 %5515 }
 0xb06   : > { %v5521_v4 = vsel %vm4324_vm15, %v5516_v19, 0 }
 0xb08   : > { %6495 = vrot.lane.b32.xlu0 %v14159_v18, %s12285_s3 }
 0xb09   : > { %v5622_v46 = vpop.permute.xlu0 %5621 }
 0xb0a   : > { %v5627_v41 = vsel %vm4324_vm15, %v5622_v46, 0 }
 0xb0c   : > { %6546 = vrot.lane.b32.xlu0 %v14157_v27, %s12285_s3 }
 0xb10   : > { %6597 = vrot.lane.b32.xlu0 %v14189_v39, %s12285_s3 }
 0xb1a   : > { %v4845_v13 = vpop.xlane.xlu1 %4844 }
 0xb1b   : > { %11841 = vrcp.f32 %v4845_v13 }
 0xb1e   : > { %v5410_v60 = vpop.permute.xlu1 %5409 }
 0xb1f   : > { %v5415_v20 = vsel %vm4324_vm15, %v5410_v60, 0 }
 0xb25   : > { %v11842_v15 = vpop.eup %11841 }
 0xb26   : > { %v4877_v2 = vmul.f32 %v11842_v15, %v14346_v61  ;;  %v5407_v61 = vpop.permute.xlu1 %5406 }
 0xb28   : > { %v4885_v52 = vpack.c.bf16 %v4877_v2, %v4876_v16 }
 0xb2a   : > { %10850 = vmatmul.mubr.msk.bf16.vlgmr.msra.gmra.mrb[124].mxu1 %vm4701_vm1, %v4885_v52  ;;  %v5513_v34 = vpop.permute.xlu1 %5512 }
 0xb2b   : > { %10860 = vmatpush3.bf16.xpose.msra.mxu1 %v5309_v10  ;;  %10861 = vmatprep.mubr.msk.bf16.mxu1 %vm12283_vm14, %v16377_v49 }
 0xb2c   : > { %10871 = vmatprep.subr.bf16.mxu1 %v16377_v49 }
 0xb32   : > { %10862 = vmatmul.mubr.msk.bf16.vlgmr.msra.gmra.mrb[128].mxu1 %vm4324_vm15, %v5301_v53  ;;  %v4707_v63 = vpop.xlane.xlu0 %4706 }
 0xb33   : > { %10872 = vmatpush3.bf16.xpose.msra.mxu1 %v5415_v20  ;;  %10873 = vmatprep.mubr.msk.bf16.mxu1 %vm12283_vm14, %v16377_v49  ;;  %v4751_v53 = vsub.f32 %v14288_v62, %v4707_v63 }
 0xb34   : > { %10883 = vmatprep.subr.bf16.mxu1 %v16377_v49 }
 0xb35   : > { %v4768_v11 = vmul.f32 1.442695, %v4751_v53 }
 0xb36   : > { %v5619_v40 = vpop.permute.xlu0 %5618 }
 0xb3a   : > { %10874 = vmatmul.mubr.msk.bf16.vlgmr.msra.gmra.mrb[132].mxu1 %vm4324_vm15, %v5407_v61 }
 0xb3b   : > { %10884 = vmatpush3.bf16.xpose.msra.mxu1 %v5521_v4  ;;  %10885 = vmatprep.mubr.msk.bf16.mxu1 %vm12283_vm14, %v16377_v49 }
 0xb3c   : > { %10895 = vmatprep.subr.bf16.mxu1 %v16377_v49 }
 0xb42   : > { %10886 = vmatmul.mubr.msk.bf16.vlgmr.msra.gmra.mrb[136].mxu1 %vm4324_vm15, %v5513_v34 }
 0xb43   : > { %10896 = vmatpush3.bf16.xpose.msra.mxu1 %v5627_v41  ;;  %10897 = vmatprep.mubr.msk.bf16.mxu1 %vm12283_vm14, %v16377_v49 }
 0xb44   : > { %10907 = vmatprep.subr.bf16.mxu1 %v16377_v49 }
 0xb4a   : > { %10898 = vmatmul.mubr.msk.bf16.vlgmr.msra.gmra.mrb[140].mxu1 %vm4324_vm15, %v5619_v40 }
 0xb4b   : > { %10909 = vmatprep.mubr.msk.bf16.mxu1 %vm12283_vm14, %v16377_v49 }
 0xb57   : > { %v4704_v3 = vpop.xlane.xlu1 %4703 }
 0xb58   : > { %v4750_v13 = vsub.f32 %v14286_v55, %v4704_v3 }
 0xb5a   : > { %v4766_v15 = vmul.f32 1.442695, %v4750_v13 }
 0xb5b   : > { %v4716_v16 = vpop.xlane.xlu1 %4715 }
 0xb5c   : > { %11843 = vpow2.f32 %v4766_v15  ;;  %v4754_v2 = vsub.f32 %v14292_v45, %v4716_v16 }
 0xb5d   : > { %11845 = vpow2.f32 %v4768_v11 }
 0xb5e   : > { %v4774_v52 = vmul.f32 1.442695, %v4754_v2 }
 0xb5f   : > { %v4719_v10 = vpop.xlane.xlu1 %4718 }
 0xb60   : > { %v4755_v60 = vsub.f32 %v14294_v8, %v4719_v10  ;;  %11847 = vpow2.f32 %v4774_v52 }
 0xb62   : > { %v4776_v20 = vmul.f32 1.442695, %v4755_v60 }
 0xb63   : > { %v4728_v19 = vpop.xlane.xlu1 %4727 }
 0xb64   : > { %v4758_v61 = vsub.f32 %v14298_v9, %v4728_v19  ;;  %11849 = vpow2.f32 %v4776_v20 }
 0xb66   : > { %v14446_v62 = vpop.eup %11843  ;;  %v4782_v55 = vmul.f32 1.442695, %v4758_v61 }
 0xb67   : > { %v4731_v4 = vpop.xlane.xlu1 %4730  ;;  %v4798_v46 = vsel %vm4701_vm1, %v14446_v62, 0.0  ;;  %v14450_v34 = vpop.eup %11845 }
 0xb68   : > { %v4759_v45 = vsub.f32 %v14301_v21, %v4731_v4  ;;  %4799 = vadd.xlane.f32.xlu1 %v4798_v46  ;;  %v4743_v41 = vpop.xlane.xlu0 %4742  ;;  %11851 = vpow2.f32 %v4782_v55  ;;  %v4801_v9 = vsel %vm4701_vm1, %v14450_v34, 0.0 }
 0xb69   : > { %v4763_v13 = vsub.f32 %v14307_v30, %v4743_v41 }
 0xb6a   : > { %v4784_v8 = vmul.f32 1.442695, %v4759_v45  ;;  %v14455_v40 = vpop.eup %11847 }
 0xb6b   : > { %v4740_v63 = vpop.xlane.xlu1 %4739  ;;  %v4810_v21 = vsel %vm4701_vm1, %v14455_v40, 0.0  ;;  %v4792_v2 = vmul.f32 1.442695, %v4763_v13 }
 0xb6c   : > { %v4762_v53 = vsub.f32 %v14304_v57, %v4740_v63  ;;  %4802 = vadd.xlane.f32.xlu1 %v4801_v9  ;;  %v14458_v3 = vpop.permute.xlu0 %5250  ;;  %11853 = vpow2.f32 %v4784_v8 }
 0xb6e   : > { %v4790_v11 = vmul.f32 1.442695, %v4762_v53  ;;  %v14463_v15 = vpop.eup %11849 }
 0xb6f   : > { %v4813_v57 = vsel %vm4701_vm1, %v14463_v15, 0.0 }
 0xb70   : > { %4811 = vadd.xlane.f32.xlu1 %v4810_v21  ;;  %v14465_v16 = vpop.permute.xlu0 %5353  ;;  %11855 = vpow2.f32 %v4790_v11 }
 0xb71   : > { %11857 = vpow2.f32 %v4792_v2 }
 0xb72   : > { %v14469_v52 = vpop.eup %11851 }
 0xb73   : > { %v4822_v30 = vsel %vm4701_vm1, %v14469_v52, 0.0 }
 0xb74   : > { %4814 = vadd.xlane.f32.xlu1 %v4813_v57  ;;  %v14471_v10 = vpop.permute.xlu0 %5459 }
 0xb76   : > { %v14475_v60 = vpop.eup %11853 }
 0xb77   : > { %v4825_v19 = vsel %vm4701_vm1, %v14475_v60, 0.0 }
 0xb78   : > { %4823 = vadd.xlane.f32.xlu1 %v4822_v30  ;;  %v14477_v20 = vpop.permute.xlu0 %5565 }
 0xb7a   : > { %v14481_v61 = vpop.eup %11855 }
 0xb7b   : > { %v4834_v4 = vsel %vm4701_vm1, %v14481_v61, 0.0  ;;  %v14486_v46 = vpop.eup %11857 }
 0xb7c   : > { %4826 = vadd.xlane.f32.xlu1 %v4825_v19  ;;  %v5904_v55 = vpop.permute.xlu0 %5903  ;;  %v4837_v45 = vsel %vm4701_vm1, %v14486_v46, 0.0 }
 0xb7d   : > { %10908 = vmatpush3.bf16.msra.mxu1 %v5904_v55 }
 0xb7e   : > { %10919 = vmatprep.subr.bf16.mxu1 %v16377_v49 }
 0xb80   : > { %4835 = vadd.xlane.f32.xlu1 %v4834_v4 }
 0xb84   : > { %4838 = vadd.xlane.f32.xlu1 %v4837_v45 }
 0xb95   : > { %5247 = vrot.lane.b32.xlu1 %v14159_v18, %s12284_s1 }
 0xb96   : > { %v14492_v41 = vpop.f32.mrb[112].mxu1 }
 0xb97   : > { %v10815_v8 = vpop.f32.mrb[113].mxu1 }
 0xb98   : > { %v14496_v63 = vpop.f32.mrb[114].mxu1 }
 0xb99   : > { %5356 = vrot.lane.b32.xlu1 %v14185_v31, %s12284_s1  ;;  %v10816_v53 = vpop.f32.mrb[115].mxu1 }
 0xb9d   : > { %5462 = vrot.lane.b32.xlu1 %v14215_v26, %s12284_s1 }
 0xba1   : > { %5568 = vrot.lane.b32.xlu1 %v14245_v12, %s12284_s1 }
 0xba5   : > { %5999 = vrot.lane.b32.xlu1 %v14274_v48, %s12284_s1 }
 0xba9   : > { %6095 = vrot.lane.b32.xlu1 %v14278_v37, %s12284_s1 }
 0xbad   : > { %6497 = vrot.lane.b32.xlu1 %v14155_v5, %s12285_s3 }
 0xbb1   : > { %6548 = vrot.lane.b32.xlu1 %v14153_v43, %s12285_s3 }
 0xbb5   : > { %6599 = vrot.lane.b32.xlu1 %v14185_v31, %s12285_s3 }
 0xbb8   : > { %v14514_v13 = vpop.f32.mrb[116].mxu1 }
 0xbb9   : > { %16378 = vst [vmem:[#allocation68_spill] sm:$0xff] %v14514_v13  ;;  %v10827_v11 = vpop.f32.mrb[117].mxu1  ;;  %6650 = vrot.lane.b32.xlu1 %v14183_v50, %s12285_s3 }
 0xbba   : > { %v14518_v21 = vpop.f32.mrb[118].mxu1 }
 0xbbb   : > { %16379 = vst [vmem:[#allocation69_spill] sm:$0xff] %v14518_v21  ;;  %v10828_v57 = vpop.f32.mrb[119].mxu1 }
 0xbc8   : > { %v14522_v30 = vpop.f32.mrb[120].mxu1 }
 0xbc9   : > { %16380 = vst [vmem:[#allocation70_spill] sm:$0xff] %v14522_v30  ;;  %v10839_v19 = vpop.f32.mrb[121].mxu1 }
 0xbca   : > { %v14524_v55 = vpop.f32.mrb[122].mxu1 }
 0xbcb   : > { %16381 = vst [vmem:[#allocation71_spill] sm:$0xff] %v14524_v55  ;;  %v10840_v45 = vpop.f32.mrb[123].mxu1 }
 0xbf5   : > { %v4800_v8 = vpop.xlane.xlu1 %4799 }
 0xbf6   : > { %11859 = vrcp.f32 %v4800_v8 }
 0xbf9   : > { %v4803_v53 = vpop.xlane.xlu1 %4802 }
 0xbfa   : > { %11861 = vrcp.f32 %v4803_v53 }
 0xbfd   : > { %v14528_v11 = vpop.f32.mrb[124].mxu1  ;;  %v4812_v9 = vpop.xlane.xlu1 %4811 }
 0xbfe   : > { %16382 = vst [vmem:[#allocation72_spill] sm:$0xff] %v14528_v11  ;;  %v10851_v23 = vpop.f32.mrb[125].mxu1  ;;  %11863 = vrcp.f32 %v4812_v9 }
 0xbff   : > { %v14530_v32 = vpop.f32.mrb[126].mxu1 }
 0xc00   : > { %16383 = vst [vmem:[#allocation73_spill] sm:$0xff] %v14530_v32  ;;  %v10852_v19 = vpop.f32.mrb[127].mxu1  ;;  %v11860_v56 = vpop.eup %11859 }
 0xc01   : > { %v4815_v2 = vpop.xlane.xlu1 %4814  ;;  %v4862_v45 = vmul.f32 %v11860_v56, %v14446_v62 }
 0xc02   : > { %11865 = vrcp.f32 %v4815_v2 }
 0xc04   : > { %v11862_v4 = vpop.eup %11861 }
 0xc05   : > { %v4863_v8 = vmul.f32 %v11862_v4, %v14450_v34  ;;  %v14536_v53 = vpop.f32.mrb[128].mxu1  ;;  %v4824_v35 = vpop.xlane.xlu1 %4823 }
 0xc06   : > { %v10863_v1 = vpop.f32.mrb[129].mxu1  ;;  %11867 = vrcp.f32 %v4824_v35 }
 0xc07   : > { %v14538_v23 = vpop.f32.mrb[130].mxu1  ;;  %v4878_v6 = vpack.c.bf16 %v4863_v8, %v4862_v45 }
 0xc08   : > { %v10864_v9 = vpop.f32.mrb[131].mxu1  ;;  %v11864_v57 = vpop.eup %11863 }
 0xc09   : > { %10808 = vmatmul.mubr.msk.bf16.vlgmr.msra.gmra.mrb[96].mxu0 %vm4701_vm1, %v4878_v6  ;;  %v4827_v19 = vpop.xlane.xlu1 %4826  ;;  %v4866_v1 = vmul.f32 %v11864_v57, %v14455_v40 }
 0xc0a   : > { %10818 = vmatpush3.bf16.msra.mxu0 %v14276_v38  ;;  %11869 = vrcp.f32 %v4827_v19  ;;  %10819 = vmatprep.mubr.msk.bf16.mxu0 %vm12283_vm14, %v16377_v49 }
 0xc0b   : > { %10829 = vmatprep.subr.bf16.mxu0 %v16377_v49 }
 0xc0c   : > { %v11866_v56 = vpop.eup %11865 }
 0xc0d   : > { %v4867_v62 = vmul.f32 %v11866_v56, %v14463_v15  ;;  %v14547_v34 = vpop.f32.mrb[132].mxu1  ;;  %v4836_v35 = vpop.xlane.xlu1 %4835 }
 0xc0e   : > { %v10875_v2 = vpop.f32.mrb[133].mxu1  ;;  %11871 = vrcp.f32 %v4836_v35 }
 0xc0f   : > { %v14549_v6 = vpop.f32.mrb[134].mxu1  ;;  %v4880_v4 = vpack.c.bf16 %v4867_v62, %v4866_v1 }
 0xc10   : > { %v10876_v45 = vpop.f32.mrb[135].mxu1  ;;  %v11868_v9 = vpop.eup %11867 }
 0xc11   : > { %10820 = vmatmul.mubr.msk.bf16.vlgmr.msra.gmra.mrb[100].mxu0 %vm4701_vm1, %v4880_v4  ;;  %v4839_v8 = vpop.xlane.xlu1 %4838  ;;  %v4870_v15 = vmul.f32 %v11868_v9, %v14469_v52 }
 0xc12   : > { %10830 = vmatpush3.bf16.msra.mxu0 %v14280_v7  ;;  %11873 = vrcp.f32 %v4839_v8  ;;  %10831 = vmatprep.mubr.msk.bf16.mxu0 %vm12283_vm14, %v16377_v49 }
 0xc13   : > { %10841 = vmatprep.subr.bf16.mxu0 %v16377_v49 }
 0xc14   : > { %v11870_v40 = vpop.eup %11869 }
 0xc15   : > { %v4871_v57 = vmul.f32 %v11870_v40, %v14475_v60  ;;  %v14558_v19 = vpop.f32.mrb[136].mxu1 }
 0xc16   : > { %v10887_v56 = vpop.f32.mrb[137].mxu1 }
 0xc17   : > { %v14560_v1 = vpop.f32.mrb[138].mxu1  ;;  %v4882_v62 = vpack.c.bf16 %v4871_v57, %v4870_v15  ;;  %v5248_v57 = vpop.permute.xlu1 %5247  ;;  %v5256_v56 = vsel %vm4324_vm15, %v14458_v3, 0 }
 0xc18   : > { %v10888_v35 = vpop.f32.mrb[139].mxu1  ;;  %v11872_v2 = vpop.eup %11871 }
 0xc19   : > { %10832 = vmatmul.mubr.msk.bf16.vlgmr.msra.gmra.mrb[104].mxu0 %vm4701_vm1, %v4882_v62  ;;  %v4874_v60 = vmul.f32 %v11872_v2, %v14481_v61 }
 0xc1a   : > { %10842 = vmatpush3.bf16.msra.mxu0 %v14284_v42  ;;  %10843 = vmatprep.mubr.msk.bf16.mxu0 %vm12283_vm14, %v16377_v49 }
 0xc1b   : > { %10853 = vmatprep.subr.bf16.mxu0 %v16377_v49  ;;  %v5357_v61 = vpop.permute.xlu1 %5356 }
 0xc1c   : > { %v11874_v52 = vpop.eup %11873 }
 0xc1d   : > { %v4875_v4 = vmul.f32 %v11874_v52, %v14486_v46  ;;  %v14569_v45 = vpop.f32.mrb[140].mxu1  ;;  %v5362_v46 = vsel %vm4324_vm15, %v5357_v61, 0 }
 0xc1e   : > { %v10899_v8 = vpop.f32.mrb[141].mxu1 }
 0xc1f   : > { %v14571_v9 = vpop.f32.mrb[142].mxu1  ;;  %v4884_v40 = vpack.c.bf16 %v4875_v4, %v4874_v60  ;;  %v5463_v62 = vpop.permute.xlu1 %5462 }
 0xc20   : > { %v10900_v15 = vpop.f32.mrb[143].mxu1  ;;  %v5468_v3 = vsel %vm4324_vm15, %v5463_v62, 0 }
 0xc21   : > { %10844 = vmatmul.mubr.msk.bf16.vlgmr.msra.gmra.mrb[108].mxu0 %vm4701_vm1, %v4884_v40 }
 0xc22   : > { %10855 = vmatprep.mubr.msk.bf16.mxu0 %vm12283_vm14, %v16377_v49 }
 0xc23   : > { %10854 = vmatpush3.bf16.xpose.msra.mxu0 %v5256_v56  ;;  %v5569_v35 = vpop.permute.xlu1 %5568 }
 0xc24   : > { %10865 = vmatprep.subr.bf16.mxu0 %v16377_v49  ;;  %v5574_v2 = vsel %vm4324_vm15, %v5569_v35, 0 }
 0xc2a   : > { %10856 = vmatmul.mubr.msk.bf16.vlgmr.msra.gmra.mrb[112].mxu0 %vm4324_vm15, %v5248_v57 }
 0xc2b   : > { %10866 = vmatpush3.bf16.xpose.msra.mxu0 %v5362_v46  ;;  %10867 = vmatprep.mubr.msk.bf16.mxu0 %vm12283_vm14, %v16377_v49 }
 0xc2c   : > { %10877 = vmatprep.subr.bf16.mxu0 %v16377_v49 }
 0xc32   : > { %10868 = vmatmul.mubr.msk.bf16.vlgmr.msra.gmra.mrb[116].mxu0 %vm4324_vm15, %v14465_v16 }
 0xc33   : > { %10878 = vmatpush3.bf16.xpose.msra.mxu0 %v5468_v3  ;;  %10879 = vmatprep.mubr.msk.bf16.mxu0 %vm12283_vm14, %v16377_v49 }
 0xc34   : > { %10889 = vmatprep.subr.bf16.mxu0 %v16377_v49 }
 0xc3a   : > { %10880 = vmatmul.mubr.msk.bf16.vlgmr.msra.gmra.mrb[120].mxu0 %vm4324_vm15, %v14471_v10 }
 0xc3b   : > { %10890 = vmatpush3.bf16.xpose.msra.mxu0 %v5574_v2  ;;  %10891 = vmatprep.mubr.msk.bf16.mxu0 %vm12283_vm14, %v16377_v49 }
 0xc3c   : > { %10901 = vmatprep.subr.bf16.mxu0 %v16377_v49 }
 0xc42   : > { %10892 = vmatmul.mubr.msk.bf16.vlgmr.msra.gmra.mrb[124].mxu0 %vm4324_vm15, %v14477_v20 }
 0xc43   : > { %10903 = vmatprep.mubr.msk.bf16.mxu0 %vm12283_vm14, %v16377_v49 }
 0xcdc   : > { %v14600_v16 = vpop.f32.mrb[96].mxu0 }
 0xcdd   : > { %v10809_v52 = vpop.f32.mrb[97].mxu0 }
 0xcde   : > { %v14602_v60 = vpop.f32.mrb[98].mxu0 }
 0xcdf   : > { %v10810_v4 = vpop.f32.mrb[99].mxu0 }
 0xce4   : > { %v14606_v8 = vpop.f32.mrb[100].mxu0 }
 0xce5   : > { %v10821_v40 = vpop.f32.mrb[101].mxu0 }
 0xce6   : > { %v14608_v15 = vpop.f32.mrb[102].mxu0 }
 0xce7   : > { %v10822_v57 = vpop.f32.mrb[103].mxu0 }
 0xcec   : > { %v14612_v56 = vpop.f32.mrb[104].mxu0 }
 0xced   : > { %16384 = vst [vmem:[#allocation74_spill] sm:$0xff] %v14612_v56  ;;  %v10833_v61 = vpop.f32.mrb[105].mxu0 }
 0xcee   : > { %v14614_v46 = vpop.f32.mrb[106].mxu0 }
 0xcef   : > { %16385 = vst [vmem:[#allocation75_spill] sm:$0xff] %v14614_v46  ;;  %v10834_v3 = vpop.f32.mrb[107].mxu0 }
 0xcf4   : > { %v14618_v35 = vpop.f32.mrb[108].mxu0 }
 0xcf5   : > { %16386 = vst [vmem:[#allocation76_spill] sm:$0xff] %v14618_v35  ;;  %v10845_v2 = vpop.f32.mrb[109].mxu0 }
 0xcf6   : > { %v14620_v52 = vpop.f32.mrb[110].mxu0  ;;  %v5679_v2 = vsel %vm4701_vm1, %v14538_v23, -inf }
 0xcf7   : > { %16387 = vst [vmem:[#allocation77_spill] sm:$0xff] %v14620_v52  ;;  %v10846_v40 = vpop.f32.mrb[111].mxu0 }
 0xcf8   : > { %v5676_v40 = vsel %vm4701_vm1, %v14536_v53, -inf }
 0xcfd   : > { %v14624_v20 = vpop.f32.mrb[112].mxu0 }
 0xcfe   : > { %v10857_v57 = vpop.f32.mrb[113].mxu0  ;;  %v5670_v61 = vsel %vm4701_vm1, %v14624_v20, -inf }
 0xcff   : > { %5671 = vmax.xlane.f32.xlu0 %v5670_v61  ;;  %v14628_v10 = vpop.f32.mrb[114].mxu0  ;;  %v5688_v61 = vsel %vm4701_vm1, %v14547_v34, -inf }
 0xd00   : > { %v10858_v62 = vpop.f32.mrb[115].mxu0  ;;  %v5673_v3 = vsel %vm4701_vm1, %v14628_v10, -inf }
 0xd01   : > { %5674 = vmax.xlane.f32.xlu1 %v5673_v3  ;;  %v5691_v3 = vsel %vm4701_vm1, %v14549_v6, -inf }
 0xd03   : > { %5680 = vmax.xlane.f32.xlu0 %v5679_v2  ;;  %v5700_v2 = vsel %vm4701_vm1, %v14558_v19, -inf }
 0xd05   : > { %5677 = vmax.xlane.f32.xlu1 %v5676_v40  ;;  %v14636_v57 = vpop.f32.mrb[116].mxu0  ;;  %v5703_v40 = vsel %vm4701_vm1, %v14560_v1, -inf }
 0xd06   : > { %v10869_v4 = vpop.f32.mrb[117].mxu0 }
 0xd07   : > { %5689 = vmax.xlane.f32.xlu0 %v5688_v61  ;;  %v14640_v62 = vpop.f32.mrb[118].mxu0  ;;  %v5712_v61 = vsel %vm4701_vm1, %v14569_v45, -inf }
 0xd08   : > { %v10870_v36 = vpop.f32.mrb[119].mxu0 }
 0xd09   : > { %5692 = vmax.xlane.f32.xlu1 %v5691_v3  ;;  %v5715_v3 = vsel %vm4701_vm1, %v14571_v9, -inf }
 0xd0b   : > { %5701 = vmax.xlane.f32.xlu0 %v5700_v2 }
 0xd0d   : > { %5704 = vmax.xlane.f32.xlu1 %v5703_v40  ;;  %v14648_v4 = vpop.f32.mrb[120].mxu0 }
 0xd0e   : > { %v10881_v51 = vpop.f32.mrb[121].mxu0 }
 0xd0f   : > { %5713 = vmax.xlane.f32.xlu0 %v5712_v61  ;;  %v14652_v36 = vpop.f32.mrb[122].mxu0  ;;  %v5682_v51 = vsel %vm4701_vm1, %v14636_v57, -inf  ;;  %v14668_v61 = vpop.permute.xlu1 %5999 }
 0xd10   : > { %v10882_v25 = vpop.f32.mrb[123].mxu0 }
 0xd11   : > { %5716 = vmax.xlane.f32.xlu1 %v5715_v3  ;;  %v5685_v25 = vsel %vm4701_vm1, %v14640_v62, -inf }
 0xd13   : > { %v14670_v3 = vpop.permute.xlu1 %6095 }
 0xd15   : > { %v14656_v44 = vpop.f32.mrb[124].mxu0 }
 0xd16   : > { %v10893_v2 = vpop.f32.mrb[125].mxu0 }
 0xd17   : > { %v14658_v29 = vpop.f32.mrb[126].mxu0  ;;  %v14672_v2 = vpop.permute.xlu0 %6191 }
 0xd18   : > { %v10894_v40 = vpop.f32.mrb[127].mxu0 }
 0xd19   : > { %v14674_v40 = vpop.permute.xlu1 %6497 }
 0xd1b   : > { %v14676_v28 = vpop.permute.xlu0 %6495 }
 0xd1d   : > { %v14678_v11 = vpop.permute.xlu1 %6548 }
 0xd1f   : > { %v14680_v32 = vpop.permute.xlu0 %6546 }
 0xd22   : > { %6701 = vrot.lane.b32.xlu1 %v14215_v26, %s12285_s3 }
 0xd25   : > { %6648 = vrot.lane.b32.xlu0 %v14187_v24, %s12285_s3  ;;  %v14682_v24 = vpop.permute.xlu1 %6599 }
 0xd29   : > { %v14686_v26 = vpop.permute.xlu1 %6650 }
 0xd44   : > { %5683 = vmax.xlane.f32.xlu0 %v5682_v51  ;;  %v14684_v51 = vpop.permute.xlu0 %6597 }
 0xd46   : > { %5686 = vmax.xlane.f32.xlu1 %v5685_v25 }
 0xd8c   : > { %v14688_v25 = vpop.xlane.xlu0 %5671 }
 0xd8e   : > { %v14690_v50 = vpop.xlane.xlu1 %5674 }
 0xd90   : > { %v5681_v39 = vpop.xlane.xlu0 %5680 }
 0xd91   : > { %v5721_v35 = vsub.f32 %v14538_v23, %v5681_v39 }
 0xd92   : > { %v5678_v52 = vpop.xlane.xlu1 %5677 }
 0xd93   : > { %v5740_v30 = vmul.f32 1.442695, %v5721_v35  ;;  %v5720_v55 = vsub.f32 %v14536_v53, %v5678_v52 }
 0xd94   : > { %v5690_v31 = vpop.xlane.xlu0 %5689 }
 0xd95   : > { %11875 = vpow2.f32 %v5740_v30  ;;  %v5738_v27 = vmul.f32 1.442695, %v5720_v55  ;;  %v5724_v43 = vsub.f32 %v14547_v34, %v5690_v31 }
 0xd96   : > { %v5693_v18 = vpop.xlane.xlu1 %5692 }
 0xd97   : > { %11877 = vpow2.f32 %v5738_v27  ;;  %v5746_v56 = vmul.f32 1.442695, %v5724_v43  ;;  %v5725_v46 = vsub.f32 %v14549_v6, %v5693_v18 }
 0xd98   : > { %v5702_v13 = vpop.xlane.xlu0 %5701 }
 0xd99   : > { %11879 = vpow2.f32 %v5746_v56  ;;  %v5748_v21 = vmul.f32 1.442695, %v5725_v46  ;;  %v5728_v5 = vsub.f32 %v14558_v19, %v5702_v13 }
 0xd9a   : > { %v5705_v53 = vpop.xlane.xlu1 %5704 }
 0xd9b   : > { %11881 = vpow2.f32 %v5748_v21  ;;  %v5754_v39 = vmul.f32 1.442695, %v5728_v5  ;;  %v5729_v34 = vsub.f32 %v14560_v1, %v5705_v53  ;;  %v5706_v53 = vsel %vm4701_vm1, %v14656_v44, -inf }
 0xd9c   : > { %v5714_v6 = vpop.xlane.xlu0 %5713 }
 0xd9d   : > { %11883 = vpow2.f32 %v5754_v39  ;;  %v5756_v19 = vmul.f32 1.442695, %v5729_v34  ;;  %v5732_v56 = vsub.f32 %v14569_v45, %v5714_v6  ;;  %v5697_v45 = vsel %vm4701_vm1, %v14652_v36, -inf }
 0xd9e   : > { %v5717_v46 = vpop.xlane.xlu1 %5716  ;;  %v5709_v34 = vsel %vm4701_vm1, %v14658_v29, -inf }
 0xd9f   : > { %v14697_v23 = vpop.eup %11875  ;;  %11885 = vpow2.f32 %v5756_v19  ;;  %v5762_v35 = vmul.f32 1.442695, %v5732_v56  ;;  %v5733_v52 = vsub.f32 %v14571_v9, %v5717_v46  ;;  %v5694_v9 = vsel %vm4701_vm1, %v14648_v4, -inf }
 0xda0   : > { %v5775_v30 = vsel %vm4701_vm1, %v14697_v23, 0.0  ;;  %v14750_v19 = vpop.permute.xlu0 %6648 }
 0xda1   : > { %v14701_v55 = vpop.eup %11877  ;;  %5776 = vadd.xlane.f32.xlu1 %v5775_v30  ;;  %11887 = vpow2.f32 %v5762_v35  ;;  %v5764_v39 = vmul.f32 1.442695, %v5733_v52 }
 0xda2   : > { %v5772_v43 = vsel %vm4701_vm1, %v14701_v55, 0.0  ;;  %v14748_v6 = vpop.permute.xlu1 %6701 }
 0xda3   : > { %v14705_v27 = vpop.eup %11879  ;;  %5773 = vadd.xlane.f32.xlu0 %v5772_v43  ;;  %11889 = vpow2.f32 %v5764_v39 }
 0xda4   : > { %v5784_v5 = vsel %vm4701_vm1, %v14705_v27, 0.0 }
 0xda5   : > { %v14707_v18 = vpop.eup %11881 }
 0xda6   : > { %v5787_v31 = vsel %vm4701_vm1, %v14707_v18, 0.0 }
 0xda7   : > { %v14713_v13 = vpop.eup %11883  ;;  %5785 = vadd.xlane.f32.xlu0 %v5784_v5  ;;  %5788 = vadd.xlane.f32.xlu1 %v5787_v31 }
 0xda8   : > { %v5796_v21 = vsel %vm4701_vm1, %v14713_v13, 0.0 }
 0xda9   : > { %v14724_v30 = vpop.eup %11885 }
 0xdaa   : > { %v5799_v43 = vsel %vm4701_vm1, %v14724_v30, 0.0 }
 0xdab   : > { %5797 = vadd.xlane.f32.xlu0 %v5796_v21  ;;  %v14728_v5 = vpop.eup %11887 }
 0xdac   : > { %v5808_v1 = vsel %vm4701_vm1, %v14728_v5, 0.0 }
 0xdad   : > { %v14734_v31 = vpop.eup %11889 }
 0xdae   : > { %v5811_v21 = vsel %vm4701_vm1, %v14734_v31, 0.0 }
 0xdb8   : > { %6752 = vrot.lane.b32.xlu1 %v14213_v0, %s12285_s3 }
 0xdc1   : > { %6699 = vrot.lane.b32.xlu0 %v14221_v59, %s12285_s3 }
 0xdd1   : > { %v5684_v46 = vpop.xlane.xlu0 %5683 }
 0xdd3   : > { %v5687_v56 = vpop.xlane.xlu1 %5686 }
 0xddc   : > { %5800 = vadd.xlane.f32.xlu1 %v5799_v43 }
 0xde0   : > { %5809 = vadd.xlane.f32.xlu0 %v5808_v1  ;;  %5698 = vmax.xlane.f32.xlu1 %v5697_v45  ;;  %v5718_v1 = vsub.f32 %v14624_v20, %v14688_v25 }
 0xde4   : > { %5695 = vmax.xlane.f32.xlu0 %v5694_v9  ;;  %5812 = vadd.xlane.f32.xlu1 %v5811_v21  ;;  %v5719_v21 = vsub.f32 %v14628_v10, %v14690_v50 }
 0xdf5   : > { %6803 = vrot.lane.b32.xlu1 %v14245_v12, %s12285_s3 }
 0xdfa   : > { %6750 = vrot.lane.b32.xlu0 %v14217_v17, %s12285_s3 }
 0xe19   : > { %5707 = vmax.xlane.f32.xlu0 %v5706_v53  ;;  %5710 = vmax.xlane.f32.xlu1 %v5709_v34  ;;  %v5734_v53 = vmul.f32 1.442695, %v5718_v1  ;;  %v5723_v34 = vsub.f32 %v14640_v62, %v5687_v56 }
 0xe1b   : > { %v5744_v20 = vmul.f32 1.442695, %v5723_v34 }
 0xe2a   : > { %6854 = vrot.lane.b32.xlu1 %v14243_v58, %s12285_s3  ;;  %v5736_v58 = vmul.f32 1.442695, %v5719_v21 }
 0xe2e   : > { %v5777_v35 = vpop.xlane.xlu1 %5776 }
 0xe2f   : > { %11891 = vrcp.f32 %v5777_v35  ;;  %6801 = vrot.lane.b32.xlu0 %v14251_v22, %s12285_s3 }
 0xe30   : > { %v5774_v52 = vpop.xlane.xlu0 %5773 }
 0xe31   : > { %11893 = vrcp.f32 %v5774_v52 }
 0xe33   : > { %6852 = vrot.lane.b32.xlu0 %v14247_v33, %s12285_s3 }
 0xe34   : > { %v5786_v39 = vpop.xlane.xlu0 %5785  ;;  %v5789_v43 = vpop.xlane.xlu1 %5788 }
 0xe35   : > { %11895 = vrcp.f32 %v5786_v39 }
 0xe36   : > { %11897 = vrcp.f32 %v5789_v43  ;;  %v5722_v43 = vsub.f32 %v14636_v57, %v5684_v46 }
 0xe37   : > { %11899 = vpow2.f32 %v5734_v53 }
 0xe38   : > { %11901 = vpow2.f32 %v5736_v58  ;;  %v5742_v62 = vmul.f32 1.442695, %v5722_v43 }
 0xe39   : > { %v11892_v45 = vpop.eup %11891  ;;  %11903 = vpow2.f32 %v5744_v20 }
 0xe3a   : > { %v5833_v35 = vmul.f32 %v11892_v45, %v14697_v23  ;;  %11905 = vpow2.f32 %v5742_v62 }
 0xe3b   : > { %v11894_v9 = vpop.eup %11893 }
 0xe3c   : > { %v5832_v52 = vmul.f32 %v11894_v9, %v14701_v55 }
 0xe3e   : > { %v5847_v33 = vpack.c.bf16 %v5833_v35, %v5832_v52 }
 0xe3f   : > { %v11896_v22 = vpop.eup %11895 }
 0xe40   : > { %v11898_v39 = vpop.eup %11897  ;;  %10910 = vmatmul.mubr.msk.bf16.vlgmr.msra.gmra.mrb[144].mxu1 %vm4701_vm1, %v5847_v33  ;;  %v5836_v50 = vmul.f32 %v11896_v22, %v14705_v27  ;;  %v5798_v27 = vpop.xlane.xlu0 %5797 }
 0xe41   : > { %10920 = vmatpush3.bf16.msra.mxu1 %v14668_v61  ;;  %10921 = vmatprep.mubr.msk.bf16.mxu1 %vm12283_vm14, %v16377_v49  ;;  %v5837_v10 = vmul.f32 %v11898_v39, %v14707_v18  ;;  %v14777_v33 = vpop.eup %11899  ;;  %v14794_v18 = vpop.permute.xlu1 %6752  ;;  %11907 = vrcp.f32 %v5798_v27 }
 0xe42   : > { %10931 = vmatprep.subr.bf16.mxu1 %v16377_v49  ;;  %v14780_v22 = vpop.eup %11901  ;;  %v5766_v58 = vsel %vm4701_vm1, %v14777_v33, 0.0 }
 0xe43   : > { %v5849_v25 = vpack.c.bf16 %v5837_v10, %v5836_v50  ;;  %v14784_v57 = vpop.eup %11903  ;;  %v5769_v61 = vsel %vm4701_vm1, %v14780_v22, 0.0 }
 0xe44   : > { %v14790_v23 = vpop.eup %11905  ;;  %v14796_v56 = vpop.permute.xlu0 %6699 }
 0xe45   : > { %v5778_v55 = vsel %vm4701_vm1, %v14790_v23, 0.0 }
 0xe48   : > { %10922 = vmatmul.mubr.msk.bf16.vlgmr.msra.gmra.mrb[148].mxu1 %vm4701_vm1, %v5849_v25 }
 0xe49   : > { %10932 = vmatpush3.bf16.msra.mxu1 %v14670_v3  ;;  %10933 = vmatprep.mubr.msk.bf16.mxu1 %vm12283_vm14, %v16377_v49  ;;  %v5781_v3 = vsel %vm4701_vm1, %v14784_v57, 0.0 }
 0xe4a   : > { %10943 = vmatprep.subr.bf16.mxu1 %v16377_v49 }
 0xe4b   : > { %v11908_v35 = vpop.eup %11907 }
 0xe4c   : > { %v5840_v20 = vmul.f32 %v11908_v35, %v14713_v13 }
 0xe4e   : > { %5767 = vadd.xlane.f32.xlu1 %v5766_v58 }
 0xe52   : > { %5770 = vadd.xlane.f32.xlu0 %v5769_v61  ;;  %5782 = vadd.xlane.f32.xlu1 %v5781_v3  ;;  %v6503_v3 = vsel %vm4324_vm15, %v14674_v40, 0  ;;  %v6605_v40 = vsel %vm4324_vm15, %v14682_v24, 0 }
 0xe56   : > { %5779 = vadd.xlane.f32.xlu0 %v5778_v55 }
 0xe69   : > { %v5801_v46 = vpop.xlane.xlu1 %5800 }
 0xe6a   : > { %11909 = vrcp.f32 %v5801_v46 }
 0xe6d   : > { %v5810_v1 = vpop.xlane.xlu0 %5809  ;;  %v5699_v45 = vpop.xlane.xlu1 %5698 }
 0xe6e   : > { %v5727_v9 = vsub.f32 %v14652_v36, %v5699_v45  ;;  %11911 = vrcp.f32 %v5810_v1 }
 0xe70   : > { %v5752_v21 = vmul.f32 1.442695, %v5727_v9 }
 0xe71   : > { %v5696_v53 = vpop.xlane.xlu0 %5695  ;;  %v5813_v34 = vpop.xlane.xlu1 %5812 }
 0xe72   : > { %11913 = vpow2.f32 %v5752_v21  ;;  %v5726_v52 = vsub.f32 %v14648_v4, %v5696_v53 }
 0xe73   : > { %11915 = vrcp.f32 %v5813_v34 }
 0xe74   : > { %v11910_v39 = vpop.eup %11909  ;;  %v5750_v43 = vmul.f32 1.442695, %v5726_v52 }
 0xe75   : > { %v5841_v50 = vmul.f32 %v11910_v39, %v14724_v30  ;;  %v6751_v24 = vpop.permute.xlu0 %6750 }
 0xe76   : > { %11917 = vpow2.f32 %v5750_v43 }
 0xe77   : > { %v5851_v10 = vpack.c.bf16 %v5841_v50, %v5840_v20 }
 0xe78   : > { %v11912_v36 = vpop.eup %11911 }
 0xe79   : > { %10934 = vmatmul.mubr.msk.bf16.vlgmr.msra.gmra.mrb[152].mxu1 %vm4701_vm1, %v5851_v10  ;;  %v5844_v30 = vmul.f32 %v11912_v36, %v14728_v5  ;;  %v6554_v5 = vsel %vm4324_vm15, %v14678_v11, 0  ;;  %v6804_v11 = vpop.permute.xlu1 %6803 }
 0xe7a   : > { %10944 = vmatpush3.bf16.msra.mxu1 %v14672_v2  ;;  %10945 = vmatprep.mubr.msk.bf16.mxu1 %vm12283_vm14, %v16377_v49 }
 0xe7b   : > { %10985 = vmatprep.subr.bf16.mxu1 %v16377_v49 }
 0xe7c   : > { %v14807_v4 = vpop.eup %11913 }
 0xe7d   : > { %v11916_v62 = vpop.eup %11915  ;;  %v5793_v13 = vsel %vm4701_vm1, %v14807_v4, 0.0 }
 0xe7e   : > { %v5845_v25 = vmul.f32 %v11916_v62, %v14734_v31  ;;  %5794 = vadd.xlane.f32.xlu1 %v5793_v13 }
 0xe80   : > { %v14813_v58 = vpop.eup %11917  ;;  %v5853_v2 = vpack.c.bf16 %v5845_v25, %v5844_v30 }
 0xe81   : > { %v5790_v61 = vsel %vm4701_vm1, %v14813_v58, 0.0 }
 0xe82   : > { %10946 = vmatmul.mubr.msk.bf16.vlgmr.msra.gmra.mrb[156].mxu1 %vm4701_vm1, %v5853_v2  ;;  %5791 = vadd.xlane.f32.xlu0 %v5790_v61 }
 0xe83   : > { %10986 = vmatpush3.bf16.xpose.msra.mxu1 %v6503_v3  ;;  %10987 = vmatprep.mubr.msk.bf16.mxu1 %vm12283_vm14, %v16377_v49 }
 0xe84   : > { %10991 = vmatprep.subr.bf16.mxu1 %v16377_v49 }
 0xe8a   : > { %10988 = vmatmul.mubr.msk.bf16.vlgmr.msra.gmra.mrb[160].mxu1 %vm4324_vm15, %v14676_v28  ;;  %v6656_v28 = vsel %vm4324_vm15, %v14686_v26, 0 }
 0xe8b   : > { %10992 = vmatpush3.bf16.xpose.msra.mxu1 %v6554_v5  ;;  %10993 = vmatprep.mubr.msk.bf16.mxu1 %vm12283_vm14, %v16377_v49 }
 0xe8c   : > { %10997 = vmatprep.subr.bf16.mxu1 %v16377_v49 }
 0xe92   : > { %10994 = vmatmul.mubr.msk.bf16.vlgmr.msra.gmra.mrb[164].mxu1 %vm4324_vm15, %v14680_v32  ;;  %v6707_v32 = vsel %vm4324_vm15, %v14748_v6, 0  ;;  %v6758_v6 = vsel %vm4324_vm15, %v14794_v18, 0 }
 0xe93   : > { %10998 = vmatpush3.bf16.xpose.msra.mxu1 %v6605_v40  ;;  %10999 = vmatprep.mubr.msk.bf16.mxu1 %vm12283_vm14, %v16377_v49 }
 0xe94   : > { %11003 = vmatprep.subr.bf16.mxu1 %v16377_v49 }
 0xe9a   : > { %11000 = vmatmul.mubr.msk.bf16.vlgmr.msra.gmra.mrb[168].mxu1 %vm4324_vm15, %v14684_v51 }
 0xe9b   : > { %11004 = vmatpush3.bf16.xpose.msra.mxu1 %v6656_v28  ;;  %11005 = vmatprep.mubr.msk.bf16.mxu1 %vm12283_vm14, %v16377_v49 }
 0xe9c   : > { %11009 = vmatprep.subr.bf16.mxu1 %v16377_v49 }
 0xea2   : > { %11006 = vmatmul.mubr.msk.bf16.vlgmr.msra.gmra.mrb[172].mxu1 %vm4324_vm15, %v14750_v19 }
 0xea3   : > { %11010 = vmatpush3.bf16.xpose.msra.mxu1 %v6707_v32  ;;  %11011 = vmatprep.mubr.msk.bf16.mxu1 %vm12283_vm14, %v16377_v49 }
 0xea4   : > { %11015 = vmatprep.subr.bf16.mxu1 %v16377_v49 }
 0xea6   : > { %v5708_v26 = vpop.xlane.xlu0 %5707  ;;  %v5711_v51 = vpop.xlane.xlu1 %5710 }
 0xea7   : > { %v5730_v31 = vsub.f32 %v14656_v44, %v5708_v26  ;;  %v5731_v55 = vsub.f32 %v14658_v29, %v5711_v51  ;;  %v6809_v44 = vsel %vm4324_vm15, %v6804_v11, 0 }
 0xea9   : > { %v5758_v27 = vmul.f32 1.442695, %v5730_v31  ;;  %v5760_v46 = vmul.f32 1.442695, %v5731_v55 }
 0xeaa   : > { %11012 = vmatmul.mubr.msk.bf16.vlgmr.msra.gmra.mrb[176].mxu1 %vm4324_vm15, %v14796_v56  ;;  %v6855_v56 = vpop.permute.xlu1 %6854  ;;  %v6802_v45 = vpop.permute.xlu0 %6801 }
 0xeab   : > { %11919 = vpow2.f32 %v5758_v27  ;;  %11016 = vmatpush3.bf16.xpose.msra.mxu1 %v6758_v6  ;;  %11017 = vmatprep.mubr.msk.bf16.mxu1 %vm12283_vm14, %v16377_v49  ;;  %v6860_v9 = vsel %vm4324_vm15, %v6855_v56, 0 }
 0xeac   : > { %11921 = vpow2.f32 %v5760_v46  ;;  %11021 = vmatprep.subr.bf16.mxu1 %v16377_v49 }
 0xeae   : > { %v6853_v21 = vpop.permute.xlu0 %6852 }
 0xeb2   : > { %11018 = vmatmul.mubr.msk.bf16.vlgmr.msra.gmra.mrb[180].mxu1 %vm4324_vm15, %v6751_v24 }
 0xeb3   : > { %11022 = vmatpush3.bf16.xpose.msra.mxu1 %v6809_v44  ;;  %11023 = vmatprep.mubr.msk.bf16.mxu1 %vm12283_vm14, %v16377_v49 }
 0xeb4   : > { %11027 = vmatprep.subr.bf16.mxu1 %v16377_v49 }
 0xeb5   : > { %v14865_v29 = vpop.eup %11919 }
 0xeb6   : > { %v14867_v19 = vpop.eup %11921  ;;  %v5802_v18 = vsel %vm4701_vm1, %v14865_v29, 0.0 }
 0xeb7   : > { %5803 = vadd.xlane.f32.xlu0 %v5802_v18  ;;  %v5805_v1 = vsel %vm4701_vm1, %v14867_v19, 0.0 }
 0xeb8   : > { %5806 = vadd.xlane.f32.xlu1 %v5805_v1 }
 0xeba   : > { %11024 = vmatmul.mubr.msk.bf16.vlgmr.msra.gmra.mrb[184].mxu1 %vm4324_vm15, %v6802_v45 }
 0xebb   : > { %11028 = vmatpush3.bf16.xpose.msra.mxu1 %v6860_v9  ;;  %11029 = vmatprep.mubr.msk.bf16.mxu1 %vm12283_vm14, %v16377_v49 }
 0xebc   : > { %11039 = vmatprep.subr.bf16.mxu1 %v16377_v49 }
 0xec2   : > { %11030 = vmatmul.mubr.msk.bf16.vlgmr.msra.gmra.mrb[188].mxu1 %vm4324_vm15, %v6853_v21 }
 0xec3   : > { %11041 = vmatprep.mubr.msk.bf16.mxu1 %vm12283_vm14, %v16377_v49 }
 0xec9   : > { %5951 = vrot.lane.b32.xlu1 %v14276_v38, %s12284_s1 }
 0xecd   : > { %6047 = vrot.lane.b32.xlu1 %v14280_v7, %s12284_s1  ;;  %5855 = vrot.lane.b32.xlu0 %v14260_v14, %s12284_s1 }
 0xed1   : > { %7134 = vrot.lane.b32.xlu1 %v14258_v54, %s12285_s3  ;;  %6143 = vrot.lane.b32.xlu0 %v14284_v42, %s12284_s1  ;;  %s16388_s1 = sld [smem:[#allocation25_spill]] }
 0xed5   : > { %7181 = vrot.lane.b32.xlu1 %v14276_v38, %s12285_s3  ;;  %7087 = vrot.lane.b32.xlu0 %v14260_v14, %s12285_s3 }
 0xedb   : > { %v5768_v13 = vpop.xlane.xlu1 %5767 }
 0xedf   : > { %v5771_v62 = vpop.xlane.xlu0 %5770  ;;  %v5783_v25 = vpop.xlane.xlu1 %5782 }
 0xee0   : > { %11923 = vrcp.f32 %v5771_v62 }
 0xee1   : > { %11925 = vrcp.f32 %v5768_v13 }
 0xee3   : > { %v5780_v30 = vpop.xlane.xlu0 %5779 }
 0xee4   : > { %11927 = vrcp.f32 %v5780_v30 }
 0xee5   : > { %11929 = vrcp.f32 %v5783_v25 }
 0xeea   : > { %v11924_v3 = vpop.eup %11923 }
 0xeeb   : > { %v11926_v40 = vpop.eup %11925  ;;  %v5831_v32 = vmul.f32 %v11924_v3, %v14780_v22 }
 0xeec   : > { %v5830_v24 = vmul.f32 %v11926_v40, %v14777_v33 }
 0xeee   : > { %v5846_v51 = vpack.c.bf16 %v5831_v32, %v5830_v24  ;;  %v11928_v31 = vpop.eup %11927 }
 0xeef   : > { %v11930_v27 = vpop.eup %11929  ;;  %v5834_v33 = vmul.f32 %v11928_v31, %v14790_v23 }
 0xef0   : > { %v5835_v56 = vmul.f32 %v11930_v27, %v14784_v57 }
 0xef2   : > { %v5848_v45 = vpack.c.bf16 %v5835_v56, %v5834_v33 }
 0xf0b   : > { %v5795_v61 = vpop.xlane.xlu1 %5794 }
 0xf0f   : > { %v5792_v2 = vpop.xlane.xlu0 %5791 }
 0xf10   : > { %11931 = vrcp.f32 %v5792_v2 }
 0xf11   : > { %11933 = vrcp.f32 %v5795_v61 }
 0xf13   : > { %v14895_v53 = vpop.f32.mrb[144].mxu1 }
 0xf14   : > { %v10911_v34 = vpop.f32.mrb[145].mxu1 }
 0xf15   : > { %v14897_v35 = vpop.f32.mrb[146].mxu1 }
 0xf16   : > { %v6239_v52 = vpack.c.bf16 %v14897_v35, %v14895_v53  ;;  %v10912_v39 = vpop.f32.mrb[147].mxu1 }
 0xf1a   : > { %v11932_v9 = vpop.eup %11931 }
 0xf1b   : > { %v14901_v43 = vpop.f32.mrb[148].mxu1  ;;  %v11934_v23 = vpop.eup %11933  ;;  %v5838_v34 = vmul.f32 %v11932_v9, %v14813_v58 }
 0xf1c   : > { %v10923_v20 = vpop.f32.mrb[149].mxu1 }
 0xf1d   : > { %v14903_v50 = vpop.f32.mrb[150].mxu1  ;;  %v5839_v20 = vmul.f32 %v11934_v23, %v14807_v4 }
 0xf1e   : > { %v6241_v10 = vpack.c.bf16 %v14903_v50, %v14901_v43  ;;  %v10924_v36 = vpop.f32.mrb[151].mxu1 }
 0xf1f   : > { %v5850_v30 = vpack.c.bf16 %v5839_v20, %v5838_v34 }
 0xf44   : > { %v5804_v5 = vpop.xlane.xlu0 %5803 }
 0xf45   : > { %v5807_v28 = vpop.xlane.xlu1 %5806  ;;  %11935 = vrcp.f32 %v5804_v5 }
 0xf46   : > { %11937 = vrcp.f32 %v5807_v28 }
 0xf48   : > { %v5856_v11 = vpop.permute.xlu0 %5855 }
 0xf49   : > { %v5952_v26 = vpop.permute.xlu1 %5951  ;;  %10902 = vmatpush3.bf16.msra.mxu0 %v5856_v11 }
 0xf4a   : > { %10913 = vmatprep.subr.bf16.mxu0 %v16377_v49 }
 0xf4c   : > { %v14910_v55 = vpop.f32.mrb[152].mxu1  ;;  %10904 = vmatmul.mubr.msk.bf16.vlgmr.msra.gmra.mrb[128].mxu0 %vm4701_vm1, %v5846_v51  ;;  %v6144_v2 = vpop.permute.xlu0 %6143 }
 0xf4d   : > { %v6048_v46 = vpop.permute.xlu1 %6047  ;;  %10914 = vmatpush3.bf16.msra.mxu0 %v5952_v26  ;;  %v10935_v6 = vpop.f32.mrb[153].mxu1  ;;  %10915 = vmatprep.mubr.msk.bf16.mxu0 %vm12283_vm14, %v16377_v49 }
 0xf4e   : > { %v14916_v22 = vpop.f32.mrb[154].mxu1  ;;  %10925 = vmatprep.subr.bf16.mxu0 %v16377_v49 }
 0xf4f   : > { %v6243_v44 = vpack.c.bf16 %v14916_v22, %v14910_v55  ;;  %v10936_v18 = vpop.f32.mrb[155].mxu1  ;;  %v11936_v13 = vpop.eup %11935  ;;  %v16389_v55 = vpack.c.bf16 %v14602_v60, %v14600_v16  ;;  %v16390_v22 = vpack.c.bf16 %v14496_v63, %v14492_v41  ;;  %v16392_v41 = vld [vmem:[#allocation50_spill] sm:$0xff]  ;;  %v16393_v63 = vld [vmem:[#allocation69_spill] sm:$0xff]  ;;  %v16394_v16 = vld [vmem:[#allocation68_spill] sm:$0xff] }
 0xf50   : > { %v11938_v25 = vpop.eup %11937  ;;  %v5842_v58 = vmul.f32 %v11936_v13, %v14865_v29  ;;  %v16395_v60 = vpack.c.bf16 %v16393_v63, %v16394_v16 }
 0xf51   : > { %v7135_v1 = vpop.permute.xlu1 %7134  ;;  %v5843_v4 = vmul.f32 %v11938_v25, %v14867_v19 }
 0xf52   : > { %11040 = vmatpush3.bf16.msra.mxu1 %v7135_v1 }
 0xf53   : > { %11051 = vmatprep.subr.bf16.mxu1 %v16377_v49  ;;  %v5852_v24 = vpack.c.bf16 %v5843_v4, %v5842_v58 }
 0xf54   : > { %10916 = vmatmul.mubr.msk.bf16.vlgmr.msra.gmra.mrb[132].mxu0 %vm4701_vm1, %v5848_v45 }
 0xf55   : > { %10926 = vmatpush3.bf16.msra.mxu0 %v6048_v46  ;;  %v14924_v21 = vpop.f32.mrb[156].mxu1  ;;  %10927 = vmatprep.mubr.msk.bf16.mxu0 %vm12283_vm14, %v16377_v49 }
 0xf56   : > { %v10947_v57 = vpop.f32.mrb[157].mxu1  ;;  %10937 = vmatprep.subr.bf16.mxu0 %v16377_v49 }
 0xf57   : > { %v14930_v39 = vpop.f32.mrb[158].mxu1 }
 0xf58   : > { %v6245_v36 = vpack.c.bf16 %v14930_v39, %v14924_v21  ;;  %v10948_v62 = vpop.f32.mrb[159].mxu1  ;;  %v16399_v39 = vld [vmem:[#allocation54_spill] sm:$0xff] }
 0xf5c   : > { %10928 = vmatmul.mubr.msk.bf16.vlgmr.msra.gmra.mrb[136].mxu0 %vm4701_vm1, %v5850_v30 }
 0xf5d   : > { %10938 = vmatpush3.bf16.msra.mxu0 %v6144_v2  ;;  %v14936_v61 = vpop.f32.mrb[160].mxu1  ;;  %10939 = vmatprep.mubr.msk.bf16.mxu0 %vm12283_vm14, %v16377_v49 }
 0xf5e   : > { %v10989_v3 = vpop.f32.mrb[161].mxu1  ;;  %v6903_v5 = vsel %vm4701_vm1, %v14936_v61, -inf }
 0xf5f   : > { %v14944_v40 = vpop.f32.mrb[162].mxu1  ;;  %6904 = vmax.xlane.f32.xlu1 %v6903_v5 }
 0xf60   : > { %v10990_v28 = vpop.f32.mrb[163].mxu1  ;;  %v6906_v32 = vsel %vm4701_vm1, %v14944_v40, -inf }
 0xf61   : > { %6907 = vmax.xlane.f32.xlu0 %v6906_v32 }
 0xf64   : > { %10940 = vmatmul.mubr.msk.bf16.vlgmr.msra.gmra.mrb[140].mxu0 %vm4701_vm1, %v5852_v24 }
 0xf65   : > { %v14949_v11 = vpop.f32.mrb[164].mxu1 }
 0xf66   : > { %v10995_v29 = vpop.f32.mrb[165].mxu1  ;;  %v6909_v19 = vsel %vm4701_vm1, %v14949_v11, -inf }
 0xf67   : > { %v14953_v26 = vpop.f32.mrb[166].mxu1  ;;  %6910 = vmax.xlane.f32.xlu0 %v6909_v19 }
 0xf68   : > { %v10996_v51 = vpop.f32.mrb[167].mxu1  ;;  %v6912_v31 = vsel %vm4701_vm1, %v14953_v26, -inf }
 0xf69   : > { %6913 = vmax.xlane.f32.xlu1 %v6912_v31 }
 0xf6d   : > { %v14957_v27 = vpop.f32.mrb[168].mxu1 }
 0xf6e   : > { %v11001_v46 = vpop.f32.mrb[169].mxu1  ;;  %v6915_v6 = vsel %vm4701_vm1, %v14957_v27, -inf }
 0xf6f   : > { %v14961_v33 = vpop.f32.mrb[170].mxu1  ;;  %6916 = vmax.xlane.f32.xlu0 %v6915_v6 }
 0xf70   : > { %v11002_v18 = vpop.f32.mrb[171].mxu1  ;;  %v6918_v56 = vsel %vm4701_vm1, %v14961_v33, -inf }
 0xf71   : > { %6919 = vmax.xlane.f32.xlu1 %v6918_v56 }
 0xf75   : > { %v14965_v1 = vpop.f32.mrb[172].mxu1 }
 0xf76   : > { %v11007_v45 = vpop.f32.mrb[173].mxu1  ;;  %v6921_v9 = vsel %vm4701_vm1, %v14965_v1, -inf }
 0xf77   : > { %v14969_v23 = vpop.f32.mrb[174].mxu1  ;;  %6922 = vmax.xlane.f32.xlu0 %v6921_v9 }
 0xf78   : > { %v11008_v34 = vpop.f32.mrb[175].mxu1  ;;  %v6924_v57 = vsel %vm4701_vm1, %v14969_v23, -inf }
 0xf79   : > { %6925 = vmax.xlane.f32.xlu1 %v6924_v57  ;;  %v4281_v57 = vld [vmem:[%s16388_s1 + $0x4] sm:$0xf] }
 0xf7a   : > { %11317 = vmatprep.subr.msk.bf16.mxu0 %vm6270_vm2, %v4281_v57 }
 0xf7d   : > { %v14973_v20 = vpop.f32.mrb[176].mxu1 }
 0xf7e   : > { %v11013_v62 = vpop.f32.mrb[177].mxu1  ;;  %v6927_v13 = vsel %vm4701_vm1, %v14973_v20, -inf }
 0xf7f   : > { %v14977_v30 = vpop.f32.mrb[178].mxu1  ;;  %6928 = vmax.xlane.f32.xlu0 %v6927_v13  ;;  %v6272_v62 = vsel %vm6270_vm2, %v4281_v57, 0  ;;  %v15015_v13 = vld [vmem:[%s16388_s1] sm:$0xf] }
 0xf80   : > { %v11014_v25 = vpop.f32.mrb[179].mxu1  ;;  %v6930_v2 = vsel %vm4701_vm1, %v14977_v30, -inf  ;;  %10950 = vmatpush3.bf16.msra.mxu0 %v6272_v62 }
 0xf81   : > { %6931 = vmax.xlane.f32.xlu1 %v6930_v2  ;;  %11318 = vmatprep.subr.msk.bf16.mxu0 %vm6270_vm2, %v15015_v13  ;;  %v15019_v25 = vpop.permute.xlu1 %7181  ;;  %v15021_v2 = vpop.permute.xlu0 %7087 }
 0xf85   : > { %v14981_v58 = vpop.f32.mrb[180].mxu1 }
 0xf86   : > { %v11019_v4 = vpop.f32.mrb[181].mxu1  ;;  %v6933_v3 = vsel %vm4701_vm1, %v14981_v58, -inf }
 0xf87   : > { %v14985_v5 = vpop.f32.mrb[182].mxu1  ;;  %6934 = vmax.xlane.f32.xlu0 %v6933_v3 }
 0xf88   : > { %v11020_v28 = vpop.f32.mrb[183].mxu1  ;;  %v6936_v32 = vsel %vm4701_vm1, %v14985_v5, -inf }
 0xf89   : > { %6937 = vmax.xlane.f32.xlu1 %v6936_v32 }
 0xf8d   : > { %v14989_v24 = vpop.f32.mrb[184].mxu1 }
 0xf8e   : > { %v11025_v29 = vpop.f32.mrb[185].mxu1  ;;  %v6939_v19 = vsel %vm4701_vm1, %v14989_v24, -inf }
 0xf8f   : > { %6940 = vmax.xlane.f32.xlu0 %v6939_v19  ;;  %v14993_v51 = vpop.f32.mrb[186].mxu1 }
 0xf90   : > { %v11026_v31 = vpop.f32.mrb[187].mxu1  ;;  %v6942_v46 = vsel %vm4701_vm1, %v14993_v51, -inf }
 0xf91   : > { %6943 = vmax.xlane.f32.xlu1 %v6942_v46 }
 0xf95   : > { %v14997_v6 = vpop.f32.mrb[188].mxu1 }
 0xf96   : > { %v11031_v18 = vpop.f32.mrb[189].mxu1  ;;  %v6945_v56 = vsel %vm4701_vm1, %v14997_v6, -inf }
 0xf97   : > { %6946 = vmax.xlane.f32.xlu0 %v6945_v56  ;;  %v15001_v45 = vpop.f32.mrb[190].mxu1 }
 0xf98   : > { %v11032_v9 = vpop.f32.mrb[191].mxu1  ;;  %v6948_v34 = vsel %vm4701_vm1, %v15001_v45, -inf }
 0xf99   : > { %6949 = vmax.xlane.f32.xlu1 %v6948_v34 }
 0xfaa   : > { %7275 = vrot.lane.b32.xlu1 %v14280_v7, %s12285_s3 }
 0xfad   : > { %7228 = vrot.lane.b32.xlu0 %v14274_v48, %s12285_s3 }
 0xfb1   : > { %7322 = vrot.lane.b32.xlu0 %v14278_v37, %s12285_s3 }
 0xfec   : > { %v6905_v4 = vpop.xlane.xlu1 %6904 }
 0xfed   : > { %v6951_v3 = vsub.f32 %v14936_v61, %v6905_v4 }
 0xfee   : > { %v6908_v28 = vpop.xlane.xlu0 %6907 }
 0xfef   : > { %v6967_v32 = vmul.f32 1.442695, %v6951_v3  ;;  %v6952_v29 = vsub.f32 %v14944_v40, %v6908_v28 }
 0xff1   : > { %11939 = vpow2.f32 %v6967_v32  ;;  %v6969_v19 = vmul.f32 1.442695, %v6952_v29 }
 0xff3   : > { %11941 = vpow2.f32 %v6969_v19 }
 0xff4   : > { %v6911_v31 = vpop.xlane.xlu0 %6910 }
 0xff5   : > { %v6953_v46 = vsub.f32 %v14949_v11, %v6911_v31 }
 0xff6   : > { %v6914_v18 = vpop.xlane.xlu1 %6913 }
 0xff7   : > { %v6971_v56 = vmul.f32 1.442695, %v6953_v46  ;;  %v6954_v9 = vsub.f32 %v14953_v26, %v6914_v18 }
 0xff9   : > { %11943 = vpow2.f32 %v6971_v56  ;;  %v6973_v34 = vmul.f32 1.442695, %v6954_v9 }
 0xffb   : > { %v15027_v57 = vpop.eup %11939  ;;  %11945 = vpow2.f32 %v6973_v34 }
 0xffc   : > { %v6917_v61 = vpop.xlane.xlu0 %6916  ;;  %v6999_v62 = vsel %vm4701_vm1, %v15027_v57, 0.0 }
 0xffd   : > { %v15031_v40 = vpop.eup %11941  ;;  %v6955_v4 = vsub.f32 %v14957_v27, %v6917_v61  ;;  %7000 = vadd.xlane.f32.xlu0 %v6999_v62 }
 0xffe   : > { %v6920_v3 = vpop.xlane.xlu1 %6919  ;;  %v7002_v11 = vsel %vm4701_vm1, %v15031_v40, 0.0 }
 0xfff   : > { %v6975_v28 = vmul.f32 1.442695, %v6955_v4  ;;  %v6956_v26 = vsub.f32 %v14961_v33, %v6920_v3  ;;  %7003 = vadd.xlane.f32.xlu1 %v7002_v11 }
0x1001   : > { %11947 = vpow2.f32 %v6975_v28  ;;  %v6977_v32 = vmul.f32 1.442695, %v6956_v26 }
0x1003   : > { %v15037_v29 = vpop.eup %11943  ;;  %11949 = vpow2.f32 %v6977_v32 }
0x1004   : > { %v6923_v19 = vpop.xlane.xlu0 %6922  ;;  %v7005_v31 = vsel %vm4701_vm1, %v15037_v29, 0.0 }
0x1005   : > { %v15041_v46 = vpop.eup %11945  ;;  %v6957_v27 = vsub.f32 %v14965_v1, %v6923_v19  ;;  %7006 = vadd.xlane.f32.xlu0 %v7005_v31 }
0x1006   : > { %v6926_v18 = vpop.xlane.xlu1 %6925  ;;  %v7008_v56 = vsel %vm4701_vm1, %v15041_v46, 0.0 }
0x1007   : > { %v6979_v33 = vmul.f32 1.442695, %v6957_v27  ;;  %v6958_v9 = vsub.f32 %v14969_v23, %v6926_v18  ;;  %7009 = vadd.xlane.f32.xlu1 %v7008_v56 }
0x1009   : > { %11951 = vpow2.f32 %v6979_v33  ;;  %v6981_v34 = vmul.f32 1.442695, %v6958_v9 }
0x100b   : > { %v15047_v61 = vpop.eup %11947  ;;  %11953 = vpow2.f32 %v6981_v34 }
0x100c   : > { %v6929_v62 = vpop.xlane.xlu0 %6928  ;;  %v7011_v4 = vsel %vm4701_vm1, %v15047_v61, 0.0 }
0x100d   : > { %v15051_v3 = vpop.eup %11949  ;;  %v6959_v1 = vsub.f32 %v14973_v20, %v6929_v62  ;;  %7012 = vadd.xlane.f32.xlu0 %v7011_v4 }
0x100e   : > { %v6932_v11 = vpop.xlane.xlu1 %6931  ;;  %v7014_v28 = vsel %vm4701_vm1, %v15051_v3, 0.0 }
0x100f   : > { %v6983_v23 = vmul.f32 1.442695, %v6959_v1  ;;  %v6960_v26 = vsub.f32 %v14977_v30, %v6932_v11  ;;  %7015 = vadd.xlane.f32.xlu1 %v7014_v28 }
0x1011   : > { %11955 = vpow2.f32 %v6983_v23  ;;  %v6985_v32 = vmul.f32 1.442695, %v6960_v26 }
0x1013   : > { %v15057_v19 = vpop.eup %11951  ;;  %11957 = vpow2.f32 %v6985_v32 }
0x1014   : > { %v6935_v31 = vpop.xlane.xlu0 %6934  ;;  %v7017_v27 = vsel %vm4701_vm1, %v15057_v19, 0.0 }
0x1015   : > { %v15061_v18 = vpop.eup %11953  ;;  %v6961_v20 = vsub.f32 %v14981_v58, %v6935_v31  ;;  %7018 = vadd.xlane.f32.xlu0 %v7017_v27 }
0x1016   : > { %v6938_v56 = vpop.xlane.xlu1 %6937  ;;  %v7020_v33 = vsel %vm4701_vm1, %v15061_v18, 0.0 }
0x1017   : > { %v6987_v30 = vmul.f32 1.442695, %v6961_v20  ;;  %v6962_v9 = vsub.f32 %v14985_v5, %v6938_v56  ;;  %7021 = vadd.xlane.f32.xlu1 %v7020_v33 }
0x1019   : > { %11959 = vpow2.f32 %v6987_v30  ;;  %v6989_v34 = vmul.f32 1.442695, %v6962_v9 }
0x101b   : > { %v15067_v62 = vpop.eup %11955  ;;  %11961 = vpow2.f32 %v6989_v34 }
0x101c   : > { %v6941_v4 = vpop.xlane.xlu0 %6940  ;;  %v7023_v1 = vsel %vm4701_vm1, %v15067_v62, 0.0 }
0x101d   : > { %v15071_v11 = vpop.eup %11957  ;;  %v6963_v58 = vsub.f32 %v14989_v24, %v6941_v4  ;;  %7024 = vadd.xlane.f32.xlu0 %v7023_v1  ;;  %v6396_v24 = vsel %vm6270_vm2, %v15015_v13, 0 }
0x101e   : > { %v6944_v28 = vpop.xlane.xlu1 %6943  ;;  %v7026_v23 = vsel %vm4701_vm1, %v15071_v11, 0.0 }
0x101f   : > { %v6991_v5 = vmul.f32 1.442695, %v6963_v58  ;;  %v6964_v26 = vsub.f32 %v14993_v51, %v6944_v28  ;;  %7027 = vadd.xlane.f32.xlu1 %v7026_v23  ;;  %v5895_v32 = vpop.f32.mrb[128].mxu0 }
0x1020   : > { %v10905_v31 = vpop.f32.mrb[129].mxu0 }
0x1021   : > { %11963 = vpow2.f32 %v6991_v5  ;;  %v6993_v27 = vmul.f32 1.442695, %v6964_v26  ;;  %v5898_v20 = vpop.f32.mrb[130].mxu0 }
0x1022   : > { %v6238_v56 = vpack.c.bf16 %v5898_v20, %v5895_v32  ;;  %v10906_v33 = vpop.f32.mrb[131].mxu0 }
0x1023   : > { %v15077_v30 = vpop.eup %11959  ;;  %11965 = vpow2.f32 %v6993_v27 }
0x1024   : > { %v6947_v9 = vpop.xlane.xlu0 %6946  ;;  %v7029_v34 = vsel %vm4701_vm1, %v15077_v30, 0.0  ;;  %10951 = vmatprep.mubr.msk.bf16.mxu0 %vm4324_vm15, %v6238_v56 }
0x1025   : > { %v15084_v51 = vpop.eup %11961  ;;  %v6965_v4 = vsub.f32 %v14997_v6, %v6947_v9  ;;  %7030 = vadd.xlane.f32.xlu0 %v7029_v34  ;;  %10952 = vmatmul.mubr.msk.bf16.vlgmr.msra.gmra.mrb[144].mxu0 %vm4324_vm15, %v6239_v52 }
0x1026   : > { %v6950_v1 = vpop.xlane.xlu1 %6949  ;;  %v7032_v13 = vsel %vm4701_vm1, %v15084_v51, 0.0  ;;  %10968 = vmatpush3.bf16.msra.mxu0 %v6396_v24 }
0x1027   : > { %v6995_v58 = vmul.f32 1.442695, %v6965_v4  ;;  %v6966_v28 = vsub.f32 %v15001_v45, %v6950_v1  ;;  %7033 = vadd.xlane.f32.xlu1 %v7032_v13  ;;  %v5991_v23 = vpop.f32.mrb[132].mxu0  ;;  %11033 = vmatprep.subr.bf16.mxu0 %v16377_v49 }
0x1028   : > { %v10917_v5 = vpop.f32.mrb[133].mxu0 }
0x1029   : > { %11967 = vpow2.f32 %v6995_v58  ;;  %v6997_v6 = vmul.f32 1.442695, %v6966_v28  ;;  %v5994_v26 = vpop.f32.mrb[134].mxu0  ;;  %v16402_v28 = vld [vmem:[#allocation32_spill] sm:$0xff]  ;;  %v16404_v5 = vld [vmem:[#allocation70_spill] sm:$0xff] }
0x102a   : > { %v6240_v32 = vpack.c.bf16 %v5994_v26, %v5991_v23  ;;  %v10918_v53 = vpop.f32.mrb[135].mxu0  ;;  %v16403_v23 = vld [vmem:[#allocation71_spill] sm:$0xff]  ;;  %v16406_v26 = vld [vmem:[#allocation77_spill] sm:$0xff] }
0x102b   : > { %v15095_v35 = vpop.eup %11963  ;;  %11969 = vpow2.f32 %v6997_v6  ;;  %v16405_v6 = vpack.c.bf16 %v16403_v23, %v16404_v5 }
0x102c   : > { %v7035_v52 = vsel %vm4701_vm1, %v15095_v35, 0.0  ;;  %10955 = vmatprep.mubr.msk.bf16.mxu0 %vm4324_vm15, %v6240_v32  ;;  %v16407_v32 = vld [vmem:[#allocation76_spill] sm:$0xff] }
0x102d   : > { %v15100_v31 = vpop.eup %11965  ;;  %7036 = vadd.xlane.f32.xlu0 %v7035_v52  ;;  %10956 = vmatmul.mubr.msk.bf16.gmra.mrb[148].mxu0 %vm4324_vm15, %v6241_v10  ;;  %v16408_v53 = vpack.c.bf16 %v16406_v26, %v16407_v32  ;;  %v16409_v52 = vld [vmem:[#allocation63_spill] sm:$0xff] }
0x102e   : > { %v7038_v45 = vsel %vm4701_vm1, %v15100_v31, 0.0 }
0x102f   : > { %7039 = vadd.xlane.f32.xlu1 %v7038_v45  ;;  %v6087_v27 = vpop.f32.mrb[136].mxu0  ;;  %v16410_v45 = vld [vmem:[#allocation47_spill] sm:$0xff] }
0x1030   : > { %v10929_v20 = vpop.f32.mrb[137].mxu0 }
0x1031   : > { %v6090_v56 = vpop.f32.mrb[138].mxu0  ;;  %v16412_v20 = vld [vmem:[#allocation62_spill] sm:$0xff] }
0x1032   : > { %v6242_v33 = vpack.c.bf16 %v6090_v56, %v6087_v27  ;;  %v10930_v24 = vpop.f32.mrb[139].mxu0  ;;  %v16411_v27 = vld [vmem:[#allocation64_spill] sm:$0xff]  ;;  %v16413_v56 = vld [vmem:[#allocation73_spill] sm:$0xff] }
0x1033   : > { %v15108_v9 = vpop.eup %11967 }
0x1034   : > { %v7041_v34 = vsel %vm4701_vm1, %v15108_v9, 0.0  ;;  %10959 = vmatprep.mubr.msk.bf16.mxu0 %vm4324_vm15, %v6242_v33  ;;  %v16414_v33 = vld [vmem:[#allocation72_spill] sm:$0xff] }
0x1035   : > { %v15113_v4 = vpop.eup %11969  ;;  %7042 = vadd.xlane.f32.xlu0 %v7041_v34  ;;  %10960 = vmatmul.mubr.msk.bf16.gmra.mrb[152].mxu0 %vm4324_vm15, %v6243_v44  ;;  %v16391_v44 = vpack.c.bf16 %v14608_v15, %v14606_v8  ;;  %v16396_v8 = vld [vmem:[#allocation75_spill] sm:$0xff]  ;;  %v16397_v15 = vld [vmem:[#allocation74_spill] sm:$0xff]  ;;  %v16415_v24 = vpack.c.bf16 %v16413_v56, %v16414_v33  ;;  %v16416_v34 = vld [vmem:[#allocation65_spill] sm:$0xff] }
0x1036   : > { %v7044_v43 = vsel %vm4701_vm1, %v15113_v4, 0.0  ;;  %v16398_v21 = vpack.c.bf16 %v16396_v8, %v16397_v15 }
0x1037   : > { %7045 = vadd.xlane.f32.xlu1 %v7044_v43  ;;  %v6183_v50 = vpop.f32.mrb[140].mxu0  ;;  %v16417_v43 = vld [vmem:[#allocation67_spill] sm:$0xff] }
0x1038   : > { %v10941_v10 = vpop.f32.mrb[141].mxu0 }
0x1039   : > { %v6186_v1 = vpop.f32.mrb[142].mxu0  ;;  %v7229_v10 = vpop.permute.xlu0 %7228 }
0x103a   : > { %v6244_v13 = vpack.c.bf16 %v6186_v1, %v6183_v50  ;;  %v10942_v58 = vpop.f32.mrb[143].mxu0  ;;  %v16418_v50 = vld [vmem:[#allocation66_spill] sm:$0xff]  ;;  %v7276_v1 = vpop.permute.xlu1 %7275 }
0x103c   : > { %10963 = vmatprep.mubr.msk.bf16.mxu0 %vm4324_vm15, %v6244_v13 }
0x103d   : > { %10964 = vmatmul.mubr.msk.bf16.gmra.mrb[156].mxu0 %vm4324_vm15, %v6245_v36  ;;  %v16400_v36 = vld [vmem:[#allocation55_spill] sm:$0xff] }
0x103e   : > { %10969 = vmatprep.mubr.msk.bf16.mxu0 %vm4324_vm15, %v16389_v55 }
0x1045   : > { %10970 = vmatmul.mubr.msk.bf16.vlgmr.msra.gmra.mrb[144].mxu0 %vm4324_vm15, %v16390_v22 }
0x1046   : > { %11034 = vmatpush3.bf16.msra.mxu0 %v15021_v2  ;;  %10973 = vmatprep.mubr.msk.bf16.mxu0 %vm4324_vm15, %v16391_v44  ;;  %v16401_v2 = vld [vmem:[#allocation35_spill] sm:$0xff] }
0x1047   : > { %11045 = vmatprep.subr.bf16.mxu0 %v16377_v49 }
0x1048   : > { %7369 = vrot.lane.b32.xlu1 %v14284_v42, %s12285_s3 }
0x104b   : > { %7416 = vrot.lane.b32.xlu0 %v14282_v47, %s12285_s3  ;;  %s16438_s3 = sld [smem:[#allocation29_spill]] }
0x104c   : > { %7613 = vrot.lane.b32.xlu1 %v16392_v41, %s12286_s5 }
0x104d   : > { %10974 = vmatmul.mubr.msk.bf16.gmra.mrb[148].mxu0 %vm4324_vm15, %v16395_v60 }
0x104e   : > { %10977 = vmatprep.mubr.msk.bf16.mxu0 %vm4324_vm15, %v16398_v21 }
0x104f   : > { %7611 = vrot.lane.b32.xlu0 %v16399_v39, %s12286_s5 }
0x1050   : > { %7664 = vrot.lane.b32.xlu1 %v16400_v36, %s12286_s5 }
0x1053   : > { %7662 = vrot.lane.b32.xlu0 %v16401_v2, %s12286_s5 }
0x1054   : > { %7715 = vrot.lane.b32.xlu1 %v16402_v28, %s12286_s5 }
0x1055   : > { %10978 = vmatmul.mubr.msk.bf16.gmra.mrb[152].mxu0 %vm4324_vm15, %v16405_v6 }
0x1056   : > { %10981 = vmatprep.mubr.msk.bf16.mxu0 %vm4324_vm15, %v16408_v53 }
0x1057   : > { %7713 = vrot.lane.b32.xlu0 %v16409_v52, %s12286_s5 }
0x1058   : > { %7766 = vrot.lane.b32.xlu1 %v16410_v45, %s12286_s5 }
0x105b   : > { %7817 = vrot.lane.b32.xlu0 %v16411_v27, %s12286_s5 }
0x105c   : > { %7764 = vrot.lane.b32.xlu1 %v16412_v20, %s12286_s5 }
0x105d   : > { %10982 = vmatmul.mubr.msk.bf16.gmra.mrb[156].mxu0 %vm4324_vm15, %v16415_v24 }
0x105e   : > { %11035 = vmatprep.mubr.msk.bf16.mxu0 %vm12283_vm14, %v16377_v49 }
0x105f   : > { %7868 = vrot.lane.b32.xlu0 %v14213_v0, %s12286_s5  ;;  %v7323_v0 = vpop.permute.xlu0 %7322 }
0x1060   : > { %7815 = vrot.lane.b32.xlu1 %v14221_v59, %s12286_s5 }
0x1063   : > { %7919 = vrot.lane.b32.xlu0 %v14245_v12, %s12286_s5 }
0x1064   : > { %7866 = vrot.lane.b32.xlu1 %v14217_v17, %s12286_s5 }
0x1067   : > { %7970 = vrot.lane.b32.xlu0 %v16416_v34, %s12286_s5 }
0x1068   : > { %7917 = vrot.lane.b32.xlu1 %v16417_v43, %s12286_s5 }
0x106b   : > { %7968 = vrot.lane.b32.xlu0 %v16418_v50, %s12286_s5 }
0x108a   : > { %v7001_v13 = vpop.xlane.xlu0 %7000 }
0x108b   : > { %11971 = vrcp.f32 %v7001_v13 }
0x108c   : > { %v7004_v59 = vpop.xlane.xlu1 %7003 }
0x108d   : > { %11973 = vrcp.f32 %v7004_v59 }
0x1092   : > { %v7007_v12 = vpop.xlane.xlu0 %7006 }
0x1093   : > { %11975 = vrcp.f32 %v7007_v12 }
0x1094   : > { %v7010_v58 = vpop.xlane.xlu1 %7009 }
0x1095   : > { %v11972_v17 = vpop.eup %11971  ;;  %11977 = vrcp.f32 %v7010_v58 }
0x1096   : > { %v7063_v22 = vmul.f32 %v11972_v17, %v15027_v57 }
0x1097   : > { %v11974_v55 = vpop.eup %11973 }
0x1098   : > { %v7064_v44 = vmul.f32 %v11974_v55, %v15031_v40 }
0x109a   : > { %v7079_v41 = vpack.c.bf16 %v7064_v44, %v7063_v22  ;;  %v7013_v63 = vpop.xlane.xlu0 %7012 }
0x109b   : > { %11979 = vrcp.f32 %v7013_v63 }
0x109c   : > { %v7016_v16 = vpop.xlane.xlu1 %7015  ;;  %11036 = vmatmul.mubr.msk.bf16.vlgmr.msra.gmra.mrb[160].mxu0 %vm4701_vm1, %v7079_v41 }
0x109d   : > { %v11976_v60 = vpop.eup %11975  ;;  %11981 = vrcp.f32 %v7016_v16  ;;  %11046 = vmatpush3.bf16.msra.mxu0 %v15019_v25  ;;  %11047 = vmatprep.mubr.msk.bf16.mxu0 %vm12283_vm14, %v16377_v49 }
0x109e   : > { %11057 = vmatprep.subr.bf16.mxu0 %v16377_v49  ;;  %v7065_v57 = vmul.f32 %v11976_v60, %v15037_v29 }
0x109f   : > { %v11978_v8 = vpop.eup %11977 }
0x10a0   : > { %v7066_v40 = vmul.f32 %v11978_v8, %v15041_v46 }
0x10a2   : > { %v7019_v15 = vpop.xlane.xlu0 %7018  ;;  %v7080_v21 = vpack.c.bf16 %v7066_v40, %v7065_v57 }
0x10a3   : > { %11983 = vrcp.f32 %v7019_v15 }
0x10a4   : > { %11042 = vmatmul.mubr.msk.bf16.vlgmr.msra.gmra.mrb[192].mxu1 %vm4701_vm1, %v7080_v21  ;;  %v7022_v39 = vpop.xlane.xlu1 %7021 }
0x10a5   : > { %v11980_v36 = vpop.eup %11979  ;;  %11052 = vmatpush3.bf16.msra.mxu1 %v7229_v10  ;;  %11985 = vrcp.f32 %v7022_v39  ;;  %11053 = vmatprep.mubr.msk.bf16.mxu1 %vm12283_vm14, %v16377_v49  ;;  %v4282_v39 = vld [vmem:[%s16388_s1 + $0x8] sm:$0xf] }
0x10a6   : > { %11063 = vmatprep.subr.bf16.mxu1 %v16377_v49  ;;  %v7067_v2 = vmul.f32 %v11980_v36, %v15047_v61 }
0x10a7   : > { %v11982_v25 = vpop.eup %11981 }
0x10a8   : > { %v7068_v29 = vmul.f32 %v11982_v25, %v15051_v3  ;;  %v7496_v25 = vsel %vm6270_vm2, %v4282_v39, 0 }
0x10aa   : > { %v7025_v46 = vpop.xlane.xlu0 %7024  ;;  %v7081_v28 = vpack.c.bf16 %v7068_v29, %v7067_v2 }
0x10ab   : > { %11987 = vrcp.f32 %v7025_v46 }
0x10ac   : > { %v7028_v23 = vpop.xlane.xlu1 %7027  ;;  %11048 = vmatmul.mubr.msk.bf16.vlgmr.msra.gmra.mrb[164].mxu0 %vm4701_vm1, %v7081_v28 }
0x10ad   : > { %v11984_v5 = vpop.eup %11983  ;;  %11989 = vrcp.f32 %v7028_v23  ;;  %11058 = vmatpush3.bf16.msra.mxu0 %v7276_v1  ;;  %11059 = vmatprep.mubr.msk.bf16.mxu0 %vm12283_vm14, %v16377_v49 }
0x10ae   : > { %11069 = vmatprep.subr.bf16.mxu0 %v16377_v49  ;;  %v7069_v26 = vmul.f32 %v11984_v5, %v15057_v19 }
0x10af   : > { %v11986_v6 = vpop.eup %11985 }
0x10b0   : > { %v7070_v61 = vmul.f32 %v11986_v6, %v15061_v18 }
0x10b2   : > { %v7031_v3 = vpop.xlane.xlu0 %7030  ;;  %v7082_v32 = vpack.c.bf16 %v7070_v61, %v7069_v26 }
0x10b3   : > { %11991 = vrcp.f32 %v7031_v3 }
0x10b4   : > { %11054 = vmatmul.mubr.msk.bf16.vlgmr.msra.gmra.mrb[196].mxu1 %vm4701_vm1, %v7082_v32  ;;  %v7034_v53 = vpop.xlane.xlu1 %7033 }
0x10b5   : > { %v11988_v52 = vpop.eup %11987  ;;  %11064 = vmatpush3.bf16.msra.mxu1 %v7323_v0  ;;  %11993 = vrcp.f32 %v7034_v53  ;;  %11065 = vmatprep.mubr.msk.bf16.mxu1 %vm12283_vm14, %v16377_v49 }
0x10b6   : > { %11075 = vmatprep.subr.bf16.mxu1 %v16377_v49  ;;  %v7071_v27 = vmul.f32 %v11988_v52, %v15067_v62 }
0x10b7   : > { %v11990_v45 = vpop.eup %11989 }
0x10b8   : > { %v7072_v19 = vmul.f32 %v11990_v45, %v15071_v11 }
0x10ba   : > { %v7037_v18 = vpop.xlane.xlu0 %7036  ;;  %v7083_v20 = vpack.c.bf16 %v7072_v19, %v7071_v27 }
0x10bb   : > { %11995 = vrcp.f32 %v7037_v18 }
0x10bc   : > { %v7040_v56 = vpop.xlane.xlu1 %7039  ;;  %11060 = vmatmul.mubr.msk.bf16.vlgmr.msra.gmra.mrb[168].mxu0 %vm4701_vm1, %v7083_v20 }
0x10bd   : > { %v11992_v33 = vpop.eup %11991  ;;  %11997 = vrcp.f32 %v7040_v56  ;;  %11071 = vmatprep.mubr.msk.bf16.mxu0 %vm12283_vm14, %v16377_v49 }
0x10be   : > { %v7073_v34 = vmul.f32 %v11992_v33, %v15077_v30 }
0x10bf   : > { %v11994_v24 = vpop.eup %11993 }
0x10c0   : > { %v7074_v43 = vmul.f32 %v11994_v24, %v15084_v51 }
0x10c2   : > { %v7043_v50 = vpop.xlane.xlu0 %7042  ;;  %v7084_v62 = vpack.c.bf16 %v7074_v43, %v7073_v34 }
0x10c3   : > { %11999 = vrcp.f32 %v7043_v50 }
0x10c4   : > { %11066 = vmatmul.mubr.msk.bf16.vlgmr.msra.gmra.mrb[200].mxu1 %vm4701_vm1, %v7084_v62  ;;  %v7046_v11 = vpop.xlane.xlu1 %7045 }
0x10c5   : > { %v11996_v10 = vpop.eup %11995  ;;  %12001 = vrcp.f32 %v7046_v11  ;;  %11077 = vmatprep.mubr.msk.bf16.mxu1 %vm12283_vm14, %v16377_v49 }
0x10c6   : > { %v7417_v0 = vpop.permute.xlu0 %7416  ;;  %v7075_v13 = vmul.f32 %v11996_v10, %v15095_v35 }
0x10c7   : > { %v11998_v1 = vpop.eup %11997  ;;  %11076 = vmatpush3.bf16.msra.mxu1 %v7417_v0 }
0x10c8   : > { %v7076_v30 = vmul.f32 %v11998_v1, %v15100_v31  ;;  %v7370_v59 = vpop.permute.xlu1 %7369  ;;  %11099 = vmatprep.subr.bf16.mxu1 %v16377_v49 }
0x10c9   : > { %11070 = vmatpush3.bf16.msra.mxu0 %v7370_v59 }
0x10ca   : > { %v7085_v51 = vpack.c.bf16 %v7076_v30, %v7075_v13  ;;  %v7612_v35 = vpop.permute.xlu0 %7611  ;;  %11319 = vmatprep.subr.msk.bf16.mxu0 %vm6270_vm2, %v4282_v39 }
0x10cc   : > { %11072 = vmatmul.mubr.msk.bf16.vlgmr.msra.gmra.mrb[172].mxu0 %vm4701_vm1, %v7085_v51  ;;  %v7614_v22 = vpop.permute.xlu1 %7613 }
0x10cd   : > { %v12000_v12 = vpop.eup %11999  ;;  %v7619_v41 = vsel %vm4324_vm15, %v7614_v22, 0  ;;  %11082 = vmatpush3.bf16.msra.mxu0 %v7496_v25 }
0x10ce   : > { %v7077_v17 = vmul.f32 %v12000_v12, %v15108_v9  ;;  %v7663_v63 = vpop.permute.xlu0 %7662  ;;  %11123 = vmatprep.subr.bf16.mxu0 %v16377_v49 }
0x10cf   : > { %v12002_v58 = vpop.eup %12001 }
0x10d0   : > { %v7078_v55 = vmul.f32 %v12002_v58, %v15113_v4  ;;  %v7665_v31 = vpop.permute.xlu1 %7664 }
0x10d1   : > { %v7670_v16 = vsel %vm4324_vm15, %v7665_v31, 0 }
0x10d2   : > { %v7086_v44 = vpack.c.bf16 %v7078_v55, %v7077_v17  ;;  %v7714_v9 = vpop.permute.xlu0 %7713 }
0x10d4   : > { %11078 = vmatmul.mubr.msk.bf16.vlgmr.msra.gmra.mrb[204].mxu1 %vm4701_vm1, %v7086_v44  ;;  %v7716_v4 = vpop.permute.xlu1 %7715 }
0x10d5   : > { %11100 = vmatpush3.bf16.xpose.msra.mxu1 %v7619_v41  ;;  %11101 = vmatprep.mubr.msk.bf16.mxu1 %vm12283_vm14, %v16377_v49  ;;  %v7721_v60 = vsel %vm4324_vm15, %v7716_v4, 0 }
0x10d6   : > { %11105 = vmatprep.subr.bf16.mxu1 %v16377_v49  ;;  %v7818_v8 = vpop.permute.xlu0 %7817 }
0x10d7   : > { %v7823_v18 = vsel %vm4324_vm15, %v7818_v8, 0 }
0x10d8   : > { %v7767_v57 = vpop.permute.xlu1 %7766 }
0x10d9   : > { %v7772_v40 = vsel %vm4324_vm15, %v7767_v57, 0 }
0x10da   : > { %v7869_v15 = vpop.permute.xlu0 %7868 }
0x10db   : > { %v7874_v2 = vsel %vm4324_vm15, %v7869_v15, 0 }
0x10dc   : > { %11102 = vmatmul.mubr.msk.bf16.vlgmr.msra.gmra.mrb[208].mxu1 %vm4324_vm15, %v7612_v35  ;;  %v7765_v21 = vpop.permute.xlu1 %7764 }
0x10dd   : > { %11106 = vmatpush3.bf16.xpose.msra.mxu1 %v7670_v16  ;;  %11107 = vmatprep.mubr.msk.bf16.mxu1 %vm12283_vm14, %v16377_v49 }
0x10de   : > { %11111 = vmatprep.subr.bf16.mxu1 %v16377_v49  ;;  %v15260_v36 = vpop.permute.xlu0 %7919 }
0x10df   : > { %v7925_v25 = vsel %vm4324_vm15, %v15260_v36, 0 }
0x10e0   : > { %v15266_v29 = vpop.permute.xlu1 %7815 }
0x10e2   : > { %v7971_v46 = vpop.permute.xlu0 %7970 }
0x10e3   : > { %v7976_v23 = vsel %vm4324_vm15, %v7971_v46, 0 }
0x10e4   : > { %11108 = vmatmul.mubr.msk.bf16.vlgmr.msra.gmra.mrb[212].mxu1 %vm4324_vm15, %v7663_v63  ;;  %v7867_v28 = vpop.permute.xlu1 %7866 }
0x10e5   : > { %11112 = vmatpush3.bf16.xpose.msra.mxu1 %v7721_v60  ;;  %11113 = vmatprep.mubr.msk.bf16.mxu1 %vm12283_vm14, %v16377_v49 }
0x10e6   : > { %11117 = vmatprep.subr.bf16.mxu1 %v16377_v49  ;;  %v7969_v5 = vpop.permute.xlu0 %7968 }
0x10ec   : > { %11114 = vmatmul.mubr.msk.bf16.vlgmr.msra.gmra.mrb[216].mxu1 %vm4324_vm15, %v7714_v9 }
0x10ed   : > { %11118 = vmatpush3.bf16.xpose.msra.mxu1 %v7772_v40  ;;  %11119 = vmatprep.mubr.msk.bf16.mxu1 %vm12283_vm14, %v16377_v49 }
0x10ee   : > { %11129 = vmatprep.subr.bf16.mxu1 %v16377_v49 }
0x10f4   : > { %11120 = vmatmul.mubr.msk.bf16.vlgmr.msra.gmra.mrb[220].mxu1 %vm4324_vm15, %v7765_v21 }
0x10f5   : > { %11130 = vmatpush3.bf16.xpose.msra.mxu1 %v7874_v2  ;;  %11131 = vmatprep.mubr.msk.bf16.mxu1 %vm12283_vm14, %v16377_v49 }
0x10f6   : > { %11141 = vmatprep.subr.bf16.mxu1 %v16377_v49 }
0x10fc   : > { %11132 = vmatmul.mubr.msk.bf16.vlgmr.msra.gmra.mrb[224].mxu1 %vm4324_vm15, %v7867_v28 }
0x10fd   : > { %11142 = vmatpush3.bf16.xpose.msra.mxu1 %v7976_v23  ;;  %11143 = vmatprep.mubr.msk.bf16.mxu1 %vm12283_vm14, %v16377_v49 }
0x10fe   : > { %11153 = vmatprep.subr.bf16.mxu1 %v16377_v49 }
0x1104   : > { %11144 = vmatmul.mubr.msk.bf16.vlgmr.msra.gmra.mrb[228].mxu1 %vm4324_vm15, %v7969_v5 }
0x1105   : > { %11155 = vmatprep.mubr.msk.bf16.mxu1 %vm12283_vm14, %v16377_v49 }
0x116f   : > { %v7127_v6 = vpop.f32.mrb[160].mxu0 }
0x1170   : > { %v11037_v26 = vpop.f32.mrb[161].mxu0 }
0x1171   : > { %v7130_v61 = vpop.f32.mrb[162].mxu0 }
0x1172   : > { %v7463_v3 = vpack.c.bf16 %v7130_v61, %v7127_v6  ;;  %v11038_v32 = vpop.f32.mrb[163].mxu0  ;;  %v7918_v6 = vpop.permute.xlu1 %7917 }
0x1174   : > { %11083 = vmatprep.mubr.msk.bf16.mxu0 %vm4324_vm15, %v7463_v3 }
0x1177   : > { %v7174_v53 = vpop.f32.mrb[192].mxu1 }
0x1178   : > { %v11043_v52 = vpop.f32.mrb[193].mxu1 }
0x1179   : > { %v7177_v45 = vpop.f32.mrb[194].mxu1 }
0x117a   : > { %v7464_v27 = vpack.c.bf16 %v7177_v45, %v7174_v53  ;;  %v11044_v19 = vpop.f32.mrb[195].mxu1 }
0x117c   : > { %11084 = vmatmul.mubr.msk.bf16.vlgmr.msra.gmra.mrb[144].mxu0 %vm4324_vm15, %v7464_v27 }
0x117d   : > { %11124 = vmatpush3.bf16.xpose.msra.mxu0 %v7823_v18 }
0x117e   : > { %11135 = vmatprep.subr.bf16.mxu0 %v16377_v49 }
0x117f   : > { %v7221_v20 = vpop.f32.mrb[164].mxu0 }
0x1180   : > { %v11049_v56 = vpop.f32.mrb[165].mxu0 }
0x1181   : > { %v7224_v33 = vpop.f32.mrb[166].mxu0 }
0x1182   : > { %v7465_v24 = vpack.c.bf16 %v7224_v33, %v7221_v20  ;;  %v11050_v34 = vpop.f32.mrb[167].mxu0 }
0x1184   : > { %11087 = vmatprep.mubr.msk.bf16.mxu0 %vm4324_vm15, %v7465_v24 }
0x1187   : > { %v7268_v43 = vpop.f32.mrb[196].mxu1 }
0x1188   : > { %v11055_v50 = vpop.f32.mrb[197].mxu1 }
0x1189   : > { %v7271_v62 = vpop.f32.mrb[198].mxu1 }
0x118a   : > { %v7466_v11 = vpack.c.bf16 %v7271_v62, %v7268_v43  ;;  %v11056_v10 = vpop.f32.mrb[199].mxu1 }
0x118c   : > { %11088 = vmatmul.mubr.msk.bf16.gmra.mrb[148].mxu0 %vm4324_vm15, %v7466_v11 }
0x118f   : > { %v7315_v0 = vpop.f32.mrb[168].mxu0 }
0x1190   : > { %v11061_v1 = vpop.f32.mrb[169].mxu0 }
0x1191   : > { %v7318_v13 = vpop.f32.mrb[170].mxu0 }
0x1192   : > { %v7467_v30 = vpack.c.bf16 %v7318_v13, %v7315_v0  ;;  %v11062_v59 = vpop.f32.mrb[171].mxu0 }
0x1194   : > { %11091 = vmatprep.mubr.msk.bf16.mxu0 %vm4324_vm15, %v7467_v30 }
0x1197   : > { %v7362_v51 = vpop.f32.mrb[200].mxu1 }
0x1198   : > { %v11067_v12 = vpop.f32.mrb[201].mxu1 }
0x1199   : > { %v7365_v58 = vpop.f32.mrb[202].mxu1 }
0x119a   : > { %v7468_v17 = vpack.c.bf16 %v7365_v58, %v7362_v51  ;;  %v11068_v55 = vpop.f32.mrb[203].mxu1 }
0x119c   : > { %11092 = vmatmul.mubr.msk.bf16.gmra.mrb[152].mxu0 %vm4324_vm15, %v7468_v17 }
0x119f   : > { %v7409_v22 = vpop.f32.mrb[172].mxu0 }
0x11a0   : > { %v11073_v44 = vpop.f32.mrb[173].mxu0 }
0x11a1   : > { %v7412_v41 = vpop.f32.mrb[174].mxu0 }
0x11a2   : > { %v7469_v35 = vpack.c.bf16 %v7412_v41, %v7409_v22  ;;  %v11074_v31 = vpop.f32.mrb[175].mxu0 }
0x11a4   : > { %11095 = vmatprep.mubr.msk.bf16.mxu0 %vm4324_vm15, %v7469_v35 }
0x11a7   : > { %v7456_v63 = vpop.f32.mrb[204].mxu1 }
0x11a8   : > { %v11079_v16 = vpop.f32.mrb[205].mxu1 }
0x11a9   : > { %v7459_v9 = vpop.f32.mrb[206].mxu1 }
0x11aa   : > { %v7470_v4 = vpack.c.bf16 %v7459_v9, %v7456_v63  ;;  %v11080_v60 = vpop.f32.mrb[207].mxu1 }
0x11ac   : > { %11096 = vmatmul.mubr.msk.bf16.gmra.mrb[156].mxu0 %vm4324_vm15, %v7470_v4 }
0x11ad   : > { %11125 = vmatprep.mubr.msk.bf16.mxu0 %vm12283_vm14, %v16377_v49 }
0x11af   : > { %v15292_v8 = vpop.f32.mrb[208].mxu1 }
0x11b0   : > { %v11103_v57 = vpop.f32.mrb[209].mxu1  ;;  %v8019_v40 = vsel %vm4701_vm1, %v15292_v8, -inf }
0x11b1   : > { %8020 = vmax.xlane.f32.xlu1 %v8019_v40  ;;  %v7658_v15 = vpop.f32.mrb[210].mxu1 }
0x11b2   : > { %v11104_v21 = vpop.f32.mrb[211].mxu1  ;;  %v8022_v39 = vsel %vm4701_vm1, %v7658_v15, -inf }
0x11b3   : > { %8023 = vmax.xlane.f32.xlu0 %v8022_v39 }
0x11b4   : > { %11126 = vmatmul.mubr.msk.bf16.vlgmr.msra.gmra.mrb[176].mxu0 %vm4324_vm15, %v15266_v29 }
0x11b5   : > { %11136 = vmatpush3.bf16.xpose.msra.mxu0 %v7925_v25  ;;  %11137 = vmatprep.mubr.msk.bf16.mxu0 %vm12283_vm14, %v16377_v49 }
0x11b6   : > { %11147 = vmatprep.subr.bf16.mxu0 %v16377_v49 }
0x11b7   : > { %v15304_v2 = vpop.f32.mrb[212].mxu1 }
0x11b8   : > { %v11109_v46 = vpop.f32.mrb[213].mxu1  ;;  %v8025_v28 = vsel %vm4701_vm1, %v15304_v2, -inf }
0x11b9   : > { %8026 = vmax.xlane.f32.xlu0 %v8025_v28  ;;  %v7709_v23 = vpop.f32.mrb[214].mxu1 }
0x11ba   : > { %v11110_v5 = vpop.f32.mrb[215].mxu1  ;;  %v8028_v36 = vsel %vm4701_vm1, %v7709_v23, -inf }
0x11bb   : > { %8029 = vmax.xlane.f32.xlu1 %v8028_v36 }
0x11bc   : > { %11138 = vmatmul.mubr.msk.bf16.vlgmr.msra.gmra.mrb[180].mxu0 %vm4324_vm15, %v7918_v6 }
0x11bd   : > { %11149 = vmatprep.mubr.msk.bf16.mxu0 %vm12283_vm14, %v16377_v49 }
0x11bf   : > { %v7757_v29 = vpop.f32.mrb[216].mxu1 }
0x11c0   : > { %v11115_v26 = vpop.f32.mrb[217].mxu1  ;;  %v8031_v61 = vsel %vm4701_vm1, %v7757_v29, -inf }
0x11c1   : > { %8032 = vmax.xlane.f32.xlu0 %v8031_v61  ;;  %v7760_v3 = vpop.f32.mrb[218].mxu1 }
0x11c2   : > { %v11116_v32 = vpop.f32.mrb[219].mxu1  ;;  %v8034_v53 = vsel %vm4701_vm1, %v7760_v3, -inf }
0x11c3   : > { %8035 = vmax.xlane.f32.xlu1 %v8034_v53 }
0x11c7   : > { %v15314_v52 = vpop.f32.mrb[220].mxu1 }
0x11c8   : > { %v11121_v45 = vpop.f32.mrb[221].mxu1  ;;  %v8037_v27 = vsel %vm4701_vm1, %v15314_v52, -inf }
0x11c9   : > { %8038 = vmax.xlane.f32.xlu0 %v8037_v27  ;;  %v7811_v19 = vpop.f32.mrb[222].mxu1 }
0x11ca   : > { %v11122_v18 = vpop.f32.mrb[223].mxu1  ;;  %v8040_v20 = vsel %vm4701_vm1, %v7811_v19, -inf }
0x11cb   : > { %8041 = vmax.xlane.f32.xlu1 %v8040_v20 }
0x11cf   : > { %v15319_v56 = vpop.f32.mrb[224].mxu1 }
0x11d0   : > { %v11133_v33 = vpop.f32.mrb[225].mxu1  ;;  %v8049_v24 = vsel %vm4701_vm1, %v15319_v56, -inf }
0x11d1   : > { %8050 = vmax.xlane.f32.xlu0 %v8049_v24  ;;  %v15323_v34 = vpop.f32.mrb[226].mxu1 }
0x11d2   : > { %v11134_v43 = vpop.f32.mrb[227].mxu1  ;;  %v8052_v50 = vsel %vm4701_vm1, %v15323_v34, -inf }
0x11d3   : > { %8053 = vmax.xlane.f32.xlu1 %v8052_v50 }
0x11d7   : > { %v15327_v62 = vpop.f32.mrb[228].mxu1 }
0x11d8   : > { %v11145_v11 = vpop.f32.mrb[229].mxu1  ;;  %v8061_v10 = vsel %vm4701_vm1, %v15327_v62, -inf }
0x11d9   : > { %8062 = vmax.xlane.f32.xlu0 %v8061_v10  ;;  %v15331_v0 = vpop.f32.mrb[230].mxu1 }
0x11da   : > { %v11146_v1 = vpop.f32.mrb[231].mxu1  ;;  %v8064_v13 = vsel %vm4701_vm1, %v15331_v0, -inf }
0x11db   : > { %8065 = vmax.xlane.f32.xlu1 %v8064_v13 }
0x123e   : > { %v8021_v17 = vpop.xlane.xlu1 %8020 }
0x123f   : > { %v8067_v22 = vsub.f32 %v15292_v8, %v8021_v17 }
0x1240   : > { %v8024_v30 = vpop.xlane.xlu0 %8023 }
0x1241   : > { %v8068_v59 = vsub.f32 %v7658_v15, %v8024_v30  ;;  %v8083_v41 = vmul.f32 1.442695, %v8067_v22 }
0x1243   : > { %v8085_v51 = vmul.f32 1.442695, %v8068_v59 }
0x1245   : > { %12003 = vpow2.f32 %v8085_v51 }
0x1246   : > { %v8027_v35 = vpop.xlane.xlu0 %8026  ;;  %12005 = vpow2.f32 %v8083_v41 }
0x1247   : > { %v8069_v16 = vsub.f32 %v15304_v2, %v8027_v35 }
0x1248   : > { %v8030_v55 = vpop.xlane.xlu1 %8029 }
0x1249   : > { %v8070_v44 = vsub.f32 %v7709_v23, %v8030_v55  ;;  %v8087_v57 = vmul.f32 1.442695, %v8069_v16 }
0x124b   : > { %v8089_v31 = vmul.f32 1.442695, %v8070_v44 }
0x124d   : > { %12007 = vpow2.f32 %v8089_v31 }
0x124e   : > { %v8033_v9 = vpop.xlane.xlu0 %8032  ;;  %12009 = vpow2.f32 %v8087_v57 }
0x124f   : > { %v15335_v12 = vpop.eup %12003  ;;  %v8071_v40 = vsub.f32 %v7757_v29, %v8033_v9 }
0x1250   : > { %v8118_v58 = vsel %vm4701_vm1, %v15335_v12, 0.0  ;;  %v8036_v63 = vpop.xlane.xlu1 %8035  ;;  %v15346_v36 = vpop.eup %12005 }
0x1251   : > { %8119 = vadd.xlane.f32.xlu1 %v8118_v58  ;;  %v8072_v4 = vsub.f32 %v7760_v3, %v8036_v63  ;;  %v8091_v8 = vmul.f32 1.442695, %v8071_v40 }
0x1253   : > { %v8093_v21 = vmul.f32 1.442695, %v8072_v4 }
0x1255   : > { %12011 = vpow2.f32 %v8093_v21 }
0x1256   : > { %v8039_v15 = vpop.xlane.xlu0 %8038  ;;  %12013 = vpow2.f32 %v8091_v8 }
0x1257   : > { %v8073_v46 = vsub.f32 %v15314_v52, %v8039_v15  ;;  %v15353_v53 = vpop.eup %12007 }
0x1258   : > { %v8042_v60 = vpop.xlane.xlu1 %8041  ;;  %v8124_v33 = vsel %vm4701_vm1, %v15353_v53, 0.0  ;;  %v15363_v11 = vpop.eup %12009 }
0x1259   : > { %v8074_v39 = vsub.f32 %v7811_v19, %v8042_v60  ;;  %v8095_v52 = vmul.f32 1.442695, %v8073_v46  ;;  %v8115_v19 = vsel %vm4701_vm1, %v15346_v36, 0.0 }
0x125b   : > { %v8097_v6 = vmul.f32 1.442695, %v8074_v39 }
0x125d   : > { %12015 = vpow2.f32 %v8097_v6 }
0x125e   : > { %v8051_v23 = vpop.xlane.xlu0 %8050  ;;  %12017 = vpow2.f32 %v8095_v52 }
0x125f   : > { %v8077_v45 = vsub.f32 %v15319_v56, %v8051_v23  ;;  %v15366_v30 = vpop.eup %12011 }
0x1260   : > { %v8054_v25 = vpop.xlane.xlu1 %8053  ;;  %v15370_v51 = vpop.eup %12013  ;;  %v8130_v58 = vsel %vm4701_vm1, %v15366_v30, 0.0 }
0x1261   : > { %v8078_v29 = vsub.f32 %v15323_v34, %v8054_v25  ;;  %v8103_v24 = vmul.f32 1.442695, %v8077_v45  ;;  %v8127_v55 = vsel %vm4701_vm1, %v15370_v51, 0.0 }
0x1263   : > { %v8105_v18 = vmul.f32 1.442695, %v8078_v29 }
0x1265   : > { %12019 = vpow2.f32 %v8105_v18 }
0x1266   : > { %v8063_v27 = vpop.xlane.xlu0 %8062  ;;  %12021 = vpow2.f32 %v8103_v24 }
0x1267   : > { %v8081_v34 = vsub.f32 %v15327_v62, %v8063_v27  ;;  %v8121_v62 = vsel %vm4701_vm1, %v15363_v11, 0.0  ;;  %v15374_v17 = vpop.eup %12015 }
0x1268   : > { %v8066_v61 = vpop.xlane.xlu1 %8065  ;;  %v15378_v22 = vpop.eup %12017  ;;  %v8136_v44 = vsel %vm4701_vm1, %v15374_v17, 0.0 }
0x1269   : > { %v8082_v20 = vsub.f32 %v15331_v0, %v8066_v61  ;;  %v8111_v59 = vmul.f32 1.442695, %v8081_v34  ;;  %v8133_v35 = vsel %vm4701_vm1, %v15378_v22, 0.0 }
0x126b   : > { %v8113_v10 = vmul.f32 1.442695, %v8082_v20 }
0x126d   : > { %12023 = vpow2.f32 %v8113_v10 }
0x126e   : > { %12025 = vpow2.f32 %v8111_v59 }
0x126f   : > { %v15382_v41 = vpop.eup %12019 }
0x1270   : > { %v15386_v31 = vpop.eup %12021  ;;  %v8148_v63 = vsel %vm4701_vm1, %v15382_v41, 0.0 }
0x1271   : > { %v8145_v9 = vsel %vm4701_vm1, %v15386_v31, 0.0 }
0x1277   : > { %v15390_v16 = vpop.eup %12023 }
0x1278   : > { %v15394_v4 = vpop.eup %12025  ;;  %v8160_v60 = vsel %vm4701_vm1, %v15390_v16, 0.0 }
0x1279   : > { %v8157_v57 = vsel %vm4701_vm1, %v15394_v4, 0.0 }
0x1287   : > { %v15342_v28 = vpop.f32.mrb[176].mxu0 }
0x1288   : > { %v11127_v5 = vpop.f32.mrb[177].mxu0  ;;  %v8043_v2 = vsel %vm4701_vm1, %v15342_v28, -inf }
0x1289   : > { %8044 = vmax.xlane.f32.xlu0 %v8043_v2  ;;  %v15349_v26 = vpop.f32.mrb[178].mxu0 }
0x128a   : > { %v11128_v3 = vpop.f32.mrb[179].mxu0  ;;  %v8046_v32 = vsel %vm4701_vm1, %v15349_v26, -inf }
0x128b   : > { %8047 = vmax.xlane.f32.xlu1 %v8046_v32 }
0x128d   : > { %8116 = vadd.xlane.f32.xlu0 %v8115_v19 }
0x128f   : > { %8125 = vadd.xlane.f32.xlu1 %v8124_v33  ;;  %v7961_v43 = vpop.f32.mrb[180].mxu0 }
0x1290   : > { %v11139_v56 = vpop.f32.mrb[181].mxu0  ;;  %v8055_v50 = vsel %vm4701_vm1, %v7961_v43, -inf }
0x1291   : > { %8056 = vmax.xlane.f32.xlu0 %v8055_v50  ;;  %v7964_v1 = vpop.f32.mrb[182].mxu0 }
0x1292   : > { %v11140_v0 = vpop.f32.mrb[183].mxu0  ;;  %v8058_v13 = vsel %vm4701_vm1, %v7964_v1, -inf }
0x1293   : > { %8059 = vmax.xlane.f32.xlu1 %v8058_v13 }
0x1295   : > { %8122 = vadd.xlane.f32.xlu0 %v8121_v62 }
0x1297   : > { %8131 = vadd.xlane.f32.xlu1 %v8130_v58 }
0x1299   : > { %8128 = vadd.xlane.f32.xlu0 %v8127_v55 }
0x129b   : > { %8137 = vadd.xlane.f32.xlu1 %v8136_v44 }
0x129d   : > { %8134 = vadd.xlane.f32.xlu0 %v8133_v35 }
0x129f   : > { %8149 = vadd.xlane.f32.xlu1 %v8148_v63 }
0x12a1   : > { %8146 = vadd.xlane.f32.xlu0 %v8145_v9 }
0x12a3   : > { %8161 = vadd.xlane.f32.xlu1 %v8160_v60 }
0x12a5   : > { %8158 = vadd.xlane.f32.xlu0 %v8157_v57 }
0x12b4   : > { %8250 = vrot.lane.b32.xlu1 %v14258_v54, %s12286_s5 }
0x12b8   : > { %8297 = vrot.lane.b32.xlu1 %v14276_v38, %s12286_s5 }
0x12bb   : > { %8203 = vrot.lane.b32.xlu0 %v14260_v14, %s12286_s5 }
0x12bc   : > { %8391 = vrot.lane.b32.xlu1 %v14280_v7, %s12286_s5 }
0x12bf   : > { %8344 = vrot.lane.b32.xlu0 %v14274_v48, %s12286_s5 }
0x12c3   : > { %8438 = vrot.lane.b32.xlu0 %v14278_v37, %s12286_s5 }
0x12de   : > { %v8120_v40 = vpop.xlane.xlu1 %8119 }
0x1316   : > { %v8045_v15 = vpop.xlane.xlu0 %8044 }
0x1317   : > { %v8075_v21 = vsub.f32 %v15342_v28, %v8045_v15 }
0x1318   : > { %v8048_v54 = vpop.xlane.xlu1 %8047 }
0x1319   : > { %v8099_v39 = vmul.f32 1.442695, %v8075_v21  ;;  %v8076_v38 = vsub.f32 %v15349_v26, %v8048_v54 }
0x131a   : > { %v8117_v25 = vpop.xlane.xlu0 %8116 }
0x131b   : > { %12027 = vpow2.f32 %v8099_v39  ;;  %v8101_v14 = vmul.f32 1.442695, %v8076_v38 }
0x131c   : > { %v8126_v8 = vpop.xlane.xlu1 %8125 }
0x131d   : > { %12029 = vpow2.f32 %v8101_v14 }
0x131e   : > { %v8057_v7 = vpop.xlane.xlu0 %8056 }
0x131f   : > { %v8079_v46 = vsub.f32 %v7961_v43, %v8057_v7 }
0x1320   : > { %v8060_v23 = vpop.xlane.xlu1 %8059 }
0x1321   : > { %v8107_v48 = vmul.f32 1.442695, %v8079_v46  ;;  %v8080_v5 = vsub.f32 %v7964_v1, %v8060_v23 }
0x1322   : > { %v8123_v2 = vpop.xlane.xlu0 %8122 }
0x1323   : > { %12031 = vpow2.f32 %v8107_v48  ;;  %v8109_v37 = vmul.f32 1.442695, %v8080_v5 }
0x1324   : > { %12033 = vrcp.f32 %v8123_v2  ;;  %v8132_v6 = vpop.xlane.xlu1 %8131 }
0x1325   : > { %v15414_v28 = vpop.eup %12027  ;;  %12035 = vpow2.f32 %v8109_v37  ;;  %v4283_v37 = vld [vmem:[%s16388_s1 + $0xc] sm:$0xf]  ;;  %s16440_s1 = sld [smem:[#allocation28_spill]] }
0x1326   : > { %12037 = vrcp.f32 %v8117_v25  ;;  %v8129_v29 = vpop.xlane.xlu0 %8128  ;;  %v8139_v26 = vsel %vm4701_vm1, %v15414_v28, 0.0 }
0x1327   : > { %v15418_v61 = vpop.eup %12029  ;;  %12039 = vrcp.f32 %v8126_v8  ;;  %8140 = vadd.xlane.f32.xlu0 %v8139_v26 }
0x1328   : > { %v8138_v3 = vpop.xlane.xlu1 %8137  ;;  %v8142_v32 = vsel %vm4701_vm1, %v15418_v61, 0.0  ;;  %12041 = vrcp.f32 %v8120_v40 }
0x1329   : > { %8143 = vadd.xlane.f32.xlu1 %v8142_v32  ;;  %v8612_v32 = vsel %vm6270_vm2, %v4283_v37, 0 }
0x132a   : > { %v8135_v52 = vpop.xlane.xlu0 %8134 }
0x132b   : > { %12043 = vrcp.f32 %v8135_v52 }
0x132c   : > { %v8150_v45 = vpop.xlane.xlu1 %8149  ;;  %12045 = vrcp.f32 %v8129_v29 }
0x132d   : > { %v15422_v27 = vpop.eup %12031  ;;  %12047 = vrcp.f32 %v8138_v3 }
0x132e   : > { %v12034_v19 = vpop.eup %12033  ;;  %v8147_v18 = vpop.xlane.xlu0 %8146  ;;  %v8151_v20 = vsel %vm4701_vm1, %v15422_v27, 0.0  ;;  %12049 = vrcp.f32 %v8132_v6 }
0x132f   : > { %v15426_v33 = vpop.eup %12035  ;;  %8152 = vadd.xlane.f32.xlu0 %v8151_v20  ;;  %v8181_v50 = vmul.f32 %v12034_v19, %v15363_v11 }
0x1330   : > { %v12038_v24 = vpop.eup %12037  ;;  %v8162_v34 = vpop.xlane.xlu1 %8161  ;;  %v8154_v43 = vsel %vm4701_vm1, %v15426_v33, 0.0 }
0x1331   : > { %v12040_v56 = vpop.eup %12039  ;;  %12051 = vrcp.f32 %v8162_v34  ;;  %8155 = vadd.xlane.f32.xlu1 %v8154_v43  ;;  %v8179_v0 = vmul.f32 %v12038_v24, %v15346_v36 }
0x1332   : > { %v8159_v10 = vpop.xlane.xlu0 %8158  ;;  %v12042_v1 = vpop.eup %12041  ;;  %v8182_v13 = vmul.f32 %v12040_v56, %v15353_v53 }
0x1333   : > { %12053 = vrcp.f32 %v8159_v10  ;;  %v8180_v62 = vmul.f32 %v12042_v1, %v15335_v12 }
0x1334   : > { %v8251_v59 = vpop.permute.xlu1 %8250  ;;  %12055 = vrcp.f32 %v8147_v18  ;;  %v8196_v55 = vpack.c.bf16 %v8182_v13, %v8181_v50 }
0x1335   : > { %11154 = vmatpush3.bf16.msra.mxu1 %v8251_v59  ;;  %v12044_v44 = vpop.eup %12043  ;;  %12057 = vrcp.f32 %v8150_v45  ;;  %v8195_v35 = vpack.c.bf16 %v8180_v62, %v8179_v0 }
0x1336   : > { %v8204_v58 = vpop.permute.xlu0 %8203  ;;  %11165 = vmatprep.subr.bf16.mxu1 %v16377_v49  ;;  %v12046_v11 = vpop.eup %12045  ;;  %v8185_v12 = vmul.f32 %v12044_v44, %v15378_v22 }
0x1337   : > { %11148 = vmatpush3.bf16.msra.mxu0 %v8204_v58  ;;  %v12048_v36 = vpop.eup %12047  ;;  %v8183_v57 = vmul.f32 %v12046_v11, %v15370_v51 }
0x1338   : > { %11156 = vmatmul.mubr.msk.bf16.vlgmr.msra.gmra.mrb[232].mxu1 %vm4701_vm1, %v8196_v55  ;;  %11159 = vmatprep.subr.bf16.mxu0 %v16377_v49  ;;  %v12050_v53 = vpop.eup %12049  ;;  %v8298_v63 = vpop.permute.xlu1 %8297  ;;  %v8186_v40 = vmul.f32 %v12048_v36, %v15374_v17 }
0x1339   : > { %11167 = vmatprep.mubr.msk.bf16.mxu1 %vm12283_vm14, %v16377_v49  ;;  %v8184_v22 = vmul.f32 %v12050_v53, %v15366_v30 }
0x133a   : > { %11150 = vmatmul.mubr.msk.bf16.vlgmr.msra.gmra.mrb[184].mxu0 %vm4701_vm1, %v8195_v35  ;;  %v8345_v9 = vpop.permute.xlu0 %8344  ;;  %v8198_v38 = vpack.c.bf16 %v8186_v40, %v8185_v12 }
0x133b   : > { %v12052_v60 = vpop.eup %12051  ;;  %11160 = vmatpush3.bf16.msra.mxu0 %v8298_v63  ;;  %11166 = vmatpush3.bf16.msra.mxu1 %v8345_v9  ;;  %v8197_v51 = vpack.c.bf16 %v8184_v22, %v8183_v57 }
0x133c   : > { %11177 = vmatprep.subr.bf16.mxu1 %v16377_v49  ;;  %11161 = vmatprep.mubr.msk.bf16.mxu0 %vm12283_vm14, %v16377_v49  ;;  %v8194_v21 = vmul.f32 %v12052_v60, %v15390_v16  ;;  %v8392_v7 = vpop.permute.xlu1 %8391 }
0x133d   : > { %v12054_v15 = vpop.eup %12053  ;;  %11171 = vmatprep.subr.bf16.mxu0 %v16377_v49 }
0x133e   : > { %v8193_v54 = vmul.f32 %v12054_v15, %v15394_v4  ;;  %v8439_v39 = vpop.permute.xlu0 %8438  ;;  %v12056_v25 = vpop.eup %12055 }
0x133f   : > { %v12058_v14 = vpop.eup %12057  ;;  %v8189_v8 = vmul.f32 %v12056_v25, %v15386_v31 }
0x1340   : > { %11168 = vmatmul.mubr.msk.bf16.vlgmr.msra.gmra.mrb[236].mxu1 %vm4701_vm1, %v8198_v38  ;;  %v8202_v17 = vpack.c.bf16 %v8194_v21, %v8193_v54  ;;  %v8190_v30 = vmul.f32 %v12058_v14, %v15382_v41 }
0x1341   : > { %11178 = vmatpush3.bf16.msra.mxu1 %v8439_v39  ;;  %11179 = vmatprep.mubr.msk.bf16.mxu1 %vm12283_vm14, %v16377_v49 }
0x1342   : > { %8485 = vrot.lane.b32.xlu1 %v14284_v42, %s12286_s5  ;;  %11162 = vmatmul.mubr.msk.bf16.vlgmr.msra.gmra.mrb[188].mxu0 %vm4701_vm1, %v8197_v51  ;;  %v8200_v31 = vpack.c.bf16 %v8190_v30, %v8189_v8 }
0x1343   : > { %11172 = vmatpush3.bf16.msra.mxu0 %v8392_v7  ;;  %11189 = vmatprep.subr.bf16.mxu1 %v16377_v49  ;;  %v16420_v7 = vld [vmem:[#allocation40_spill] sm:$0xff] }
0x1344   : > { %11173 = vmatprep.mubr.msk.bf16.mxu0 %vm12283_vm14, %v16377_v49  ;;  %11183 = vmatprep.subr.bf16.mxu0 %v16377_v49 }
0x1345   : > { %8532 = vrot.lane.b32.xlu0 %v14282_v47, %s12286_s5  ;;  %s16419_s5 = sld [smem:[#allocation26_spill]] }
0x1348   : > { %11180 = vmatmul.mubr.msk.bf16.vlgmr.msra.gmra.mrb[240].mxu1 %vm4701_vm1, %v8200_v31 }
0x1349   : > { %11191 = vmatprep.mubr.msk.bf16.mxu1 %vm12283_vm14, %v16377_v49 }
0x134b   : > { %v15488_v14 = vld [vmem:[%s16419_s5] ss:$0 sm:$0xff]  ;;  %s16439_s5 = sld [smem:[#allocation27_spill]] }
0x13b4   : > { %v8141_v42 = vpop.xlane.xlu0 %8140 }
0x13b5   : > { %12059 = vrcp.f32 %v8141_v42  ;;  %v16421_v42 = vld [vmem:[#allocation43_spill] sm:$0xff] }
0x13b6   : > { %v8144_v16 = vpop.xlane.xlu1 %8143 }
0x13b7   : > { %12061 = vrcp.f32 %v8144_v16 }
0x13bc   : > { %v8153_v41 = vpop.xlane.xlu0 %8152 }
0x13bd   : > { %12063 = vrcp.f32 %v8153_v41  ;;  %v16422_v41 = vld [vmem:[#allocation48_spill] sm:$0xff] }
0x13be   : > { %v8156_v4 = vpop.xlane.xlu1 %8155 }
0x13bf   : > { %v12060_v46 = vpop.eup %12059  ;;  %12065 = vrcp.f32 %v8156_v4 }
0x13c0   : > { %v8533_v23 = vpop.permute.xlu0 %8532  ;;  %v8187_v47 = vmul.f32 %v12060_v46, %v15414_v28 }
0x13c1   : > { %v12062_v48 = vpop.eup %12061  ;;  %11190 = vmatpush3.bf16.msra.mxu1 %v8533_v23 }
0x13c2   : > { %v8188_v5 = vmul.f32 %v12062_v48, %v15418_v61  ;;  %v8486_v6 = vpop.permute.xlu1 %8485  ;;  %v16423_v48 = vld [vmem:[#allocation51_spill] sm:$0xff] }
0x13c4   : > { %11192 = vmatmul.mubr.msk.bf16.vlgmr.msra.gmra.mrb[244].mxu1 %vm4701_vm1, %v8202_v17  ;;  %v8199_v2 = vpack.c.bf16 %v8188_v5, %v8187_v47 }
0x13c6   : > { %11174 = vmatmul.mubr.msk.bf16.vlgmr.msra.gmra.mrb[192].mxu0 %vm4701_vm1, %v8199_v2 }
0x13c7   : > { %v12064_v29 = vpop.eup %12063  ;;  %11184 = vmatpush3.bf16.msra.mxu0 %v8486_v6  ;;  %11185 = vmatprep.mubr.msk.bf16.mxu0 %vm12283_vm14, %v16377_v49 }
0x13c8   : > { %11320 = vmatprep.subr.msk.bf16.mxu0 %vm6270_vm2, %v4283_v37  ;;  %v8191_v3 = vmul.f32 %v12064_v29, %v15422_v27 }
0x13c9   : > { %v12066_v26 = vpop.eup %12065 }
0x13ca   : > { %v8192_v28 = vmul.f32 %v12066_v26, %v15426_v33 }
0x13cc   : > { %v8201_v61 = vpack.c.bf16 %v8192_v28, %v8191_v3  ;;  %v16424_v28 = vld [vmem:[#allocation49_spill] sm:$0xff] }
0x13ce   : > { %11186 = vmatmul.mubr.msk.bf16.vlgmr.msra.gmra.mrb[196].mxu0 %vm4701_vm1, %v8201_v61 }
0x13cf   : > { %11196 = vmatpush3.bf16.msra.mxu0 %v8612_v32 }
0x140b   : > { %v8290_v52 = vpop.f32.mrb[232].mxu1 }
0x140c   : > { %v11157_v45 = vpop.f32.mrb[233].mxu1 }
0x140d   : > { %v8243_v19 = vpop.f32.mrb[184].mxu0  ;;  %v8293_v18 = vpop.f32.mrb[234].mxu1 }
0x140e   : > { %v8580_v20 = vpack.c.bf16 %v8293_v18, %v8290_v52  ;;  %v11151_v24 = vpop.f32.mrb[185].mxu0  ;;  %v11158_v49 = vpop.f32.mrb[235].mxu1  ;;  %v16425_v18 = vld [vmem:[#allocation52_spill] sm:$0xff] }
0x140f   : > { %v8246_v34 = vpop.f32.mrb[186].mxu0  ;;  %v16426_v49 = vld [vmem:[#allocation58_spill] sm:$0xff] }
0x1410   : > { %v8579_v43 = vpack.c.bf16 %v8246_v34, %v8243_v19  ;;  %v11152_v56 = vpop.f32.mrb[187].mxu0 }
0x1412   : > { %11197 = vmatprep.mubr.msk.bf16.mxu0 %vm4324_vm15, %v8579_v43  ;;  %v16427_v43 = vld [vmem:[#allocation34_spill] sm:$0xff] }
0x1413   : > { %v8384_v27 = vpop.f32.mrb[236].mxu1  ;;  %11198 = vmatmul.mubr.msk.bf16.vlgmr.msra.gmra.mrb[144].mxu0 %vm4324_vm15, %v8580_v20 }
0x1414   : > { %v11169_v33 = vpop.f32.mrb[237].mxu1 }
0x1415   : > { %v8337_v50 = vpop.f32.mrb[188].mxu0  ;;  %v8387_v10 = vpop.f32.mrb[238].mxu1 }
0x1416   : > { %v8582_v1 = vpack.c.bf16 %v8387_v10, %v8384_v27  ;;  %v11163_v0 = vpop.f32.mrb[189].mxu0  ;;  %v11170_v13 = vpop.f32.mrb[239].mxu1 }
0x1417   : > { %v8340_v59 = vpop.f32.mrb[190].mxu0 }
0x1418   : > { %v8581_v62 = vpack.c.bf16 %v8340_v59, %v8337_v50  ;;  %v11164_v58 = vpop.f32.mrb[191].mxu0 }
0x1419   : > { %v16428_v58 = vld [vmem:[#allocation59_spill] sm:$0xff] }
0x141a   : > { %11201 = vmatprep.mubr.msk.bf16.mxu0 %vm4324_vm15, %v8581_v62 }
0x141b   : > { %v8478_v55 = vpop.f32.mrb[240].mxu1  ;;  %11202 = vmatmul.mubr.msk.bf16.gmra.mrb[148].mxu0 %vm4324_vm15, %v8582_v1 }
0x141c   : > { %v11181_v44 = vpop.f32.mrb[241].mxu1 }
0x141d   : > { %v8481_v11 = vpop.f32.mrb[242].mxu1  ;;  %v16429_v44 = vld [vmem:[#allocation36_spill] sm:$0xff] }
0x141e   : > { %v8584_v35 = vpack.c.bf16 %v8481_v11, %v8478_v55  ;;  %v11182_v36 = vpop.f32.mrb[243].mxu1 }
0x141f   : > { %v16430_v36 = vld [vmem:[#allocation33_spill] sm:$0xff] }
0x1497   : > { %v8572_v53 = vpop.f32.mrb[244].mxu1 }
0x1498   : > { %v11193_v12 = vpop.f32.mrb[245].mxu1 }
0x1499   : > { %v8431_v63 = vpop.f32.mrb[192].mxu0  ;;  %v8575_v9 = vpop.f32.mrb[246].mxu1 }
0x149a   : > { %v8586_v60 = vpack.c.bf16 %v8575_v9, %v8572_v53  ;;  %v11175_v57 = vpop.f32.mrb[193].mxu0  ;;  %v11194_v40 = vpop.f32.mrb[247].mxu1  ;;  %v16431_v9 = vld [vmem:[#allocation60_spill] sm:$0xff] }
0x149b   : > { %v8434_v15 = vpop.f32.mrb[194].mxu0 }
0x149c   : > { %v8583_v22 = vpack.c.bf16 %v8434_v15, %v8431_v63  ;;  %v11176_v21 = vpop.f32.mrb[195].mxu0 }
0x149e   : > { %11205 = vmatprep.mubr.msk.bf16.mxu0 %vm4324_vm15, %v8583_v22 }
0x149f   : > { %11206 = vmatmul.mubr.msk.bf16.gmra.mrb[152].mxu0 %vm4324_vm15, %v8584_v35 }
0x14a1   : > { %v8525_v54 = vpop.f32.mrb[196].mxu0 }
0x14a2   : > { %v11187_v39 = vpop.f32.mrb[197].mxu0 }
0x14a3   : > { %v8528_v38 = vpop.f32.mrb[198].mxu0 }
0x14a4   : > { %v8585_v25 = vpack.c.bf16 %v8528_v38, %v8525_v54  ;;  %v11188_v51 = vpop.f32.mrb[199].mxu0 }
0x14a5   : > { %v16432_v51 = vld [vmem:[#allocation61_spill] sm:$0xff] }
0x14a6   : > { %11209 = vmatprep.mubr.msk.bf16.mxu0 %vm4324_vm15, %v8585_v25 }
0x14a7   : > { %11210 = vmatmul.mubr.msk.bf16.gmra.mrb[156].mxu0 %vm4324_vm15, %v8586_v60 }
0x14e6   : > { %v11199_v17 = vpop.f32.mrb[144].mxu0 }
0x14e7   : > { %v8648_v8 = vpop.f32.mrb[145].mxu0  ;;  %v8729_v16 = vadd.f32 %v11199_v17, %v16421_v42 }
0x14e8   : > { %v8727_v30 = vadd.f32 %v8648_v8, %v16420_v7  ;;  %v11200_v31 = vpop.f32.mrb[146].mxu0  ;;  %v16433_v8 = vld [vmem:[#allocation37_spill] sm:$0xff] }
0x14e9   : > { %v8730_v4 = vadd.f32 %v11200_v31, %v16422_v41  ;;  %v8651_v46 = vpop.f32.mrb[147].mxu0  ;;  %v15506_v6 = vadd.f32 %v15488_v14, %v8729_v16 }
0x14ea   : > { %v15494_v23 = vadd.f32 %v15488_v14, %v8727_v30  ;;  %v8728_v47 = vadd.f32 %v8651_v46, %v16423_v48  ;;  %v16434_v48 = vld [vmem:[#allocation57_spill] sm:$0xff] }
0x14eb   : > { %v15498_v5 = vadd.f32 %v15488_v14, %v8730_v4  ;;  %v8772_v19 = vsel %vm1227_vm0, %v15506_v6, 0.0 }
0x14ec   : > { %v15501_v2 = vadd.f32 %v15488_v14, %v8728_v47  ;;  %v8766_v37 = vsel %vm1227_vm0, %v15494_v23, 0.0 }
0x14ed   : > { %8767 = vadd.xlane.f32.xlu1 %v8766_v37  ;;  %v8775_v52 = vsel %vm1227_vm0, %v15498_v5, 0.0  ;;  %v16435_v37 = vld [vmem:[#allocation56_spill] sm:$0xff] }
0x14ee   : > { %v11203_v29 = vpop.f32.mrb[148].mxu0  ;;  %v8769_v26 = vsel %vm1227_vm0, %v15501_v2, 0.0 }
0x14ef   : > { %8770 = vadd.xlane.f32.xlu0 %v8769_v26  ;;  %v8664_v3 = vpop.f32.mrb[149].mxu0  ;;  %v8733_v20 = vadd.f32 %v11203_v29, %v16425_v18 }
0x14f0   : > { %v8731_v61 = vadd.f32 %v8664_v3, %v16424_v28  ;;  %v11204_v32 = vpop.f32.mrb[150].mxu0 }
0x14f1   : > { %8776 = vadd.xlane.f32.xlu1 %v8775_v52  ;;  %v8667_v45 = vpop.f32.mrb[151].mxu0  ;;  %v8734_v34 = vadd.f32 %v11204_v32, %v16426_v49  ;;  %v15525_v33 = vadd.f32 %v15488_v14, %v8733_v20 }
0x14f2   : > { %v15517_v24 = vadd.f32 %v15488_v14, %v8731_v61  ;;  %v8732_v56 = vadd.f32 %v8667_v45, %v16427_v43 }
0x14f3   : > { %8773 = vadd.xlane.f32.xlu0 %v8772_v19  ;;  %v15528_v50 = vadd.f32 %v15488_v14, %v8734_v34  ;;  %v8784_v0 = vsel %vm1227_vm0, %v15525_v33, 0.0 }
0x14f4   : > { %v15522_v27 = vadd.f32 %v15488_v14, %v8732_v56  ;;  %v8778_v10 = vsel %vm1227_vm0, %v15517_v24, 0.0 }
0x14f5   : > { %v8787_v13 = vsel %vm1227_vm0, %v15528_v50, 0.0 }
0x14f6   : > { %v8781_v1 = vsel %vm1227_vm0, %v15522_v27, 0.0 }
0x14f7   : > { %8779 = vadd.xlane.f32.xlu0 %v8778_v10  ;;  %8782 = vadd.xlane.f32.xlu1 %v8781_v1 }
0x14fb   : > { %8785 = vadd.xlane.f32.xlu0 %v8784_v0  ;;  %8788 = vadd.xlane.f32.xlu1 %v8787_v13 }
0x1572   : > { %v11207_v59 = vpop.f32.mrb[152].mxu0 }
0x1573   : > { %v8680_v62 = vpop.f32.mrb[153].mxu0  ;;  %v8737_v55 = vadd.f32 %v11207_v59, %v16428_v58 }
0x1574   : > { %v8735_v11 = vadd.f32 %v8680_v62, %v16429_v44  ;;  %v11208_v35 = vpop.f32.mrb[154].mxu0 }
0x1575   : > { %v8738_v53 = vadd.f32 %v11208_v35, %v16430_v36  ;;  %v8683_v12 = vpop.f32.mrb[155].mxu0  ;;  %v15546_v57 = vadd.f32 %v15488_v14, %v8737_v55 }
0x1576   : > { %v15542_v63 = vadd.f32 %v15488_v14, %v8735_v11  ;;  %v8736_v60 = vadd.f32 %v8683_v12, %v16431_v9 }
0x1577   : > { %v15554_v22 = vadd.f32 %v15488_v14, %v8738_v53  ;;  %v8796_v42 = vsel %vm1227_vm0, %v15546_v57, 0.0 }
0x1578   : > { %v15549_v40 = vadd.f32 %v15488_v14, %v8736_v60  ;;  %v8790_v15 = vsel %vm1227_vm0, %v15542_v63, 0.0 }
0x1579   : > { %8791 = vadd.xlane.f32.xlu0 %v8790_v15  ;;  %v8799_v41 = vsel %vm1227_vm0, %v15554_v22, 0.0 }
0x157a   : > { %v8768_v21 = vpop.xlane.xlu1 %8767  ;;  %v11211_v54 = vpop.f32.mrb[156].mxu0  ;;  %v8793_v39 = vsel %vm1227_vm0, %v15549_v40, 0.0 }
0x157b   : > { %8794 = vadd.xlane.f32.xlu1 %v8793_v39  ;;  %v8696_v38 = vpop.f32.mrb[157].mxu0  ;;  %v8814_v25 = vmul.f32 0.03125, %v8768_v21  ;;  %v8741_v17 = vadd.f32 %v11211_v54, %v16432_v51 }
0x157c   : > { %v8739_v7 = vadd.f32 %v8696_v38, %v16433_v8  ;;  %v8771_v30 = vpop.xlane.xlu0 %8770  ;;  %v11212_v31 = vpop.f32.mrb[158].mxu0 }
0x157d   : > { %8797 = vadd.xlane.f32.xlu0 %v8796_v42  ;;  %v8699_v16 = vpop.f32.mrb[159].mxu0  ;;  %v8815_v46 = vmul.f32 0.03125, %v8771_v30  ;;  %v8742_v47 = vadd.f32 %v11212_v31, %v16434_v48  ;;  %v15570_v3 = vsub.f32 %v15494_v23, %v8814_v25  ;;  %v15573_v28 = vadd.f32 %v15488_v14, %v8741_v17  ;;  %v11437_v42 = vld [vmem:[%s16438_s3] sm:$0xff]  }
0x157e   : > { %v15565_v4 = vadd.f32 %v15488_v14, %v8739_v7  ;;  %v8740_v29 = vadd.f32 %v8699_v16, %v16435_v37  ;;  %v8777_v26 = vpop.xlane.xlu1 %8776  ;;  %v11438_v16 = vld [vmem:[%s16438_s3 + $0x8] sm:$0xff]   ;;  %11213 = vmatprep.subr.bf16.mxu1 %v11437_v42 }
0x157f   : > { %8800 = vadd.xlane.f32.xlu1 %v8799_v41  ;;  %v15581_v19 = vsub.f32 %v15501_v2, %v8815_v46  ;;  %v15584_v18 = vadd.f32 %v15488_v14, %v8742_v47  ;;  %v8817_v20 = vmul.f32 0.03125, %v8777_v26  ;;  %v8808_v10 = vsel %vm1227_vm0, %v15573_v28, 0.0  ;;  %11214 = vmatpush3.bf16.msra.mxu1 %v11437_v42 }
0x1580   : > { %v15576_v61 = vadd.f32 %v15488_v14, %v8740_v29  ;;  %v8774_v32 = vpop.xlane.xlu0 %8773  ;;  %v8802_v52 = vsel %vm1227_vm0, %v15565_v4, 0.0  ;;  %v8846_v1 = vmul.f32 %v15570_v3, %v15570_v3  ;;  %11215 = vmatprep.subr.bf16.mxu1 %v11438_v16 }
0x1581   : > { %v8816_v45 = vmul.f32 0.03125, %v8774_v32  ;;  %8803 = vadd.xlane.f32.xlu0 %v8802_v52  ;;  %16437 = vst [vmem:[#allocation69_spill] sm:$0xff] %v15584_v18  ;;  %v15596_v14 = vsub.f32 %v15498_v5, %v8817_v20  ;;  %v8811_v59 = vsel %vm1227_vm0, %v15584_v18, 0.0  ;;  %v8847_v62 = vmul.f32 %v15581_v19, %v15581_v19 }
0x1582   : > { %16436 = vst [vmem:[#allocation50_spill] sm:$0xff] %v15576_v61  ;;  %v8805_v49 = vsel %vm1227_vm0, %v15576_v61, 0.0  ;;  %v8862_v11 = vsel %vm1227_vm0, %v8846_v1, 0.0 }
0x1583   : > { %8806 = vadd.xlane.f32.xlu1 %v8805_v49  ;;  %v15589_v34 = vsub.f32 %v15506_v6, %v8816_v45  ;;  %v8865_v9 = vsel %vm1227_vm0, %v8847_v62, 0.0  ;;  %v8849_v60 = vmul.f32 %v15596_v14, %v15596_v14  ;;  %11216 = vmatpush3.bf16.msra.mxu1 %v11438_v16 }
0x1584   : > { %v8780_v43 = vpop.xlane.xlu0 %8779  ;;  %v8783_v56 = vpop.xlane.xlu1 %8782 }
0x1585   : > { %v8818_v0 = vmul.f32 0.03125, %v8780_v43  ;;  %8809 = vadd.xlane.f32.xlu0 %v8808_v10  ;;  %v8819_v13 = vmul.f32 0.03125, %v8783_v56  ;;  %v8848_v35 = vmul.f32 %v15589_v34, %v15589_v34  ;;  %v8871_v38 = vsel %vm1227_vm0, %v8849_v60, 0.0 }
0x1587   : > { %8812 = vadd.xlane.f32.xlu1 %v8811_v59  ;;  %v15603_v58 = vsub.f32 %v15517_v24, %v8818_v0  ;;  %v15609_v53 = vsub.f32 %v15522_v27, %v8819_v13  ;;  %v8868_v21 = vsel %vm1227_vm0, %v8848_v35, 0.0 }
0x1588   : > { %v8786_v55 = vpop.xlane.xlu0 %8785  ;;  %v8789_v44 = vpop.xlane.xlu1 %8788 }
0x1589   : > { %v8820_v36 = vmul.f32 0.03125, %v8786_v55  ;;  %8863 = vadd.xlane.f32.xlu0 %v8862_v11  ;;  %v8821_v12 = vmul.f32 0.03125, %v8789_v44  ;;  %v8850_v54 = vmul.f32 %v15603_v58, %v15603_v58  ;;  %v8851_v25 = vmul.f32 %v15609_v53, %v15609_v53 }
0x158b   : > { %8866 = vadd.xlane.f32.xlu1 %v8865_v9  ;;  %v15615_v15 = vsub.f32 %v15525_v33, %v8820_v36  ;;  %v15621_v39 = vsub.f32 %v15528_v50, %v8821_v12  ;;  %v8874_v51 = vsel %vm1227_vm0, %v8850_v54, 0.0  ;;  %v8877_v8 = vsel %vm1227_vm0, %v8851_v25, 0.0 }
0x158d   : > { %8869 = vadd.xlane.f32.xlu0 %v8868_v21  ;;  %v8852_v17 = vmul.f32 %v15615_v15, %v15615_v15  ;;  %v8853_v7 = vmul.f32 %v15621_v39, %v15621_v39 }
0x158f   : > { %8872 = vadd.xlane.f32.xlu1 %v8871_v38  ;;  %v8880_v30 = vsel %vm1227_vm0, %v8852_v17, 0.0  ;;  %v8883_v31 = vsel %vm1227_vm0, %v8853_v7, 0.0 }
0x1591   : > { %8875 = vadd.xlane.f32.xlu0 %v8874_v51 }
0x1593   : > { %8878 = vadd.xlane.f32.xlu1 %v8877_v8 }
0x1595   : > { %8881 = vadd.xlane.f32.xlu0 %v8880_v30 }
0x1597   : > { %8884 = vadd.xlane.f32.xlu1 %v8883_v31 }
0x1606   : > { %v8792_v41 = vpop.xlane.xlu0 %8791 }
0x1607   : > { %v8822_v46 = vmul.f32 0.03125, %v8792_v41 }
0x1608   : > { %v8795_v48 = vpop.xlane.xlu1 %8794 }
0x1609   : > { %v15637_v47 = vsub.f32 %v15542_v63, %v8822_v46  ;;  %v8823_v37 = vmul.f32 0.03125, %v8795_v48 }
0x160a   : > { %v8798_v29 = vpop.xlane.xlu0 %8797 }
0x160b   : > { %v15640_v26 = vsub.f32 %v15549_v40, %v8823_v37  ;;  %v8824_v32 = vmul.f32 0.03125, %v8798_v29  ;;  %v8854_v52 = vmul.f32 %v15637_v47, %v15637_v47 }
0x160c   : > { %v8801_v45 = vpop.xlane.xlu1 %8800 }
0x160d   : > { %v15645_v20 = vsub.f32 %v15546_v57, %v8824_v32  ;;  %v8825_v49 = vmul.f32 0.03125, %v8801_v45  ;;  %v8886_v43 = vsel %vm1227_vm0, %v8854_v52, 0.0  ;;  %v8855_v56 = vmul.f32 %v15640_v26, %v15640_v26 }
0x160e   : > { %8887 = vadd.xlane.f32.xlu0 %v8886_v43  ;;  %v8804_v10 = vpop.xlane.xlu0 %8803 }
0x160f   : > { %v15651_v1 = vsub.f32 %v15554_v22, %v8825_v49  ;;  %v8826_v0 = vmul.f32 0.03125, %v8804_v10  ;;  %v8889_v13 = vsel %vm1227_vm0, %v8855_v56, 0.0  ;;  %v8856_v59 = vmul.f32 %v15645_v20, %v15645_v20 }
0x1610   : > { %8890 = vadd.xlane.f32.xlu1 %v8889_v13  ;;  %v8807_v62 = vpop.xlane.xlu1 %8806 }
0x1611   : > { %v15657_v55 = vsub.f32 %v15565_v4, %v8826_v0  ;;  %v8827_v44 = vmul.f32 0.03125, %v8807_v62  ;;  %v8892_v11 = vsel %vm1227_vm0, %v8856_v59, 0.0  ;;  %v8857_v35 = vmul.f32 %v15651_v1, %v15651_v1 }
0x1612   : > { %8893 = vadd.xlane.f32.xlu0 %v8892_v11  ;;  %v8810_v36 = vpop.xlane.xlu0 %8809 }
0x1613   : > { %v15663_v12 = vsub.f32 %v15576_v61, %v8827_v44  ;;  %v8828_v9 = vmul.f32 0.03125, %v8810_v36  ;;  %v8895_v60 = vsel %vm1227_vm0, %v8857_v35, 0.0  ;;  %v8858_v21 = vmul.f32 %v15657_v55, %v15657_v55 }
0x1614   : > { %8896 = vadd.xlane.f32.xlu1 %v8895_v60  ;;  %v8813_v54 = vpop.xlane.xlu1 %8812 }
0x1615   : > { %v15669_v38 = vsub.f32 %v15573_v28, %v8828_v9  ;;  %v8829_v25 = vmul.f32 0.03125, %v8813_v54  ;;  %v8898_v51 = vsel %vm1227_vm0, %v8858_v21, 0.0  ;;  %v8859_v17 = vmul.f32 %v15663_v12, %v15663_v12  ;;  %v15685_v21 = vld [vmem:[%s16439_s5] ss:$0 sm:$0xff]  ;;  %s12287_s5 = smov 32  }
0x1616   : > { %8899 = vadd.xlane.f32.xlu0 %v8898_v51  ;;  %v8864_v8 = vpop.xlane.xlu0 %8863 }
0x1617   : > { %v15675_v7 = vsub.f32 %v15584_v18, %v8829_v25  ;;  %v8910_v30 = vmul.f32 0.03125, %v8864_v8  ;;  %v8901_v31 = vsel %vm1227_vm0, %v8859_v17, 0.0  ;;  %v8860_v42 = vmul.f32 %v15669_v38, %v15669_v38 }
0x1618   : > { %8902 = vadd.xlane.f32.xlu1 %v8901_v31  ;;  %v8867_v16 = vpop.xlane.xlu1 %8866 }
0x1619   : > { %v8926_v41 = vadd.f32 1e-06, %v8910_v30  ;;  %v8911_v46 = vmul.f32 0.03125, %v8867_v16  ;;  %v8904_v48 = vsel %vm1227_vm0, %v8860_v42, 0.0  ;;  %v8861_v37 = vmul.f32 %v15675_v7, %v15675_v7  ;;  %v15691_v16 = vld [vmem:[%s16440_s1] ss:$0 sm:$0xff] }
0x161a   : > { %8905 = vadd.xlane.f32.xlu0 %v8904_v48  ;;  %v8870_v29 = vpop.xlane.xlu0 %8869  ;;  %s12288_s1 = smov 64  }
0x161b   : > { %12067 = vrsqrt.f32 %v8926_v41  ;;  %v8927_v32 = vadd.f32 1e-06, %v8911_v46  ;;  %v8912_v52 = vmul.f32 0.03125, %v8870_v29  ;;  %v8907_v45 = vsel %vm1227_vm0, %v8861_v37, 0.0 }
0x161c   : > { %8908 = vadd.xlane.f32.xlu1 %v8907_v45  ;;  %v8873_v49 = vpop.xlane.xlu1 %8872 }
0x161d   : > { %12069 = vrsqrt.f32 %v8927_v32  ;;  %v8928_v43 = vadd.f32 1e-06, %v8912_v52  ;;  %v8913_v56 = vmul.f32 0.03125, %v8873_v49  ;;  %v16441_v52 = vld [vmem:[#allocation45_spill] sm:$0xff] }
0x161e   : > { %v8876_v10 = vpop.xlane.xlu0 %8875 }
0x161f   : > { %12071 = vrsqrt.f32 %v8928_v43  ;;  %v8929_v0 = vadd.f32 1e-06, %v8913_v56  ;;  %v8914_v13 = vmul.f32 0.03125, %v8876_v10 }
0x1620   : > { %v8879_v59 = vpop.xlane.xlu1 %8878 }
0x1621   : > { %12073 = vrsqrt.f32 %v8929_v0  ;;  %v8930_v62 = vadd.f32 1e-06, %v8914_v13  ;;  %v8915_v44 = vmul.f32 0.03125, %v8879_v59  ;;  %v16442_v0 = vld [vmem:[#allocation44_spill] sm:$0xff] }
0x1622   : > { %v8882_v11 = vpop.xlane.xlu0 %8881 }
0x1623   : > { %12075 = vrsqrt.f32 %v8930_v62  ;;  %v8931_v35 = vadd.f32 1e-06, %v8915_v44  ;;  %v8916_v36 = vmul.f32 0.03125, %v8882_v11  ;;  %v16443_v62 = vld [vmem:[#allocation53_spill] sm:$0xff] }
0x1624   : > { %v8885_v9 = vpop.xlane.xlu1 %8884 }
0x1625   : > { %v12068_v60 = vpop.eup %12067  ;;  %12077 = vrsqrt.f32 %v8931_v35  ;;  %v8932_v54 = vadd.f32 1e-06, %v8916_v36  ;;  %v8917_v25 = vmul.f32 0.03125, %v8885_v9  ;;  %v16444_v9 = vld [vmem:[#allocation46_spill] sm:$0xff] }
0x1626   : > { %v8958_v51 = vmul.f32 %v12068_v60, %v15570_v3 }
0x1627   : > { %v12070_v17 = vpop.eup %12069  ;;  %12079 = vrsqrt.f32 %v8932_v54  ;;  %v8933_v8 = vadd.f32 1e-06, %v8917_v25  ;;  %v16445_v25 = vld [vmem:[#allocation38_spill] sm:$0xff] }
0x1628   : > { %v8959_v30 = vmul.f32 %v12070_v17, %v15581_v19  ;;  %v8981_v31 = vmul.f32 %v15685_v21, %v8958_v51  ;;  %v16446_v17 = vld [vmem:[#allocation42_spill] sm:$0xff] }
0x1629   : > { %v12072_v42 = vpop.eup %12071  ;;  %12081 = vrsqrt.f32 %v8933_v8 }
0x162a   : > { %v8960_v41 = vmul.f32 %v12072_v42, %v15589_v34  ;;  %v8982_v46 = vmul.f32 %v15685_v21, %v8959_v30  ;;  %v9004_v29 = vadd.f32 %v15691_v16, %v8981_v31 }
0x162b   : > { %v12074_v48 = vpop.eup %12073 }
0x162c   : > { %v8983_v37 = vmul.f32 %v15685_v21, %v8960_v41  ;;  %v8961_v3 = vmul.f32 %v12074_v48, %v15596_v14  ;;  %v9005_v32 = vadd.f32 %v15691_v16, %v8982_v46 }
0x162d   : > { %v12076_v19 = vpop.eup %12075  ;;  %2660 = vrot.lane.b32.xlu1 %v16441_v52, %s12287_s5 }
0x162e   : > { %v8984_v45 = vmul.f32 %v15685_v21, %v8961_v3  ;;  %v8962_v49 = vmul.f32 %v12076_v19, %v15603_v58  ;;  %v9020_v34 = vpack.c.bf16 %v9005_v32, %v9004_v29  ;;  %v9006_v56 = vadd.f32 %v15691_v16, %v8983_v37 }
0x162f   : > { %v12078_v43 = vpop.eup %12077 }
0x1630   : > { %v8963_v10 = vmul.f32 %v12078_v43, %v15609_v53  ;;  %2658 = vrot.lane.b32.xlu0 %v16442_v0, %s12287_s5  ;;  %11217 = vmatprep.mubr.msk.bf16.mxu1 %vm1227_vm0, %v9020_v34  ;;  %v9007_v14 = vadd.f32 %v15691_v16, %v8984_v45  ;;  %v8985_v13 = vmul.f32 %v15685_v21, %v8962_v49  ;;  %s12289_s5 = smov 96  }
0x1631   : > { %v12080_v59 = vpop.eup %12079  ;;  %2666 = vrot.lane.b32.xlu1 %v16443_v62, %s12288_s1 }
0x1632   : > { %v8964_v58 = vmul.f32 %v12080_v59, %v15615_v15  ;;  %v9021_v44 = vpack.c.bf16 %v9007_v14, %v9006_v56  ;;  %v8986_v11 = vmul.f32 %v15685_v21, %v8963_v10  ;;  %v9008_v53 = vadd.f32 %v15691_v16, %v8985_v13 }
0x1633   : > { %v12082_v35 = vpop.eup %12081 }
0x1634   : > { %v8965_v36 = vmul.f32 %v12082_v35, %v15621_v39  ;;  %2668 = vrot.lane.b32.xlu0 %v16444_v9, %s12288_s1  ;;  %11218 = vmatmul.mubr.msk.bf16.vlgmr.msra.gmra.mrb[248].mxu1 %vm1227_vm0, %v9021_v44  ;;  %v9009_v60 = vadd.f32 %v15691_v16, %v8986_v11  ;;  %v8987_v54 = vmul.f32 %v15685_v21, %v8964_v58  ;;  %s10217_s1 = sshll.u32 %s12548_s18, 4 }
0x1635   : > { %2674 = vrot.lane.b32.xlu1 %v16445_v25, %s12289_s5  ;;  %s1193_s18 = scalar_lea.vmem %s12496_s20, %s10217_s1  ;;  %s16240_s1 = sand.u32 1, %s12233_s23  }
0x1636   : > { %v9022_v15 = vpack.c.bf16 %v9009_v60, %v9008_v53  ;;  %v8988_v51 = vmul.f32 %v15685_v21, %v8965_v36  ;;  %v9010_v39 = vadd.f32 %v15691_v16, %v8987_v54 }
0x1638   : > { %2676 = vrot.lane.b32.xlu0 %v16446_v17, %s12289_s5  ;;  %11221 = vmatprep.mubr.msk.bf16.mxu1 %vm1227_vm0, %v9022_v15  ;;  %v9011_v8 = vadd.f32 %v15691_v16, %v8988_v51  ;;  %s16449_s5 = sld [smem:[#allocation30_spill]] }
0x163a   : > { %v9023_v30 = vpack.c.bf16 %v9011_v8, %v9010_v39 }
0x163c   : > { %11222 = vmatmul.mubr.msk.bf16.gmra.mrb[252].mxu1 %vm1227_vm0, %v9023_v30 }
0x169b   : > { %v8888_v31 = vpop.xlane.xlu0 %8887 }
0x169c   : > { %v8918_v42 = vmul.f32 0.03125, %v8888_v31 }
0x169d   : > { %v8891_v41 = vpop.xlane.xlu1 %8890 }
0x169e   : > { %v8934_v46 = vadd.f32 1e-06, %v8918_v42  ;;  %v8919_v48 = vmul.f32 0.03125, %v8891_v41 }
0x169f   : > { %v8894_v37 = vpop.xlane.xlu0 %8893 }
0x16a0   : > { %12083 = vrsqrt.f32 %v8934_v46  ;;  %v8935_v3 = vadd.f32 1e-06, %v8919_v48  ;;  %v8920_v29 = vmul.f32 0.03125, %v8894_v37  ;;  %v16448_v46 = vld [vmem:[#allocation39_spill] sm:$0xff] }
0x16a1   : > { %v8897_v32 = vpop.xlane.xlu1 %8896 }
0x16a2   : > { %12085 = vrsqrt.f32 %v8935_v3  ;;  %v8936_v19 = vadd.f32 1e-06, %v8920_v29  ;;  %v8921_v52 = vmul.f32 0.03125, %v8897_v32 }
0x16a3   : > { %v8900_v45 = vpop.xlane.xlu0 %8899 }
0x16a4   : > { %12087 = vrsqrt.f32 %v8936_v19  ;;  %v8937_v49 = vadd.f32 1e-06, %v8921_v52  ;;  %v8922_v34 = vmul.f32 0.03125, %v8900_v45 }
0x16a5   : > { %v8903_v43 = vpop.xlane.xlu1 %8902 }
0x16a6   : > { %12089 = vrsqrt.f32 %v8937_v49  ;;  %v8938_v56 = vadd.f32 1e-06, %v8922_v34  ;;  %v8923_v10 = vmul.f32 0.03125, %v8903_v43 }
0x16a7   : > { %v8906_v0 = vpop.xlane.xlu0 %8905 }
0x16a8   : > { %12091 = vrsqrt.f32 %v8938_v56  ;;  %v8939_v14 = vadd.f32 1e-06, %v8923_v10  ;;  %v8924_v13 = vmul.f32 0.03125, %v8906_v0 }
0x16a9   : > { %v8909_v59 = vpop.xlane.xlu1 %8908 }
0x16aa   : > { %v12084_v62 = vpop.eup %12083  ;;  %12093 = vrsqrt.f32 %v8939_v14  ;;  %v8940_v58 = vadd.f32 1e-06, %v8924_v13  ;;  %v8925_v44 = vmul.f32 0.03125, %v8909_v59 }
0x16ab   : > { %v8966_v11 = vmul.f32 %v12084_v62, %v15637_v47  ;;  %v2659_v35 = vpop.permute.xlu0 %2658  ;;  %v16447_v47 = vld [vmem:[#allocation41_spill] sm:$0xff] }
0x16ac   : > { %v12086_v53 = vpop.eup %12085  ;;  %12095 = vrsqrt.f32 %v8940_v58  ;;  %v8941_v36 = vadd.f32 1e-06, %v8925_v44  ;;  %v2680_v48 = vsel %vm1227_vm0, %v16448_v46, %v2659_v35 }
0x16ad   : > { %v8967_v9 = vmul.f32 %v12086_v53, %v15640_v26  ;;  %v2661_v60 = vpop.permute.xlu1 %2660  ;;  %v8989_v54 = vmul.f32 %v15685_v21, %v8966_v11  ;;  %v11439_v53 = vld [vmem:[%s12481_s27] sm:$0xff]  }
0x16ae   : > { %v12088_v25 = vpop.eup %12087  ;;  %12097 = vrsqrt.f32 %v8941_v36  ;;  %v2681_v8 = vsel %vm1227_vm0, %v16447_v47, %v2661_v60  ;;  %11233 = vmatprep.subr.bf16.mxu0 %v11439_v53  ;;  %v11440_v60 = vld [vmem:[%s12481_s27 + $0x8] sm:$0xff]  }
0x16af   : > { %v8968_v15 = vmul.f32 %v12088_v25, %v15645_v20  ;;  %v2669_v51 = vpop.permute.xlu0 %2668  ;;  %v8990_v17 = vmul.f32 %v15685_v21, %v8967_v9  ;;  %v9012_v42 = vadd.f32 %v15691_v16, %v8989_v54  ;;  %11234 = vmatpush3.bf16.msra.mxu0 %v11439_v53  ;;  %v11442_v54 = vld [vmem:[%s12481_s27 + $0x18] sm:$0xff]   ;;  %v11444_v25 = vld [vmem:[%s12481_s27 + $0x28] sm:$0xff]  }
0x16b0   : > { %v12090_v39 = vpop.eup %12089  ;;  %v2684_v29 = vsel %vm2682_vm3, %v2681_v8, %v2669_v51  ;;  %11235 = vmatprep.subr.bf16.mxu0 %v11440_v60  ;;  %v11446_v51 = vld [vmem:[%s12481_s27 + $0x38] sm:$0xff]  }
0x16b1   : > { %v8991_v26 = vmul.f32 %v15685_v21, %v8968_v15  ;;  %v8969_v30 = vmul.f32 %v12090_v39, %v15651_v1  ;;  %v2667_v31 = vpop.permute.xlu1 %2666  ;;  %v9013_v41 = vadd.f32 %v15691_v16, %v8990_v17  ;;  %v11445_v15 = vld [vmem:[%s12481_s27 + $0x30] sm:$0xff]   ;;  %v15771_v17 = vld [vmem:[%s16449_s5] ss:$0 sm:$0xff] }
0x16b2   : > { %v12092_v20 = vpop.eup %12091  ;;  %v2683_v1 = vsel %vm2682_vm3, %v2680_v48, %v2667_v31 }
0x16b3   : > { %v8992_v37 = vmul.f32 %v15685_v21, %v8969_v30  ;;  %v8970_v3 = vmul.f32 %v12092_v20, %v15657_v55  ;;  %v2677_v32 = vpop.permute.xlu0 %2676  ;;  %v9024_v19 = vpack.c.bf16 %v9013_v41, %v9012_v42  ;;  %v9014_v49 = vadd.f32 %v15691_v16, %v8991_v26  ;;  %11236 = vmatpush3.bf16.msra.mxu0 %v11440_v60 }
0x16b4   : > { %v12094_v52 = vpop.eup %12093  ;;  %v2687_v45 = vsel %vm2685_vm4, %v2684_v29, %v2677_v32 }
0x16b5   : > { %v9015_v34 = vadd.f32 %v15691_v16, %v8992_v37  ;;  %v8971_v43 = vmul.f32 %v12094_v52, %v15663_v12  ;;  %2689 = vst [vmem:[%s1193_s18 + $0x8] sm:$0xff] %v2687_v45  ;;  %11225 = vmatprep.mubr.msk.bf16.mxu1 %vm1227_vm0, %v9024_v19  ;;  %v2675_v56 = vpop.permute.xlu1 %2674  ;;  %v8993_v55 = vmul.f32 %v15685_v21, %v8970_v3 }
0x16b6   : > { %v12096_v10 = vpop.eup %12095  ;;  %v2686_v0 = vsel %vm2685_vm4, %v2683_v1, %v2675_v56 }
0x16b7   : > { %v9025_v14 = vpack.c.bf16 %v9015_v34, %v9014_v49  ;;  %v8972_v13 = vmul.f32 %v12096_v10, %v15669_v38  ;;  %2688 = vst [vmem:[%s1193_s18] sm:$0xff] %v2686_v0  ;;  %v8994_v59 = vmul.f32 %v15685_v21, %v8971_v43  ;;  %v9016_v44 = vadd.f32 %v15691_v16, %v8993_v55  ;;  %s9964_s18 = sshll.u32 %s16240_s1, 7 }
0x16b8   : > { %v12098_v62 = vpop.eup %12097  ;;  %s16061_s5 = scalar_lea.vmem [#allocation2], %s9964_s18  ;;  %s10218_s18 = sshll.u32 %s12519_s0, 11 }
0x16b9   : > { %v8995_v12 = vmul.f32 %v15685_v21, %v8972_v13  ;;  %v8973_v58 = vmul.f32 %v12098_v62, %v15675_v7  ;;  %11226 = vmatmul.mubr.msk.bf16.gmra.mrb[0].mxu1 %vm1227_vm0, %v9025_v14  ;;  %v9017_v11 = vadd.f32 %v15691_v16, %v8994_v59  ;;  %s9831_s1 = sshll.u32 %s16061_s5, 4  ;;  %s16105_s3 = scalar_lea.hbm %s12491_s12, %s10218_s18  ;;  %s16107_s1 = int_to_ptr.vmem [resolvable:$true] %s9831_s1 }
0x16ba   : > { %s16453_s0 = sand.u32 1, %s12233_s23   ;;  %s12179_s6 = scalar_lea.vmem %s16107_s1, 2048 }
0x16bb   : > { %v8996_v35 = vmul.f32 %v15685_v21, %v8973_v58  ;;  %v9026_v38 = vpack.c.bf16 %v9017_v11, %v9016_v44  ;;  %v9018_v36 = vadd.f32 %v15691_v16, %v8995_v12  ;;  %v11441_v21 = vld [vmem:[%s12481_s27 + $0x10] sm:$0xff]   ;;  %p12180_p11 = scmp.ne.s32.totalorder %s16107_s1, %s12179_s6  ;;  %s12290_s18 = smov [#allocation2]  }
0x16bc   : > { %11237 = vmatprep.subr.bf16.mxu0 %v11441_v21  ;;  %s12183_s7 = sshll.u32 %s12290_s18, 4  ;;  %s12184_s7 = int_to_ptr.vmem [resolvable:$false] %s12183_s7 }
0x16bd   : > { %v9019_v9 = vadd.f32 %v15691_v16, %v8996_v35  ;;  %11229 = vmatprep.mubr.msk.bf16.mxu1 %vm1227_vm0, %v9026_v38  ;;  %11238 = vmatpush3.bf16.msra.mxu0 %v11441_v21  ;;  %v11443_v16 = vld [vmem:[%s12481_s27 + $0x20] sm:$0xff]   ;;  %p12181_p12 = pnand %p12180_p11, %p12536_p5  ;;  %s12185_s8 = scalar_lea.vmem %s12184_s7, 4096 }
0x16be   : > { %11239 = vmatprep.subr.bf16.mxu0 %v11442_v54  ;;  %p12186_p0 = scmp.lt.s32.totalorder %s16107_s1, %s12184_s7  ;;  %p12187_p1 = scmp.lt.s32.totalorder %s12185_s8, %s12179_s6 }
0x16bf   : > { %v9027_v7 = vpack.c.bf16 %v9019_v9, %v9018_v36  ;;  %p12182_p13 = pneg %p12181_p12 }
0x16c0   : > { %p12188_p2 = por %p12187_p1, %p12186_p0 }
0x16c1   : > { %11230 = vmatmul.mubr.msk.bf16.gmra.mrb[4].mxu1 %vm1227_vm0, %v9027_v7  ;;  %11240 = vmatpush3.bf16.msra.mxu0 %v11442_v54 }
0x16c2   : > { %11241 = vmatprep.subr.bf16.mxu0 %v11443_v16  ;;  %p12189_p3 = pnand %p12188_p2, %p12182_p13 }
0x16c5   : > { %11242 = vmatpush3.bf16.msra.mxu0 %v11443_v16 }
0x16c6   : > { %11243 = vmatprep.subr.bf16.mxu0 %v11444_v25 }
0x16c9   : > { %11244 = vmatpush3.bf16.msra.mxu0 %v11444_v25 }
0x16ca   : > { %11245 = vmatprep.subr.bf16.mxu0 %v11445_v15 }
0x16cd   : > { %11246 = vmatpush3.bf16.msra.mxu0 %v11445_v15 }
0x16ce   : > { %11247 = vmatprep.subr.bf16.mxu0 %v11446_v51 }
0x16d1   : > { %11248 = vmatpush3.bf16.msra.mxu0 %v11446_v51 }
0x1707   : > { %v11219_v39 = vpop.f32.mrb[248].mxu1 }
0x1708   : > { %v9118_v47 = vadd.f32 %v11219_v39, %v15771_v17  ;;  %v9109_v8 = vpop.f32.mrb[249].mxu1 }
0x1709   : > { %v15775_v26 = vadd.f32 %v15771_v17, %v9109_v8  ;;  %v11220_v30 = vpop.f32.mrb[250].mxu1 }
0x170a   : > { %v15777_v31 = vmul.f32 0.70710677, %v9118_v47  ;;  %v15780_v42 = vadd.f32 %v11220_v30, %v15771_v17  ;;  %v9112_v41 = vpop.f32.mrb[251].mxu1  ;;  %v15825_v25 = vmul.f32 0.5, %v9118_v47 }
0x170b   : > { %v15783_v20 = vmul.f32 0.70710677, %v15775_v26  ;;  %v15786_v46 = vadd.f32 %v15771_v17, %v9112_v41 }
0x170c   : > { %v9206_v48 = vand.u32 2147483647, %v15777_v31  ;;  %v15790_v37 = vmul.f32 0.70710677, %v15780_v42  ;;  %vm9526_vm5 = vcmp.ge.f32.partialorder %v15777_v31, 0.0 }
0x170d   : > { %v9204_v3 = vand.u32 2147483647, %v15783_v20  ;;  %v15794_v29 = vmul.f32 0.70710677, %v15786_v46  ;;  %vm9524_vm6 = vcmp.ge.f32.partialorder %v15783_v20, 0.0 }
0x170e   : > { %v9222_v32 = vmul.f32 0.3275911, %v9206_v48  ;;  %v9207_v19 = vand.u32 2147483647, %v15790_v37  ;;  %v9430_v11 = vsub.f32 0.0, %v9206_v48  ;;  %vm9527_vm7 = vcmp.ge.f32.partialorder %v15790_v37, 0.0 }
0x170f   : > { %v9220_v52 = vmul.f32 0.3275911, %v9204_v3  ;;  %v9205_v1 = vand.u32 2147483647, %v15794_v29  ;;  %v11223_v34 = vpop.f32.mrb[252].mxu1  ;;  %v9428_v53 = vsub.f32 0.0, %v9204_v3 }
0x1710   : > { %v9238_v45 = vadd.f32 1.0, %v9222_v32  ;;  %v9223_v49 = vmul.f32 0.3275911, %v9207_v19  ;;  %v9125_v55 = vpop.f32.mrb[253].mxu1  ;;  %v15799_v59 = vadd.f32 %v11223_v34, %v15771_v17  ;;  %v9431_v9 = vsub.f32 0.0, %v9207_v19 }
0x1711   : > { %v9236_v43 = vadd.f32 1.0, %v9220_v52  ;;  %v9221_v56 = vmul.f32 0.3275911, %v9205_v1  ;;  %v11224_v0 = vpop.f32.mrb[254].mxu1  ;;  %v15802_v62 = vadd.f32 %v15771_v17, %v9125_v55  ;;  %v9429_v7 = vsub.f32 0.0, %v9205_v1 }
0x1712   : > { %12099 = vrcp.f32 %v9238_v45  ;;  %v9239_v10 = vadd.f32 1.0, %v9223_v49  ;;  %v9128_v14 = vpop.f32.mrb[255].mxu1  ;;  %v15805_v12 = vadd.f32 %v11224_v0, %v15771_v17  ;;  %v15808_v58 = vmul.f32 0.70710677, %v15799_v59 }
0x1713   : > { %12101 = vrcp.f32 %v9236_v43  ;;  %v9237_v13 = vadd.f32 1.0, %v9221_v56  ;;  %v15811_v44 = vadd.f32 %v15771_v17, %v9128_v14  ;;  %v15814_v35 = vmul.f32 0.70710677, %v15802_v62 }
0x1714   : > { %12103 = vrcp.f32 %v9239_v10  ;;  %v15817_v38 = vmul.f32 0.70710677, %v15805_v12  ;;  %v9210_v36 = vand.u32 2147483647, %v15808_v58  ;;  %v9446_v15 = vmul.f32 %v9430_v11, %v9206_v48 }
0x1715   : > { %12105 = vrcp.f32 %v9237_v13  ;;  %v9208_v60 = vand.u32 2147483647, %v15814_v35  ;;  %v15823_v16 = vmul.f32 0.70710677, %v15811_v44  ;;  %v9444_v30 = vmul.f32 %v9428_v53, %v9204_v3 }
0x1716   : > { %v9211_v21 = vand.u32 2147483647, %v15817_v38  ;;  %v9226_v54 = vmul.f32 0.3275911, %v9210_v36  ;;  %v9434_v32 = vsub.f32 0.0, %v9210_v36  ;;  %v9447_v34 = vmul.f32 %v9431_v9, %v9207_v19 }
0x1717   : > { %v9224_v51 = vmul.f32 0.3275911, %v9208_v60  ;;  %v9209_v52 = vand.u32 2147483647, %v15823_v16  ;;  %v9445_v43 = vmul.f32 %v9429_v7, %v9205_v1  ;;  %v9432_v48 = vsub.f32 0.0, %v9208_v60 }
0x1718   : > { %v9227_v39 = vmul.f32 0.3275911, %v9211_v21  ;;  %v9242_v41 = vadd.f32 1.0, %v9226_v54  ;;  %v9464_v0 = vmul.f32 1.442695, %v9446_v15  ;;  %v9450_v53 = vmul.f32 %v9434_v32, %v9210_v36 }
0x1719   : > { %v9240_v56 = vadd.f32 1.0, %v9224_v51  ;;  %v9225_v3 = vmul.f32 0.3275911, %v9209_v52  ;;  %v9460_v11 = vmul.f32 1.442695, %v9444_v30  ;;  %v9435_v54 = vsub.f32 0.0, %v9211_v21 }
0x171a   : > { %12107 = vrcp.f32 %v9242_v41  ;;  %v9243_v55 = vadd.f32 1.0, %v9227_v39  ;;  %v9466_v1 = vmul.f32 1.442695, %v9447_v34  ;;  %v9462_v39 = vmul.f32 1.442695, %v9445_v43 }
0x171b   : > { %12109 = vrcp.f32 %v9240_v56  ;;  %v9241_v9 = vadd.f32 1.0, %v9225_v3  ;;  %v9448_v15 = vmul.f32 %v9432_v48, %v9208_v60  ;;  %v9472_v32 = vmul.f32 1.442695, %v9450_v53 }
0x171c   : > { %v15827_v8 = vpop.eup %12099  ;;  %12111 = vrcp.f32 %v9243_v55  ;;  %v9451_v56 = vmul.f32 %v9435_v54, %v9211_v21  ;;  %v9433_v43 = vsub.f32 0.0, %v9209_v52  ;;  %v15849_v21 = vmul.f32 0.5, %v15775_v26 }
0x171d   : > { %v15830_v45 = vpop.eup %12101  ;;  %v9286_v49 = vmul.f32 1.0614054, %v15827_v8  ;;  %12113 = vpow2.f32 %v9464_v0  ;;  %v9468_v60 = vmul.f32 1.442695, %v9448_v15  ;;  %vm9525_vm8 = vcmp.ge.f32.partialorder %v15794_v29, 0.0 }
0x171e   : > { %v9284_v47 = vmul.f32 1.0614054, %v15830_v45  ;;  %v15834_v14 = vpop.eup %12103  ;;  %12115 = vrcp.f32 %v9241_v9  ;;  %v9449_v15 = vmul.f32 %v9433_v43, %v9209_v52  ;;  %vm9530_vm9 = vcmp.ge.f32.partialorder %v15808_v58, 0.0 }
0x171f   : > { %v9302_v10 = vadd.f32 -1.4531521, %v9286_v49  ;;  %v9287_v19 = vmul.f32 1.0614054, %v15834_v14  ;;  %v15838_v7 = vpop.eup %12105  ;;  %12117 = vpow2.f32 %v9460_v11  ;;  %v9474_v11 = vmul.f32 1.442695, %v9451_v56 }
0x1720   : > { %v9300_v13 = vadd.f32 -1.4531521, %v9284_v47  ;;  %v9285_v30 = vmul.f32 1.0614054, %v15838_v7  ;;  %12119 = vpow2.f32 %v9466_v1  ;;  %v15863_v56 = vmul.f32 0.5, %v15780_v42 }
0x1721   : > { %v9318_v61 = vmul.f32 %v15827_v8, %v9302_v10  ;;  %v9303_v49 = vadd.f32 -1.4531521, %v9287_v19  ;;  %12121 = vpow2.f32 %v9462_v39  ;;  %vm9531_vm10 = vcmp.ge.f32.partialorder %v15817_v38, 0.0 }
0x1722   : > { %v9316_v51 = vmul.f32 %v15830_v45, %v9300_v13  ;;  %v9301_v10 = vadd.f32 -1.4531521, %v9285_v30  ;;  %12123 = vpow2.f32 %v9472_v32  ;;  %vm9528_vm11 = vcmp.ge.f32.partialorder %v15814_v35, 0.0 }
0x1723   : > { %v9334_v41 = vadd.f32 1.4214138, %v9318_v61  ;;  %v9319_v34 = vmul.f32 %v15834_v14, %v9303_v49  ;;  %12125 = vpow2.f32 %v9468_v60  ;;  %vm9529_vm12 = vcmp.ge.f32.partialorder %v15823_v16, 0.0 }
0x1724   : > { %v9332_v36 = vadd.f32 1.4214138, %v9316_v51  ;;  %v9317_v55 = vmul.f32 %v15838_v7, %v9301_v10  ;;  %v15846_v0 = vpop.eup %12107  ;;  %12127 = vpow2.f32 %v9474_v11  ;;  %v9176_v38 = vmul.f32 0.5, %v15802_v62 }
0x1725   : > { %v9350_v47 = vmul.f32 %v15827_v8, %v9334_v41  ;;  %v9335_v48 = vadd.f32 1.4214138, %v9319_v34  ;;  %v15851_v53 = vpop.eup %12109  ;;  %v9290_v9 = vmul.f32 1.0614054, %v15846_v0 }
0x1726   : > { %v9348_v3 = vmul.f32 %v15830_v45, %v9332_v36  ;;  %v9333_v1 = vadd.f32 1.4214138, %v9317_v55  ;;  %v9288_v39 = vmul.f32 1.0614054, %v15851_v53  ;;  %v15859_v36 = vpop.eup %12111  ;;  %v9470_v55 = vmul.f32 1.442695, %v9449_v15 }
0x1727   : > { %v9366_v61 = vadd.f32 -0.28449672, %v9350_v47  ;;  %v9351_v19 = vmul.f32 %v15834_v14, %v9335_v48  ;;  %v9306_v30 = vadd.f32 -1.4531521, %v9290_v9  ;;  %v12114_v34 = vpop.eup %12113  ;;  %v9291_v42 = vmul.f32 1.0614054, %v15859_v36 }
0x1728   : > { %v9364_v13 = vadd.f32 -0.28449672, %v9348_v3  ;;  %v9349_v49 = vmul.f32 %v15838_v7, %v9333_v1  ;;  %v9304_v47 = vadd.f32 -1.4531521, %v9288_v39  ;;  %v15869_v43 = vpop.eup %12115  ;;  %12129 = vpow2.f32 %v9470_v55 }
0x1729   : > { %v9382_v54 = vmul.f32 %v15827_v8, %v9366_v61  ;;  %v9367_v41 = vadd.f32 -0.28449672, %v9351_v19  ;;  %v9322_v60 = vmul.f32 %v15846_v0, %v9306_v30  ;;  %v9307_v39 = vadd.f32 -1.4531521, %v9291_v42 }
0x172a   : > { %v9380_v51 = vmul.f32 %v15830_v45, %v9364_v13  ;;  %v9365_v3 = vadd.f32 -0.28449672, %v9349_v49  ;;  %v9320_v48 = vmul.f32 %v15851_v53, %v9304_v47  ;;  %v12118_v13 = vpop.eup %12117 }
0x172b   : > { %v9398_v26 = vadd.f32 0.2548296, %v9382_v54  ;;  %v9383_v52 = vmul.f32 %v15834_v14, %v9367_v41  ;;  %v9338_v19 = vadd.f32 1.4214138, %v9322_v60  ;;  %v12120_v1 = vpop.eup %12119 }
0x172c   : > { %v9396_v32 = vadd.f32 0.2548296, %v9380_v51  ;;  %v9336_v51 = vadd.f32 1.4214138, %v9320_v48 }
0x172d   : > { %v9414_v10 = vmul.f32 %v15827_v8, %v9398_v26  ;;  %v9399_v54 = vadd.f32 0.2548296, %v9383_v52  ;;  %v9381_v8 = vmul.f32 %v15838_v7, %v9365_v3  ;;  %v9289_v26 = vmul.f32 1.0614054, %v15869_v43 }
0x172e   : > { %v9412_v61 = vmul.f32 %v15830_v45, %v9396_v32  ;;  %v12122_v45 = vpop.eup %12121  ;;  %v9354_v15 = vmul.f32 %v15846_v0, %v9338_v19 }
0x172f   : > { %v9494_v11 = vmul.f32 %v12114_v34, %v9414_v10  ;;  %v9415_v49 = vmul.f32 %v15834_v14, %v9399_v54  ;;  %v9397_v30 = vadd.f32 0.2548296, %v9381_v8  ;;  %v12124_v32 = vpop.eup %12123  ;;  %v9352_v34 = vmul.f32 %v15851_v53, %v9336_v51 }
0x1730   : > { %v9492_v9 = vmul.f32 %v12118_v13, %v9412_v61  ;;  %v9323_v10 = vmul.f32 %v15859_v36, %v9307_v39  ;;  %v9305_v52 = vadd.f32 -1.4531521, %v9289_v26  ;;  %v9370_v48 = vadd.f32 -0.28449672, %v9354_v15  ;;  %v12126_v42 = vpop.eup %12125 }
0x1731   : > { %v9510_v41 = vsub.f32 1.0, %v9494_v11  ;;  %v9495_v60 = vmul.f32 %v12120_v1, %v9415_v49  ;;  %v9413_v61 = vmul.f32 %v15838_v7, %v9397_v30  ;;  %v9368_v11 = vadd.f32 -0.28449672, %v9352_v34  ;;  %v12128_v51 = vpop.eup %12127 }
0x1732   : > { %v9508_v47 = vsub.f32 1.0, %v9492_v9  ;;  %v9339_v18 = vadd.f32 1.4214138, %v9323_v10  ;;  %v9321_v14 = vmul.f32 %v15869_v43, %v9305_v52  ;;  %v9386_v9 = vmul.f32 %v15846_v0, %v9370_v48 }
0x1733   : > { %v9542_v3 = vsub.f32 0.0, %v9510_v41  ;;  %v9511_v8 = vsub.f32 1.0, %v9495_v60  ;;  %v9493_v19 = vmul.f32 %v12122_v45, %v9413_v61  ;;  %v9384_v7 = vmul.f32 %v15851_v53, %v9368_v11 }
0x1734   : > { %v9540_v13 = vsub.f32 0.0, %v9508_v47  ;;  %v9355_v39 = vmul.f32 %v15859_v36, %v9339_v18  ;;  %v9402_v15 = vadd.f32 0.2548296, %v9386_v9  ;;  %v9337_v34 = vadd.f32 1.4214138, %v9321_v14 }
0x1735   : > { %v9558_v54 = vsel %vm9526_vm5, %v9510_v41, %v9542_v3  ;;  %v9543_v49 = vsub.f32 0.0, %v9511_v8  ;;  %v9509_v30 = vsub.f32 1.0, %v9493_v19  ;;  %v9400_v31 = vadd.f32 0.2548296, %v9384_v7 }
0x1736   : > { %v9556_v1 = vsel %vm9524_vm6, %v9508_v47, %v9540_v13  ;;  %v9574_v26 = vadd.f32 1.0, %v9558_v54  ;;  %v9371_v41 = vadd.f32 -0.28449672, %v9355_v39  ;;  %v9418_v47 = vmul.f32 %v15846_v0, %v9402_v15 }
0x1737   : > { %v9572_v45 = vadd.f32 1.0, %v9556_v1  ;;  %v9559_v10 = vsel %vm9527_vm7, %v9511_v8, %v9543_v49  ;;  %v9541_v20 = vsub.f32 0.0, %v9509_v30  ;;  %v9416_v3 = vmul.f32 %v15851_v53, %v9400_v31 }
0x1738   : > { %v9575_v52 = vadd.f32 1.0, %v9559_v10  ;;  %v9387_v18 = vmul.f32 %v15859_v36, %v9371_v41  ;;  %v9353_v60 = vmul.f32 %v15869_v43, %v9337_v34  ;;  %v9590_v61 = vmul.f32 %v9574_v26, %v15825_v25 }
0x1739   : > { %v9173_v48 = vmul.f32 0.5, %v15786_v46  ;;  %v9557_v55 = vsel %vm9525_vm8, %v9509_v30, %v9541_v20  ;;  %v9498_v13 = vmul.f32 %v12124_v32, %v9418_v47  ;;  %v9496_v14 = vmul.f32 %v12126_v42, %v9416_v3  ;;  %v12130_v32 = vpop.eup %12129 }
0x173a   : > { %v9591_v37 = vmul.f32 %v9575_v52, %v15863_v56  ;;  %v9573_v11 = vadd.f32 1.0, %v9557_v55  ;;  %v9403_v0 = vadd.f32 0.2548296, %v9387_v18  ;;  %v9369_v8 = vadd.f32 -0.28449672, %v9353_v60 }
0x173b   : > { %v9514_v54 = vsub.f32 1.0, %v9498_v13  ;;  %v9588_v53 = vmul.f32 %v9572_v45, %v15849_v21  ;;  %v9512_v7 = vsub.f32 1.0, %v9496_v14  ;;  %v9178_v31 = vmul.f32 0.5, %v15799_v59 }
0x173c   : > { %v9605_v19 = vpack.c.bf16 %v9591_v37, %v9590_v61  ;;  %v9589_v9 = vmul.f32 %v9573_v11, %v9173_v48  ;;  %v9419_v1 = vmul.f32 %v15859_v36, %v9403_v0  ;;  %v9385_v46 = vmul.f32 %v15869_v43, %v9369_v8 }
0x173d   : > { %v9546_v25 = vsub.f32 0.0, %v9514_v54  ;;  %v9544_v49 = vsub.f32 0.0, %v9512_v7  ;;  %v9179_v41 = vmul.f32 0.5, %v15805_v12  ;;  %v9177_v59 = vmul.f32 0.5, %v15811_v44 }
0x173e   : > { %v9499_v29 = vmul.f32 %v12128_v51, %v9419_v1  ;;  %v9604_v39 = vpack.c.bf16 %v9589_v9, %v9588_v53  ;;  %v9401_v56 = vadd.f32 0.2548296, %v9385_v46 }
0x173f   : > { %v9562_v42 = vsel %vm9530_vm9, %v9514_v54, %v9546_v25  ;;  %v9560_v58 = vsel %vm9528_vm11, %v9512_v7, %v9544_v49 }
0x1740   : > { %v9515_v26 = vsub.f32 1.0, %v9499_v29  ;;  %11249 = vmatprep.mubr.bf16.mxu0 %v9604_v39  ;;  %v9417_v21 = vmul.f32 %v15869_v43, %v9401_v56  ;;  %v9578_v15 = vadd.f32 1.0, %v9562_v42  ;;  %v9576_v43 = vadd.f32 1.0, %v9560_v58 }
0x1741   : > { %11250 = vmatmul.mubr.bf16.vlgmr.msra.gmra.mrb[200].mxu0 %v9605_v19 }
0x1742   : > { %v9547_v30 = vsub.f32 0.0, %v9515_v26  ;;  %v9497_v36 = vmul.f32 %v12130_v32, %v9417_v21  ;;  %v9594_v10 = vmul.f32 %v9578_v15, %v9178_v31  ;;  %v9592_v35 = vmul.f32 %v9576_v43, %v9176_v38 }
0x1744   : > { %v9563_v51 = vsel %vm9531_vm10, %v9515_v26, %v9547_v30  ;;  %v9513_v45 = vsub.f32 1.0, %v9497_v36 }
0x1745   : > { %v9579_v34 = vadd.f32 1.0, %v9563_v51 }
0x1746   : > { %v9545_v47 = vsub.f32 0.0, %v9513_v45 }
0x1747   : > { %v9595_v20 = vmul.f32 %v9579_v34, %v9179_v41 }
0x1748   : > { %v9561_v52 = vsel %vm9529_vm12, %v9513_v45, %v9545_v47 }
0x1749   : > { %v9607_v3 = vpack.c.bf16 %v9595_v20, %v9594_v10  ;;  %v9577_v18 = vadd.f32 1.0, %v9561_v52 }
0x174b   : > { %v9593_v60 = vmul.f32 %v9577_v18, %v9177_v59 }
0x174d   : > { %v9606_v61 = vpack.c.bf16 %v9593_v60, %v9592_v35 }
0x174f   : > { %11253 = vmatprep.mubr.bf16.mxu0 %v9606_v61 }
0x1750   : > { %11254 = vmatmul.mubr.bf16.gmra.mrb[204].mxu0 %v9607_v3 }
0x178c   : > { %v11227_v12 = vpop.f32.mrb[0].mxu1 }
0x178d   : > { %v9150_v48 = vadd.f32 %v11227_v12, %v15771_v17  ;;  %v9141_v55 = vpop.f32.mrb[1].mxu1 }
0x178e   : > { %v15916_v13 = vadd.f32 %v15771_v17, %v9141_v55  ;;  %v11228_v16 = vpop.f32.mrb[2].mxu1 }
0x178f   : > { %v15918_v37 = vmul.f32 0.70710677, %v9150_v48  ;;  %v15921_v62 = vadd.f32 %v11228_v16, %v15771_v17  ;;  %v9144_v44 = vpop.f32.mrb[3].mxu1  ;;  %v15966_v38 = vmul.f32 0.5, %v9150_v48 }
0x1790   : > { %v15924_v11 = vmul.f32 0.70710677, %v15916_v13  ;;  %v15927_v14 = vadd.f32 %v15771_v17, %v9144_v44 }
0x1791   : > { %v9214_v0 = vand.u32 2147483647, %v15918_v37  ;;  %v15931_v54 = vmul.f32 0.70710677, %v15921_v62  ;;  %vm9534_vm13 = vcmp.ge.f32.partialorder %v15918_v37, 0.0 }
0x1792   : > { %v9212_v8 = vand.u32 2147483647, %v15924_v11  ;;  %v15935_v53 = vmul.f32 0.70710677, %v15927_v14  ;;  %vm9532_vm14 = vcmp.ge.f32.partialorder %v15924_v11, 0.0 }
0x1793   : > { %v9230_v19 = vmul.f32 0.3275911, %v9214_v0  ;;  %v9215_v9 = vand.u32 2147483647, %v15931_v54  ;;  %v9438_v58 = vsub.f32 0.0, %v9214_v0  ;;  %vm9535_vm15 = vcmp.ge.f32.partialorder %v15931_v54, 0.0 }
0x1794   : > { %v9228_v1 = vmul.f32 0.3275911, %v9212_v8  ;;  %v9213_v25 = vand.u32 2147483647, %v15935_v53  ;;  %v11231_v29 = vpop.f32.mrb[4].mxu1  ;;  %v9436_v45 = vsub.f32 0.0, %v9212_v8 }
0x1795   : > { %v9246_v7 = vadd.f32 1.0, %v9230_v19  ;;  %v9231_v46 = vmul.f32 0.3275911, %v9215_v9  ;;  %v9157_v32 = vpop.f32.mrb[5].mxu1  ;;  %v15940_v30 = vadd.f32 %v11231_v29, %v15771_v17  ;;  %v9439_v20 = vsub.f32 0.0, %v9215_v9 }
0x1796   : > { %v9244_v39 = vadd.f32 1.0, %v9228_v1  ;;  %v9229_v56 = vmul.f32 0.3275911, %v9213_v25  ;;  %v11232_v26 = vpop.f32.mrb[6].mxu1  ;;  %v15943_v15 = vadd.f32 %v15771_v17, %v9157_v32  ;;  %v9437_v47 = vsub.f32 0.0, %v9213_v25 }
0x1797   : > { %12131 = vrcp.f32 %v9246_v7  ;;  %v9247_v42 = vadd.f32 1.0, %v9231_v46  ;;  %v9160_v49 = vpop.f32.mrb[7].mxu1  ;;  %v15946_v36 = vadd.f32 %v11232_v26, %v15771_v17  ;;  %v15949_v31 = vmul.f32 0.70710677, %v15940_v30 }
0x1798   : > { %12133 = vrcp.f32 %v9244_v39  ;;  %v9245_v21 = vadd.f32 1.0, %v9229_v56  ;;  %v15952_v51 = vadd.f32 %v15771_v17, %v9160_v49  ;;  %v15955_v41 = vmul.f32 0.70710677, %v15943_v15 }
0x1799   : > { %12135 = vrcp.f32 %v9247_v42  ;;  %v15958_v34 = vmul.f32 0.70710677, %v15946_v36  ;;  %v9218_v10 = vand.u32 2147483647, %v15949_v31  ;;  %v9454_v59 = vmul.f32 %v9438_v58, %v9214_v0 }
0x179a   : > { %12137 = vrcp.f32 %v9245_v21  ;;  %v9216_v43 = vand.u32 2147483647, %v15955_v41  ;;  %v15964_v17 = vmul.f32 0.70710677, %v15952_v51  ;;  %v9452_v61 = vmul.f32 %v9436_v45, %v9212_v8 }
0x179b   : > { %v9219_v52 = vand.u32 2147483647, %v15958_v34  ;;  %v9234_v3 = vmul.f32 0.3275911, %v9218_v10  ;;  %v9442_v55 = vsub.f32 0.0, %v9218_v10  ;;  %v9455_v1 = vmul.f32 %v9439_v20, %v9215_v9 }
0x179c   : > { %v9232_v18 = vmul.f32 0.3275911, %v9216_v43  ;;  %v9217_v16 = vand.u32 2147483647, %v15964_v17  ;;  %v9453_v7 = vmul.f32 %v9437_v47, %v9213_v25  ;;  %v9440_v0 = vsub.f32 0.0, %v9216_v43 }
0x179d   : > { %v9235_v35 = vmul.f32 0.3275911, %v9219_v52  ;;  %v9250_v12 = vadd.f32 1.0, %v9234_v3  ;;  %v9480_v56 = vmul.f32 1.442695, %v9454_v59  ;;  %v9458_v49 = vmul.f32 %v9442_v55, %v9218_v10 }
0x179e   : > { %v9248_v46 = vadd.f32 1.0, %v9232_v18  ;;  %v9233_v8 = vmul.f32 0.3275911, %v9217_v16  ;;  %v9476_v26 = vmul.f32 1.442695, %v9452_v61  ;;  %v9443_v21 = vsub.f32 0.0, %v9219_v52 }
0x179f   : > { %12139 = vrcp.f32 %v9250_v12  ;;  %v9251_v29 = vadd.f32 1.0, %v9235_v35  ;;  %v9482_v25 = vmul.f32 1.442695, %v9455_v1  ;;  %v9478_v3 = vmul.f32 1.442695, %v9453_v7 }
0x17a0   : > { %12141 = vrcp.f32 %v9248_v46  ;;  %v9249_v45 = vadd.f32 1.0, %v9233_v8  ;;  %v9456_v59 = vmul.f32 %v9440_v0, %v9216_v43  ;;  %v9488_v12 = vmul.f32 1.442695, %v9458_v49 }
0x17a1   : > { %v15968_v60 = vpop.eup %12131  ;;  %12143 = vrcp.f32 %v9251_v29  ;;  %v9459_v55 = vmul.f32 %v9443_v21, %v9219_v52  ;;  %v9441_v7 = vsub.f32 0.0, %v9217_v16  ;;  %v15990_v52 = vmul.f32 0.5, %v15916_v13 }
0x17a2   : > { %v15971_v44 = vpop.eup %12133  ;;  %v9294_v19 = vmul.f32 1.0614054, %v15968_v60  ;;  %12145 = vpow2.f32 %v9480_v56  ;;  %v9484_v43 = vmul.f32 1.442695, %v9456_v59  ;;  %vm9533_vm1 = vcmp.ge.f32.partialorder %v15935_v53, 0.0 }
0x17a3   : > { %v9292_v48 = vmul.f32 1.0614054, %v15971_v44  ;;  %v15975_v32 = vpop.eup %12135  ;;  %12147 = vrcp.f32 %v9249_v45  ;;  %vm9538_vm2 = vcmp.ge.f32.partialorder %v15949_v31, 0.0  ;;  %vm9539_vm3 = vcmp.ge.f32.partialorder %v15958_v34, 0.0 }
0x17a4   : > { %v9310_v39 = vadd.f32 -1.4531521, %v9294_v19  ;;  %v9295_v9 = vmul.f32 1.0614054, %v15975_v32  ;;  %v15979_v20 = vpop.eup %12137  ;;  %12149 = vpow2.f32 %v9476_v26  ;;  %vm9536_vm4 = vcmp.ge.f32.partialorder %v15955_v41, 0.0 }
0x17a5   : > { %v9308_v42 = vadd.f32 -1.4531521, %v9292_v48  ;;  %v9293_v61 = vmul.f32 1.0614054, %v15979_v20  ;;  %12151 = vpow2.f32 %v9482_v25  ;;  %vm9537_vm5 = vcmp.ge.f32.partialorder %v15964_v17, 0.0 }
0x17a6   : > { %v9326_v58 = vmul.f32 %v15968_v60, %v9310_v39  ;;  %v9311_v35 = vadd.f32 -1.4531521, %v9295_v9  ;;  %12153 = vpow2.f32 %v9478_v3  ;;  %v9185_v41 = vmul.f32 0.5, %v15952_v51 }
0x17a7   : > { %v9324_v47 = vmul.f32 %v15971_v44, %v9308_v42  ;;  %v9309_v46 = vadd.f32 -1.4531521, %v9293_v61  ;;  %12155 = vpow2.f32 %v9488_v12  ;;  %v9490_v42 = vmul.f32 1.442695, %v9459_v55 }
0x17a8   : > { %v9342_v18 = vadd.f32 1.4214138, %v9326_v58  ;;  %v9327_v1 = vmul.f32 %v15975_v32, %v9311_v35  ;;  %12157 = vpow2.f32 %v9484_v43 }
0x17a9   : > { %v9340_v10 = vadd.f32 1.4214138, %v9324_v47  ;;  %v9325_v39 = vmul.f32 %v15979_v20, %v9309_v46  ;;  %v15987_v56 = vpop.eup %12139  ;;  %v9457_v47 = vmul.f32 %v9441_v7, %v9217_v16  ;;  %12159 = vpow2.f32 %v9490_v42 }
0x17aa   : > { %v9358_v19 = vmul.f32 %v15968_v60, %v9342_v18  ;;  %v9343_v29 = vadd.f32 1.4214138, %v9327_v1  ;;  %v15992_v26 = vpop.eup %12141  ;;  %v9298_v9 = vmul.f32 1.0614054, %v15987_v56 }
0x17ab   : > { %v9356_v48 = vmul.f32 %v15971_v44, %v9340_v10  ;;  %v9341_v58 = vadd.f32 1.4214138, %v9325_v39  ;;  %v9296_v45 = vmul.f32 1.0614054, %v15992_v26  ;;  %v16000_v35 = vpop.eup %12143  ;;  %v16004_v10 = vmul.f32 0.5, %v15921_v62 }
0x17ac   : > { %v9374_v0 = vadd.f32 -0.28449672, %v9358_v19  ;;  %v9359_v21 = vmul.f32 %v15975_v32, %v9343_v29  ;;  %v9314_v18 = vadd.f32 -1.4531521, %v9298_v9  ;;  %v12146_v55 = vpop.eup %12145  ;;  %v9299_v62 = vmul.f32 1.0614054, %v16000_v35 }
0x17ad   : > { %v9372_v8 = vadd.f32 -0.28449672, %v9356_v48  ;;  %v9357_v59 = vmul.f32 %v15979_v20, %v9341_v58  ;;  %v9312_v12 = vadd.f32 -1.4531521, %v9296_v45  ;;  %v16010_v48 = vpop.eup %12147 }
0x17ae   : > { %v9390_v49 = vmul.f32 %v15968_v60, %v9374_v0  ;;  %v9375_v3 = vadd.f32 -0.28449672, %v9359_v21  ;;  %v9330_v46 = vmul.f32 %v15987_v56, %v9314_v18  ;;  %v9486_v0 = vmul.f32 1.442695, %v9457_v47  ;;  %v12150_v29 = vpop.eup %12149 }
0x17af   : > { %v9388_v25 = vmul.f32 %v15971_v44, %v9372_v8  ;;  %v9373_v1 = vadd.f32 -0.28449672, %v9357_v59  ;;  %v9328_v7 = vmul.f32 %v15992_v26, %v9312_v12  ;;  %v9315_v9 = vadd.f32 -1.4531521, %v9299_v62 }
0x17b0   : > { %v9406_v13 = vadd.f32 0.2548296, %v9390_v49  ;;  %v9391_v16 = vmul.f32 %v15975_v32, %v9375_v3  ;;  %v9346_v42 = vadd.f32 1.4214138, %v9330_v46  ;;  %v12152_v49 = vpop.eup %12151  ;;  %12161 = vpow2.f32 %v9486_v0 }
0x17b1   : > { %v9404_v61 = vadd.f32 0.2548296, %v9388_v25  ;;  %v9344_v58 = vadd.f32 1.4214138, %v9328_v7  ;;  %v9297_v25 = vmul.f32 1.0614054, %v16010_v48  ;;  %v9331_v12 = vmul.f32 %v16000_v35, %v9315_v9 }
0x17b2   : > { %v9422_v19 = vmul.f32 %v15968_v60, %v9406_v13  ;;  %v9407_v8 = vadd.f32 0.2548296, %v9391_v16  ;;  %v9389_v60 = vmul.f32 %v15979_v20, %v9373_v1  ;;  %v9362_v47 = vmul.f32 %v15987_v56, %v9346_v42 }
0x17b3   : > { %v9420_v43 = vmul.f32 %v15971_v44, %v9404_v61  ;;  %v12154_v44 = vpop.eup %12153  ;;  %v9360_v61 = vmul.f32 %v15992_v26, %v9344_v58 }
0x17b4   : > { %v9502_v39 = vmul.f32 %v12146_v55, %v9422_v19  ;;  %v9423_v13 = vmul.f32 %v15975_v32, %v9407_v8  ;;  %v9405_v3 = vadd.f32 0.2548296, %v9389_v60  ;;  %v12156_v59 = vpop.eup %12155  ;;  %v9313_v55 = vadd.f32 -1.4531521, %v9297_v25 }
0x17b5   : > { %v9500_v21 = vmul.f32 %v12150_v29, %v9420_v43  ;;  %v9378_v46 = vadd.f32 -0.28449672, %v9362_v47  ;;  %v12158_v43 = vpop.eup %12157  ;;  %v9376_v62 = vadd.f32 -0.28449672, %v9360_v61  ;;  %v9347_v29 = vadd.f32 1.4214138, %v9331_v12 }
0x17b6   : > { %v9518_v45 = vsub.f32 1.0, %v9502_v39  ;;  %v9503_v16 = vmul.f32 %v12152_v49, %v9423_v13  ;;  %v9421_v1 = vmul.f32 %v15979_v20, %v9405_v3  ;;  %v9329_v32 = vmul.f32 %v16010_v48, %v9313_v55 }
0x17b7   : > { %v9516_v18 = vsub.f32 1.0, %v9500_v21  ;;  %v9394_v42 = vmul.f32 %v15987_v56, %v9378_v46  ;;  %v12160_v21 = vpop.eup %12159  ;;  %v9392_v20 = vmul.f32 %v15992_v26, %v9376_v62  ;;  %v9363_v58 = vmul.f32 %v16000_v35, %v9347_v29 }
0x17b8   : > { %v9550_v19 = vsub.f32 0.0, %v9518_v45  ;;  %v9519_v8 = vsub.f32 1.0, %v9503_v16  ;;  %v9501_v60 = vmul.f32 %v12154_v44, %v9421_v1  ;;  %v9345_v47 = vadd.f32 1.4214138, %v9329_v32 }
0x17b9   : > { %v9548_v7 = vsub.f32 0.0, %v9516_v18  ;;  %v9410_v3 = vadd.f32 0.2548296, %v9394_v42  ;;  %v9408_v37 = vadd.f32 0.2548296, %v9392_v20  ;;  %v9181_v46 = vmul.f32 0.5, %v15927_v14 }
0x17ba   : > { %v9566_v39 = vsel %vm9534_vm13, %v9518_v45, %v9550_v19  ;;  %v9551_v25 = vsub.f32 0.0, %v9519_v8  ;;  %v9517_v13 = vsub.f32 1.0, %v9501_v60  ;;  %v9379_v45 = vadd.f32 -0.28449672, %v9363_v58 }
0x17bb   : > { %v9564_v49 = vsel %vm9532_vm14, %v9516_v18, %v9548_v7  ;;  %v9582_v9 = vadd.f32 1.0, %v9566_v39  ;;  %v9426_v18 = vmul.f32 %v15987_v56, %v9410_v3  ;;  %v9424_v55 = vmul.f32 %v15992_v26, %v9408_v37 }
0x17bc   : > { %v9580_v44 = vadd.f32 1.0, %v9564_v49  ;;  %v9567_v61 = vsel %vm9535_vm15, %v9519_v8, %v9551_v25  ;;  %v9549_v11 = vsub.f32 0.0, %v9517_v13  ;;  %v9395_v19 = vmul.f32 %v16000_v35, %v9379_v45 }
0x17bd   : > { %v9583_v12 = vadd.f32 1.0, %v9567_v61  ;;  %v9361_v16 = vmul.f32 %v16010_v48, %v9345_v47  ;;  %v9598_v1 = vmul.f32 %v9582_v9, %v15966_v38  ;;  %v9506_v7 = vmul.f32 %v12156_v59, %v9426_v18  ;;  %v12162_v59 = vpop.eup %12161 }
0x17be   : > { %v9565_v0 = vsel %vm9533_vm1, %v9517_v13, %v9549_v11  ;;  %v9504_v29 = vmul.f32 %v12158_v43, %v9424_v55  ;;  %v9411_v56 = vadd.f32 0.2548296, %v9395_v19  ;;  %v9596_v26 = vmul.f32 %v9580_v44, %v15990_v52 }
0x17bf   : > { %v9599_v54 = vmul.f32 %v9583_v12, %v16004_v10  ;;  %v9581_v62 = vadd.f32 1.0, %v9565_v0  ;;  %v9522_v32 = vsub.f32 1.0, %v9506_v7  ;;  %v9377_v39 = vadd.f32 -0.28449672, %v9361_v16  ;;  %v10202_v16 = vld [vmem:[%s16450_s4] ss:$0 sm:$0xff] }
0x17c0   : > { %v9427_v60 = vmul.f32 %v16000_v35, %v9411_v56  ;;  %v9520_v49 = vsub.f32 1.0, %v9504_v29  ;;  %v9186_v3 = vmul.f32 0.5, %v15940_v30  ;;  %v9187_v37 = vmul.f32 0.5, %v15946_v36  ;;  %s16118_s4 = scalar_lea.sflag [#allocation3], %s16453_s0 }
0x17c1   : > { %v9597_v8 = vmul.f32 %v9581_v62, %v9181_v46  ;;  %v9609_v42 = vpack.c.bf16 %v9599_v54, %v9598_v1  ;;  %v9554_v38 = vsub.f32 0.0, %v9522_v32  ;;  %v9393_v14 = vmul.f32 %v16010_v48, %v9377_v39 }
0x17c2   : > { %v9507_v53 = vmul.f32 %v12160_v21, %v9427_v60  ;;  %v9552_v9 = vsub.f32 0.0, %v9520_v49  ;;  %v9184_v30 = vmul.f32 0.5, %v15943_v15 }
0x17c3   : > { %v9608_v20 = vpack.c.bf16 %v9597_v8, %v9596_v26  ;;  %v9409_v10 = vadd.f32 0.2548296, %v9393_v14  ;;  %v9570_v43 = vsel %vm9538_vm2, %v9522_v32, %v9554_v38 }
0x17c4   : > { %v9523_v58 = vsub.f32 1.0, %v9507_v53  ;;  %v9586_v35 = vadd.f32 1.0, %v9570_v43  ;;  %v9568_v31 = vsel %vm9536_vm4, %v9520_v49, %v9552_v9 }
0x17c5   : > { %11257 = vmatprep.mubr.bf16.mxu0 %v9608_v20  ;;  %v9425_v52 = vmul.f32 %v16010_v48, %v9409_v10  ;;  %v9584_v11 = vadd.f32 1.0, %v9568_v31 }
0x17c6   : > { %11258 = vmatmul.mubr.bf16.gmra.mrb[208].mxu0 %v9609_v42  ;;  %v9555_v25 = vsub.f32 0.0, %v9523_v58  ;;  %v9602_v44 = vmul.f32 %v9586_v35, %v9186_v3 }
0x17c7   : > { %v9505_v13 = vmul.f32 %v12162_v59, %v9425_v52  ;;  %v9600_v55 = vmul.f32 %v9584_v11, %v9184_v30 }
0x17c8   : > { %v9571_v21 = vsel %vm9539_vm3, %v9523_v58, %v9555_v25 }
0x17c9   : > { %v9587_v45 = vadd.f32 1.0, %v9571_v21  ;;  %v9521_v47 = vsub.f32 1.0, %v9505_v13 }
0x17cb   : > { %v9603_v48 = vmul.f32 %v9587_v45, %v9187_v37  ;;  %v9553_v61 = vsub.f32 0.0, %v9521_v47  ;;  %v16451_v37 = vld [vmem:[#allocation69_spill] sm:$0xff] }
0x17cd   : > { %v9569_v34 = vsel %vm9537_vm5, %v9521_v47, %v9553_v61  ;;  %v9611_v18 = vpack.c.bf16 %v9603_v48, %v9602_v44 }
0x17ce   : > { %v9585_v12 = vadd.f32 1.0, %v9569_v34 }
0x17d0   : > { %v9601_v36 = vmul.f32 %v9585_v12, %v9185_v41 }
0x17d2   : > { %v9610_v19 = vpack.c.bf16 %v9601_v36, %v9600_v55 }
0x17d4   : > { %11261 = vmatprep.mubr.bf16.mxu0 %v9610_v19 }
0x17d5   : > { %11262 = vmatmul.mubr.bf16.gmra.mrb[212].mxu0 %v9611_v18 }
0x1814   : > { %v11251_v1 = vpop.f32.mrb[200].mxu0 }
0x1815   : > { %v9726_v46 = vadd.f32 %v11251_v1, %v10202_v16  ;;  %v9717_v0 = vpop.f32.mrb[201].mxu0 }
0x1816   : > { %v9718_v17 = vadd.f32 %v10202_v16, %v9717_v0  ;;  %v11252_v7 = vpop.f32.mrb[202].mxu0 }
0x1817   : > { %v9782_v54 = vadd.f32 %v9726_v46, %v15506_v6  ;;  %v9729_v15 = vadd.f32 %v11252_v7, %v10202_v16  ;;  %v9720_v62 = vpop.f32.mrb[203].mxu0 }
0x1818   : > { %v9780_v51 = vadd.f32 %v9718_v17, %v15494_v23  ;;  %v9721_v29 = vadd.f32 %v10202_v16, %v9720_v62 }
0x1819   : > { %9798 = vst.msk [vmem:[%s16061_s5 + $0x10] sm:$0xff] %vm1227_vm0, %v9782_v54  ;;  %v9783_v56 = vadd.f32 %v9729_v15, %v15498_v5 }
0x181a   : > { %9796 = vst.msk [vmem:[%s16061_s5] sm:$0xff] %vm1227_vm0, %v9780_v51  ;;  %v9781_v6 = vadd.f32 %v9721_v29, %v15501_v2 }
0x181b   : > { %9799 = vst.msk [vmem:[%s16061_s5 + $0x18] sm:$0xff] %vm1227_vm0, %v9783_v56 }
0x181c   : > { %9797 = vst.msk [vmem:[%s16061_s5 + $0x8] sm:$0xff] %vm1227_vm0, %v9781_v6 }
0x1823   : > { %v11255_v23 = vpop.f32.mrb[204].mxu0 }
0x1824   : > { %v9742_v32 = vadd.f32 %v11255_v23, %v10202_v16  ;;  %v9733_v39 = vpop.f32.mrb[205].mxu0 }
0x1825   : > { %v9734_v26 = vadd.f32 %v10202_v16, %v9733_v39  ;;  %v11256_v8 = vpop.f32.mrb[206].mxu0 }
0x1826   : > { %v9786_v60 = vadd.f32 %v9742_v32, %v15525_v33  ;;  %v9745_v42 = vadd.f32 %v11256_v8, %v10202_v16  ;;  %v9736_v5 = vpop.f32.mrb[207].mxu0 }
0x1827   : > { %v9784_v38 = vadd.f32 %v9734_v26, %v15517_v24  ;;  %v9737_v49 = vadd.f32 %v10202_v16, %v9736_v5 }
0x1828   : > { %9802 = vst.msk [vmem:[%s16061_s5 + $0x30] sm:$0xff] %vm1227_vm0, %v9786_v60  ;;  %v9787_v2 = vadd.f32 %v9745_v42, %v15528_v50 }
0x1829   : > { %9800 = vst.msk [vmem:[%s16061_s5 + $0x20] sm:$0xff] %vm1227_vm0, %v9784_v38  ;;  %v9785_v14 = vadd.f32 %v9737_v49, %v15522_v27 }
0x182a   : > { %9803 = vst.msk [vmem:[%s16061_s5 + $0x38] sm:$0xff] %vm1227_vm0, %v9787_v2 }
0x182b   : > { %9801 = vst.msk [vmem:[%s16061_s5 + $0x28] sm:$0xff] %vm1227_vm0, %v9785_v14 }
0x1899   : > { %v11259_v33 = vpop.f32.mrb[208].mxu0 }
0x189a   : > { %v9758_v53 = vadd.f32 %v11259_v33, %v10202_v16  ;;  %v9749_v24 = vpop.f32.mrb[209].mxu0 }
0x189b   : > { %v9750_v20 = vadd.f32 %v10202_v16, %v9749_v24  ;;  %v11260_v10 = vpop.f32.mrb[210].mxu0 }
0x189c   : > { %v9790_v59 = vadd.f32 %v9758_v53, %v15546_v57  ;;  %v9761_v50 = vadd.f32 %v11260_v10, %v10202_v16  ;;  %v9752_v43 = vpop.f32.mrb[211].mxu0 }
0x189d   : > { %v9788_v58 = vadd.f32 %v9750_v20, %v15542_v63  ;;  %v9753_v27 = vadd.f32 %v10202_v16, %v9752_v43 }
0x189e   : > { %9806 = vst.msk [vmem:[%s16061_s5 + $0x50] sm:$0xff] %vm1227_vm0, %v9790_v59  ;;  %v9791_v9 = vadd.f32 %v9761_v50, %v15554_v22 }
0x189f   : > { %9804 = vst.msk [vmem:[%s16061_s5 + $0x40] sm:$0xff] %vm1227_vm0, %v9788_v58  ;;  %v9789_v52 = vadd.f32 %v9753_v27, %v15549_v40 }
0x18a0   : > { %9807 = vst.msk [vmem:[%s16061_s5 + $0x58] sm:$0xff] %vm1227_vm0, %v9791_v9 }
0x18a1   : > { %9805 = vst.msk [vmem:[%s16061_s5 + $0x48] sm:$0xff] %vm1227_vm0, %v9789_v52 }
0x18a8   : > { %v11263_v57 = vpop.f32.mrb[212].mxu0 }
0x18a9   : > { %v9774_v25 = vadd.f32 %v11263_v57, %v10202_v16  ;;  %v9765_v35 = vpop.f32.mrb[213].mxu0 }
0x18aa   : > { %v9766_v63 = vadd.f32 %v10202_v16, %v9765_v35  ;;  %v11264_v13 = vpop.f32.mrb[214].mxu0 }
0x18ab   : > { %v9794_v22 = vadd.f32 %v9774_v25, %v15573_v28  ;;  %v9777_v40 = vadd.f32 %v11264_v13, %v10202_v16  ;;  %v9768_v3 = vpop.f32.mrb[215].mxu0  ;;  %v16452_v28 = vld [vmem:[#allocation50_spill] sm:$0xff] }
0x18ac   : > { %v9792_v21 = vadd.f32 %v9766_v63, %v15565_v4  ;;  %v9769_v31 = vadd.f32 %v10202_v16, %v9768_v3 }
0x18ad   : > { %9810 = vst.msk [vmem:[%s16061_s5 + $0x70] sm:$0xff] %vm1227_vm0, %v9794_v22  ;;  %v9795_v45 = vadd.f32 %v9777_v40, %v16451_v37 }
0x18ae   : > { %9808 = vst.msk [vmem:[%s16061_s5 + $0x60] sm:$0xff] %vm1227_vm0, %v9792_v21  ;;  %v9793_v47 = vadd.f32 %v9769_v31, %v16452_v28 }
0x18af   : > { %9811 = vst.msk [vmem:[%s16061_s5 + $0x78] sm:$0xff] %vm1227_vm0, %v9795_v45 }
0x18b0   : > { %9809 = vst.msk [vmem:[%s16061_s5 + $0x68] sm:$0xff] %vm1227_vm0, %v9793_v47 }
0x18b1   : > { %12192 = shalt.err (!%p12189_p3)
}
0x18b2   : > { %s12193_s5 = scalar_lea.hbm %s16105_s3, 2048  ;;  %s12197_s0 = scalar_lea.hbm %s12491_s12, 4096 }
0x18b3   : > { %p12194_p4 = scmp.ne.s32.totalorder %s16105_s3, %s12193_s5  ;;  %p12198_p9 = scmp.lt.u32.totalorder %s16105_s3, %s12491_s12 }
0x18b4   : > { %p12199_p10 = scmp.lt.u32.totalorder %s12197_s0, %s12193_s5  ;;  %p12201_p12 = scmp.lt.u32.totalorder %s12193_s5, %s16105_s3 }
0x18b5   : > { %p12195_p7 = pnand %p12194_p4, %p12536_p5 }
0x18b6   : > { %p12200_p11 = por %p12199_p10, %p12198_p9 }
0x18b7   : > { %p12196_p8 = pneg %p12195_p7 }
0x18b8   : > { %p12202_p0 = por %p12201_p12, %p12200_p11 }
0x18ba   : > { %p12203_p13 = pnand %p12202_p0, %p12196_p8 }
0x18bc   : > { %12206 = shalt.err (!%p12203_p13)
}
0x18bd   : > { %s12291_s8 = smov 128   ;;  %s12292_s6 = smov 8  }
0x18be   : > { %11321 = dma.vmem_to_hbm [thread:$0]  (%p12536_p5), %s16107_s1, 2048, %s16105_s3, %s16118_s4, %s12291_s8, %s12291_s8, %s12292_s6  }
0x18bf PF: > { %p11327_p1 = scmp.ge.s32.totalorder %s12241_s28, 2  ;;  %s9849_s7 = sand.u32 1, %s12229_s22  }
0x18c0   : > { %s9850_s18 = scalar_lea.sflag [#allocation3], %s9849_s7 }
0x18c1   : > { %p11324_p2 = pnand %p11327_p1, %p12540_p6 }
0x18c3   : > { %12224 = dma.done.wait (!%p11324_p2), %s9850_s18, 2048  }
0x18c4   : > { %12226 = vsyncadd (!%p11324_p2), %s9850_s18, 4294965248  ;;  %p90_p3 = scmp.ge.s32.totalorder %s12523_s2, 4   ;;  %s16454_s22 = smov %s12233_s23 }
0x18c5   : > { %s16455_s23 = smov %s12237_s26  ;;  %s16456_s26 = smov %s12534_s11 }
0x18c6   : > { %s16457_s28 = smov %s12523_s2  ;;  %92 = sbr.rel (!%p90_p3) target bundleno = 82 (0x52), region = 258 }
0x18cd   :  { %9863 = vsyncpa [#allocation3], 1 }
0x18ce   :  { %9865 = vsyncpa [#allocation3 + $0x1], 1 }

</bundles_post_ra>
